<compile_context>
chip_gen: v6e
topology: v6e:2x2x1
jax: 0.10.0
libtpu: 0.0.40
codegen_flags: <defaults>
</compile_context>

<pallas_src>
import functools
import math

import jax
import jax.numpy as jnp
import numpy as np
from jax.experimental import pallas as pl
from jax.experimental.pallas import tpu as pltpu

jax.config.update("jax_default_matmul_precision", "highest")

EMBED_DIM = 32
NUM_HEADS = 4
FF_DIM = 64
HEAD_DIM = EMBED_DIM // NUM_HEADS
NUM_LAYERS = 2
LN_EPS = 1e-6

# Packed-parameter layout (per layer):
#   W : (4*D + F, 3*D) = (192, 96)
#     rows   0: 32 -> [Wq_self | Wk_self | Wv_self]
#     rows  32: 64 -> [Wq_cross| Wk_cross| Wv_cross]
#     rows  64: 96 -> [Wo_self (cols 0:32) | Wo_cross (cols 32:64) | pad]
#     rows  96:128 -> FF W1 (cols 0:64)
#     rows 128:192 -> FF W2 (cols 0:32)
#   V : (16, 3*D) = (16, 96)
#     row 0 -> self  [bq|bk|bv] ; row 1 -> cross [bq|bk|bv]
#     row 2 -> self  bo         ; row 3 -> cross bo
#     row 4 -> FF b1            ; row 5 -> FF b2
#     rows 6..11 -> ln1_g, ln1_b, ln2_g, ln2_b, ln3_g, ln3_b
#     rows 12,13 (last layer only) -> final Decoder LN gamma / beta


# ------------------------- in-kernel helpers -------------------------------
def _layernorm(x, gamma, beta):
    # torch custom LayerNorm: gamma * (x - mean) / (std + eps) + beta
    # std is the unbiased std (divide by d-1), eps added to std (not var).
    d = x.shape[-1]
    mean = jnp.mean(x, axis=-1, keepdims=True)
    var = jnp.sum((x - mean) ** 2, axis=-1, keepdims=True) * (1.0 / (d - 1))
    inv = pl.reciprocal(jnp.sqrt(var) + LN_EPS, approx=True)
    return gamma * (x - mean) * inv + beta


def _softmax(x):
    m = jnp.max(x, axis=-1, keepdims=True)
    e = jnp.exp(x - m)
    return e * pl.reciprocal(jnp.sum(e, axis=-1, keepdims=True), approx=True)


def _attention_heads(q, k, v, mask_bias, w_o, b_o):
    # q: (Sq, D), k/v: (Skv, D), mask_bias: (Sq, Skv) additive (0 or -1e9).
    # Output projection is folded into the head loop: sum_h (ctx_h @ Wo[h]).
    scale = 1.0 / math.sqrt(HEAD_DIM)
    acc = None
    for hh in range(NUM_HEADS):  # static head loop, static lane slices
        sl = slice(hh * HEAD_DIM, (hh + 1) * HEAD_DIM)
        scores = jnp.dot(q[:, sl], k[:, sl].T,
                         preferred_element_type=jnp.float32) * scale + mask_bias
        p = _softmax(scores)
        ctx = jnp.dot(p, v[:, sl], preferred_element_type=jnp.float32)
        part = jnp.dot(ctx, w_o[sl, :], preferred_element_type=jnp.float32)
        acc = part if acc is None else acc + part
    return acc + b_o


# ------------------------------- kernel -------------------------------------
def decoder_kernel(x_ref, h_ref, sbias_ref, cbias_ref, w_ref, v_ref, out_ref,
                   *, num_layers):
    D, F = EMBED_DIM, FF_DIM
    x = x_ref[0]          # (S, D)
    hmem = h_ref[0]       # (T, D)
    sbias = sbias_ref[0]  # (S, S) additive mask bias
    cbias = cbias_ref[0]  # (S, T) additive mask bias

    for l in range(num_layers):
        # ---- static slices into the packed parameter blocks ----
        w_sa_qkv = w_ref[l, 0:D, :]                  # (D, 3D)
        w_ca_q   = w_ref[l, D:2 * D, 0:D]            # (D, D)
        w_ca_kv  = w_ref[l, D:2 * D, D:3 * D]        # (D, 2D)
        w_sa_o   = w_ref[l, 2 * D:3 * D, 0:D]        # (D, D)
        w_ca_o   = w_ref[l, 2 * D:3 * D, D:2 * D]    # (D, D)
        w_ff1    = w_ref[l, 3 * D:4 * D, 0:F]        # (D, F)
        w_ff2    = w_ref[l, 4 * D:4 * D + F, 0:D]    # (F, D)

        b_sa_qkv = v_ref[l, 0:1, :]                  # (1, 3D)
        b_ca_q   = v_ref[l, 1:2, 0:D]
        b_ca_kv  = v_ref[l, 1:2, D:3 * D]
        b_sa_o   = v_ref[l, 2:3, 0:D]
        b_ca_o   = v_ref[l, 3:4, 0:D]
        b_ff1    = v_ref[l, 4:5, 0:F]
        b_ff2    = v_ref[l, 5:6, 0:D]
        ln1_g, ln1_b = v_ref[l, 6:7, 0:D], v_ref[l, 7:8, 0:D]
        ln2_g, ln2_b = v_ref[l, 8:9, 0:D], v_ref[l, 9:10, 0:D]
        ln3_g, ln3_b = v_ref[l, 10:11, 0:D], v_ref[l, 11:12, 0:D]

        # ---- sublayer 1: x = x + self_attn(norm(x), norm(x), norm(x)) ----
        xn = _layernorm(x, ln1_g, ln1_b)
        qkv = jnp.dot(xn, w_sa_qkv, preferred_element_type=jnp.float32) + b_sa_qkv
        x = x + _attention_heads(qkv[:, 0:D], qkv[:, D:2 * D], qkv[:, 2 * D:3 * D],
                                 sbias, w_sa_o, b_sa_o)

        # ---- sublayer 2: x = x + cross_attn(norm(x), h, h) ----
        xn = _layernorm(x, ln2_g, ln2_b)
        q = jnp.dot(xn, w_ca_q, preferred_element_type=jnp.float32) + b_ca_q
        kv = jnp.dot(hmem, w_ca_kv, preferred_element_type=jnp.float32) + b_ca_kv
        x = x + _attention_heads(q, kv[:, 0:D], kv[:, D:2 * D],
                                 cbias, w_ca_o, b_ca_o)

        # ---- sublayer 3: x = x + W2 relu(W1 norm(x)) ----
        xn = _layernorm(x, ln3_g, ln3_b)
        hid = jnp.maximum(
            jnp.dot(xn, w_ff1, preferred_element_type=jnp.float32) + b_ff1, 0.0)
        x = x + jnp.dot(hid, w_ff2, preferred_element_type=jnp.float32) + b_ff2

    # ---- final Decoder LayerNorm ----
    fin_g = v_ref[num_layers - 1, 12:13, 0:D]
    fin_b = v_ref[num_layers - 1, 13:14, 0:D]
    x = _layernorm(x, fin_g, fin_b)

    out_ref[0] = x.astype(out_ref.dtype)
    # TODO(synk): nn.Dropout layers are identity (eval mode); no dropout in kernel.


# ------------------------------ wrapper --------------------------------------
def decoder_forward(x, h, self_mask, cross_mask, w_packed, v_packed):
    B, S, D = x.shape
    T = h.shape[1]
    L = w_packed.shape[0]

    # additive mask bias: 0.0 where visible, -1e9 where masked
    smask_bias = (self_mask - 1.0) * 1e9
    cmask_bias = (cross_mask - 1.0) * 1e9

    kernel = functools.partial(decoder_kernel, num_layers=L)

    grid_spec = pltpu.PrefetchScalarGridSpec(
        num_scalar_prefetch=0,
        grid=(B,),
        in_specs=[
            pl.BlockSpec((1, S, D), lambda b: (b, 0, 0)),
            pl.BlockSpec((1, T, D), lambda b: (b, 0, 0)),
            pl.BlockSpec((1, S, S), lambda b: (b, 0, 0)),
            pl.BlockSpec((1, S, T), lambda b: (b, 0, 0)),
            # params: constant block index -> DMA'd once, reused every step
            pl.BlockSpec(tuple(w_packed.shape), lambda b: (0, 0, 0)),
            pl.BlockSpec(tuple(v_packed.shape), lambda b: (0, 0, 0)),
        ],
        out_specs=pl.BlockSpec((1, S, D), lambda b: (b, 0, 0)),
    )

    return pl.pallas_call(
        kernel,
        out_shape=jax.ShapeDtypeStruct((B, S, D), x.dtype),
        grid_spec=grid_spec,
        compiler_params=pltpu.CompilerParams(dimension_semantics=("parallel",)),
    )(x, h, smask_bias, cmask_bias, w_packed, v_packed)


# -------------------------- parameter init -----------------------------------
def make_params(key, num_layers):
    D, F = EMBED_DIM, FF_DIM
    keys = jax.random.split(key, num_layers + 1)
    layers = []
    for l in range(num_layers):
        ks = jax.random.split(keys[l], 26)
        i = 0

        def nxt(shape, scale=0.05):
            nonlocal i
            out = scale * jax.random.normal(ks[i], shape, jnp.float32)
            i += 1
            return out

        p = []
        for _ in range(4):                       # self-attn: wq,bq,wk,bk,wv,bv,wo,bo
            p.append(nxt((D, D)))
            p.append(nxt((D,), 0.02))
        for _ in range(4):                       # cross-attn
            p.append(nxt((D, D)))
            p.append(nxt((D,), 0.02))
        p.append(nxt((D, F)))                    # ff_w1
        p.append(nxt((F,), 0.02))                # ff_b1
        p.append(nxt((F, D)))                    # ff_w2
        p.append(nxt((D,), 0.02))                # ff_b2
        for _ in range(3):                       # ln1/ln2/ln3 gamma, beta
            p.append(jnp.ones((D,), jnp.float32) + nxt((D,), 0.01))
            p.append(nxt((D,), 0.01))
        layers.append(tuple(p))

    kf = jax.random.split(keys[-1], 2)
    final_g = jnp.ones((D,), jnp.float32) + 0.01 * jax.random.normal(kf[0], (D,), jnp.float32)
    final_b = 0.01 * jax.random.normal(kf[1], (D,), jnp.float32)
    return layers, (final_g, final_b)


def pack_params(layer_params, final_ln):
    D, F = EMBED_DIM, FF_DIM
    Ws, Vs = [], []
    for lp in layer_params:
        (sa_wq, sa_bq, sa_wk, sa_bk, sa_wv, sa_bv, sa_wo, sa_bo,
         ca_wq, ca_bq, ca_wk, ca_bk, ca_wv, ca_bv, ca_wo, ca_bo,
         ff_w1, ff_b1, ff_w2, ff_b2,
         ln1_g, ln1_b, ln2_g, ln2_b, ln3_g, ln3_b) = lp

        W = jnp.zeros((4 * D + F, 3 * D), jnp.float32)
        W = W.at[0:D, 0:D].set(sa_wq).at[0:D, D:2 * D].set(sa_wk).at[0:D, 2 * D:3 * D].set(sa_wv)
        W = W.at[D:2 * D, 0:D].set(ca_wq).at[D:2 * D, D:2 * D].set(ca_wk).at[D:2 * D, 2 * D:3 * D].set(ca_wv)
        W = W.at[2 * D:3 * D, 0:D].set(sa_wo).at[2 * D:3 * D, D:2 * D].set(ca_wo)
        W = W.at[3 * D:4 * D, 0:F].set(ff_w1)
        W = W.at[4 * D:4 * D + F, 0:D].set(ff_w2)

        V = jnp.zeros((16, 3 * D), jnp.float32)
        V = V.at[0, 0:D].set(sa_bq).at[0, D:2 * D].set(sa_bk).at[0, 2 * D:3 * D].set(sa_bv)
        V = V.at[1, 0:D].set(ca_bq).at[1, D:2 * D].set(ca_bk).at[1, 2 * D:3 * D].set(ca_bv)
        V = V.at[2, 0:D].set(sa_bo).at[3, 0:D].set(ca_bo)
        V = V.at[4, 0:F].set(ff_b1).at[5, 0:D].set(ff_b2)
        V = V.at[6, 0:D].set(ln1_g).at[7, 0:D].set(ln1_b)
        V = V.at[8, 0:D].set(ln2_g).at[9, 0:D].set(ln2_b)
        V = V.at[10, 0:D].set(ln3_g).at[11, 0:D].set(ln3_b)

        Ws.append(W)
        Vs.append(V)

    fg, fb = final_ln
    Vs[-1] = Vs[-1].at[12, 0:D].set(fg).at[13, 0:D].set(fb)
    return jnp.stack(Ws), jnp.stack(Vs)


# -------------------------- pure-JAX reference --------------------------------
def reference(x, h, smask, cmask, layer_params, final_ln):
    def ln(t, g, b):
        d = t.shape[-1]
        mean = t.mean(-1, keepdims=True)
        var = ((t - mean) ** 2).sum(-1, keepdims=True) / (d - 1)
        return g * (t - mean) / (jnp.sqrt(var) + LN_EPS) + b

    def mha(q_in, kv_in, mask, wq, bq, wk, bk, wv, bv, wo, bo):
        B, Sq, D = q_in.shape
        Skv = kv_in.shape[1]
        q = (q_in @ wq + bq).reshape(B, Sq, NUM_HEADS, HEAD_DIM).transpose(0, 2, 1, 3)
        k = (kv_in @ wk + bk).reshape(B, Skv, NUM_HEADS, HEAD_DIM).transpose(0, 2, 1, 3)
        v = (kv_in @ wv + bv).reshape(B, Skv, NUM_HEADS, HEAD_DIM).transpose(0, 2, 1, 3)
        scores = jnp.einsum('bhqd,bhkd->bhqk', q, k) / math.sqrt(HEAD_DIM)
        scores = jnp.where(mask[:, None] == 0.0, -1e9, scores)
        p = jax.nn.softmax(scores, axis=-1)
        o = jnp.einsum('bhqk,bhkd->bhqd', p, v).transpose(0, 2, 1, 3).reshape(B, Sq, D)
        return o @ wo + bo

    for lp in layer_params:
        (sa_wq, sa_bq, sa_wk, sa_bk, sa_wv, sa_bv, sa_wo, sa_bo,
         ca_wq, ca_bq, ca_wk, ca_bk, ca_wv, ca_bv, ca_wo, ca_bo,
         ff_w1, ff_b1, ff_w2, ff_b2,
         ln1_g, ln1_b, ln2_g, ln2_b, ln3_g, ln3_b) = lp
        xn = ln(x, ln1_g, ln1_b)
        x = x + mha(xn, xn, smask,
                    sa_wq, sa_bq, sa_wk, sa_bk, sa_wv, sa_bv, sa_wo, sa_bo)
        xn = ln(x, ln2_g, ln2_b)
        x = x + mha(xn, h, cmask,
                    ca_wq, ca_bq, ca_wk, ca_bk, ca_wv, ca_bv, ca_wo, ca_bo)
        xn = ln(x, ln3_g, ln3_b)
        x = x + jnp.maximum(xn @ ff_w1 + ff_b1, 0.0) @ ff_w2 + ff_b2

    fg, fb = final_ln
    return ln(x, fg, fb)


# --------------------------------- main ---------------------------------------
if __name__ == "__main__":
    B, S, T, D = 2, 8, 16, EMBED_DIM
    key = jax.random.PRNGKey(0)
    kx, kh, kp = jax.random.split(key, 3)

    x = jax.random.normal(kx, (B, S, D), jnp.float32)
    h = jax.random.normal(kh, (B, T, D), jnp.float32)

    # causal self mask, all-visible cross mask (float: 0.0 == masked)
    self_mask = jnp.broadcast_to(
        jnp.tril(jnp.ones((S, S), jnp.float32))[None], (B, S, S))
    cross_mask = jnp.ones((B, S, T), jnp.float32)

    layer_params, final_ln = make_params(kp, NUM_LAYERS)
    w_packed, v_packed = pack_params(layer_params, final_ln)

    out = decoder_forward(x, h, self_mask, cross_mask, w_packed, v_packed)
    out = jax.block_until_ready(out)

    ref = jax.block_until_ready(
        reference(x, h, self_mask, cross_mask, layer_params, final_ln))
    np.testing.assert_allclose(np.asarray(out), np.asarray(ref), rtol=2e-2, atol=2e-2)

    print("KERNEL_OK")
</pallas_src>

<mosaic_0001>
module attributes {stable_mosaic.version = 11 : i64} {
  func.func @decoder_kernel(%arg0: i32, %arg1: memref<1x8x32xf32, #tpu.memory_space<vmem>>, %arg2: memref<1x16x32xf32, #tpu.memory_space<vmem>>, %arg3: memref<1x8x8xf32, #tpu.memory_space<vmem>>, %arg4: memref<1x8x16xf32, #tpu.memory_space<vmem>>, %arg5: memref<2x192x96xf32, #tpu.memory_space<vmem>>, %arg6: memref<2x16x96xf32, #tpu.memory_space<vmem>>, %arg7: memref<1x8x32xf32, #tpu.memory_space<vmem>>) attributes {dimension_semantics = [#tpu.dimension_semantics<parallel>], iteration_bounds = array<i64: 2>, scalar_prefetch = 0 : i64, scratch_operands = 0 : i64, tpu.core_type = #tpu.core_type<tc>, window_params = [{transform_indices = @transform_0, window_bounds = array<i64: 1, 8, 32>}, {transform_indices = @transform_1, window_bounds = array<i64: 1, 16, 32>}, {transform_indices = @transform_2, window_bounds = array<i64: 1, 8, 8>}, {transform_indices = @transform_3, window_bounds = array<i64: 1, 8, 16>}, {pipeline_mode = #tpu.pipeline_mode<synchronous>, transform_indices = @transform_4, window_bounds = array<i64: 2, 192, 96>}, {pipeline_mode = #tpu.pipeline_mode<synchronous>, transform_indices = @transform_5, window_bounds = array<i64: 2, 16, 96>}, {transform_indices = @transform_6, window_bounds = array<i64: 1, 8, 32>}]} {
    %c0 = arith.constant 0 : index
    %c0_0 = arith.constant 0 : index
    %c0_1 = arith.constant 0 : index
    %0 = vector.load %arg1[%c0, %c0_0, %c0_1] : memref<1x8x32xf32, #tpu.memory_space<vmem>>, vector<1x8x32xf32>
    %1 = vector.shape_cast %0 : vector<1x8x32xf32> to vector<8x32xf32>
    %c0_2 = arith.constant 0 : index
    %c0_3 = arith.constant 0 : index
    %c0_4 = arith.constant 0 : index
    %2 = vector.load %arg2[%c0_2, %c0_3, %c0_4] : memref<1x16x32xf32, #tpu.memory_space<vmem>>, vector<1x16x32xf32>
    %3 = vector.shape_cast %2 : vector<1x16x32xf32> to vector<16x32xf32>
    %c0_5 = arith.constant 0 : index
    %c0_6 = arith.constant 0 : index
    %c0_7 = arith.constant 0 : index
    %4 = vector.load %arg3[%c0_5, %c0_6, %c0_7] : memref<1x8x8xf32, #tpu.memory_space<vmem>>, vector<1x8x8xf32>
    %5 = vector.shape_cast %4 : vector<1x8x8xf32> to vector<8x8xf32>
    %c0_8 = arith.constant 0 : index
    %c0_9 = arith.constant 0 : index
    %c0_10 = arith.constant 0 : index
    %6 = vector.load %arg4[%c0_8, %c0_9, %c0_10] : memref<1x8x16xf32, #tpu.memory_space<vmem>>, vector<1x8x16xf32>
    %7 = vector.shape_cast %6 : vector<1x8x16xf32> to vector<8x16xf32>
    %c0_11 = arith.constant 0 : index
    %c0_12 = arith.constant 0 : index
    %c0_13 = arith.constant 0 : index
    %8 = vector.load %arg5[%c0_11, %c0_12, %c0_13] : memref<2x192x96xf32, #tpu.memory_space<vmem>>, vector<1x32x96xf32>
    %9 = vector.shape_cast %8 : vector<1x32x96xf32> to vector<32x96xf32>
    %c0_14 = arith.constant 0 : index
    %c32 = arith.constant 32 : index
    %c0_15 = arith.constant 0 : index
    %10 = vector.load %arg5[%c0_14, %c32, %c0_15] : memref<2x192x96xf32, #tpu.memory_space<vmem>>, vector<1x32x32xf32>
    %11 = vector.shape_cast %10 : vector<1x32x32xf32> to vector<32x32xf32>
    %c0_16 = arith.constant 0 : index
    %c32_17 = arith.constant 32 : index
    %c32_18 = arith.constant 32 : index
    %12 = vector.load %arg5[%c0_16, %c32_17, %c32_18] : memref<2x192x96xf32, #tpu.memory_space<vmem>>, vector<1x32x64xf32>
    %13 = vector.shape_cast %12 : vector<1x32x64xf32> to vector<32x64xf32>
    %c0_19 = arith.constant 0 : index
    %c64 = arith.constant 64 : index
    %c0_20 = arith.constant 0 : index
    %14 = vector.load %arg5[%c0_19, %c64, %c0_20] : memref<2x192x96xf32, #tpu.memory_space<vmem>>, vector<1x32x32xf32>
    %15 = vector.shape_cast %14 : vector<1x32x32xf32> to vector<32x32xf32>
    %c0_21 = arith.constant 0 : index
    %c64_22 = arith.constant 64 : index
    %c32_23 = arith.constant 32 : index
    %16 = vector.load %arg5[%c0_21, %c64_22, %c32_23] : memref<2x192x96xf32, #tpu.memory_space<vmem>>, vector<1x32x32xf32>
    %17 = vector.shape_cast %16 : vector<1x32x32xf32> to vector<32x32xf32>
    %c0_24 = arith.constant 0 : index
    %c96 = arith.constant 96 : index
    %c0_25 = arith.constant 0 : index
    %18 = vector.load %arg5[%c0_24, %c96, %c0_25] : memref<2x192x96xf32, #tpu.memory_space<vmem>>, vector<1x32x64xf32>
    %19 = vector.shape_cast %18 : vector<1x32x64xf32> to vector<32x64xf32>
    %c0_26 = arith.constant 0 : index
    %c128 = arith.constant 128 : index
    %c0_27 = arith.constant 0 : index
    %20 = vector.load %arg5[%c0_26, %c128, %c0_27] : memref<2x192x96xf32, #tpu.memory_space<vmem>>, vector<1x64x32xf32>
    %21 = vector.shape_cast %20 : vector<1x64x32xf32> to vector<64x32xf32>
    %c0_28 = arith.constant 0 : index
    %c0_29 = arith.constant 0 : index
    %c0_30 = arith.constant 0 : index
    %22 = vector.load %arg6[%c0_28, %c0_29, %c0_30] : memref<2x16x96xf32, #tpu.memory_space<vmem>>, vector<1x1x96xf32>
    %23 = vector.shape_cast %22 : vector<1x1x96xf32> to vector<1x96xf32>
    %c0_31 = arith.constant 0 : index
    %c1 = arith.constant 1 : index
    %c0_32 = arith.constant 0 : index
    %24 = vector.load %arg6[%c0_31, %c1, %c0_32] : memref<2x16x96xf32, #tpu.memory_space<vmem>>, vector<1x1x32xf32>
    %25 = vector.shape_cast %24 : vector<1x1x32xf32> to vector<1x32xf32>
    %c0_33 = arith.constant 0 : index
    %c1_34 = arith.constant 1 : index
    %c32_35 = arith.constant 32 : index
    %26 = vector.load %arg6[%c0_33, %c1_34, %c32_35] : memref<2x16x96xf32, #tpu.memory_space<vmem>>, vector<1x1x64xf32>
    %27 = vector.shape_cast %26 : vector<1x1x64xf32> to vector<1x64xf32>
    %c0_36 = arith.constant 0 : index
    %c2 = arith.constant 2 : index
    %c0_37 = arith.constant 0 : index
    %28 = vector.load %arg6[%c0_36, %c2, %c0_37] : memref<2x16x96xf32, #tpu.memory_space<vmem>>, vector<1x1x32xf32>
    %29 = vector.shape_cast %28 : vector<1x1x32xf32> to vector<1x32xf32>
    %c0_38 = arith.constant 0 : index
    %c3 = arith.constant 3 : index
    %c0_39 = arith.constant 0 : index
    %30 = vector.load %arg6[%c0_38, %c3, %c0_39] : memref<2x16x96xf32, #tpu.memory_space<vmem>>, vector<1x1x32xf32>
    %31 = vector.shape_cast %30 : vector<1x1x32xf32> to vector<1x32xf32>
    %c0_40 = arith.constant 0 : index
    %c4 = arith.constant 4 : index
    %c0_41 = arith.constant 0 : index
    %32 = vector.load %arg6[%c0_40, %c4, %c0_41] : memref<2x16x96xf32, #tpu.memory_space<vmem>>, vector<1x1x64xf32>
    %33 = vector.shape_cast %32 : vector<1x1x64xf32> to vector<1x64xf32>
    %c0_42 = arith.constant 0 : index
    %c5 = arith.constant 5 : index
    %c0_43 = arith.constant 0 : index
    %34 = vector.load %arg6[%c0_42, %c5, %c0_43] : memref<2x16x96xf32, #tpu.memory_space<vmem>>, vector<1x1x32xf32>
    %35 = vector.shape_cast %34 : vector<1x1x32xf32> to vector<1x32xf32>
    %c0_44 = arith.constant 0 : index
    %c6 = arith.constant 6 : index
    %c0_45 = arith.constant 0 : index
    %36 = vector.load %arg6[%c0_44, %c6, %c0_45] : memref<2x16x96xf32, #tpu.memory_space<vmem>>, vector<1x1x32xf32>
    %37 = vector.shape_cast %36 : vector<1x1x32xf32> to vector<1x32xf32>
    %c0_46 = arith.constant 0 : index
    %c7 = arith.constant 7 : index
    %c0_47 = arith.constant 0 : index
    %38 = vector.load %arg6[%c0_46, %c7, %c0_47] : memref<2x16x96xf32, #tpu.memory_space<vmem>>, vector<1x1x32xf32>
    %39 = vector.shape_cast %38 : vector<1x1x32xf32> to vector<1x32xf32>
    %c0_48 = arith.constant 0 : index
    %c8 = arith.constant 8 : index
    %c0_49 = arith.constant 0 : index
    %40 = vector.load %arg6[%c0_48, %c8, %c0_49] : memref<2x16x96xf32, #tpu.memory_space<vmem>>, vector<1x1x32xf32>
    %41 = vector.shape_cast %40 : vector<1x1x32xf32> to vector<1x32xf32>
    %c0_50 = arith.constant 0 : index
    %c9 = arith.constant 9 : index
    %c0_51 = arith.constant 0 : index
    %42 = vector.load %arg6[%c0_50, %c9, %c0_51] : memref<2x16x96xf32, #tpu.memory_space<vmem>>, vector<1x1x32xf32>
    %43 = vector.shape_cast %42 : vector<1x1x32xf32> to vector<1x32xf32>
    %c0_52 = arith.constant 0 : index
    %c10 = arith.constant 10 : index
    %c0_53 = arith.constant 0 : index
    %44 = vector.load %arg6[%c0_52, %c10, %c0_53] : memref<2x16x96xf32, #tpu.memory_space<vmem>>, vector<1x1x32xf32>
    %45 = vector.shape_cast %44 : vector<1x1x32xf32> to vector<1x32xf32>
    %c0_54 = arith.constant 0 : index
    %c11 = arith.constant 11 : index
    %c0_55 = arith.constant 0 : index
    %46 = vector.load %arg6[%c0_54, %c11, %c0_55] : memref<2x16x96xf32, #tpu.memory_space<vmem>>, vector<1x1x32xf32>
    %47 = vector.shape_cast %46 : vector<1x1x32xf32> to vector<1x32xf32>
    %cst = arith.constant dense<0.000000e+00> : vector<8xf32>
    %48 = vector.multi_reduction <add>, %1, %cst [1] : vector<8x32xf32> to vector<8xf32>
    %49 = vector.shape_cast %48 : vector<8xf32> to vector<8x1xf32>
    %cst_56 = arith.constant 3.200000e+01 : f32
    %50 = vector.broadcast %cst_56 : f32 to vector<8x1xf32>
    %51 = arith.divf %49, %50 : vector<8x1xf32>
    %52 = vector.broadcast %51 : vector<8x1xf32> to vector<8x32xf32>
    %53 = arith.subf %1, %52 : vector<8x32xf32>
    %54 = arith.mulf %53, %53 : vector<8x32xf32>
    %cst_57 = arith.constant dense<0.000000e+00> : vector<8xf32>
    %55 = vector.multi_reduction <add>, %54, %cst_57 [1] : vector<8x32xf32> to vector<8xf32>
    %56 = vector.shape_cast %55 : vector<8xf32> to vector<8x1xf32>
    %cst_58 = arith.constant 0.0322580636 : f32
    %57 = vector.broadcast %cst_58 : f32 to vector<8x1xf32>
    %58 = arith.mulf %56, %57 : vector<8x1xf32>
    %59 = math.sqrt %58 : vector<8x1xf32>
    %cst_59 = arith.constant 9.99999997E-7 : f32
    %60 = vector.broadcast %cst_59 : f32 to vector<8x1xf32>
    %61 = arith.addf %59, %60 : vector<8x1xf32>
    %62 = tpu.reciprocal %61 {approx = true} : vector<8x1xf32> -> vector<8x1xf32>
    %63 = vector.broadcast %51 : vector<8x1xf32> to vector<8x32xf32>
    %64 = arith.subf %1, %63 : vector<8x32xf32>
    %65 = vector.broadcast %37 : vector<1x32xf32> to vector<8x32xf32>
    %66 = arith.mulf %65, %64 : vector<8x32xf32>
    %67 = vector.broadcast %62 : vector<8x1xf32> to vector<8x32xf32>
    %68 = arith.mulf %66, %67 : vector<8x32xf32>
    %69 = vector.broadcast %39 : vector<1x32xf32> to vector<8x32xf32>
    %70 = arith.addf %68, %69 : vector<8x32xf32>
    %cst_60 = arith.constant dense<0.000000e+00> : vector<8x96xf32>
    %71 = tpu.matmul %70, %9, %cst_60 {dimension_numbers = #tpu.dot_dimension_numbers<[1], [0], [0], [1], [0, 0, 1, 1], [], []>, precision = #tpu.contract_precision<fp32>} : vector<8x32xf32>, vector<32x96xf32>, vector<8x96xf32> -> vector<8x96xf32>
    %72 = vector.broadcast %23 : vector<1x96xf32> to vector<8x96xf32>
    %73 = arith.addf %71, %72 : vector<8x96xf32>
    %74 = vector.extract_strided_slice %73 {offsets = [0, 0], sizes = [8, 32], strides = [1, 1]} : vector<8x96xf32> to vector<8x32xf32>
    %75 = vector.extract_strided_slice %73 {offsets = [0, 32], sizes = [8, 32], strides = [1, 1]} : vector<8x96xf32> to vector<8x32xf32>
    %76 = vector.extract_strided_slice %73 {offsets = [0, 64], sizes = [8, 32], strides = [1, 1]} : vector<8x96xf32> to vector<8x32xf32>
    %77 = vector.extract_strided_slice %74 {offsets = [0, 0], sizes = [8, 8], strides = [1, 1]} : vector<8x32xf32> to vector<8x8xf32>
    %78 = vector.extract_strided_slice %75 {offsets = [0, 0], sizes = [8, 8], strides = [1, 1]} : vector<8x32xf32> to vector<8x8xf32>
    %79 = tpu.transpose %78, [1, 0] : vector<8x8xf32> -> vector<8x8xf32>
    %cst_61 = arith.constant dense<0.000000e+00> : vector<8x8xf32>
    %80 = tpu.matmul %77, %79, %cst_61 {dimension_numbers = #tpu.dot_dimension_numbers<[1], [0], [0], [1], [0, 0, 1, 1], [], []>, precision = #tpu.contract_precision<fp32>} : vector<8x8xf32>, vector<8x8xf32>, vector<8x8xf32> -> vector<8x8xf32>
    %cst_62 = arith.constant 0.353553385 : f32
    %81 = vector.broadcast %cst_62 : f32 to vector<8x8xf32>
    %82 = arith.mulf %80, %81 : vector<8x8xf32>
    %83 = arith.addf %82, %5 : vector<8x8xf32>
    %cst_63 = arith.constant dense<0xFF800000> : vector<8xf32>
    %84 = vector.multi_reduction <maximumf>, %83, %cst_63 [1] : vector<8x8xf32> to vector<8xf32>
    %85 = vector.shape_cast %84 : vector<8xf32> to vector<8x1xf32>
    %86 = vector.broadcast %85 : vector<8x1xf32> to vector<8x8xf32>
    %87 = arith.subf %83, %86 : vector<8x8xf32>
    %88 = math.exp %87 : vector<8x8xf32>
    %cst_64 = arith.constant dense<0.000000e+00> : vector<8xf32>
    %89 = vector.multi_reduction <add>, %88, %cst_64 [1] : vector<8x8xf32> to vector<8xf32>
    %90 = vector.shape_cast %89 : vector<8xf32> to vector<8x1xf32>
    %91 = tpu.reciprocal %90 {approx = true} : vector<8x1xf32> -> vector<8x1xf32>
    %92 = vector.broadcast %91 : vector<8x1xf32> to vector<8x8xf32>
    %93 = arith.mulf %88, %92 : vector<8x8xf32>
    %94 = vector.extract_strided_slice %76 {offsets = [0, 0], sizes = [8, 8], strides = [1, 1]} : vector<8x32xf32> to vector<8x8xf32>
    %cst_65 = arith.constant dense<0.000000e+00> : vector<8x8xf32>
    %95 = tpu.matmul %93, %94, %cst_65 {dimension_numbers = #tpu.dot_dimension_numbers<[1], [0], [0], [1], [0, 0, 1, 1], [], []>, precision = #tpu.contract_precision<fp32>} : vector<8x8xf32>, vector<8x8xf32>, vector<8x8xf32> -> vector<8x8xf32>
    %96 = vector.extract_strided_slice %15 {offsets = [0, 0], sizes = [8, 32], strides = [1, 1]} : vector<32x32xf32> to vector<8x32xf32>
    %cst_66 = arith.constant dense<0.000000e+00> : vector<8x32xf32>
    %97 = tpu.matmul %95, %96, %cst_66 {dimension_numbers = #tpu.dot_dimension_numbers<[1], [0], [0], [1], [0, 0, 1, 1], [], []>, precision = #tpu.contract_precision<fp32>} : vector<8x8xf32>, vector<8x32xf32>, vector<8x32xf32> -> vector<8x32xf32>
    %98 = vector.extract_strided_slice %74 {offsets = [0, 8], sizes = [8, 8], strides = [1, 1]} : vector<8x32xf32> to vector<8x8xf32>
    %99 = vector.extract_strided_slice %75 {offsets = [0, 8], sizes = [8, 8], strides = [1, 1]} : vector<8x32xf32> to vector<8x8xf32>
    %100 = tpu.transpose %99, [1, 0] : vector<8x8xf32> -> vector<8x8xf32>
    %cst_67 = arith.constant dense<0.000000e+00> : vector<8x8xf32>
    %101 = tpu.matmul %98, %100, %cst_67 {dimension_numbers = #tpu.dot_dimension_numbers<[1], [0], [0], [1], [0, 0, 1, 1], [], []>, precision = #tpu.contract_precision<fp32>} : vector<8x8xf32>, vector<8x8xf32>, vector<8x8xf32> -> vector<8x8xf32>
    %cst_68 = arith.constant 0.353553385 : f32
    %102 = vector.broadcast %cst_68 : f32 to vector<8x8xf32>
    %103 = arith.mulf %101, %102 : vector<8x8xf32>
    %104 = arith.addf %103, %5 : vector<8x8xf32>
    %cst_69 = arith.constant dense<0xFF800000> : vector<8xf32>
    %105 = vector.multi_reduction <maximumf>, %104, %cst_69 [1] : vector<8x8xf32> to vector<8xf32>
    %106 = vector.shape_cast %105 : vector<8xf32> to vector<8x1xf32>
    %107 = vector.broadcast %106 : vector<8x1xf32> to vector<8x8xf32>
    %108 = arith.subf %104, %107 : vector<8x8xf32>
    %109 = math.exp %108 : vector<8x8xf32>
    %cst_70 = arith.constant dense<0.000000e+00> : vector<8xf32>
    %110 = vector.multi_reduction <add>, %109, %cst_70 [1] : vector<8x8xf32> to vector<8xf32>
    %111 = vector.shape_cast %110 : vector<8xf32> to vector<8x1xf32>
    %112 = tpu.reciprocal %111 {approx = true} : vector<8x1xf32> -> vector<8x1xf32>
    %113 = vector.broadcast %112 : vector<8x1xf32> to vector<8x8xf32>
    %114 = arith.mulf %109, %113 : vector<8x8xf32>
    %115 = vector.extract_strided_slice %76 {offsets = [0, 8], sizes = [8, 8], strides = [1, 1]} : vector<8x32xf32> to vector<8x8xf32>
    %cst_71 = arith.constant dense<0.000000e+00> : vector<8x8xf32>
    %116 = tpu.matmul %114, %115, %cst_71 {dimension_numbers = #tpu.dot_dimension_numbers<[1], [0], [0], [1], [0, 0, 1, 1], [], []>, precision = #tpu.contract_precision<fp32>} : vector<8x8xf32>, vector<8x8xf32>, vector<8x8xf32> -> vector<8x8xf32>
    %117 = vector.extract_strided_slice %15 {offsets = [8, 0], sizes = [8, 32], strides = [1, 1]} : vector<32x32xf32> to vector<8x32xf32>
    %cst_72 = arith.constant dense<0.000000e+00> : vector<8x32xf32>
    %118 = tpu.matmul %116, %117, %cst_72 {dimension_numbers = #tpu.dot_dimension_numbers<[1], [0], [0], [1], [0, 0, 1, 1], [], []>, precision = #tpu.contract_precision<fp32>} : vector<8x8xf32>, vector<8x32xf32>, vector<8x32xf32> -> vector<8x32xf32>
    %119 = arith.addf %97, %118 : vector<8x32xf32>
    %120 = vector.extract_strided_slice %74 {offsets = [0, 16], sizes = [8, 8], strides = [1, 1]} : vector<8x32xf32> to vector<8x8xf32>
    %121 = vector.extract_strided_slice %75 {offsets = [0, 16], sizes = [8, 8], strides = [1, 1]} : vector<8x32xf32> to vector<8x8xf32>
    %122 = tpu.transpose %121, [1, 0] : vector<8x8xf32> -> vector<8x8xf32>
    %cst_73 = arith.constant dense<0.000000e+00> : vector<8x8xf32>
    %123 = tpu.matmul %120, %122, %cst_73 {dimension_numbers = #tpu.dot_dimension_numbers<[1], [0], [0], [1], [0, 0, 1, 1], [], []>, precision = #tpu.contract_precision<fp32>} : vector<8x8xf32>, vector<8x8xf32>, vector<8x8xf32> -> vector<8x8xf32>
    %cst_74 = arith.constant 0.353553385 : f32
    %124 = vector.broadcast %cst_74 : f32 to vector<8x8xf32>
    %125 = arith.mulf %123, %124 : vector<8x8xf32>
    %126 = arith.addf %125, %5 : vector<8x8xf32>
    %cst_75 = arith.constant dense<0xFF800000> : vector<8xf32>
    %127 = vector.multi_reduction <maximumf>, %126, %cst_75 [1] : vector<8x8xf32> to vector<8xf32>
    %128 = vector.shape_cast %127 : vector<8xf32> to vector<8x1xf32>
    %129 = vector.broadcast %128 : vector<8x1xf32> to vector<8x8xf32>
    %130 = arith.subf %126, %129 : vector<8x8xf32>
    %131 = math.exp %130 : vector<8x8xf32>
    %cst_76 = arith.constant dense<0.000000e+00> : vector<8xf32>
    %132 = vector.multi_reduction <add>, %131, %cst_76 [1] : vector<8x8xf32> to vector<8xf32>
    %133 = vector.shape_cast %132 : vector<8xf32> to vector<8x1xf32>
    %134 = tpu.reciprocal %133 {approx = true} : vector<8x1xf32> -> vector<8x1xf32>
    %135 = vector.broadcast %134 : vector<8x1xf32> to vector<8x8xf32>
    %136 = arith.mulf %131, %135 : vector<8x8xf32>
    %137 = vector.extract_strided_slice %76 {offsets = [0, 16], sizes = [8, 8], strides = [1, 1]} : vector<8x32xf32> to vector<8x8xf32>
    %cst_77 = arith.constant dense<0.000000e+00> : vector<8x8xf32>
    %138 = tpu.matmul %136, %137, %cst_77 {dimension_numbers = #tpu.dot_dimension_numbers<[1], [0], [0], [1], [0, 0, 1, 1], [], []>, precision = #tpu.contract_precision<fp32>} : vector<8x8xf32>, vector<8x8xf32>, vector<8x8xf32> -> vector<8x8xf32>
    %139 = vector.extract_strided_slice %15 {offsets = [16, 0], sizes = [8, 32], strides = [1, 1]} : vector<32x32xf32> to vector<8x32xf32>
    %cst_78 = arith.constant dense<0.000000e+00> : vector<8x32xf32>
    %140 = tpu.matmul %138, %139, %cst_78 {dimension_numbers = #tpu.dot_dimension_numbers<[1], [0], [0], [1], [0, 0, 1, 1], [], []>, precision = #tpu.contract_precision<fp32>} : vector<8x8xf32>, vector<8x32xf32>, vector<8x32xf32> -> vector<8x32xf32>
    %141 = arith.addf %119, %140 : vector<8x32xf32>
    %142 = vector.extract_strided_slice %74 {offsets = [0, 24], sizes = [8, 8], strides = [1, 1]} : vector<8x32xf32> to vector<8x8xf32>
    %143 = vector.extract_strided_slice %75 {offsets = [0, 24], sizes = [8, 8], strides = [1, 1]} : vector<8x32xf32> to vector<8x8xf32>
    %144 = tpu.transpose %143, [1, 0] : vector<8x8xf32> -> vector<8x8xf32>
    %cst_79 = arith.constant dense<0.000000e+00> : vector<8x8xf32>
    %145 = tpu.matmul %142, %144, %cst_79 {dimension_numbers = #tpu.dot_dimension_numbers<[1], [0], [0], [1], [0, 0, 1, 1], [], []>, precision = #tpu.contract_precision<fp32>} : vector<8x8xf32>, vector<8x8xf32>, vector<8x8xf32> -> vector<8x8xf32>
    %cst_80 = arith.constant 0.353553385 : f32
    %146 = vector.broadcast %cst_80 : f32 to vector<8x8xf32>
    %147 = arith.mulf %145, %146 : vector<8x8xf32>
    %148 = arith.addf %147, %5 : vector<8x8xf32>
    %cst_81 = arith.constant dense<0xFF800000> : vector<8xf32>
    %149 = vector.multi_reduction <maximumf>, %148, %cst_81 [1] : vector<8x8xf32> to vector<8xf32>
    %150 = vector.shape_cast %149 : vector<8xf32> to vector<8x1xf32>
    %151 = vector.broadcast %150 : vector<8x1xf32> to vector<8x8xf32>
    %152 = arith.subf %148, %151 : vector<8x8xf32>
    %153 = math.exp %152 : vector<8x8xf32>
    %cst_82 = arith.constant dense<0.000000e+00> : vector<8xf32>
    %154 = vector.multi_reduction <add>, %153, %cst_82 [1] : vector<8x8xf32> to vector<8xf32>
    %155 = vector.shape_cast %154 : vector<8xf32> to vector<8x1xf32>
    %156 = tpu.reciprocal %155 {approx = true} : vector<8x1xf32> -> vector<8x1xf32>
    %157 = vector.broadcast %156 : vector<8x1xf32> to vector<8x8xf32>
    %158 = arith.mulf %153, %157 : vector<8x8xf32>
    %159 = vector.extract_strided_slice %76 {offsets = [0, 24], sizes = [8, 8], strides = [1, 1]} : vector<8x32xf32> to vector<8x8xf32>
    %cst_83 = arith.constant dense<0.000000e+00> : vector<8x8xf32>
    %160 = tpu.matmul %158, %159, %cst_83 {dimension_numbers = #tpu.dot_dimension_numbers<[1], [0], [0], [1], [0, 0, 1, 1], [], []>, precision = #tpu.contract_precision<fp32>} : vector<8x8xf32>, vector<8x8xf32>, vector<8x8xf32> -> vector<8x8xf32>
    %161 = vector.extract_strided_slice %15 {offsets = [24, 0], sizes = [8, 32], strides = [1, 1]} : vector<32x32xf32> to vector<8x32xf32>
    %cst_84 = arith.constant dense<0.000000e+00> : vector<8x32xf32>
    %162 = tpu.matmul %160, %161, %cst_84 {dimension_numbers = #tpu.dot_dimension_numbers<[1], [0], [0], [1], [0, 0, 1, 1], [], []>, precision = #tpu.contract_precision<fp32>} : vector<8x8xf32>, vector<8x32xf32>, vector<8x32xf32> -> vector<8x32xf32>
    %163 = arith.addf %141, %162 : vector<8x32xf32>
    %164 = vector.broadcast %29 : vector<1x32xf32> to vector<8x32xf32>
    %165 = arith.addf %163, %164 : vector<8x32xf32>
    %166 = arith.addf %1, %165 : vector<8x32xf32>
    %cst_85 = arith.constant dense<0.000000e+00> : vector<8xf32>
    %167 = vector.multi_reduction <add>, %166, %cst_85 [1] : vector<8x32xf32> to vector<8xf32>
    %168 = vector.shape_cast %167 : vector<8xf32> to vector<8x1xf32>
    %cst_86 = arith.constant 3.200000e+01 : f32
    %169 = vector.broadcast %cst_86 : f32 to vector<8x1xf32>
    %170 = arith.divf %168, %169 : vector<8x1xf32>
    %171 = vector.broadcast %170 : vector<8x1xf32> to vector<8x32xf32>
    %172 = arith.subf %166, %171 : vector<8x32xf32>
    %173 = arith.mulf %172, %172 : vector<8x32xf32>
    %cst_87 = arith.constant dense<0.000000e+00> : vector<8xf32>
    %174 = vector.multi_reduction <add>, %173, %cst_87 [1] : vector<8x32xf32> to vector<8xf32>
    %175 = vector.shape_cast %174 : vector<8xf32> to vector<8x1xf32>
    %cst_88 = arith.constant 0.0322580636 : f32
    %176 = vector.broadcast %cst_88 : f32 to vector<8x1xf32>
    %177 = arith.mulf %175, %176 : vector<8x1xf32>
    %178 = math.sqrt %177 : vector<8x1xf32>
    %cst_89 = arith.constant 9.99999997E-7 : f32
    %179 = vector.broadcast %cst_89 : f32 to vector<8x1xf32>
    %180 = arith.addf %178, %179 : vector<8x1xf32>
    %181 = tpu.reciprocal %180 {approx = true} : vector<8x1xf32> -> vector<8x1xf32>
    %182 = vector.broadcast %170 : vector<8x1xf32> to vector<8x32xf32>
    %183 = arith.subf %166, %182 : vector<8x32xf32>
    %184 = vector.broadcast %41 : vector<1x32xf32> to vector<8x32xf32>
    %185 = arith.mulf %184, %183 : vector<8x32xf32>
    %186 = vector.broadcast %181 : vector<8x1xf32> to vector<8x32xf32>
    %187 = arith.mulf %185, %186 : vector<8x32xf32>
    %188 = vector.broadcast %43 : vector<1x32xf32> to vector<8x32xf32>
    %189 = arith.addf %187, %188 : vector<8x32xf32>
    %cst_90 = arith.constant dense<0.000000e+00> : vector<8x32xf32>
    %190 = tpu.matmul %189, %11, %cst_90 {dimension_numbers = #tpu.dot_dimension_numbers<[1], [0], [0], [1], [0, 0, 1, 1], [], []>, precision = #tpu.contract_precision<fp32>} : vector<8x32xf32>, vector<32x32xf32>, vector<8x32xf32> -> vector<8x32xf32>
    %191 = vector.broadcast %25 : vector<1x32xf32> to vector<8x32xf32>
    %192 = arith.addf %190, %191 : vector<8x32xf32>
    %cst_91 = arith.constant dense<0.000000e+00> : vector<16x64xf32>
    %193 = tpu.matmul %3, %13, %cst_91 {dimension_numbers = #tpu.dot_dimension_numbers<[1], [0], [0], [1], [0, 0, 1, 1], [], []>, precision = #tpu.contract_precision<fp32>} : vector<16x32xf32>, vector<32x64xf32>, vector<16x64xf32> -> vector<16x64xf32>
    %194 = vector.broadcast %27 : vector<1x64xf32> to vector<16x64xf32>
    %195 = arith.addf %193, %194 : vector<16x64xf32>
    %196 = vector.extract_strided_slice %195 {offsets = [0, 0], sizes = [16, 32], strides = [1, 1]} : vector<16x64xf32> to vector<16x32xf32>
    %197 = vector.extract_strided_slice %195 {offsets = [0, 32], sizes = [16, 32], strides = [1, 1]} : vector<16x64xf32> to vector<16x32xf32>
    %198 = vector.extract_strided_slice %192 {offsets = [0, 0], sizes = [8, 8], strides = [1, 1]} : vector<8x32xf32> to vector<8x8xf32>
    %199 = vector.extract_strided_slice %196 {offsets = [0, 0], sizes = [16, 8], strides = [1, 1]} : vector<16x32xf32> to vector<16x8xf32>
    %200 = tpu.transpose %199, [1, 0] : vector<16x8xf32> -> vector<8x16xf32>
    %cst_92 = arith.constant dense<0.000000e+00> : vector<8x16xf32>
    %201 = tpu.matmul %198, %200, %cst_92 {dimension_numbers = #tpu.dot_dimension_numbers<[1], [0], [0], [1], [0, 0, 1, 1], [], []>, precision = #tpu.contract_precision<fp32>} : vector<8x8xf32>, vector<8x16xf32>, vector<8x16xf32> -> vector<8x16xf32>
    %cst_93 = arith.constant 0.353553385 : f32
    %202 = vector.broadcast %cst_93 : f32 to vector<8x16xf32>
    %203 = arith.mulf %201, %202 : vector<8x16xf32>
    %204 = arith.addf %203, %7 : vector<8x16xf32>
    %cst_94 = arith.constant dense<0xFF800000> : vector<8xf32>
    %205 = vector.multi_reduction <maximumf>, %204, %cst_94 [1] : vector<8x16xf32> to vector<8xf32>
    %206 = vector.shape_cast %205 : vector<8xf32> to vector<8x1xf32>
    %207 = vector.broadcast %206 : vector<8x1xf32> to vector<8x16xf32>
    %208 = arith.subf %204, %207 : vector<8x16xf32>
    %209 = math.exp %208 : vector<8x16xf32>
    %cst_95 = arith.constant dense<0.000000e+00> : vector<8xf32>
    %210 = vector.multi_reduction <add>, %209, %cst_95 [1] : vector<8x16xf32> to vector<8xf32>
    %211 = vector.shape_cast %210 : vector<8xf32> to vector<8x1xf32>
    %212 = tpu.reciprocal %211 {approx = true} : vector<8x1xf32> -> vector<8x1xf32>
    %213 = vector.broadcast %212 : vector<8x1xf32> to vector<8x16xf32>
    %214 = arith.mulf %209, %213 : vector<8x16xf32>
    %215 = vector.extract_strided_slice %197 {offsets = [0, 0], sizes = [16, 8], strides = [1, 1]} : vector<16x32xf32> to vector<16x8xf32>
    %cst_96 = arith.constant dense<0.000000e+00> : vector<8x8xf32>
    %216 = tpu.matmul %214, %215, %cst_96 {dimension_numbers = #tpu.dot_dimension_numbers<[1], [0], [0], [1], [0, 0, 1, 1], [], []>, precision = #tpu.contract_precision<fp32>} : vector<8x16xf32>, vector<16x8xf32>, vector<8x8xf32> -> vector<8x8xf32>
    %217 = vector.extract_strided_slice %17 {offsets = [0, 0], sizes = [8, 32], strides = [1, 1]} : vector<32x32xf32> to vector<8x32xf32>
    %cst_97 = arith.constant dense<0.000000e+00> : vector<8x32xf32>
    %218 = tpu.matmul %216, %217, %cst_97 {dimension_numbers = #tpu.dot_dimension_numbers<[1], [0], [0], [1], [0, 0, 1, 1], [], []>, precision = #tpu.contract_precision<fp32>} : vector<8x8xf32>, vector<8x32xf32>, vector<8x32xf32> -> vector<8x32xf32>
    %219 = vector.extract_strided_slice %192 {offsets = [0, 8], sizes = [8, 8], strides = [1, 1]} : vector<8x32xf32> to vector<8x8xf32>
    %220 = vector.extract_strided_slice %196 {offsets = [0, 8], sizes = [16, 8], strides = [1, 1]} : vector<16x32xf32> to vector<16x8xf32>
    %221 = tpu.transpose %220, [1, 0] : vector<16x8xf32> -> vector<8x16xf32>
    %cst_98 = arith.constant dense<0.000000e+00> : vector<8x16xf32>
    %222 = tpu.matmul %219, %221, %cst_98 {dimension_numbers = #tpu.dot_dimension_numbers<[1], [0], [0], [1], [0, 0, 1, 1], [], []>, precision = #tpu.contract_precision<fp32>} : vector<8x8xf32>, vector<8x16xf32>, vector<8x16xf32> -> vector<8x16xf32>
    %cst_99 = arith.constant 0.353553385 : f32
    %223 = vector.broadcast %cst_99 : f32 to vector<8x16xf32>
    %224 = arith.mulf %222, %223 : vector<8x16xf32>
    %225 = arith.addf %224, %7 : vector<8x16xf32>
    %cst_100 = arith.constant dense<0xFF800000> : vector<8xf32>
    %226 = vector.multi_reduction <maximumf>, %225, %cst_100 [1] : vector<8x16xf32> to vector<8xf32>
    %227 = vector.shape_cast %226 : vector<8xf32> to vector<8x1xf32>
    %228 = vector.broadcast %227 : vector<8x1xf32> to vector<8x16xf32>
    %229 = arith.subf %225, %228 : vector<8x16xf32>
    %230 = math.exp %229 : vector<8x16xf32>
    %cst_101 = arith.constant dense<0.000000e+00> : vector<8xf32>
    %231 = vector.multi_reduction <add>, %230, %cst_101 [1] : vector<8x16xf32> to vector<8xf32>
    %232 = vector.shape_cast %231 : vector<8xf32> to vector<8x1xf32>
    %233 = tpu.reciprocal %232 {approx = true} : vector<8x1xf32> -> vector<8x1xf32>
    %234 = vector.broadcast %233 : vector<8x1xf32> to vector<8x16xf32>
    %235 = arith.mulf %230, %234 : vector<8x16xf32>
    %236 = vector.extract_strided_slice %197 {offsets = [0, 8], sizes = [16, 8], strides = [1, 1]} : vector<16x32xf32> to vector<16x8xf32>
    %cst_102 = arith.constant dense<0.000000e+00> : vector<8x8xf32>
    %237 = tpu.matmul %235, %236, %cst_102 {dimension_numbers = #tpu.dot_dimension_numbers<[1], [0], [0], [1], [0, 0, 1, 1], [], []>, precision = #tpu.contract_precision<fp32>} : vector<8x16xf32>, vector<16x8xf32>, vector<8x8xf32> -> vector<8x8xf32>
    %238 = vector.extract_strided_slice %17 {offsets = [8, 0], sizes = [8, 32], strides = [1, 1]} : vector<32x32xf32> to vector<8x32xf32>
    %cst_103 = arith.constant dense<0.000000e+00> : vector<8x32xf32>
    %239 = tpu.matmul %237, %238, %cst_103 {dimension_numbers = #tpu.dot_dimension_numbers<[1], [0], [0], [1], [0, 0, 1, 1], [], []>, precision = #tpu.contract_precision<fp32>} : vector<8x8xf32>, vector<8x32xf32>, vector<8x32xf32> -> vector<8x32xf32>
    %240 = arith.addf %218, %239 : vector<8x32xf32>
    %241 = vector.extract_strided_slice %192 {offsets = [0, 16], sizes = [8, 8], strides = [1, 1]} : vector<8x32xf32> to vector<8x8xf32>
    %242 = vector.extract_strided_slice %196 {offsets = [0, 16], sizes = [16, 8], strides = [1, 1]} : vector<16x32xf32> to vector<16x8xf32>
    %243 = tpu.transpose %242, [1, 0] : vector<16x8xf32> -> vector<8x16xf32>
    %cst_104 = arith.constant dense<0.000000e+00> : vector<8x16xf32>
    %244 = tpu.matmul %241, %243, %cst_104 {dimension_numbers = #tpu.dot_dimension_numbers<[1], [0], [0], [1], [0, 0, 1, 1], [], []>, precision = #tpu.contract_precision<fp32>} : vector<8x8xf32>, vector<8x16xf32>, vector<8x16xf32> -> vector<8x16xf32>
    %cst_105 = arith.constant 0.353553385 : f32
    %245 = vector.broadcast %cst_105 : f32 to vector<8x16xf32>
    %246 = arith.mulf %244, %245 : vector<8x16xf32>
    %247 = arith.addf %246, %7 : vector<8x16xf32>
    %cst_106 = arith.constant dense<0xFF800000> : vector<8xf32>
    %248 = vector.multi_reduction <maximumf>, %247, %cst_106 [1] : vector<8x16xf32> to vector<8xf32>
    %249 = vector.shape_cast %248 : vector<8xf32> to vector<8x1xf32>
    %250 = vector.broadcast %249 : vector<8x1xf32> to vector<8x16xf32>
    %251 = arith.subf %247, %250 : vector<8x16xf32>
    %252 = math.exp %251 : vector<8x16xf32>
    %cst_107 = arith.constant dense<0.000000e+00> : vector<8xf32>
    %253 = vector.multi_reduction <add>, %252, %cst_107 [1] : vector<8x16xf32> to vector<8xf32>
    %254 = vector.shape_cast %253 : vector<8xf32> to vector<8x1xf32>
    %255 = tpu.reciprocal %254 {approx = true} : vector<8x1xf32> -> vector<8x1xf32>
    %256 = vector.broadcast %255 : vector<8x1xf32> to vector<8x16xf32>
    %257 = arith.mulf %252, %256 : vector<8x16xf32>
    %258 = vector.extract_strided_slice %197 {offsets = [0, 16], sizes = [16, 8], strides = [1, 1]} : vector<16x32xf32> to vector<16x8xf32>
    %cst_108 = arith.constant dense<0.000000e+00> : vector<8x8xf32>
    %259 = tpu.matmul %257, %258, %cst_108 {dimension_numbers = #tpu.dot_dimension_numbers<[1], [0], [0], [1], [0, 0, 1, 1], [], []>, precision = #tpu.contract_precision<fp32>} : vector<8x16xf32>, vector<16x8xf32>, vector<8x8xf32> -> vector<8x8xf32>
    %260 = vector.extract_strided_slice %17 {offsets = [16, 0], sizes = [8, 32], strides = [1, 1]} : vector<32x32xf32> to vector<8x32xf32>
    %cst_109 = arith.constant dense<0.000000e+00> : vector<8x32xf32>
    %261 = tpu.matmul %259, %260, %cst_109 {dimension_numbers = #tpu.dot_dimension_numbers<[1], [0], [0], [1], [0, 0, 1, 1], [], []>, precision = #tpu.contract_precision<fp32>} : vector<8x8xf32>, vector<8x32xf32>, vector<8x32xf32> -> vector<8x32xf32>
    %262 = arith.addf %240, %261 : vector<8x32xf32>
    %263 = vector.extract_strided_slice %192 {offsets = [0, 24], sizes = [8, 8], strides = [1, 1]} : vector<8x32xf32> to vector<8x8xf32>
    %264 = vector.extract_strided_slice %196 {offsets = [0, 24], sizes = [16, 8], strides = [1, 1]} : vector<16x32xf32> to vector<16x8xf32>
    %265 = tpu.transpose %264, [1, 0] : vector<16x8xf32> -> vector<8x16xf32>
    %cst_110 = arith.constant dense<0.000000e+00> : vector<8x16xf32>
    %266 = tpu.matmul %263, %265, %cst_110 {dimension_numbers = #tpu.dot_dimension_numbers<[1], [0], [0], [1], [0, 0, 1, 1], [], []>, precision = #tpu.contract_precision<fp32>} : vector<8x8xf32>, vector<8x16xf32>, vector<8x16xf32> -> vector<8x16xf32>
    %cst_111 = arith.constant 0.353553385 : f32
    %267 = vector.broadcast %cst_111 : f32 to vector<8x16xf32>
    %268 = arith.mulf %266, %267 : vector<8x16xf32>
    %269 = arith.addf %268, %7 : vector<8x16xf32>
    %cst_112 = arith.constant dense<0xFF800000> : vector<8xf32>
    %270 = vector.multi_reduction <maximumf>, %269, %cst_112 [1] : vector<8x16xf32> to vector<8xf32>
    %271 = vector.shape_cast %270 : vector<8xf32> to vector<8x1xf32>
    %272 = vector.broadcast %271 : vector<8x1xf32> to vector<8x16xf32>
    %273 = arith.subf %269, %272 : vector<8x16xf32>
    %274 = math.exp %273 : vector<8x16xf32>
    %cst_113 = arith.constant dense<0.000000e+00> : vector<8xf32>
    %275 = vector.multi_reduction <add>, %274, %cst_113 [1] : vector<8x16xf32> to vector<8xf32>
    %276 = vector.shape_cast %275 : vector<8xf32> to vector<8x1xf32>
    %277 = tpu.reciprocal %276 {approx = true} : vector<8x1xf32> -> vector<8x1xf32>
    %278 = vector.broadcast %277 : vector<8x1xf32> to vector<8x16xf32>
    %279 = arith.mulf %274, %278 : vector<8x16xf32>
    %280 = vector.extract_strided_slice %197 {offsets = [0, 24], sizes = [16, 8], strides = [1, 1]} : vector<16x32xf32> to vector<16x8xf32>
    %cst_114 = arith.constant dense<0.000000e+00> : vector<8x8xf32>
    %281 = tpu.matmul %279, %280, %cst_114 {dimension_numbers = #tpu.dot_dimension_numbers<[1], [0], [0], [1], [0, 0, 1, 1], [], []>, precision = #tpu.contract_precision<fp32>} : vector<8x16xf32>, vector<16x8xf32>, vector<8x8xf32> -> vector<8x8xf32>
    %282 = vector.extract_strided_slice %17 {offsets = [24, 0], sizes = [8, 32], strides = [1, 1]} : vector<32x32xf32> to vector<8x32xf32>
    %cst_115 = arith.constant dense<0.000000e+00> : vector<8x32xf32>
    %283 = tpu.matmul %281, %282, %cst_115 {dimension_numbers = #tpu.dot_dimension_numbers<[1], [0], [0], [1], [0, 0, 1, 1], [], []>, precision = #tpu.contract_precision<fp32>} : vector<8x8xf32>, vector<8x32xf32>, vector<8x32xf32> -> vector<8x32xf32>
    %284 = arith.addf %262, %283 : vector<8x32xf32>
    %285 = vector.broadcast %31 : vector<1x32xf32> to vector<8x32xf32>
    %286 = arith.addf %284, %285 : vector<8x32xf32>
    %287 = arith.addf %166, %286 : vector<8x32xf32>
    %cst_116 = arith.constant dense<0.000000e+00> : vector<8xf32>
    %288 = vector.multi_reduction <add>, %287, %cst_116 [1] : vector<8x32xf32> to vector<8xf32>
    %289 = vector.shape_cast %288 : vector<8xf32> to vector<8x1xf32>
    %cst_117 = arith.constant 3.200000e+01 : f32
    %290 = vector.broadcast %cst_117 : f32 to vector<8x1xf32>
    %291 = arith.divf %289, %290 : vector<8x1xf32>
    %292 = vector.broadcast %291 : vector<8x1xf32> to vector<8x32xf32>
    %293 = arith.subf %287, %292 : vector<8x32xf32>
    %294 = arith.mulf %293, %293 : vector<8x32xf32>
    %cst_118 = arith.constant dense<0.000000e+00> : vector<8xf32>
    %295 = vector.multi_reduction <add>, %294, %cst_118 [1] : vector<8x32xf32> to vector<8xf32>
    %296 = vector.shape_cast %295 : vector<8xf32> to vector<8x1xf32>
    %cst_119 = arith.constant 0.0322580636 : f32
    %297 = vector.broadcast %cst_119 : f32 to vector<8x1xf32>
    %298 = arith.mulf %296, %297 : vector<8x1xf32>
    %299 = math.sqrt %298 : vector<8x1xf32>
    %cst_120 = arith.constant 9.99999997E-7 : f32
    %300 = vector.broadcast %cst_120 : f32 to vector<8x1xf32>
    %301 = arith.addf %299, %300 : vector<8x1xf32>
    %302 = tpu.reciprocal %301 {approx = true} : vector<8x1xf32> -> vector<8x1xf32>
    %303 = vector.broadcast %291 : vector<8x1xf32> to vector<8x32xf32>
    %304 = arith.subf %287, %303 : vector<8x32xf32>
    %305 = vector.broadcast %45 : vector<1x32xf32> to vector<8x32xf32>
    %306 = arith.mulf %305, %304 : vector<8x32xf32>
    %307 = vector.broadcast %302 : vector<8x1xf32> to vector<8x32xf32>
    %308 = arith.mulf %306, %307 : vector<8x32xf32>
    %309 = vector.broadcast %47 : vector<1x32xf32> to vector<8x32xf32>
    %310 = arith.addf %308, %309 : vector<8x32xf32>
    %cst_121 = arith.constant dense<0.000000e+00> : vector<8x64xf32>
    %311 = tpu.matmul %310, %19, %cst_121 {dimension_numbers = #tpu.dot_dimension_numbers<[1], [0], [0], [1], [0, 0, 1, 1], [], []>, precision = #tpu.contract_precision<fp32>} : vector<8x32xf32>, vector<32x64xf32>, vector<8x64xf32> -> vector<8x64xf32>
    %312 = vector.broadcast %33 : vector<1x64xf32> to vector<8x64xf32>
    %313 = arith.addf %311, %312 : vector<8x64xf32>
    %cst_122 = arith.constant 0.000000e+00 : f32
    %314 = vector.broadcast %cst_122 : f32 to vector<8x64xf32>
    %315 = arith.maximumf %313, %314 : vector<8x64xf32>
    %cst_123 = arith.constant dense<0.000000e+00> : vector<8x32xf32>
    %316 = tpu.matmul %315, %21, %cst_123 {dimension_numbers = #tpu.dot_dimension_numbers<[1], [0], [0], [1], [0, 0, 1, 1], [], []>, precision = #tpu.contract_precision<fp32>} : vector<8x64xf32>, vector<64x32xf32>, vector<8x32xf32> -> vector<8x32xf32>
    %317 = arith.addf %287, %316 : vector<8x32xf32>
    %318 = vector.broadcast %35 : vector<1x32xf32> to vector<8x32xf32>
    %319 = arith.addf %317, %318 : vector<8x32xf32>
    %c1_124 = arith.constant 1 : index
    %c0_125 = arith.constant 0 : index
    %c0_126 = arith.constant 0 : index
    %320 = vector.load %arg5[%c1_124, %c0_125, %c0_126] : memref<2x192x96xf32, #tpu.memory_space<vmem>>, vector<1x32x96xf32>
    %321 = vector.shape_cast %320 : vector<1x32x96xf32> to vector<32x96xf32>
    %c1_127 = arith.constant 1 : index
    %c32_128 = arith.constant 32 : index
    %c0_129 = arith.constant 0 : index
    %322 = vector.load %arg5[%c1_127, %c32_128, %c0_129] : memref<2x192x96xf32, #tpu.memory_space<vmem>>, vector<1x32x32xf32>
    %323 = vector.shape_cast %322 : vector<1x32x32xf32> to vector<32x32xf32>
    %c1_130 = arith.constant 1 : index
    %c32_131 = arith.constant 32 : index
    %c32_132 = arith.constant 32 : index
    %324 = vector.load %arg5[%c1_130, %c32_131, %c32_132] : memref<2x192x96xf32, #tpu.memory_space<vmem>>, vector<1x32x64xf32>
    %325 = vector.shape_cast %324 : vector<1x32x64xf32> to vector<32x64xf32>
    %c1_133 = arith.constant 1 : index
    %c64_134 = arith.constant 64 : index
    %c0_135 = arith.constant 0 : index
    %326 = vector.load %arg5[%c1_133, %c64_134, %c0_135] : memref<2x192x96xf32, #tpu.memory_space<vmem>>, vector<1x32x32xf32>
    %327 = vector.shape_cast %326 : vector<1x32x32xf32> to vector<32x32xf32>
    %c1_136 = arith.constant 1 : index
    %c64_137 = arith.constant 64 : index
    %c32_138 = arith.constant 32 : index
    %328 = vector.load %arg5[%c1_136, %c64_137, %c32_138] : memref<2x192x96xf32, #tpu.memory_space<vmem>>, vector<1x32x32xf32>
    %329 = vector.shape_cast %328 : vector<1x32x32xf32> to vector<32x32xf32>
    %c1_139 = arith.constant 1 : index
    %c96_140 = arith.constant 96 : index
    %c0_141 = arith.constant 0 : index
    %330 = vector.load %arg5[%c1_139, %c96_140, %c0_141] : memref<2x192x96xf32, #tpu.memory_space<vmem>>, vector<1x32x64xf32>
    %331 = vector.shape_cast %330 : vector<1x32x64xf32> to vector<32x64xf32>
    %c1_142 = arith.constant 1 : index
    %c128_143 = arith.constant 128 : index
    %c0_144 = arith.constant 0 : index
    %332 = vector.load %arg5[%c1_142, %c128_143, %c0_144] : memref<2x192x96xf32, #tpu.memory_space<vmem>>, vector<1x64x32xf32>
    %333 = vector.shape_cast %332 : vector<1x64x32xf32> to vector<64x32xf32>
    %c1_145 = arith.constant 1 : index
    %c0_146 = arith.constant 0 : index
    %c0_147 = arith.constant 0 : index
    %334 = vector.load %arg6[%c1_145, %c0_146, %c0_147] : memref<2x16x96xf32, #tpu.memory_space<vmem>>, vector<1x1x96xf32>
    %335 = vector.shape_cast %334 : vector<1x1x96xf32> to vector<1x96xf32>
    %c1_148 = arith.constant 1 : index
    %c1_149 = arith.constant 1 : index
    %c0_150 = arith.constant 0 : index
    %336 = vector.load %arg6[%c1_148, %c1_149, %c0_150] : memref<2x16x96xf32, #tpu.memory_space<vmem>>, vector<1x1x32xf32>
    %337 = vector.shape_cast %336 : vector<1x1x32xf32> to vector<1x32xf32>
    %c1_151 = arith.constant 1 : index
    %c1_152 = arith.constant 1 : index
    %c32_153 = arith.constant 32 : index
    %338 = vector.load %arg6[%c1_151, %c1_152, %c32_153] : memref<2x16x96xf32, #tpu.memory_space<vmem>>, vector<1x1x64xf32>
    %339 = vector.shape_cast %338 : vector<1x1x64xf32> to vector<1x64xf32>
    %c1_154 = arith.constant 1 : index
    %c2_155 = arith.constant 2 : index
    %c0_156 = arith.constant 0 : index
    %340 = vector.load %arg6[%c1_154, %c2_155, %c0_156] : memref<2x16x96xf32, #tpu.memory_space<vmem>>, vector<1x1x32xf32>
    %341 = vector.shape_cast %340 : vector<1x1x32xf32> to vector<1x32xf32>
    %c1_157 = arith.constant 1 : index
    %c3_158 = arith.constant 3 : index
    %c0_159 = arith.constant 0 : index
    %342 = vector.load %arg6[%c1_157, %c3_158, %c0_159] : memref<2x16x96xf32, #tpu.memory_space<vmem>>, vector<1x1x32xf32>
    %343 = vector.shape_cast %342 : vector<1x1x32xf32> to vector<1x32xf32>
    %c1_160 = arith.constant 1 : index
    %c4_161 = arith.constant 4 : index
    %c0_162 = arith.constant 0 : index
    %344 = vector.load %arg6[%c1_160, %c4_161, %c0_162] : memref<2x16x96xf32, #tpu.memory_space<vmem>>, vector<1x1x64xf32>
    %345 = vector.shape_cast %344 : vector<1x1x64xf32> to vector<1x64xf32>
    %c1_163 = arith.constant 1 : index
    %c5_164 = arith.constant 5 : index
    %c0_165 = arith.constant 0 : index
    %346 = vector.load %arg6[%c1_163, %c5_164, %c0_165] : memref<2x16x96xf32, #tpu.memory_space<vmem>>, vector<1x1x32xf32>
    %347 = vector.shape_cast %346 : vector<1x1x32xf32> to vector<1x32xf32>
    %c1_166 = arith.constant 1 : index
    %c6_167 = arith.constant 6 : index
    %c0_168 = arith.constant 0 : index
    %348 = vector.load %arg6[%c1_166, %c6_167, %c0_168] : memref<2x16x96xf32, #tpu.memory_space<vmem>>, vector<1x1x32xf32>
    %349 = vector.shape_cast %348 : vector<1x1x32xf32> to vector<1x32xf32>
    %c1_169 = arith.constant 1 : index
    %c7_170 = arith.constant 7 : index
    %c0_171 = arith.constant 0 : index
    %350 = vector.load %arg6[%c1_169, %c7_170, %c0_171] : memref<2x16x96xf32, #tpu.memory_space<vmem>>, vector<1x1x32xf32>
    %351 = vector.shape_cast %350 : vector<1x1x32xf32> to vector<1x32xf32>
    %c1_172 = arith.constant 1 : index
    %c8_173 = arith.constant 8 : index
    %c0_174 = arith.constant 0 : index
    %352 = vector.load %arg6[%c1_172, %c8_173, %c0_174] : memref<2x16x96xf32, #tpu.memory_space<vmem>>, vector<1x1x32xf32>
    %353 = vector.shape_cast %352 : vector<1x1x32xf32> to vector<1x32xf32>
    %c1_175 = arith.constant 1 : index
    %c9_176 = arith.constant 9 : index
    %c0_177 = arith.constant 0 : index
    %354 = vector.load %arg6[%c1_175, %c9_176, %c0_177] : memref<2x16x96xf32, #tpu.memory_space<vmem>>, vector<1x1x32xf32>
    %355 = vector.shape_cast %354 : vector<1x1x32xf32> to vector<1x32xf32>
    %c1_178 = arith.constant 1 : index
    %c10_179 = arith.constant 10 : index
    %c0_180 = arith.constant 0 : index
    %356 = vector.load %arg6[%c1_178, %c10_179, %c0_180] : memref<2x16x96xf32, #tpu.memory_space<vmem>>, vector<1x1x32xf32>
    %357 = vector.shape_cast %356 : vector<1x1x32xf32> to vector<1x32xf32>
    %c1_181 = arith.constant 1 : index
    %c11_182 = arith.constant 11 : index
    %c0_183 = arith.constant 0 : index
    %358 = vector.load %arg6[%c1_181, %c11_182, %c0_183] : memref<2x16x96xf32, #tpu.memory_space<vmem>>, vector<1x1x32xf32>
    %359 = vector.shape_cast %358 : vector<1x1x32xf32> to vector<1x32xf32>
    %cst_184 = arith.constant dense<0.000000e+00> : vector<8xf32>
    %360 = vector.multi_reduction <add>, %319, %cst_184 [1] : vector<8x32xf32> to vector<8xf32>
    %361 = vector.shape_cast %360 : vector<8xf32> to vector<8x1xf32>
    %cst_185 = arith.constant 3.200000e+01 : f32
    %362 = vector.broadcast %cst_185 : f32 to vector<8x1xf32>
    %363 = arith.divf %361, %362 : vector<8x1xf32>
    %364 = vector.broadcast %363 : vector<8x1xf32> to vector<8x32xf32>
    %365 = arith.subf %319, %364 : vector<8x32xf32>
    %366 = arith.mulf %365, %365 : vector<8x32xf32>
    %cst_186 = arith.constant dense<0.000000e+00> : vector<8xf32>
    %367 = vector.multi_reduction <add>, %366, %cst_186 [1] : vector<8x32xf32> to vector<8xf32>
    %368 = vector.shape_cast %367 : vector<8xf32> to vector<8x1xf32>
    %cst_187 = arith.constant 0.0322580636 : f32
    %369 = vector.broadcast %cst_187 : f32 to vector<8x1xf32>
    %370 = arith.mulf %368, %369 : vector<8x1xf32>
    %371 = math.sqrt %370 : vector<8x1xf32>
    %cst_188 = arith.constant 9.99999997E-7 : f32
    %372 = vector.broadcast %cst_188 : f32 to vector<8x1xf32>
    %373 = arith.addf %371, %372 : vector<8x1xf32>
    %374 = tpu.reciprocal %373 {approx = true} : vector<8x1xf32> -> vector<8x1xf32>
    %375 = vector.broadcast %363 : vector<8x1xf32> to vector<8x32xf32>
    %376 = arith.subf %319, %375 : vector<8x32xf32>
    %377 = vector.broadcast %349 : vector<1x32xf32> to vector<8x32xf32>
    %378 = arith.mulf %377, %376 : vector<8x32xf32>
    %379 = vector.broadcast %374 : vector<8x1xf32> to vector<8x32xf32>
    %380 = arith.mulf %378, %379 : vector<8x32xf32>
    %381 = vector.broadcast %351 : vector<1x32xf32> to vector<8x32xf32>
    %382 = arith.addf %380, %381 : vector<8x32xf32>
    %cst_189 = arith.constant dense<0.000000e+00> : vector<8x96xf32>
    %383 = tpu.matmul %382, %321, %cst_189 {dimension_numbers = #tpu.dot_dimension_numbers<[1], [0], [0], [1], [0, 0, 1, 1], [], []>, precision = #tpu.contract_precision<fp32>} : vector<8x32xf32>, vector<32x96xf32>, vector<8x96xf32> -> vector<8x96xf32>
    %384 = vector.broadcast %335 : vector<1x96xf32> to vector<8x96xf32>
    %385 = arith.addf %383, %384 : vector<8x96xf32>
    %386 = vector.extract_strided_slice %385 {offsets = [0, 0], sizes = [8, 32], strides = [1, 1]} : vector<8x96xf32> to vector<8x32xf32>
    %387 = vector.extract_strided_slice %385 {offsets = [0, 32], sizes = [8, 32], strides = [1, 1]} : vector<8x96xf32> to vector<8x32xf32>
    %388 = vector.extract_strided_slice %385 {offsets = [0, 64], sizes = [8, 32], strides = [1, 1]} : vector<8x96xf32> to vector<8x32xf32>
    %389 = vector.extract_strided_slice %386 {offsets = [0, 0], sizes = [8, 8], strides = [1, 1]} : vector<8x32xf32> to vector<8x8xf32>
    %390 = vector.extract_strided_slice %387 {offsets = [0, 0], sizes = [8, 8], strides = [1, 1]} : vector<8x32xf32> to vector<8x8xf32>
    %391 = tpu.transpose %390, [1, 0] : vector<8x8xf32> -> vector<8x8xf32>
    %cst_190 = arith.constant dense<0.000000e+00> : vector<8x8xf32>
    %392 = tpu.matmul %389, %391, %cst_190 {dimension_numbers = #tpu.dot_dimension_numbers<[1], [0], [0], [1], [0, 0, 1, 1], [], []>, precision = #tpu.contract_precision<fp32>} : vector<8x8xf32>, vector<8x8xf32>, vector<8x8xf32> -> vector<8x8xf32>
    %cst_191 = arith.constant 0.353553385 : f32
    %393 = vector.broadcast %cst_191 : f32 to vector<8x8xf32>
    %394 = arith.mulf %392, %393 : vector<8x8xf32>
    %395 = arith.addf %394, %5 : vector<8x8xf32>
    %cst_192 = arith.constant dense<0xFF800000> : vector<8xf32>
    %396 = vector.multi_reduction <maximumf>, %395, %cst_192 [1] : vector<8x8xf32> to vector<8xf32>
    %397 = vector.shape_cast %396 : vector<8xf32> to vector<8x1xf32>
    %398 = vector.broadcast %397 : vector<8x1xf32> to vector<8x8xf32>
    %399 = arith.subf %395, %398 : vector<8x8xf32>
    %400 = math.exp %399 : vector<8x8xf32>
    %cst_193 = arith.constant dense<0.000000e+00> : vector<8xf32>
    %401 = vector.multi_reduction <add>, %400, %cst_193 [1] : vector<8x8xf32> to vector<8xf32>
    %402 = vector.shape_cast %401 : vector<8xf32> to vector<8x1xf32>
    %403 = tpu.reciprocal %402 {approx = true} : vector<8x1xf32> -> vector<8x1xf32>
    %404 = vector.broadcast %403 : vector<8x1xf32> to vector<8x8xf32>
    %405 = arith.mulf %400, %404 : vector<8x8xf32>
    %406 = vector.extract_strided_slice %388 {offsets = [0, 0], sizes = [8, 8], strides = [1, 1]} : vector<8x32xf32> to vector<8x8xf32>
    %cst_194 = arith.constant dense<0.000000e+00> : vector<8x8xf32>
    %407 = tpu.matmul %405, %406, %cst_194 {dimension_numbers = #tpu.dot_dimension_numbers<[1], [0], [0], [1], [0, 0, 1, 1], [], []>, precision = #tpu.contract_precision<fp32>} : vector<8x8xf32>, vector<8x8xf32>, vector<8x8xf32> -> vector<8x8xf32>
    %408 = vector.extract_strided_slice %327 {offsets = [0, 0], sizes = [8, 32], strides = [1, 1]} : vector<32x32xf32> to vector<8x32xf32>
    %cst_195 = arith.constant dense<0.000000e+00> : vector<8x32xf32>
    %409 = tpu.matmul %407, %408, %cst_195 {dimension_numbers = #tpu.dot_dimension_numbers<[1], [0], [0], [1], [0, 0, 1, 1], [], []>, precision = #tpu.contract_precision<fp32>} : vector<8x8xf32>, vector<8x32xf32>, vector<8x32xf32> -> vector<8x32xf32>
    %410 = vector.extract_strided_slice %386 {offsets = [0, 8], sizes = [8, 8], strides = [1, 1]} : vector<8x32xf32> to vector<8x8xf32>
    %411 = vector.extract_strided_slice %387 {offsets = [0, 8], sizes = [8, 8], strides = [1, 1]} : vector<8x32xf32> to vector<8x8xf32>
    %412 = tpu.transpose %411, [1, 0] : vector<8x8xf32> -> vector<8x8xf32>
    %cst_196 = arith.constant dense<0.000000e+00> : vector<8x8xf32>
    %413 = tpu.matmul %410, %412, %cst_196 {dimension_numbers = #tpu.dot_dimension_numbers<[1], [0], [0], [1], [0, 0, 1, 1], [], []>, precision = #tpu.contract_precision<fp32>} : vector<8x8xf32>, vector<8x8xf32>, vector<8x8xf32> -> vector<8x8xf32>
    %cst_197 = arith.constant 0.353553385 : f32
    %414 = vector.broadcast %cst_197 : f32 to vector<8x8xf32>
    %415 = arith.mulf %413, %414 : vector<8x8xf32>
    %416 = arith.addf %415, %5 : vector<8x8xf32>
    %cst_198 = arith.constant dense<0xFF800000> : vector<8xf32>
    %417 = vector.multi_reduction <maximumf>, %416, %cst_198 [1] : vector<8x8xf32> to vector<8xf32>
    %418 = vector.shape_cast %417 : vector<8xf32> to vector<8x1xf32>
    %419 = vector.broadcast %418 : vector<8x1xf32> to vector<8x8xf32>
    %420 = arith.subf %416, %419 : vector<8x8xf32>
    %421 = math.exp %420 : vector<8x8xf32>
    %cst_199 = arith.constant dense<0.000000e+00> : vector<8xf32>
    %422 = vector.multi_reduction <add>, %421, %cst_199 [1] : vector<8x8xf32> to vector<8xf32>
    %423 = vector.shape_cast %422 : vector<8xf32> to vector<8x1xf32>
    %424 = tpu.reciprocal %423 {approx = true} : vector<8x1xf32> -> vector<8x1xf32>
    %425 = vector.broadcast %424 : vector<8x1xf32> to vector<8x8xf32>
    %426 = arith.mulf %421, %425 : vector<8x8xf32>
    %427 = vector.extract_strided_slice %388 {offsets = [0, 8], sizes = [8, 8], strides = [1, 1]} : vector<8x32xf32> to vector<8x8xf32>
    %cst_200 = arith.constant dense<0.000000e+00> : vector<8x8xf32>
    %428 = tpu.matmul %426, %427, %cst_200 {dimension_numbers = #tpu.dot_dimension_numbers<[1], [0], [0], [1], [0, 0, 1, 1], [], []>, precision = #tpu.contract_precision<fp32>} : vector<8x8xf32>, vector<8x8xf32>, vector<8x8xf32> -> vector<8x8xf32>
    %429 = vector.extract_strided_slice %327 {offsets = [8, 0], sizes = [8, 32], strides = [1, 1]} : vector<32x32xf32> to vector<8x32xf32>
    %cst_201 = arith.constant dense<0.000000e+00> : vector<8x32xf32>
    %430 = tpu.matmul %428, %429, %cst_201 {dimension_numbers = #tpu.dot_dimension_numbers<[1], [0], [0], [1], [0, 0, 1, 1], [], []>, precision = #tpu.contract_precision<fp32>} : vector<8x8xf32>, vector<8x32xf32>, vector<8x32xf32> -> vector<8x32xf32>
    %431 = arith.addf %409, %430 : vector<8x32xf32>
    %432 = vector.extract_strided_slice %386 {offsets = [0, 16], sizes = [8, 8], strides = [1, 1]} : vector<8x32xf32> to vector<8x8xf32>
    %433 = vector.extract_strided_slice %387 {offsets = [0, 16], sizes = [8, 8], strides = [1, 1]} : vector<8x32xf32> to vector<8x8xf32>
    %434 = tpu.transpose %433, [1, 0] : vector<8x8xf32> -> vector<8x8xf32>
    %cst_202 = arith.constant dense<0.000000e+00> : vector<8x8xf32>
    %435 = tpu.matmul %432, %434, %cst_202 {dimension_numbers = #tpu.dot_dimension_numbers<[1], [0], [0], [1], [0, 0, 1, 1], [], []>, precision = #tpu.contract_precision<fp32>} : vector<8x8xf32>, vector<8x8xf32>, vector<8x8xf32> -> vector<8x8xf32>
    %cst_203 = arith.constant 0.353553385 : f32
    %436 = vector.broadcast %cst_203 : f32 to vector<8x8xf32>
    %437 = arith.mulf %435, %436 : vector<8x8xf32>
    %438 = arith.addf %437, %5 : vector<8x8xf32>
    %cst_204 = arith.constant dense<0xFF800000> : vector<8xf32>
    %439 = vector.multi_reduction <maximumf>, %438, %cst_204 [1] : vector<8x8xf32> to vector<8xf32>
    %440 = vector.shape_cast %439 : vector<8xf32> to vector<8x1xf32>
    %441 = vector.broadcast %440 : vector<8x1xf32> to vector<8x8xf32>
    %442 = arith.subf %438, %441 : vector<8x8xf32>
    %443 = math.exp %442 : vector<8x8xf32>
    %cst_205 = arith.constant dense<0.000000e+00> : vector<8xf32>
    %444 = vector.multi_reduction <add>, %443, %cst_205 [1] : vector<8x8xf32> to vector<8xf32>
    %445 = vector.shape_cast %444 : vector<8xf32> to vector<8x1xf32>
    %446 = tpu.reciprocal %445 {approx = true} : vector<8x1xf32> -> vector<8x1xf32>
    %447 = vector.broadcast %446 : vector<8x1xf32> to vector<8x8xf32>
    %448 = arith.mulf %443, %447 : vector<8x8xf32>
    %449 = vector.extract_strided_slice %388 {offsets = [0, 16], sizes = [8, 8], strides = [1, 1]} : vector<8x32xf32> to vector<8x8xf32>
    %cst_206 = arith.constant dense<0.000000e+00> : vector<8x8xf32>
    %450 = tpu.matmul %448, %449, %cst_206 {dimension_numbers = #tpu.dot_dimension_numbers<[1], [0], [0], [1], [0, 0, 1, 1], [], []>, precision = #tpu.contract_precision<fp32>} : vector<8x8xf32>, vector<8x8xf32>, vector<8x8xf32> -> vector<8x8xf32>
    %451 = vector.extract_strided_slice %327 {offsets = [16, 0], sizes = [8, 32], strides = [1, 1]} : vector<32x32xf32> to vector<8x32xf32>
    %cst_207 = arith.constant dense<0.000000e+00> : vector<8x32xf32>
    %452 = tpu.matmul %450, %451, %cst_207 {dimension_numbers = #tpu.dot_dimension_numbers<[1], [0], [0], [1], [0, 0, 1, 1], [], []>, precision = #tpu.contract_precision<fp32>} : vector<8x8xf32>, vector<8x32xf32>, vector<8x32xf32> -> vector<8x32xf32>
    %453 = arith.addf %431, %452 : vector<8x32xf32>
    %454 = vector.extract_strided_slice %386 {offsets = [0, 24], sizes = [8, 8], strides = [1, 1]} : vector<8x32xf32> to vector<8x8xf32>
    %455 = vector.extract_strided_slice %387 {offsets = [0, 24], sizes = [8, 8], strides = [1, 1]} : vector<8x32xf32> to vector<8x8xf32>
    %456 = tpu.transpose %455, [1, 0] : vector<8x8xf32> -> vector<8x8xf32>
    %cst_208 = arith.constant dense<0.000000e+00> : vector<8x8xf32>
    %457 = tpu.matmul %454, %456, %cst_208 {dimension_numbers = #tpu.dot_dimension_numbers<[1], [0], [0], [1], [0, 0, 1, 1], [], []>, precision = #tpu.contract_precision<fp32>} : vector<8x8xf32>, vector<8x8xf32>, vector<8x8xf32> -> vector<8x8xf32>
    %cst_209 = arith.constant 0.353553385 : f32
    %458 = vector.broadcast %cst_209 : f32 to vector<8x8xf32>
    %459 = arith.mulf %457, %458 : vector<8x8xf32>
    %460 = arith.addf %459, %5 : vector<8x8xf32>
    %cst_210 = arith.constant dense<0xFF800000> : vector<8xf32>
    %461 = vector.multi_reduction <maximumf>, %460, %cst_210 [1] : vector<8x8xf32> to vector<8xf32>
    %462 = vector.shape_cast %461 : vector<8xf32> to vector<8x1xf32>
    %463 = vector.broadcast %462 : vector<8x1xf32> to vector<8x8xf32>
    %464 = arith.subf %460, %463 : vector<8x8xf32>
    %465 = math.exp %464 : vector<8x8xf32>
    %cst_211 = arith.constant dense<0.000000e+00> : vector<8xf32>
    %466 = vector.multi_reduction <add>, %465, %cst_211 [1] : vector<8x8xf32> to vector<8xf32>
    %467 = vector.shape_cast %466 : vector<8xf32> to vector<8x1xf32>
    %468 = tpu.reciprocal %467 {approx = true} : vector<8x1xf32> -> vector<8x1xf32>
    %469 = vector.broadcast %468 : vector<8x1xf32> to vector<8x8xf32>
    %470 = arith.mulf %465, %469 : vector<8x8xf32>
    %471 = vector.extract_strided_slice %388 {offsets = [0, 24], sizes = [8, 8], strides = [1, 1]} : vector<8x32xf32> to vector<8x8xf32>
    %cst_212 = arith.constant dense<0.000000e+00> : vector<8x8xf32>
    %472 = tpu.matmul %470, %471, %cst_212 {dimension_numbers = #tpu.dot_dimension_numbers<[1], [0], [0], [1], [0, 0, 1, 1], [], []>, precision = #tpu.contract_precision<fp32>} : vector<8x8xf32>, vector<8x8xf32>, vector<8x8xf32> -> vector<8x8xf32>
    %473 = vector.extract_strided_slice %327 {offsets = [24, 0], sizes = [8, 32], strides = [1, 1]} : vector<32x32xf32> to vector<8x32xf32>
    %cst_213 = arith.constant dense<0.000000e+00> : vector<8x32xf32>
    %474 = tpu.matmul %472, %473, %cst_213 {dimension_numbers = #tpu.dot_dimension_numbers<[1], [0], [0], [1], [0, 0, 1, 1], [], []>, precision = #tpu.contract_precision<fp32>} : vector<8x8xf32>, vector<8x32xf32>, vector<8x32xf32> -> vector<8x32xf32>
    %475 = arith.addf %453, %474 : vector<8x32xf32>
    %476 = vector.broadcast %341 : vector<1x32xf32> to vector<8x32xf32>
    %477 = arith.addf %475, %476 : vector<8x32xf32>
    %478 = arith.addf %319, %477 : vector<8x32xf32>
    %cst_214 = arith.constant dense<0.000000e+00> : vector<8xf32>
    %479 = vector.multi_reduction <add>, %478, %cst_214 [1] : vector<8x32xf32> to vector<8xf32>
    %480 = vector.shape_cast %479 : vector<8xf32> to vector<8x1xf32>
    %cst_215 = arith.constant 3.200000e+01 : f32
    %481 = vector.broadcast %cst_215 : f32 to vector<8x1xf32>
    %482 = arith.divf %480, %481 : vector<8x1xf32>
    %483 = vector.broadcast %482 : vector<8x1xf32> to vector<8x32xf32>
    %484 = arith.subf %478, %483 : vector<8x32xf32>
    %485 = arith.mulf %484, %484 : vector<8x32xf32>
    %cst_216 = arith.constant dense<0.000000e+00> : vector<8xf32>
    %486 = vector.multi_reduction <add>, %485, %cst_216 [1] : vector<8x32xf32> to vector<8xf32>
    %487 = vector.shape_cast %486 : vector<8xf32> to vector<8x1xf32>
    %cst_217 = arith.constant 0.0322580636 : f32
    %488 = vector.broadcast %cst_217 : f32 to vector<8x1xf32>
    %489 = arith.mulf %487, %488 : vector<8x1xf32>
    %490 = math.sqrt %489 : vector<8x1xf32>
    %cst_218 = arith.constant 9.99999997E-7 : f32
    %491 = vector.broadcast %cst_218 : f32 to vector<8x1xf32>
    %492 = arith.addf %490, %491 : vector<8x1xf32>
    %493 = tpu.reciprocal %492 {approx = true} : vector<8x1xf32> -> vector<8x1xf32>
    %494 = vector.broadcast %482 : vector<8x1xf32> to vector<8x32xf32>
    %495 = arith.subf %478, %494 : vector<8x32xf32>
    %496 = vector.broadcast %353 : vector<1x32xf32> to vector<8x32xf32>
    %497 = arith.mulf %496, %495 : vector<8x32xf32>
    %498 = vector.broadcast %493 : vector<8x1xf32> to vector<8x32xf32>
    %499 = arith.mulf %497, %498 : vector<8x32xf32>
    %500 = vector.broadcast %355 : vector<1x32xf32> to vector<8x32xf32>
    %501 = arith.addf %499, %500 : vector<8x32xf32>
    %cst_219 = arith.constant dense<0.000000e+00> : vector<8x32xf32>
    %502 = tpu.matmul %501, %323, %cst_219 {dimension_numbers = #tpu.dot_dimension_numbers<[1], [0], [0], [1], [0, 0, 1, 1], [], []>, precision = #tpu.contract_precision<fp32>} : vector<8x32xf32>, vector<32x32xf32>, vector<8x32xf32> -> vector<8x32xf32>
    %503 = vector.broadcast %337 : vector<1x32xf32> to vector<8x32xf32>
    %504 = arith.addf %502, %503 : vector<8x32xf32>
    %cst_220 = arith.constant dense<0.000000e+00> : vector<16x64xf32>
    %505 = tpu.matmul %3, %325, %cst_220 {dimension_numbers = #tpu.dot_dimension_numbers<[1], [0], [0], [1], [0, 0, 1, 1], [], []>, precision = #tpu.contract_precision<fp32>} : vector<16x32xf32>, vector<32x64xf32>, vector<16x64xf32> -> vector<16x64xf32>
    %506 = vector.broadcast %339 : vector<1x64xf32> to vector<16x64xf32>
    %507 = arith.addf %505, %506 : vector<16x64xf32>
    %508 = vector.extract_strided_slice %507 {offsets = [0, 0], sizes = [16, 32], strides = [1, 1]} : vector<16x64xf32> to vector<16x32xf32>
    %509 = vector.extract_strided_slice %507 {offsets = [0, 32], sizes = [16, 32], strides = [1, 1]} : vector<16x64xf32> to vector<16x32xf32>
    %510 = vector.extract_strided_slice %504 {offsets = [0, 0], sizes = [8, 8], strides = [1, 1]} : vector<8x32xf32> to vector<8x8xf32>
    %511 = vector.extract_strided_slice %508 {offsets = [0, 0], sizes = [16, 8], strides = [1, 1]} : vector<16x32xf32> to vector<16x8xf32>
    %512 = tpu.transpose %511, [1, 0] : vector<16x8xf32> -> vector<8x16xf32>
    %cst_221 = arith.constant dense<0.000000e+00> : vector<8x16xf32>
    %513 = tpu.matmul %510, %512, %cst_221 {dimension_numbers = #tpu.dot_dimension_numbers<[1], [0], [0], [1], [0, 0, 1, 1], [], []>, precision = #tpu.contract_precision<fp32>} : vector<8x8xf32>, vector<8x16xf32>, vector<8x16xf32> -> vector<8x16xf32>
    %cst_222 = arith.constant 0.353553385 : f32
    %514 = vector.broadcast %cst_222 : f32 to vector<8x16xf32>
    %515 = arith.mulf %513, %514 : vector<8x16xf32>
    %516 = arith.addf %515, %7 : vector<8x16xf32>
    %cst_223 = arith.constant dense<0xFF800000> : vector<8xf32>
    %517 = vector.multi_reduction <maximumf>, %516, %cst_223 [1] : vector<8x16xf32> to vector<8xf32>
    %518 = vector.shape_cast %517 : vector<8xf32> to vector<8x1xf32>
    %519 = vector.broadcast %518 : vector<8x1xf32> to vector<8x16xf32>
    %520 = arith.subf %516, %519 : vector<8x16xf32>
    %521 = math.exp %520 : vector<8x16xf32>
    %cst_224 = arith.constant dense<0.000000e+00> : vector<8xf32>
    %522 = vector.multi_reduction <add>, %521, %cst_224 [1] : vector<8x16xf32> to vector<8xf32>
    %523 = vector.shape_cast %522 : vector<8xf32> to vector<8x1xf32>
    %524 = tpu.reciprocal %523 {approx = true} : vector<8x1xf32> -> vector<8x1xf32>
    %525 = vector.broadcast %524 : vector<8x1xf32> to vector<8x16xf32>
    %526 = arith.mulf %521, %525 : vector<8x16xf32>
    %527 = vector.extract_strided_slice %509 {offsets = [0, 0], sizes = [16, 8], strides = [1, 1]} : vector<16x32xf32> to vector<16x8xf32>
    %cst_225 = arith.constant dense<0.000000e+00> : vector<8x8xf32>
    %528 = tpu.matmul %526, %527, %cst_225 {dimension_numbers = #tpu.dot_dimension_numbers<[1], [0], [0], [1], [0, 0, 1, 1], [], []>, precision = #tpu.contract_precision<fp32>} : vector<8x16xf32>, vector<16x8xf32>, vector<8x8xf32> -> vector<8x8xf32>
    %529 = vector.extract_strided_slice %329 {offsets = [0, 0], sizes = [8, 32], strides = [1, 1]} : vector<32x32xf32> to vector<8x32xf32>
    %cst_226 = arith.constant dense<0.000000e+00> : vector<8x32xf32>
    %530 = tpu.matmul %528, %529, %cst_226 {dimension_numbers = #tpu.dot_dimension_numbers<[1], [0], [0], [1], [0, 0, 1, 1], [], []>, precision = #tpu.contract_precision<fp32>} : vector<8x8xf32>, vector<8x32xf32>, vector<8x32xf32> -> vector<8x32xf32>
    %531 = vector.extract_strided_slice %504 {offsets = [0, 8], sizes = [8, 8], strides = [1, 1]} : vector<8x32xf32> to vector<8x8xf32>
    %532 = vector.extract_strided_slice %508 {offsets = [0, 8], sizes = [16, 8], strides = [1, 1]} : vector<16x32xf32> to vector<16x8xf32>
    %533 = tpu.transpose %532, [1, 0] : vector<16x8xf32> -> vector<8x16xf32>
    %cst_227 = arith.constant dense<0.000000e+00> : vector<8x16xf32>
    %534 = tpu.matmul %531, %533, %cst_227 {dimension_numbers = #tpu.dot_dimension_numbers<[1], [0], [0], [1], [0, 0, 1, 1], [], []>, precision = #tpu.contract_precision<fp32>} : vector<8x8xf32>, vector<8x16xf32>, vector<8x16xf32> -> vector<8x16xf32>
    %cst_228 = arith.constant 0.353553385 : f32
    %535 = vector.broadcast %cst_228 : f32 to vector<8x16xf32>
    %536 = arith.mulf %534, %535 : vector<8x16xf32>
    %537 = arith.addf %536, %7 : vector<8x16xf32>
    %cst_229 = arith.constant dense<0xFF800000> : vector<8xf32>
    %538 = vector.multi_reduction <maximumf>, %537, %cst_229 [1] : vector<8x16xf32> to vector<8xf32>
    %539 = vector.shape_cast %538 : vector<8xf32> to vector<8x1xf32>
    %540 = vector.broadcast %539 : vector<8x1xf32> to vector<8x16xf32>
    %541 = arith.subf %537, %540 : vector<8x16xf32>
    %542 = math.exp %541 : vector<8x16xf32>
    %cst_230 = arith.constant dense<0.000000e+00> : vector<8xf32>
    %543 = vector.multi_reduction <add>, %542, %cst_230 [1] : vector<8x16xf32> to vector<8xf32>
    %544 = vector.shape_cast %543 : vector<8xf32> to vector<8x1xf32>
    %545 = tpu.reciprocal %544 {approx = true} : vector<8x1xf32> -> vector<8x1xf32>
    %546 = vector.broadcast %545 : vector<8x1xf32> to vector<8x16xf32>
    %547 = arith.mulf %542, %546 : vector<8x16xf32>
    %548 = vector.extract_strided_slice %509 {offsets = [0, 8], sizes = [16, 8], strides = [1, 1]} : vector<16x32xf32> to vector<16x8xf32>
    %cst_231 = arith.constant dense<0.000000e+00> : vector<8x8xf32>
    %549 = tpu.matmul %547, %548, %cst_231 {dimension_numbers = #tpu.dot_dimension_numbers<[1], [0], [0], [1], [0, 0, 1, 1], [], []>, precision = #tpu.contract_precision<fp32>} : vector<8x16xf32>, vector<16x8xf32>, vector<8x8xf32> -> vector<8x8xf32>
    %550 = vector.extract_strided_slice %329 {offsets = [8, 0], sizes = [8, 32], strides = [1, 1]} : vector<32x32xf32> to vector<8x32xf32>
    %cst_232 = arith.constant dense<0.000000e+00> : vector<8x32xf32>
    %551 = tpu.matmul %549, %550, %cst_232 {dimension_numbers = #tpu.dot_dimension_numbers<[1], [0], [0], [1], [0, 0, 1, 1], [], []>, precision = #tpu.contract_precision<fp32>} : vector<8x8xf32>, vector<8x32xf32>, vector<8x32xf32> -> vector<8x32xf32>
    %552 = arith.addf %530, %551 : vector<8x32xf32>
    %553 = vector.extract_strided_slice %504 {offsets = [0, 16], sizes = [8, 8], strides = [1, 1]} : vector<8x32xf32> to vector<8x8xf32>
    %554 = vector.extract_strided_slice %508 {offsets = [0, 16], sizes = [16, 8], strides = [1, 1]} : vector<16x32xf32> to vector<16x8xf32>
    %555 = tpu.transpose %554, [1, 0] : vector<16x8xf32> -> vector<8x16xf32>
    %cst_233 = arith.constant dense<0.000000e+00> : vector<8x16xf32>
    %556 = tpu.matmul %553, %555, %cst_233 {dimension_numbers = #tpu.dot_dimension_numbers<[1], [0], [0], [1], [0, 0, 1, 1], [], []>, precision = #tpu.contract_precision<fp32>} : vector<8x8xf32>, vector<8x16xf32>, vector<8x16xf32> -> vector<8x16xf32>
    %cst_234 = arith.constant 0.353553385 : f32
    %557 = vector.broadcast %cst_234 : f32 to vector<8x16xf32>
    %558 = arith.mulf %556, %557 : vector<8x16xf32>
    %559 = arith.addf %558, %7 : vector<8x16xf32>
    %cst_235 = arith.constant dense<0xFF800000> : vector<8xf32>
    %560 = vector.multi_reduction <maximumf>, %559, %cst_235 [1] : vector<8x16xf32> to vector<8xf32>
    %561 = vector.shape_cast %560 : vector<8xf32> to vector<8x1xf32>
    %562 = vector.broadcast %561 : vector<8x1xf32> to vector<8x16xf32>
    %563 = arith.subf %559, %562 : vector<8x16xf32>
    %564 = math.exp %563 : vector<8x16xf32>
    %cst_236 = arith.constant dense<0.000000e+00> : vector<8xf32>
    %565 = vector.multi_reduction <add>, %564, %cst_236 [1] : vector<8x16xf32> to vector<8xf32>
    %566 = vector.shape_cast %565 : vector<8xf32> to vector<8x1xf32>
    %567 = tpu.reciprocal %566 {approx = true} : vector<8x1xf32> -> vector<8x1xf32>
    %568 = vector.broadcast %567 : vector<8x1xf32> to vector<8x16xf32>
    %569 = arith.mulf %564, %568 : vector<8x16xf32>
    %570 = vector.extract_strided_slice %509 {offsets = [0, 16], sizes = [16, 8], strides = [1, 1]} : vector<16x32xf32> to vector<16x8xf32>
    %cst_237 = arith.constant dense<0.000000e+00> : vector<8x8xf32>
    %571 = tpu.matmul %569, %570, %cst_237 {dimension_numbers = #tpu.dot_dimension_numbers<[1], [0], [0], [1], [0, 0, 1, 1], [], []>, precision = #tpu.contract_precision<fp32>} : vector<8x16xf32>, vector<16x8xf32>, vector<8x8xf32> -> vector<8x8xf32>
    %572 = vector.extract_strided_slice %329 {offsets = [16, 0], sizes = [8, 32], strides = [1, 1]} : vector<32x32xf32> to vector<8x32xf32>
    %cst_238 = arith.constant dense<0.000000e+00> : vector<8x32xf32>
    %573 = tpu.matmul %571, %572, %cst_238 {dimension_numbers = #tpu.dot_dimension_numbers<[1], [0], [0], [1], [0, 0, 1, 1], [], []>, precision = #tpu.contract_precision<fp32>} : vector<8x8xf32>, vector<8x32xf32>, vector<8x32xf32> -> vector<8x32xf32>
    %574 = arith.addf %552, %573 : vector<8x32xf32>
    %575 = vector.extract_strided_slice %504 {offsets = [0, 24], sizes = [8, 8], strides = [1, 1]} : vector<8x32xf32> to vector<8x8xf32>
    %576 = vector.extract_strided_slice %508 {offsets = [0, 24], sizes = [16, 8], strides = [1, 1]} : vector<16x32xf32> to vector<16x8xf32>
    %577 = tpu.transpose %576, [1, 0] : vector<16x8xf32> -> vector<8x16xf32>
    %cst_239 = arith.constant dense<0.000000e+00> : vector<8x16xf32>
    %578 = tpu.matmul %575, %577, %cst_239 {dimension_numbers = #tpu.dot_dimension_numbers<[1], [0], [0], [1], [0, 0, 1, 1], [], []>, precision = #tpu.contract_precision<fp32>} : vector<8x8xf32>, vector<8x16xf32>, vector<8x16xf32> -> vector<8x16xf32>
    %cst_240 = arith.constant 0.353553385 : f32
    %579 = vector.broadcast %cst_240 : f32 to vector<8x16xf32>
    %580 = arith.mulf %578, %579 : vector<8x16xf32>
    %581 = arith.addf %580, %7 : vector<8x16xf32>
    %cst_241 = arith.constant dense<0xFF800000> : vector<8xf32>
    %582 = vector.multi_reduction <maximumf>, %581, %cst_241 [1] : vector<8x16xf32> to vector<8xf32>
    %583 = vector.shape_cast %582 : vector<8xf32> to vector<8x1xf32>
    %584 = vector.broadcast %583 : vector<8x1xf32> to vector<8x16xf32>
    %585 = arith.subf %581, %584 : vector<8x16xf32>
    %586 = math.exp %585 : vector<8x16xf32>
    %cst_242 = arith.constant dense<0.000000e+00> : vector<8xf32>
    %587 = vector.multi_reduction <add>, %586, %cst_242 [1] : vector<8x16xf32> to vector<8xf32>
    %588 = vector.shape_cast %587 : vector<8xf32> to vector<8x1xf32>
    %589 = tpu.reciprocal %588 {approx = true} : vector<8x1xf32> -> vector<8x1xf32>
    %590 = vector.broadcast %589 : vector<8x1xf32> to vector<8x16xf32>
    %591 = arith.mulf %586, %590 : vector<8x16xf32>
    %592 = vector.extract_strided_slice %509 {offsets = [0, 24], sizes = [16, 8], strides = [1, 1]} : vector<16x32xf32> to vector<16x8xf32>
    %cst_243 = arith.constant dense<0.000000e+00> : vector<8x8xf32>
    %593 = tpu.matmul %591, %592, %cst_243 {dimension_numbers = #tpu.dot_dimension_numbers<[1], [0], [0], [1], [0, 0, 1, 1], [], []>, precision = #tpu.contract_precision<fp32>} : vector<8x16xf32>, vector<16x8xf32>, vector<8x8xf32> -> vector<8x8xf32>
    %594 = vector.extract_strided_slice %329 {offsets = [24, 0], sizes = [8, 32], strides = [1, 1]} : vector<32x32xf32> to vector<8x32xf32>
    %cst_244 = arith.constant dense<0.000000e+00> : vector<8x32xf32>
    %595 = tpu.matmul %593, %594, %cst_244 {dimension_numbers = #tpu.dot_dimension_numbers<[1], [0], [0], [1], [0, 0, 1, 1], [], []>, precision = #tpu.contract_precision<fp32>} : vector<8x8xf32>, vector<8x32xf32>, vector<8x32xf32> -> vector<8x32xf32>
    %596 = arith.addf %574, %595 : vector<8x32xf32>
    %597 = vector.broadcast %343 : vector<1x32xf32> to vector<8x32xf32>
    %598 = arith.addf %596, %597 : vector<8x32xf32>
    %599 = arith.addf %478, %598 : vector<8x32xf32>
    %cst_245 = arith.constant dense<0.000000e+00> : vector<8xf32>
    %600 = vector.multi_reduction <add>, %599, %cst_245 [1] : vector<8x32xf32> to vector<8xf32>
    %601 = vector.shape_cast %600 : vector<8xf32> to vector<8x1xf32>
    %cst_246 = arith.constant 3.200000e+01 : f32
    %602 = vector.broadcast %cst_246 : f32 to vector<8x1xf32>
    %603 = arith.divf %601, %602 : vector<8x1xf32>
    %604 = vector.broadcast %603 : vector<8x1xf32> to vector<8x32xf32>
    %605 = arith.subf %599, %604 : vector<8x32xf32>
    %606 = arith.mulf %605, %605 : vector<8x32xf32>
    %cst_247 = arith.constant dense<0.000000e+00> : vector<8xf32>
    %607 = vector.multi_reduction <add>, %606, %cst_247 [1] : vector<8x32xf32> to vector<8xf32>
    %608 = vector.shape_cast %607 : vector<8xf32> to vector<8x1xf32>
    %cst_248 = arith.constant 0.0322580636 : f32
    %609 = vector.broadcast %cst_248 : f32 to vector<8x1xf32>
    %610 = arith.mulf %608, %609 : vector<8x1xf32>
    %611 = math.sqrt %610 : vector<8x1xf32>
    %cst_249 = arith.constant 9.99999997E-7 : f32
    %612 = vector.broadcast %cst_249 : f32 to vector<8x1xf32>
    %613 = arith.addf %611, %612 : vector<8x1xf32>
    %614 = tpu.reciprocal %613 {approx = true} : vector<8x1xf32> -> vector<8x1xf32>
    %615 = vector.broadcast %603 : vector<8x1xf32> to vector<8x32xf32>
    %616 = arith.subf %599, %615 : vector<8x32xf32>
    %617 = vector.broadcast %357 : vector<1x32xf32> to vector<8x32xf32>
    %618 = arith.mulf %617, %616 : vector<8x32xf32>
    %619 = vector.broadcast %614 : vector<8x1xf32> to vector<8x32xf32>
    %620 = arith.mulf %618, %619 : vector<8x32xf32>
    %621 = vector.broadcast %359 : vector<1x32xf32> to vector<8x32xf32>
    %622 = arith.addf %620, %621 : vector<8x32xf32>
    %cst_250 = arith.constant dense<0.000000e+00> : vector<8x64xf32>
    %623 = tpu.matmul %622, %331, %cst_250 {dimension_numbers = #tpu.dot_dimension_numbers<[1], [0], [0], [1], [0, 0, 1, 1], [], []>, precision = #tpu.contract_precision<fp32>} : vector<8x32xf32>, vector<32x64xf32>, vector<8x64xf32> -> vector<8x64xf32>
    %624 = vector.broadcast %345 : vector<1x64xf32> to vector<8x64xf32>
    %625 = arith.addf %623, %624 : vector<8x64xf32>
    %cst_251 = arith.constant 0.000000e+00 : f32
    %626 = vector.broadcast %cst_251 : f32 to vector<8x64xf32>
    %627 = arith.maximumf %625, %626 : vector<8x64xf32>
    %cst_252 = arith.constant dense<0.000000e+00> : vector<8x32xf32>
    %628 = tpu.matmul %627, %333, %cst_252 {dimension_numbers = #tpu.dot_dimension_numbers<[1], [0], [0], [1], [0, 0, 1, 1], [], []>, precision = #tpu.contract_precision<fp32>} : vector<8x64xf32>, vector<64x32xf32>, vector<8x32xf32> -> vector<8x32xf32>
    %629 = arith.addf %599, %628 : vector<8x32xf32>
    %630 = vector.broadcast %347 : vector<1x32xf32> to vector<8x32xf32>
    %631 = arith.addf %629, %630 : vector<8x32xf32>
    %c1_253 = arith.constant 1 : index
    %c12 = arith.constant 12 : index
    %c0_254 = arith.constant 0 : index
    %632 = vector.load %arg6[%c1_253, %c12, %c0_254] : memref<2x16x96xf32, #tpu.memory_space<vmem>>, vector<1x1x32xf32>
    %633 = vector.shape_cast %632 : vector<1x1x32xf32> to vector<1x32xf32>
    %c1_255 = arith.constant 1 : index
    %c13 = arith.constant 13 : index
    %c0_256 = arith.constant 0 : index
    %634 = vector.load %arg6[%c1_255, %c13, %c0_256] : memref<2x16x96xf32, #tpu.memory_space<vmem>>, vector<1x1x32xf32>
    %635 = vector.shape_cast %634 : vector<1x1x32xf32> to vector<1x32xf32>
    %cst_257 = arith.constant dense<0.000000e+00> : vector<8xf32>
    %636 = vector.multi_reduction <add>, %631, %cst_257 [1] : vector<8x32xf32> to vector<8xf32>
    %637 = vector.shape_cast %636 : vector<8xf32> to vector<8x1xf32>
    %cst_258 = arith.constant 3.200000e+01 : f32
    %638 = vector.broadcast %cst_258 : f32 to vector<8x1xf32>
    %639 = arith.divf %637, %638 : vector<8x1xf32>
    %640 = vector.broadcast %639 : vector<8x1xf32> to vector<8x32xf32>
    %641 = arith.subf %631, %640 : vector<8x32xf32>
    %642 = arith.mulf %641, %641 : vector<8x32xf32>
    %cst_259 = arith.constant dense<0.000000e+00> : vector<8xf32>
    %643 = vector.multi_reduction <add>, %642, %cst_259 [1] : vector<8x32xf32> to vector<8xf32>
    %644 = vector.shape_cast %643 : vector<8xf32> to vector<8x1xf32>
    %cst_260 = arith.constant 0.0322580636 : f32
    %645 = vector.broadcast %cst_260 : f32 to vector<8x1xf32>
    %646 = arith.mulf %644, %645 : vector<8x1xf32>
    %647 = math.sqrt %646 : vector<8x1xf32>
    %cst_261 = arith.constant 9.99999997E-7 : f32
    %648 = vector.broadcast %cst_261 : f32 to vector<8x1xf32>
    %649 = arith.addf %647, %648 : vector<8x1xf32>
    %650 = tpu.reciprocal %649 {approx = true} : vector<8x1xf32> -> vector<8x1xf32>
    %651 = vector.broadcast %639 : vector<8x1xf32> to vector<8x32xf32>
    %652 = arith.subf %631, %651 : vector<8x32xf32>
    %653 = vector.broadcast %633 : vector<1x32xf32> to vector<8x32xf32>
    %654 = arith.mulf %653, %652 : vector<8x32xf32>
    %655 = vector.broadcast %650 : vector<8x1xf32> to vector<8x32xf32>
    %656 = arith.mulf %654, %655 : vector<8x32xf32>
    %657 = vector.broadcast %635 : vector<1x32xf32> to vector<8x32xf32>
    %658 = arith.addf %656, %657 : vector<8x32xf32>
    %c0_262 = arith.constant 0 : index
    %c0_263 = arith.constant 0 : index
    %c0_264 = arith.constant 0 : index
    %659 = vector.load %arg7[%c0_262, %c0_263, %c0_264] : memref<1x8x32xf32, #tpu.memory_space<vmem>>, vector<1x8x32xf32>
    %660 = vector.shape_cast %659 : vector<1x8x32xf32> to vector<8x32xf32>
    %661 = vector.shape_cast %658 : vector<8x32xf32> to vector<1x8x32xf32>
    tpu.vector_store %arg7[%c0_262, %c0_263, %c0_264], %661 {strides = array<i32>} : memref<1x8x32xf32, #tpu.memory_space<vmem>>, vector<1x8x32xf32>,
    return
  }
  func.func @transform_0(%arg0: i32) -> (i32, i32, i32) {
    %c0_i32 = arith.constant 0 : i32
    %c0_i32_0 = arith.constant 0 : i32
    %c0_i32_1 = arith.constant 0 : i32
    return %arg0, %c0_i32, %c0_i32_0 : i32, i32, i32
  }
  func.func @transform_1(%arg0: i32) -> (i32, i32, i32) {
    %c0_i32 = arith.constant 0 : i32
    %c0_i32_0 = arith.constant 0 : i32
    %c0_i32_1 = arith.constant 0 : i32
    return %arg0, %c0_i32, %c0_i32_0 : i32, i32, i32
  }
  func.func @transform_2(%arg0: i32) -> (i32, i32, i32) {
    %c0_i32 = arith.constant 0 : i32
    %c0_i32_0 = arith.constant 0 : i32
    %c0_i32_1 = arith.constant 0 : i32
    return %arg0, %c0_i32, %c0_i32_0 : i32, i32, i32
  }
  func.func @transform_3(%arg0: i32) -> (i32, i32, i32) {
    %c0_i32 = arith.constant 0 : i32
    %c0_i32_0 = arith.constant 0 : i32
    %c0_i32_1 = arith.constant 0 : i32
    return %arg0, %c0_i32, %c0_i32_0 : i32, i32, i32
  }
  func.func @transform_4(%arg0: i32) -> (i32, i32, i32) {
    %c0_i32 = arith.constant 0 : i32
    %c0_i32_0 = arith.constant 0 : i32
    %c0_i32_1 = arith.constant 0 : i32
    %c0_i32_2 = arith.constant 0 : i32
    return %c0_i32, %c0_i32_0, %c0_i32_1 : i32, i32, i32
  }
  func.func @transform_5(%arg0: i32) -> (i32, i32, i32) {
    %c0_i32 = arith.constant 0 : i32
    %c0_i32_0 = arith.constant 0 : i32
    %c0_i32_1 = arith.constant 0 : i32
    %c0_i32_2 = arith.constant 0 : i32
    return %c0_i32, %c0_i32_0, %c0_i32_1 : i32, i32, i32
  }
  func.func @transform_6(%arg0: i32) -> (i32, i32, i32) {
    %c0_i32 = arith.constant 0 : i32
    %c0_i32_0 = arith.constant 0 : i32
    %c0_i32_1 = arith.constant 0 : i32
    return %arg0, %c0_i32, %c0_i32_0 : i32, i32, i32
  }
}

</mosaic_0001>

<bundles_post_ra>
// kernel: tpu_custom_call.1
= control target key start
LH: loop header
LB: loop body
LE: loop exit
PB: predicated region body
PF: predicated region fallthrough
CT: control target
= control target key end

     0   :  { %s35372_s0 = inlined_call_operand.hbm [shape: f32[2,8,32], index: 0, kind: input, shape index: {}]   ;;  %s35373_s1 = inlined_call_operand.hbm [shape: f32[2,16,32], index: 1, kind: input, shape index: {}]   ;;  %s35374_s2 = inlined_call_operand.hbm [shape: f32[2,8,8], index: 2, kind: input, shape index: {}]   ;;  %s35375_s3 = inlined_call_operand.hbm [shape: f32[2,8,16], index: 3, kind: input, shape index: {}]   ;;  %s35376_s4 = inlined_call_operand.hbm [shape: f32[2,192,96], index: 4, kind: input, shape index: {}]   ;;  %s35377_s5 = inlined_call_operand.hbm [shape: f32[2,16,96], index: 5, kind: input, shape index: {}]   ;;  %s35378_s6 = inlined_call_operand.hbm [shape: f32[2,8,32], index: 6, kind: output, shape index: {}]  }
   0x1   :  { %35391 = sst [smem:[#allocation22_spill]] %s35372_s0 }
   0x2   :  { %35392 = sst [smem:[#allocation23_spill]] %s35373_s1 }
   0x3   :  { %35393 = sst [smem:[#allocation24_spill]] %s35376_s4 }
   0x4   :  { %35394 = sst [smem:[#allocation25_spill]] %s35377_s5 }
   0x5   :  { %11 = vsyncpa [#allocation3], 0 }
   0x6   :  { %13 = vsyncpa [#allocation3 + $0x1], 0 }
   0x7   :  { %14 = vsyncpa [#allocation6], 0 }
   0x8   :  { %16 = vsyncpa [#allocation6 + $0x1], 0 }
   0x9   :  { %17 = vsyncpa [#allocation9], 0 }
   0xa   :  { %19 = vsyncpa [#allocation9 + $0x1], 0 }
   0xb   :  { %20 = vsyncpa [#allocation12], 0 }
   0xc   :  { %21 = vsyncpa [#allocation4], 0 }
   0xd   :  { %23 = vsyncpa [#allocation4 + $0x1], 0  ;;  %s32209_s21 = smov 0   ;;  %s32211_s22 = smov 0  }
   0xe   :  { %s32213_s23 = smov 0   ;;  %s32215_s24 = smov 0  }
   0xf LB: > { %35395 = sst [smem:[#allocation20_spill]] %s32146_s23  ;;  %s32230_s25 = sadd.s32 4294967295, %s32150_s24   ;;  %s32150_s24 = sphi %s32215_s24, %s35428_s24   ;;  %s32146_s23 = sphi %s32213_s23, %s35425_s23   ;;  %s32142_s22 = sphi %s32211_s22, %s35427_s22   ;;  %s32138_s21 = sphi %s32209_s21, %s35426_s21  }
  0x10   : > { %s28229_s26 = sadd.s32 4294967294, %s32150_s24   ;;  %s32234_s27 = sadd.s32 1, %s32150_s24  }
  0x11   : > { %s36_s28 = sadd.s32 1, %s32146_s23  ;;  %s33_s29 = ssub.s32 %s32150_s24, %s32234_s27 }
  0x12   : > { %p43_p0 = scmp.ne.s32.totalorder %s32146_s23, %s32142_s22  ;;  %p34_p1 = scmp.eq.s32.totalorder %s33_s29, 0 }
  0x13   : > { %p44_p2 = scmp.eq.s32.totalorder %s32150_s24, 0  ;;  %p49_p3 = scmp.ne.s32.totalorder %s32142_s22, %s32138_s21 }
  0x14   : > { %p35379_p4 = scmp.eq.s32.totalorder %s32230_s25, 0  ;;  %p193_p7 = scmp.eq.s32.totalorder %s32230_s25, 1 }
  0x15   : > { %s32246_s30 = scalar_select %p34_p1, %s32146_s23, %s36_s28  }
  0x16   : > { %p32248_p5 = por %p44_p2, %p43_p0  ;;  %p32254_p6 = por %p35379_p4, %p49_p3 }
  0x17   : > { %35396 = sst [smem:[#allocation21_spill]] %s32246_s30  ;;  %p199_p8 = scmp.eq.s32.totalorder %s28229_s26, 1 }
  0x18   : > { %s35398_s8 = scalar_select %p32254_p6, 1, 0 }
  0x19   : > { %p28230_p9 = scmp.ge.s32.totalorder %s32150_s24, 1  ;;  %p206_p10 = scmp.lt.s32.totalorder %s32150_s24, 3 }
  0x1a   : > { %p32261_p11 = por %p193_p7, %p43_p0  ;;  %p32265_p12 = por %p199_p8, %p49_p3 }
  0x1b   : > { %p32269_p13 = pnand %p28230_p9, %p206_p10  ;;  %s32152_s12 = smov [#allocation10]  }
  0x1c   : > { %s35399_s9 = scalar_select %p32261_p11, 1, 0 }
  0x1d   : > { %s35400_s10 = scalar_select %p32265_p12, 1, 0 }
  0x1e   : > { %s35401_s11 = scalar_select %p32269_p13, 1, 0 }
  0x1f   : > { %p31720_p1 = pneg %p32269_p13  ;;  %s218_s13 = sshll.u32 %s32152_s12, 4  ;;  %s219_s13 = int_to_ptr.vmem [resolvable:$true] %s218_s13 }
  0x20   : > { %p31746_p3 = scmp.lt.s32.totalorder %s32150_s24, 2  ;;  %s32284_s15 = sand.u32 1, %s32146_s23  }
  0x21   : > { %p32277_p2 = pnand %p31720_p1, %p35379_p4  ;;  %s31917_s17 = scalar_lea.vmem %s219_s13, 6144 }
  0x22   : > { %p31918_p8 = scmp.ne.s32.totalorder %s219_s13, %s31917_s17  ;;  %p31925_p12 = scmp.lt.s32.totalorder %s219_s13, %s219_s13 }
  0x23   : > { %s35402_s14 = scalar_select %p32277_p2, 1, 0 }
  0x24   : > { %p35386_p7 = pneg %p32277_p2  ;;  %p31926_p1 = scmp.lt.s32.totalorder %s31917_s17, %s31917_s17 }
  0x26   : > { %p31920_p9 = pnand %p31918_p8, %p35386_p7  ;;  %p31927_p4 = por %p31926_p1, %p31925_p12 }
  0x28   : > { %p31921_p10 = pneg %p31920_p9 }
  0x2a   : > { %p31928_p11 = pnand %p31927_p4, %p31921_p10 }
  0x2c   : > { %31931 = shalt.err (!%p31928_p11)
}
  0x2d   : > { %s35382_s18 = smov 128   ;;  %s35384_s19 = smov 8  }
  0x2e   : > { %s35403_s4 = sld [smem:[#allocation24_spill]]  ;;  %p32304_p4 = pnand %p31746_p3, %p32248_p5 }
  0x2f   : > { %s28236_s29 = sshll.u32 %s32284_s15, 4  ;;  %s28281_s12 = sshll.u32 %s32150_s24, 8 }
  0x30   : > { %s35405_s1 = sld [smem:[#allocation23_spill]]  ;;  %s267_s23 = scalar_lea.vmem [#allocation5], %s28236_s29 }
  0x31   : > { %s274_s20 = sshll.u32 %s267_s23, 4  ;;  %s35406_s7 = sand.u32 1, %s32150_s24   ;;  %s32315_s20 = int_to_ptr.vmem [resolvable:$true] %s274_s20 }
  0x32   : > { %p32325_p11 = pneg %p32304_p4 }
  0x34   : > { %31723 = dma.hbm_to_vmem [thread:$0]  (!%p32277_p2), %s35403_s4, 6144, %s219_s13, [#allocation9], %s35382_s18, %s35382_s18, %s35384_s19  }
  0x35   : > { %s32319_s13 = scalar_lea.sflag [#allocation6], %s35406_s7 }
  0x36   : > { %s32313_s30 = scalar_lea.hbm %s35405_s1, %s28281_s12  ;;  %s31937_s23 = scalar_lea.hbm %s35405_s1, 512 }
  0x37   : > { %s31932_s26 = scalar_lea.hbm %s32313_s30, 256  ;;  %p31938_p8 = scmp.lt.s32.totalorder %s32313_s30, %s35405_s1 }
  0x38   : > { %p31933_p5 = scmp.ne.s32.totalorder %s32313_s30, %s31932_s26  ;;  %p31939_p9 = scmp.lt.s32.totalorder %s31937_s23, %s31932_s26 }
  0x3a   : > { %p31935_p12 = pnand %p32325_p11, %p31933_p5  ;;  %p31940_p10 = por %p31939_p9, %p31938_p8 }
  0x3c   : > { %p31936_p3 = pneg %p31935_p12 }
  0x3e   : > { %p31941_p1 = pnand %p31940_p10, %p31936_p3 }
  0x40   : > { %31944 = shalt.err (!%p31941_p1)
}
  0x41   : > { %s31945_s7 = scalar_lea.vmem %s32315_s20, 256  ;;  %s32155_s19 = smov [#allocation5]  }
  0x42   : > { %p31946_p0 = scmp.ne.s32.totalorder %s32315_s20, %s31945_s7  ;;  %s31950_s16 = sshll.u32 %s32155_s19, 4  ;;  %s31951_s16 = int_to_ptr.vmem [resolvable:$false] %s31950_s16 }
  0x43   : > { %s31952_s12 = scalar_lea.vmem %s31951_s16, 512  ;;  %p31953_p7 = scmp.lt.s32.totalorder %s32315_s20, %s31951_s16 }
  0x44   : > { %p31948_p5 = pnand %p31946_p0, %p32325_p11  ;;  %p31954_p6 = scmp.lt.s32.totalorder %s31952_s12, %s31945_s7 }
  0x46   : > { %p31949_p12 = pneg %p31948_p5  ;;  %p31955_p13 = por %p31954_p6, %p31953_p7 }
  0x48   : > { %p31956_p2 = pnand %p31955_p13, %p31949_p12 }
  0x4a   : > { %31959 = shalt.err (!%p31956_p2)
}
  0x4b   : > { %s35408_s26 = smov 8   ;;  %s35409_s23 = smov 128  }
  0x4c   : > { %31733 = dma.hbm_to_vmem [thread:$0]  (!%p32304_p4), %s32313_s30, 256, %s32315_s20, %s32319_s13, %s35409_s23, %s35409_s23, %s35408_s26  }
  0x4d   : > { %s32156_s29 = smov [#allocation11]   ;;  %s32352_s17 = sshll.u32 %s32284_s15, 3 }
  0x4e   : > { %s231_s19 = sshll.u32 %s32156_s29, 4  ;;  %p35410_p13 = scmp.ne.s32.totalorder %s35402_s14, 0  ;;  %s232_s19 = int_to_ptr.vmem [resolvable:$true] %s231_s19 }
  0x4f   : > { %s31971_s7 = scalar_lea.vmem %s232_s19, 512  ;;  %p31979_p3 = scmp.lt.s32.totalorder %s232_s19, %s232_s19 }
  0x50   : > { %p31972_p6 = scmp.ne.s32.totalorder %s232_s19, %s31971_s7  ;;  %p35411_p2 = pneg %p35410_p13 }
  0x51   : > { %p31980_p8 = scmp.lt.s32.totalorder %s31971_s7, %s31971_s7 }
  0x52   : > { %p31974_p0 = pnand %p31972_p6, %p35411_p2 }
  0x53   : > { %p31981_p9 = por %p31980_p8, %p31979_p3 }
  0x54   : > { %p31975_p7 = pneg %p31974_p0 }
  0x56   : > { %p31982_p10 = pnand %p31981_p9, %p31975_p7 }
  0x58   : > { %31985 = shalt.err (!%p31982_p10)
}
  0x59   : > { %s35412_s5 = sld [smem:[#allocation25_spill]]  ;;  %s32366_s16 = sshll.u32 %s32150_s24, 7 }
  0x5a   : > { %s35413_s0 = sld [smem:[#allocation22_spill]]  ;;  %s249_s14 = scalar_lea.vmem [#allocation2], %s32352_s17 }
  0x5b   : > { %s256_s1 = sshll.u32 %s249_s14, 4  ;;  %s246_s30 = scalar_lea.sflag [#allocation3], %s32284_s15  ;;  %s257_s1 = int_to_ptr.vmem [resolvable:$true] %s256_s1 }
  0x5f   : > { %31726 = dma.hbm_to_vmem [thread:$0]  (!%p35410_p13), %s35412_s5, 512, %s232_s19, [#allocation12], %s35409_s23, %s35409_s23, %s35408_s26  }
  0x60   : > { %s32372_s7 = scalar_lea.hbm %s35413_s0, %s32366_s16  ;;  %s31991_s19 = scalar_lea.hbm %s35413_s0, 256 }
  0x61   : > { %s31986_s20 = scalar_lea.hbm %s32372_s7, 128  ;;  %p31992_p6 = scmp.lt.s32.totalorder %s32372_s7, %s35413_s0 }
  0x62   : > { %p31987_p1 = scmp.ne.s32.totalorder %s32372_s7, %s31986_s20  ;;  %p31993_p13 = scmp.lt.s32.totalorder %s31991_s19, %s31986_s20 }
  0x64   : > { %p31989_p5 = pnand %p31987_p1, %p32325_p11  ;;  %p31994_p2 = por %p31993_p13, %p31992_p6 }
  0x66   : > { %p31990_p12 = pneg %p31989_p5 }
  0x68   : > { %p31995_p0 = pnand %p31994_p2, %p31990_p12 }
  0x6a   : > { %31998 = shalt.err (!%p31995_p0)
}
  0x6b   : > { %s31999_s29 = scalar_lea.vmem %s257_s1, 128  ;;  %s32157_s15 = smov [#allocation2]  }
  0x6c   : > { %p32000_p7 = scmp.ne.s32.totalorder %s257_s1, %s31999_s29  ;;  %s32004_s14 = sshll.u32 %s32157_s15, 4  ;;  %s32005_s14 = int_to_ptr.vmem [resolvable:$false] %s32004_s14 }
  0x6d   : > { %s32006_s5 = scalar_lea.vmem %s32005_s14, 256  ;;  %p32007_p9 = scmp.lt.s32.totalorder %s257_s1, %s32005_s14 }
  0x6e   : > { %p32002_p3 = pnand %p32000_p7, %p32325_p11  ;;  %p32008_p10 = scmp.lt.s32.totalorder %s32006_s5, %s31999_s29 }
  0x70   : > { %p32003_p8 = pneg %p32002_p3  ;;  %p32009_p1 = por %p32008_p10, %p32007_p9 }
  0x72   : > { %p32010_p5 = pnand %p32009_p1, %p32003_p8 }
  0x74   : > { %32013 = shalt.err (!%p32010_p5)
}
  0x75   : > { %31730 = dma.hbm_to_vmem [thread:$0]  (!%p32304_p4), %s32372_s7, 128, %s257_s1, %s246_s30  }
  0x76   : > { %s293_s26 = scalar_lea.hbm %s35374_s2, %s32366_s16  ;;  %s288_s23 = scalar_lea.vmem [#allocation7], %s32352_s17 }
  0x77   : > { %s295_s19 = sshll.u32 %s288_s23, 4  ;;  %s32014_s12 = scalar_lea.hbm %s293_s26, 128  ;;  %s296_s19 = int_to_ptr.vmem [resolvable:$true] %s295_s19 }
  0x78   : > { %p32015_p12 = scmp.ne.s32.totalorder %s293_s26, %s32014_s12  ;;  %s32019_s15 = scalar_lea.hbm %s35374_s2, 256 }
  0x79   : > { %p32020_p2 = scmp.lt.s32.totalorder %s293_s26, %s35374_s2  ;;  %p32021_p0 = scmp.lt.s32.totalorder %s32019_s15, %s32014_s12 }
  0x7a   : > { %p32017_p6 = pnand %p32015_p12, %p32325_p11 }
  0x7b   : > { %p32022_p7 = por %p32021_p0, %p32020_p2 }
  0x7c   : > { %p32018_p13 = pneg %p32017_p6 }
  0x7e   : > { %p32023_p3 = pnand %p32022_p7, %p32018_p13 }
  0x80   : > { %32026 = shalt.err (!%p32023_p3)
}
  0x81   : > { %s32027_s1 = scalar_lea.vmem %s296_s19, 128  ;;  %s32158_s7 = smov [#allocation7]  }
  0x82   : > { %p32028_p8 = scmp.ne.s32.totalorder %s296_s19, %s32027_s1  ;;  %s32032_s30 = sshll.u32 %s32158_s7, 4  ;;  %s32033_s30 = int_to_ptr.vmem [resolvable:$false] %s32032_s30 }
  0x83   : > { %s32034_s4 = scalar_lea.vmem %s32033_s30, 256  ;;  %p32035_p1 = scmp.lt.s32.totalorder %s296_s19, %s32033_s30 }
  0x84   : > { %p32030_p9 = pnand %p32028_p8, %p32325_p11  ;;  %p32036_p5 = scmp.lt.s32.totalorder %s32034_s4, %s32027_s1 }
  0x86   : > { %p32031_p10 = pneg %p32030_p9  ;;  %p32037_p12 = por %p32036_p5, %p32035_p1 }
  0x88   : > { %p32038_p6 = pnand %p32037_p12, %p32031_p10 }
  0x8a   : > { %32041 = shalt.err (!%p32038_p6)
}
  0x8b   : > { %31736 = dma.hbm_to_vmem [thread:$0]  (!%p32304_p4), %s293_s26, 128, %s296_s19, %s32319_s13  }
  0x8c   : > { %s32414_s23 = scalar_lea.hbm %s35375_s3, %s32366_s16  ;;  %s306_s12 = scalar_lea.vmem [#allocation8], %s32352_s17 }
  0x8d   : > { %s313_s5 = sshll.u32 %s306_s12, 4  ;;  %s35414_s29 = sand.u32 1, %s32150_s24   ;;  %s314_s5 = int_to_ptr.vmem [resolvable:$true] %s313_s5 }
  0x8e   : > { %s303_s15 = scalar_lea.sflag [#allocation9], %s35414_s29  ;;  %s32042_s14 = scalar_lea.hbm %s32414_s23, 128 }
  0x8f   : > { %p32043_p13 = scmp.ne.s32.totalorder %s32414_s23, %s32042_s14  ;;  %s32047_s26 = scalar_lea.hbm %s35375_s3, 256 }
  0x90   : > { %p32048_p7 = scmp.lt.s32.totalorder %s32414_s23, %s35375_s3  ;;  %p32049_p3 = scmp.lt.s32.totalorder %s32047_s26, %s32042_s14 }
  0x91   : > { %p32045_p2 = pnand %p32043_p13, %p32325_p11 }
  0x92   : > { %p32050_p8 = por %p32049_p3, %p32048_p7 }
  0x93   : > { %p32046_p0 = pneg %p32045_p2 }
  0x95   : > { %p32051_p9 = pnand %p32050_p8, %p32046_p0 }
  0x97   : > { %32054 = shalt.err (!%p32051_p9)
}
  0x98   : > { %s32055_s17 = scalar_lea.vmem %s314_s5, 128  ;;  %s32159_s7 = smov [#allocation8]  }
  0x99   : > { %p32056_p10 = scmp.ne.s32.totalorder %s314_s5, %s32055_s17  ;;  %s32060_s30 = sshll.u32 %s32159_s7, 4  ;;  %s32061_s30 = int_to_ptr.vmem [resolvable:$false] %s32060_s30 }
  0x9a   : > { %s32062_s4 = scalar_lea.vmem %s32061_s30, 256  ;;  %p32063_p12 = scmp.lt.s32.totalorder %s314_s5, %s32061_s30 }
  0x9b   : > { %p32058_p1 = pnand %p32056_p10, %p32325_p11  ;;  %p32064_p6 = scmp.lt.s32.totalorder %s32062_s4, %s32055_s17 }
  0x9d   : > { %p32059_p5 = pneg %p32058_p1  ;;  %p32065_p13 = por %p32064_p6, %p32063_p12 }
  0x9f   : > { %p32066_p2 = pnand %p32065_p13, %p32059_p5 }
  0xa1   : > { %32069 = shalt.err (!%p32066_p2)
}
  0xa2   : > { %31739 = dma.hbm_to_vmem [thread:$0]  (!%p32304_p4), %s32414_s23, 128, %s314_s5, %s303_s15  }
  0xa3   : > { %p35415_p0 = scmp.ne.s32.totalorder %s35401_s11, 0 }
  0xa4   : > { %s32438_s18 = sand.u32 (!%p35415_p0), 1, %s32142_s22   ;;  %p35416_p11 = scmp.ne.s32.totalorder (!%p35415_p0), %s35398_s8, 0 }
  0xa5   : > { %322 = sbr.rel (%p35415_p0) target bundleno = 16893 (0x41fd), region = 44  ;;  %s32441_s0 = sshll.u32 (!%p35415_p0), %s32438_s18, 3 }
  0xa6   : > { %s325_s20 = scalar_lea.sflag (!%p35415_p0), [#allocation3], %s32438_s18  ;;  %s328_s12 = scalar_lea.vmem (!%p35415_p0), [#allocation2], %s32441_s0 }
  0xaa   : > { %32113 = dma.done.wait (%p35416_p11), %s325_s20, 128  }
  0xab   : > { %32115 = vsyncadd (%p35416_p11), %s325_s20, 4294967168  ;;  %s333_s11 = sand.u32 1, %s32230_s25   ;;  %s28245_s28 = sshll.u32 %s32438_s18, 4 }
  0xac   : > { %s334_s23 = scalar_lea.sflag [#allocation6], %s333_s11  ;;  %s32451_s5 = scalar_lea.vmem [#allocation5], %s28245_s28 }
  0xad   : > { %32117 = dma.done.wait (%p35416_p11), %s334_s23, 384  }
  0xae   : > { %32119 = vsyncadd (%p35416_p11), %s334_s23, 4294966912  ;;  %s32458_s29 = scalar_lea.vmem [#allocation7], %s32441_s0  ;;  %s352_s15 = scalar_lea.sflag [#allocation9], %s333_s11 }
  0xaf   : > { %s32461_s14 = scalar_lea.vmem [#allocation8], %s32441_s0 }
  0xb0   : > { %32121 = dma.done.wait (%p35416_p11), %s352_s15, 128  }
  0xb1   : > { %32123 = vsyncadd (%p35416_p11), %s352_s15, 4294967168  ;;  %p35417_p4 = scmp.eq.s32.totalorder %s32230_s25, 0 }
  0xb3   : > { %32125 = dma.done.wait (%p35417_p4), [#allocation9], 6144   ;;  %p35418_p7 = pmov %p35417_p4 }
  0xb4   : > { %p35419_p3 = pmov %p35417_p4 }
  0xb5   : > { %32127 = vsyncadd (%p35418_p7), [#allocation9], 4294961152 }
  0xb6   : > { %32129 = dma.done.wait (%p35419_p3), [#allocation12], 512   ;;  %p35420_p8 = pmov %p35419_p3 }
  0xb7   : > { %vm448_vm0 = vcmask 261120   ;;  %v407_v0 = vld [vmem:[%s328_s12] sm:$0xff]  ;;  %v413_v9 = vld [vmem:[#allocation10 + $0x8] sm:$0xff]  ;;  %v32160_v10 = vmov 0.0   ;;  %v412_v14 = vld [vmem:[#allocation10] sm:$0xff]  ;;  %vm32161_vm1 = vmmov 0  }
  0xb8   : > { %32131 = vsyncadd (%p35420_p8), [#allocation12], 4294966784  ;;  %v449_v1 = vsel %vm448_vm0, %v407_v0, 0.0  ;;  %v415_v7 = vld [vmem:[#allocation10 + $0x18] sm:$0xff]  ;;  %v414_v8 = vld [vmem:[#allocation10 + $0x10] sm:$0xff]  ;;  %29325 = vmatprep.subr.mxu1 %v32160_v10  ;;  %v32488_v13 = vand.u32 4294901760, %v413_v9  ;;  %29314 = vmatprep.subr.mxu0 %v32160_v10 }
  0xb9   : > { %450 = vadd.xlane.f32.xlu0 %v449_v1  ;;  %v32484_v11 = vand.u32 4294901760, %v415_v7  ;;  %v32486_v12 = vand.u32 4294901760, %v414_v8  ;;  %v32491_v15 = vand.u32 4294901760, %v412_v14  ;;  %29333 = vmatprep.mubr.msk.f32.mxu1 %vm32161_vm1, %v32160_v10  ;;  %v28251_v40 = vld [vmem:[#allocation11 + $0x6] ss:$0 sm:$0xff]  ;;  %s32162_s8 = smov 96  }
  0xba   : > { %29322 = vmatprep.mubr.msk.f32.mxu0 %vm32161_vm1, %v32160_v10  ;;  %v32504_v18 = vsub.f32 %v413_v9, %v32488_v13  ;;  %v28252_v43 = vld [vmem:[#allocation11 + $0x7] ss:$0 sm:$0xff]  ;;  %v28253_v58 = vld [vmem:[#allocation11] ss:$0 sm:$0xff]  ;;  %vm975_vm4 = vcmask 64512   ;;  %s32163_s1 = smov 64  }
  0xbb   : > { %v32498_v16 = vsub.f32 %v415_v7, %v32484_v11  ;;  %v32501_v17 = vsub.f32 %v414_v8, %v32486_v12  ;;  %29315 = vmatpush3.msra.mxu0 %v32484_v11  ;;  %v32508_v19 = vsub.f32 %v412_v14, %v32491_v15  ;;  %s32164_s13 = smov 88   ;;  %s32165_s26 = smov 120   ;;  %vm7998_vm7 = vcmask 130048  }
  0xbc   : > { %29316 = vmatprep.subr.mxu0 %v32160_v10  ;;  %v607_v22 = vand.u32 4294901760, %v32504_v18  ;;  %s32166_s19 = smov 56   ;;  %s32167_s16 = smov 80   ;;  %vm13677_vm10 = vcmask 523264  }
  0xbd   : > { %v593_v20 = vand.u32 4294901760, %v32498_v16  ;;  %v600_v21 = vand.u32 4294901760, %v32501_v17  ;;  %29317 = vmatpush3.msra.mxu0 %v32486_v12  ;;  %v614_v23 = vand.u32 4294901760, %v32508_v19  ;;  %s32168_s17 = smov 112   ;;  %s32169_s7 = smov 48  }
  0xbe   : > { %29318 = vmatprep.subr.mxu0 %v32160_v10  ;;  %v608_v26 = vsub.f32 %v32504_v18, %v607_v22  ;;  %s32170_s30 = smov 72   ;;  %s32171_s4 = smov 104  }
  0xbf   : > { %v594_v24 = vsub.f32 %v32498_v16, %v593_v20  ;;  %v601_v25 = vsub.f32 %v32501_v17, %v600_v21  ;;  %29319 = vmatpush3.msra.mxu0 %v32488_v13  ;;  %v615_v29 = vsub.f32 %v32508_v19, %v614_v23  ;;  %s32172_s20 = smov 40   ;;  %s406_s11 = scalar_lea.vmem [#allocation13], %s32441_s0 }
  0xc0   : > { %29320 = vmatprep.subr.mxu0 %v32160_v10  ;;  %v609_v30 = vand.u32 4294901760, %v608_v26  ;;  %s28074_s28 = sshll.u32 %s406_s11, 4  ;;  %s28061_s15 = scalar_lea.sflag [#allocation4], %s32438_s18  ;;  %s28075_s28 = int_to_ptr.vmem [resolvable:$true] %s28074_s28 }
  0xc1   : > { %v595_v27 = vand.u32 4294901760, %v594_v24  ;;  %v602_v28 = vand.u32 4294901760, %v601_v25  ;;  %29321 = vmatpush3.msra.mxu0 %v32491_v15  ;;  %v616_v31 = vand.u32 4294901760, %v615_v29  ;;  %p35421_p10 = scmp.ne.s32.totalorder %s35399_s9, 0 }
  0xc2   : > { %29336 = vmatprep.subr.mxu0 %v32160_v10 }
  0xc3   : > { %29326 = vmatpush3.msra.mxu1 %v595_v27 }
  0xc4   : > { %29327 = vmatprep.subr.mxu1 %v32160_v10 }
  0xc5   : > { %29328 = vmatpush3.msra.mxu1 %v602_v28 }
  0xc6   : > { %29329 = vmatprep.subr.mxu1 %v32160_v10 }
  0xc7   : > { %29330 = vmatpush3.msra.mxu1 %v609_v30 }
  0xc8   : > { %29331 = vmatprep.subr.mxu1 %v32160_v10 }
  0xc9   : > { %29332 = vmatpush3.msra.mxu1 %v616_v31 }
  0xca   : > { %29347 = vmatprep.subr.mxu1 %v32160_v10 }
 0x142   : > { %v451_v2 = vpop.xlane.xlu0 %450 }
 0x143   : > { %v453_v3 = vmul.f32 0.03125, %v451_v2 }
 0x145   : > { %v32478_v4 = vsub.f32 %v407_v0, %v453_v3 }
 0x147   : > { %v455_v5 = vmul.f32 %v32478_v4, %v32478_v4  ;;  %v473_v41 = vmul.f32 %v28251_v40, %v32478_v4 }
 0x149   : > { %v456_v6 = vsel %vm448_vm0, %v455_v5, 0.0 }
 0x14a   : > { %457 = vadd.xlane.f32.xlu0 %v456_v6 }
 0x1d3   : > { %v458_v32 = vpop.xlane.xlu0 %457 }
 0x1d4   : > { %v459_v33 = vmul.f32 0.032258064, %v458_v32 }
 0x1d6   : > { %31799 = vrsqrt.f32 %v459_v33  ;;  %vm462_vm2 = vcmp.eq.f32.partialorder %v459_v33, inf  ;;  %v465_v36 = vand.u32 2147483648, %v459_v33  ;;  %vm464_vm3 = vcmp.eq.f32.partialorder %v459_v33, 0.0 }
 0x1e3   : > { %v31800_v34 = vpop.eup %31799 }
 0x1e4   : > { %v461_v35 = vmul.f32 %v31800_v34, %v459_v33 }
 0x1e6   : > { %v463_v37 = vsel %vm462_vm2, %v459_v33, %v461_v35 }
 0x1e7   : > { %v466_v38 = vsel %vm464_vm3, %v465_v36, %v463_v37 }
 0x1e8   : > { %v467_v39 = vadd.f32 1e-06, %v466_v38  ;;  %v32613_v38 = vld [vmem:[%s32458_s29] sm:$0xff] }
 0x1ea   : > { %31801 = vrcp.f32 %v467_v39 }
 0x1f7   : > { %v31802_v42 = vpop.eup %31801 }
 0x1f8   : > { %v474_v44 = vmul.f32 %v31802_v42, %v473_v41 }
 0x1fa   : > { %v479_v45 = vadd.f32 %v28252_v43, %v474_v44 }
 0x1fc   : > { %v485_v46 = vsel %vm448_vm0, %v479_v45, 0 }
 0x1fd   : > { %v556_v47 = vand.u32 4294901760, %v485_v46 }
 0x1ff   : > { %v557_v48 = vsub.f32 %v485_v46, %v556_v47  ;;  %29334 = vmatmul.mubr.f32.vlgmr.msra.gmra.mxu1 %v556_v47 }
 0x200   : > { %29348 = vmatpush3.msra.mxu1 %v32484_v11  ;;  %29355 = vmatprep.mubr.msk.f32.mxu1 %vm32161_vm1, %v32160_v10 }
 0x201   : > { %29349 = vmatprep.subr.mxu1 %v32160_v10  ;;  %v558_v49 = vand.u32 4294901760, %v557_v48 }
 0x202   : > { %29350 = vmatpush3.msra.mxu1 %v32486_v12 }
 0x203   : > { %29351 = vmatprep.subr.mxu1 %v32160_v10  ;;  %v559_v50 = vsub.f32 %v557_v48, %v558_v49 }
 0x204   : > { %29352 = vmatpush3.msra.mxu1 %v32488_v13 }
 0x205   : > { %29353 = vmatprep.subr.mxu1 %v32160_v10  ;;  %v560_v51 = vand.u32 4294901760, %v559_v50 }
 0x206   : > { %29354 = vmatpush3.msra.mxu1 %v32491_v15 }
 0x207   : > { %29356 = vmatmul.mubr.f32.vlgmr.msra.gmra.mxu1 %v558_v49  ;;  %29369 = vmatprep.subr.mxu1 %v32160_v10 }
 0x208   : > { %29323 = vmatmul.mubr.f32.vlgmr.msra.gmra.mxu0 %v560_v51  ;;  %29370 = vmatpush3.msra.mxu1 %v32484_v11 }
 0x209   : > { %29337 = vmatpush3.msra.mxu0 %v32498_v16  ;;  %29371 = vmatprep.subr.mxu1 %v32160_v10 }
 0x20a   : > { %29338 = vmatprep.subr.mxu0 %v32160_v10  ;;  %29372 = vmatpush3.msra.mxu1 %v32486_v12 }
 0x20b   : > { %29339 = vmatpush3.msra.mxu0 %v32501_v17  ;;  %29373 = vmatprep.subr.mxu1 %v32160_v10 }
 0x20c   : > { %29340 = vmatprep.subr.mxu0 %v32160_v10  ;;  %29374 = vmatpush3.msra.mxu1 %v32488_v13 }
 0x20d   : > { %29341 = vmatpush3.msra.mxu0 %v32504_v18  ;;  %29375 = vmatprep.subr.mxu1 %v32160_v10 }
 0x20e   : > { %29342 = vmatprep.subr.mxu0 %v32160_v10  ;;  %29344 = vmatprep.mubr.msk.f32.mxu0 %vm32161_vm1, %v32160_v10 }
 0x20f   : > { %29343 = vmatpush3.msra.mxu0 %v32508_v19  ;;  %29376 = vmatpush3.msra.mxu1 %v32491_v15 }
 0x210   : > { %29377 = vmatprep.mubr.msk.f32.mxu1 %vm32161_vm1, %v32160_v10  ;;  %29345 = vmatmul.mubr.f32.vlgmr.msra.gmra.mxu0 %v557_v48 }
 0x211   : > { %29358 = vmatprep.subr.mxu0 %v32160_v10  ;;  %29378 = vmatmul.mubr.f32.vlgmr.msra.gmra.mxu1 %v556_v47 }
 0x212   : > { %29359 = vmatpush3.msra.mxu0 %v593_v20  ;;  %29366 = vmatprep.mubr.msk.f32.mxu0 %vm32161_vm1, %v32160_v10 }
 0x213   : > { %29360 = vmatprep.subr.mxu0 %v32160_v10  ;;  %29385 = vmatprep.subr.mxu1 %v32160_v10 }
 0x214   : > { %29361 = vmatpush3.msra.mxu0 %v600_v21  ;;  %29387 = vmatprep.mubr.msk.f32.mxu1 %vm32161_vm1, %v32160_v10 }
 0x215   : > { %29362 = vmatprep.subr.mxu0 %v32160_v10 }
 0x216   : > { %29363 = vmatpush3.msra.mxu0 %v607_v22 }
 0x217   : > { %29364 = vmatprep.subr.mxu0 %v32160_v10 }
 0x218   : > { %29365 = vmatpush3.msra.mxu0 %v614_v23 }
 0x219   : > { %29367 = vmatmul.mubr.f32.vlgmr.msra.gmra.mxu0 %v556_v47  ;;  %29380 = vmatprep.subr.mxu0 %v32160_v10 }
 0x21a   : > { %29382 = vmatprep.mubr.msk.f32.mxu0 %vm32161_vm1, %v32160_v10 }
 0x2bf   : > { %v653_v52 = vpop.f32.mrf.mxu1 }
 0x2c1   : > { %v29335_v53 = vpop.f32.mrf.mxu1 }
 0x2c7   : > { %v810_v54 = vpop.f32.mrf.mxu1 }
 0x2c8   : > { %v562_v55 = vpop.f32.mrf.mxu0 }
 0x2c9   : > { %v29357_v56 = vpop.f32.mrf.mxu1  ;;  %v563_v59 = vadd.f32 %v28253_v58, %v562_v55 }
 0x2ca   : > { %v29324_v57 = vpop.f32.mrf.mxu0 }
 0x2cb   : > { %v654_v62 = vadd.f32 %v653_v52, %v563_v59 }
 0x2d0   : > { %v733_v60 = vpop.f32.mrf.mxu0 }
 0x2d1   : > { %v968_v61 = vpop.f32.mrf.mxu1  ;;  %v734_v1 = vadd.f32 %v733_v60, %v654_v62 }
 0x2d2   : > { %v29346_v63 = vpop.f32.mrf.mxu0 }
 0x2d3   : > { %v29379_v0 = vpop.f32.mrf.mxu1  ;;  %v811_v2 = vadd.f32 %v810_v54, %v734_v1 }
 0x2d9   : > { %v893_v3 = vpop.f32.mrf.mxu0 }
 0x2da   : > { %v894_v4 = vadd.f32 %v893_v3, %v811_v2 }
 0x2db   : > { %v29368_v5 = vpop.f32.mrf.mxu0 }
 0x2dc   : > { %v32587_v6 = vadd.f32 %v968_v61, %v894_v4 }
 0x2de   : > { %973 = vrot.lane.b32.xlu1 %v32587_v6, %s32162_s8  ;;  %v976_v7 = vsel %vm975_vm4, %v32587_v6, 0 }
 0x2df   : > { %v1046_v8 = vand.u32 4294901760, %v976_v7 }
 0x2e1   : > { %v1047_v9 = vsub.f32 %v976_v7, %v1046_v8 }
 0x2e3   : > { %v1048_v11 = vand.u32 4294901760, %v1047_v9 }
 0x2e5   : > { %v1049_v14 = vsub.f32 %v1047_v9, %v1048_v11 }
 0x2e7   : > { %v1050_v17 = vand.u32 4294901760, %v1049_v14 }
 0x350   : > { %v974_v12 = vpop.permute.xlu1 %973 }
 0x351   : > { %v978_v13 = vsel %vm975_vm4, %v974_v12, 0 }
 0x352   : > { %v1011_v15 = vand.u32 4294901760, %v978_v13 }
 0x354   : > { %v1088_v16 = vsub.f32 %v978_v13, %v1011_v15  ;;  %29381 = vmatpush3.xpose.msra.mxu0 %v1011_v15 }
 0x355   : > { %29390 = vmatprep.subr.mxu0 %v32160_v10 }
 0x356   : > { %v1089_v18 = vand.u32 4294901760, %v1088_v16 }
 0x357   : > { %29383 = vmatmul.mubr.f32.vlgmr.msra.gmra.mxu0 %v1050_v17 }
 0x358   : > { %v1090_v19 = vsub.f32 %v1088_v16, %v1089_v18  ;;  %29391 = vmatpush3.xpose.msra.mxu0 %v1088_v16  ;;  %29392 = vmatprep.mubr.msk.f32.mxu0 %vm32161_vm1, %v32160_v10 }
 0x359   : > { %29400 = vmatprep.subr.mxu0 %v32160_v10 }
 0x35a   : > { %v1091_v20 = vand.u32 4294901760, %v1090_v19 }
 0x35b   : > { %29393 = vmatmul.mubr.f32.vlgmr.msra.gmra.mxu0 %v1047_v9 }
 0x35c   : > { %29386 = vmatpush3.xpose.msra.mxu1 %v1091_v20  ;;  %29401 = vmatpush3.xpose.msra.mxu0 %v1089_v18 }
 0x35d   : > { %29402 = vmatprep.mubr.msk.f32.mxu0 %vm32161_vm1, %v32160_v10  ;;  %29395 = vmatprep.subr.mxu1 %v32160_v10 }
 0x35e   : > { %29410 = vmatprep.subr.mxu0 %v32160_v10 }
 0x35f   : > { %29388 = vmatmul.mubr.f32.vlgmr.msra.gmra.mxu1 %v1046_v8  ;;  %29403 = vmatmul.mubr.f32.vlgmr.msra.gmra.mxu0 %v1046_v8 }
 0x360   : > { %29396 = vmatpush3.xpose.msra.mxu1 %v1011_v15  ;;  %29397 = vmatprep.mubr.msk.f32.mxu1 %vm32161_vm1, %v32160_v10 }
 0x361   : > { %29405 = vmatprep.subr.mxu1 %v32160_v10  ;;  %29412 = vmatprep.mubr.msk.f32.mxu0 %vm32161_vm1, %v32160_v10 }
 0x363   : > { %29398 = vmatmul.mubr.f32.vlgmr.msra.gmra.mxu1 %v1048_v11 }
 0x364   : > { %29406 = vmatpush3.xpose.msra.mxu1 %v1011_v15  ;;  %29407 = vmatprep.mubr.msk.f32.mxu1 %vm32161_vm1, %v32160_v10 }
 0x365   : > { %29415 = vmatprep.subr.mxu1 %v32160_v10 }
 0x367   : > { %29408 = vmatmul.mubr.f32.vlgmr.msra.gmra.mxu1 %v1046_v8 }
 0x368   : > { %29417 = vmatprep.mubr.msk.f32.mxu1 %vm32161_vm1, %v32160_v10 }
 0x417   : > { %v1052_v21 = vpop.f32.mrf.mxu0 }
 0x419   : > { %v29384_v22 = vpop.f32.mrf.mxu0 }
 0x41b   : > { %v1202_v23 = vpop.f32.mrf.mxu0 }
 0x41d   : > { %v29394_v24 = vpop.f32.mrf.mxu0 }
 0x41f   : > { %v1128_v25 = vpop.f32.mrf.mxu1  ;;  %v1350_v26 = vpop.f32.mrf.mxu0 }
 0x420   : > { %v1129_v27 = vadd.f32 %v1128_v25, %v1052_v21 }
 0x421   : > { %v29389_v28 = vpop.f32.mrf.mxu1  ;;  %v29404_v29 = vpop.f32.mrf.mxu0 }
 0x422   : > { %v1203_v30 = vadd.f32 %v1202_v23, %v1129_v27 }
 0x423   : > { %v1276_v31 = vpop.f32.mrf.mxu1 }
 0x424   : > { %v1277_v32 = vadd.f32 %v1276_v31, %v1203_v30 }
 0x425   : > { %v29399_v33 = vpop.f32.mrf.mxu1 }
 0x426   : > { %v1351_v34 = vadd.f32 %v1350_v26, %v1277_v32 }
 0x427   : > { %v1422_v35 = vpop.f32.mrf.mxu1 }
 0x428   : > { %v1423_v36 = vadd.f32 %v1422_v35, %v1351_v34 }
 0x429   : > { %v29409_v37 = vpop.f32.mrf.mxu1 }
 0x42a   : > { %v1426_v39 = vmul.f32 0.35355338, %v1423_v36 }
 0x42c   : > { %v1427_v40 = vadd.f32 %v1426_v39, %v32613_v38 }
 0x42e   : > { %v1428_v41 = vsel %vm975_vm4, %v1427_v40, -inf }
 0x42f   : > { %1429 = vmax.xlane.f32.xlu1 %v1428_v41 }
 0x4b8   : > { %v1430_v42 = vpop.xlane.xlu1 %1429 }
 0x4b9   : > { %v1431_v43 = vsub.f32 %v1427_v40, %v1430_v42 }
 0x4bb   : > { %v1432_v44 = vmul.f32 1.442695, %v1431_v43 }
 0x4bd   : > { %31803 = vpow2.f32 %v1432_v44 }
 0x4ca   : > { %v31804_v45 = vpop.eup %31803 }
 0x4cb   : > { %v1434_v46 = vsel %vm975_vm4, %v31804_v45, 0.0 }
 0x4cc   : > { %1435 = vadd.xlane.f32.xlu0 %v1434_v46 }
 0x4e2   : > { %1439 = vrot.lane.b32.xlu0 %v32587_v6, %s32163_s1 }
 0x4e6   : > { %1893 = vrot.lane.b32.xlu0 %v32587_v6, %s32164_s13 }
 0x4ea   : > { %1891 = vrot.lane.b32.xlu0 %v32587_v6, %s32165_s26 }
 0x555   : > { %v1436_v47 = vpop.xlane.xlu0 %1435 }
 0x556   : > { %31805 = vrcp.f32 %v1436_v47 }
 0x559   : > { %v1440_v48 = vpop.permute.xlu0 %1439 }
 0x55a   : > { %v1476_v49 = vand.u32 4294901760, %v1440_v48 }
 0x55c   : > { %v1553_v50 = vsub.f32 %v1440_v48, %v1476_v49  ;;  %29411 = vmatpush3.msra.mxu0 %v1476_v49 }
 0x55d   : > { %v1894_v51 = vpop.permute.xlu0 %1893  ;;  %29420 = vmatprep.subr.mxu0 %v32160_v10 }
 0x55e   : > { %v1554_v52 = vand.u32 4294901760, %v1553_v50  ;;  %v1897_v53 = vsel %vm975_vm4, %v1894_v51, 0 }
 0x55f   : > { %v1930_v54 = vand.u32 4294901760, %v1897_v53 }
 0x560   : > { %v1555_v55 = vsub.f32 %v1553_v50, %v1554_v52 }
 0x561   : > { %v2007_v58 = vsub.f32 %v1897_v53, %v1930_v54  ;;  %v1892_v60 = vpop.permute.xlu0 %1891 }
 0x562   : > { %v1556_v56 = vand.u32 4294901760, %v1555_v55  ;;  %v1895_v0 = vsel %vm975_vm4, %v1892_v60, 0 }
 0x563   : > { %v31806_v57 = vpop.eup %31805  ;;  %v2008_v63 = vand.u32 4294901760, %v2007_v58  ;;  %v1965_v2 = vand.u32 4294901760, %v1895_v0 }
 0x564   : > { %29416 = vmatpush3.msra.mxu1 %v1556_v56  ;;  %v1438_v59 = vmul.f32 %v31806_v57, %v31804_v45 }
 0x565   : > { %29425 = vmatprep.subr.mxu1 %v32160_v10  ;;  %v2009_v4 = vsub.f32 %v2007_v58, %v2008_v63  ;;  %v1966_v7 = vsub.f32 %v1895_v0, %v1965_v2 }
 0x566   : > { %v1443_v61 = vsel %vm975_vm4, %v1438_v59, 0 }
 0x567   : > { %v1511_v62 = vand.u32 4294901760, %v1443_v61  ;;  %v2010_v9 = vand.u32 4294901760, %v2009_v4  ;;  %v1967_v11 = vand.u32 4294901760, %v1966_v7 }
 0x569   : > { %v1512_v1 = vsub.f32 %v1443_v61, %v1511_v62  ;;  %29418 = vmatmul.mubr.f32.vlgmr.msra.gmra.mxu1 %v1511_v62  ;;  %v1968_v12 = vsub.f32 %v1966_v7, %v1967_v11 }
 0x56a   : > { %29426 = vmatpush3.msra.mxu1 %v1476_v49  ;;  %29427 = vmatprep.mubr.msk.f32.mxu1 %vm32161_vm1, %v32160_v10 }
 0x56b   : > { %29435 = vmatprep.subr.mxu1 %v32160_v10  ;;  %v1513_v3 = vand.u32 4294901760, %v1512_v1  ;;  %v1969_v13 = vand.u32 4294901760, %v1968_v12 }
 0x56d   : > { %29428 = vmatmul.mubr.f32.vlgmr.msra.gmra.mxu1 %v1513_v3  ;;  %v1514_v5 = vsub.f32 %v1512_v1, %v1513_v3 }
 0x56e   : > { %29436 = vmatpush3.msra.mxu1 %v1476_v49  ;;  %29437 = vmatprep.mubr.msk.f32.mxu1 %vm32161_vm1, %v32160_v10 }
 0x56f   : > { %29445 = vmatprep.subr.mxu1 %v32160_v10  ;;  %v1515_v8 = vand.u32 4294901760, %v1514_v5 }
 0x571   : > { %29413 = vmatmul.mubr.f32.vlgmr.msra.gmra.mxu0 %v1515_v8  ;;  %29438 = vmatmul.mubr.f32.vlgmr.msra.gmra.mxu1 %v1511_v62 }
 0x572   : > { %29421 = vmatpush3.msra.mxu0 %v1553_v50  ;;  %29446 = vmatpush3.xpose.msra.mxu1 %v2010_v9  ;;  %v421_v9 = vld [vmem:[#allocation10 + $0x48] sm:$0xff] }
 0x573   : > { %29422 = vmatprep.mubr.msk.f32.mxu0 %vm32161_vm1, %v32160_v10  ;;  %29430 = vmatprep.subr.mxu0 %v32160_v10 }
 0x574   : > { %29447 = vmatprep.mubr.msk.f32.mxu1 %vm32161_vm1, %v32160_v10  ;;  %29455 = vmatprep.subr.mxu1 %v32160_v10 }
 0x575   : > { %29423 = vmatmul.mubr.f32.vlgmr.msra.gmra.mxu0 %v1512_v1  ;;  %29448 = vmatmul.mubr.f32.vlgmr.msra.gmra.mxu1 %v1965_v2 }
 0x576   : > { %29431 = vmatpush3.msra.mxu0 %v1554_v52  ;;  %29456 = vmatpush3.xpose.msra.mxu1 %v1930_v54 }
 0x577   : > { %29432 = vmatprep.mubr.msk.f32.mxu0 %vm32161_vm1, %v32160_v10  ;;  %29440 = vmatprep.subr.mxu0 %v32160_v10 }
 0x578   : > { %29457 = vmatprep.mubr.msk.f32.mxu1 %vm32161_vm1, %v32160_v10  ;;  %29465 = vmatprep.subr.mxu1 %v32160_v10 }
 0x579   : > { %29433 = vmatmul.mubr.f32.vlgmr.msra.gmra.mxu0 %v1511_v62  ;;  %29458 = vmatmul.mubr.f32.vlgmr.msra.gmra.mxu1 %v1967_v11  ;;  %v2844_v11 = vand.u32 4294901760, %v421_v9 }
 0x57a   : > { %29441 = vmatpush3.xpose.msra.mxu0 %v1930_v54  ;;  %29466 = vmatpush3.xpose.msra.mxu1 %v1930_v54 }
 0x57b   : > { %29442 = vmatprep.mubr.msk.f32.mxu0 %vm32161_vm1, %v32160_v10  ;;  %29450 = vmatprep.subr.mxu0 %v32160_v10  ;;  %v32693_v12 = vsub.f32 %v421_v9, %v2844_v11 }
 0x57c   : > { %29467 = vmatprep.mubr.msk.f32.mxu1 %vm32161_vm1, %v32160_v10  ;;  %29475 = vmatprep.subr.mxu1 %v32160_v10 }
 0x57d   : > { %29443 = vmatmul.mubr.f32.vlgmr.msra.gmra.mxu0 %v1969_v13  ;;  %29468 = vmatmul.mubr.f32.vlgmr.msra.gmra.mxu1 %v1965_v2  ;;  %v2922_v13 = vand.u32 4294901760, %v32693_v12 }
 0x57e   : > { %29451 = vmatpush3.xpose.msra.mxu0 %v2007_v58  ;;  %29452 = vmatprep.mubr.msk.f32.mxu0 %vm32161_vm1, %v32160_v10 }
 0x57f   : > { %29460 = vmatprep.subr.mxu0 %v32160_v10  ;;  %29477 = vmatprep.mubr.msk.f32.mxu1 %vm32161_vm1, %v32160_v10 }
 0x581   : > { %29453 = vmatmul.mubr.f32.vlgmr.msra.gmra.mxu0 %v1966_v7 }
 0x582   : > { %29461 = vmatpush3.xpose.msra.mxu0 %v2008_v63  ;;  %29462 = vmatprep.mubr.msk.f32.mxu0 %vm32161_vm1, %v32160_v10 }
 0x583   : > { %29470 = vmatprep.subr.mxu0 %v32160_v10 }
 0x585   : > { %29463 = vmatmul.mubr.f32.vlgmr.msra.gmra.mxu0 %v1965_v2 }
 0x586   : > { %29472 = vmatprep.mubr.msk.f32.mxu0 %vm32161_vm1, %v32160_v10 }
 0x629   : > { %v1593_v14 = vpop.f32.mrf.mxu1 }
 0x62b   : > { %v29419_v15 = vpop.f32.mrf.mxu1 }
 0x62d   : > { %v1741_v16 = vpop.f32.mrf.mxu1 }
 0x62f   : > { %v29429_v17 = vpop.f32.mrf.mxu1 }
 0x631   : > { %v1517_v18 = vpop.f32.mrf.mxu0  ;;  %v1887_v19 = vpop.f32.mrf.mxu1 }
 0x632   : > { %v1594_v20 = vadd.f32 %v1593_v14, %v1517_v18  ;;  %v2923_v14 = vsub.f32 %v32693_v12, %v2922_v13 }
 0x633   : > { %v29414_v21 = vpop.f32.mrf.mxu0  ;;  %v29439_v22 = vpop.f32.mrf.mxu1 }
 0x634   : > { %v2924_v15 = vand.u32 4294901760, %v2923_v14 }
 0x635   : > { %v1667_v23 = vpop.f32.mrf.mxu0  ;;  %v2047_v24 = vpop.f32.mrf.mxu1 }
 0x636   : > { %v1668_v25 = vadd.f32 %v1667_v23, %v1594_v20 }
 0x637   : > { %v29424_v26 = vpop.f32.mrf.mxu0  ;;  %v29449_v27 = vpop.f32.mrf.mxu1 }
 0x638   : > { %v1742_v28 = vadd.f32 %v1741_v16, %v1668_v25  ;;  %v420_v25 = vld [vmem:[#allocation10 + $0x40] sm:$0xff] }
 0x639   : > { %v1815_v29 = vpop.f32.mrf.mxu0  ;;  %v2195_v30 = vpop.f32.mrf.mxu1 }
 0x63a   : > { %v1816_v31 = vadd.f32 %v1815_v29, %v1742_v28  ;;  %v3293_v29 = vand.u32 4294901760, %v420_v25 }
 0x63b   : > { %v29434_v32 = vpop.f32.mrf.mxu0  ;;  %v29459_v33 = vpop.f32.mrf.mxu1 }
 0x63c   : > { %v32663_v34 = vadd.f32 %v1887_v19, %v1816_v31 }
 0x63d   : > { %v1971_v35 = vpop.f32.mrf.mxu0  ;;  %v2341_v36 = vpop.f32.mrf.mxu1 }
 0x63e   : > { %v2048_v40 = vadd.f32 %v2047_v24, %v1971_v35  ;;  %v32699_v35 = vsub.f32 %v420_v25, %v3293_v29 }
 0x63f   : > { %v29444_v37 = vpop.f32.mrf.mxu0  ;;  %v29469_v39 = vpop.f32.mrf.mxu1 }
 0x641   : > { %v2121_v41 = vpop.f32.mrf.mxu0 }
 0x642   : > { %v2122_v42 = vadd.f32 %v2121_v41, %v2048_v40  ;;  %v3371_v41 = vand.u32 4294901760, %v32699_v35 }
 0x643   : > { %v29454_v43 = vpop.f32.mrf.mxu0 }
 0x644   : > { %v2196_v44 = vadd.f32 %v2195_v30, %v2122_v42  ;;  %v3260_v42 = vsel %vm975_vm4, %v32663_v34, 0 }
 0x645   : > { %v2269_v45 = vpop.f32.mrf.mxu0 }
 0x646   : > { %v2270_v46 = vadd.f32 %v2269_v45, %v2196_v44  ;;  %v32708_v45 = vand.u32 4294901760, %v3260_v42 }
 0x647   : > { %v29464_v47 = vpop.f32.mrf.mxu0 }
 0x648   : > { %v2342_v48 = vadd.f32 %v2341_v36, %v2270_v46  ;;  %v3372_v47 = vsub.f32 %v32699_v35, %v3371_v41 }
 0x64a   : > { %v2345_v49 = vmul.f32 0.35355338, %v2342_v48 }
 0x64c   : > { %v2346_v50 = vadd.f32 %v2345_v49, %v32613_v38  ;;  %v3329_v49 = vsub.f32 %v3260_v42, %v32708_v45 }
 0x64e   : > { %v2347_v51 = vsel %vm975_vm4, %v2346_v50, -inf }
 0x64f   : > { %2348 = vmax.xlane.f32.xlu1 %v2347_v51  ;;  %v3373_v51 = vand.u32 4294901760, %v3372_v47 }
 0x660   : > { %2358 = vrot.lane.b32.xlu1 %v32587_v6, %s32166_s19 }
 0x664   : > { %3710 = vrot.lane.b32.xlu1 %v32587_v6, %s32167_s16 }
 0x668   : > { %3708 = vrot.lane.b32.xlu1 %v32587_v6, %s32168_s17 }
 0x6d8   : > { %v2349_v52 = vpop.xlane.xlu1 %2348 }
 0x6d9   : > { %v2350_v53 = vsub.f32 %v2346_v50, %v2349_v52 }
 0x6db   : > { %v2351_v54 = vmul.f32 1.442695, %v2350_v53 }
 0x6dc   : > { %v2359_v55 = vpop.permute.xlu1 %2358 }
 0x6dd   : > { %31807 = vpow2.f32 %v2351_v54  ;;  %v2395_v56 = vand.u32 4294901760, %v2359_v55  ;;  %v3330_v54 = vand.u32 4294901760, %v3329_v49 }
 0x6df   : > { %v2472_v57 = vsub.f32 %v2359_v55, %v2395_v56  ;;  %29471 = vmatpush3.msra.mxu0 %v2395_v56 }
 0x6e0   : > { %29480 = vmatprep.subr.mxu0 %v32160_v10  ;;  %v3711_v37 = vpop.permute.xlu1 %3710 }
 0x6e1   : > { %v2473_v58 = vand.u32 4294901760, %v2472_v57  ;;  %v3714_v43 = vsel %vm975_vm4, %v3711_v37, 0 }
 0x6e2   : > { %v32714_v48 = vand.u32 4294901760, %v3714_v43 }
 0x6e3   : > { %v2474_v59 = vsub.f32 %v2472_v57, %v2473_v58 }
 0x6e4   : > { %v32721_v52 = vsub.f32 %v3714_v43, %v32714_v48  ;;  %v3709_v53 = vpop.permute.xlu1 %3708 }
 0x6e5   : > { %v2475_v60 = vand.u32 4294901760, %v2474_v59 }
 0x6e6   : > { %v3825_v55 = vand.u32 4294901760, %v32721_v52 }
 0x6e7   : > { %29476 = vmatpush3.msra.mxu1 %v2475_v60 }
 0x6e8   : > { %29485 = vmatprep.subr.mxu1 %v32160_v10  ;;  %v3826_v59 = vsub.f32 %v32721_v52, %v3825_v55 }
 0x6ea   : > { %v31808_v61 = vpop.eup %31807 }
 0x6eb   : > { %v2353_v62 = vsel %vm975_vm4, %v31808_v61, 0.0 }
 0x6ec   : > { %2354 = vadd.xlane.f32.xlu0 %v2353_v62  ;;  %v3827_v62 = vand.u32 4294901760, %v3826_v59 }
 0x775   : > { %v2355_v63 = vpop.xlane.xlu0 %2354 }
 0x776   : > { %31809 = vrcp.f32 %v2355_v63 }
 0x783   : > { %v31810_v0 = vpop.eup %31809 }
 0x784   : > { %v2357_v1 = vmul.f32 %v31810_v0, %v31808_v61 }
 0x786   : > { %v2362_v2 = vsel %vm975_vm4, %v2357_v1, 0 }
 0x787   : > { %v2430_v3 = vand.u32 4294901760, %v2362_v2 }
 0x789   : > { %v2431_v4 = vsub.f32 %v2362_v2, %v2430_v3  ;;  %29478 = vmatmul.mubr.f32.vlgmr.msra.gmra.mxu1 %v2430_v3 }
 0x78a   : > { %29486 = vmatpush3.msra.mxu1 %v2395_v56  ;;  %29487 = vmatprep.mubr.msk.f32.mxu1 %vm32161_vm1, %v32160_v10 }
 0x78b   : > { %29495 = vmatprep.subr.mxu1 %v32160_v10  ;;  %v2432_v5 = vand.u32 4294901760, %v2431_v4 }
 0x78d   : > { %29488 = vmatmul.mubr.f32.vlgmr.msra.gmra.mxu1 %v2432_v5  ;;  %v2433_v7 = vsub.f32 %v2431_v4, %v2432_v5 }
 0x78e   : > { %29496 = vmatpush3.msra.mxu1 %v2395_v56  ;;  %29497 = vmatprep.mubr.msk.f32.mxu1 %vm32161_vm1, %v32160_v10  ;;  %v3712_v56 = vsel %vm975_vm4, %v3709_v53, 0 }
 0x78f   : > { %v2434_v8 = vand.u32 4294901760, %v2433_v7  ;;  %29505 = vmatprep.subr.mxu1 %v32160_v10 }
 0x791   : > { %29473 = vmatmul.mubr.f32.vlgmr.msra.gmra.mxu0 %v2434_v8  ;;  %29498 = vmatmul.mubr.f32.vlgmr.msra.gmra.mxu1 %v2430_v3 }
 0x792   : > { %29481 = vmatpush3.msra.mxu0 %v2472_v57  ;;  %29482 = vmatprep.mubr.msk.f32.mxu0 %vm32161_vm1, %v32160_v10  ;;  %v3782_v57 = vand.u32 4294901760, %v3712_v56 }
 0x793   : > { %29490 = vmatprep.subr.mxu0 %v32160_v10  ;;  %29507 = vmatprep.mubr.msk.f32.mxu1 %vm32161_vm1, %v32160_v10 }
 0x794   : > { %29506 = vmatpush3.msra.mxu1 %v2924_v15  ;;  %v3783_v60 = vsub.f32 %v3712_v56, %v3782_v57 }
 0x795   : > { %29483 = vmatmul.mubr.f32.vlgmr.msra.gmra.mxu0 %v2431_v4  ;;  %29515 = vmatprep.subr.mxu1 %v32160_v10 }
 0x796   : > { %29491 = vmatpush3.msra.mxu0 %v2473_v58  ;;  %29492 = vmatprep.mubr.msk.f32.mxu0 %vm32161_vm1, %v32160_v10  ;;  %v3331_v58 = vsub.f32 %v3329_v49, %v3330_v54  ;;  %v3784_v63 = vand.u32 4294901760, %v3783_v60 }
 0x797   : > { %29500 = vmatprep.subr.mxu0 %v32160_v10 }
 0x798   : > { %v3332_v61 = vand.u32 4294901760, %v3331_v58  ;;  %v3785_v0 = vsub.f32 %v3783_v60, %v3784_v63 }
 0x799   : > { %29493 = vmatmul.mubr.f32.vlgmr.msra.gmra.mxu0 %v2430_v3 }
 0x79a   : > { %29502 = vmatprep.mubr.msk.f32.mxu0 %vm32161_vm1, %v32160_v10  ;;  %29501 = vmatpush3.msra.mxu0 %v2844_v11  ;;  %v3786_v1 = vand.u32 4294901760, %v3785_v0 }
 0x79b   : > { %29510 = vmatprep.subr.mxu0 %v32160_v10 }
 0x849   : > { %v2512_v16 = vpop.f32.mrf.mxu1 }
 0x84b   : > { %v29479_v17 = vpop.f32.mrf.mxu1 }
 0x84d   : > { %v2660_v18 = vpop.f32.mrf.mxu1 }
 0x84f   : > { %v29489_v19 = vpop.f32.mrf.mxu1 }
 0x851   : > { %v2436_v20 = vpop.f32.mrf.mxu0  ;;  %v2806_v21 = vpop.f32.mrf.mxu1 }
 0x852   : > { %v2513_v24 = vadd.f32 %v2512_v16, %v2436_v20 }
 0x853   : > { %v29474_v22 = vpop.f32.mrf.mxu0  ;;  %v29499_v23 = vpop.f32.mrf.mxu1 }
 0x855   : > { %v2586_v26 = vpop.f32.mrf.mxu0 }
 0x856   : > { %v2587_v27 = vadd.f32 %v2586_v26, %v2513_v24 }
 0x857   : > { %v29484_v28 = vpop.f32.mrf.mxu0 }
 0x858   : > { %v2661_v30 = vadd.f32 %v2660_v18, %v2587_v27 }
 0x859   : > { %v2734_v31 = vpop.f32.mrf.mxu0 }
 0x85a   : > { %v2735_v32 = vadd.f32 %v2734_v31, %v2661_v30 }
 0x85b   : > { %v29494_v33 = vpop.f32.mrf.mxu0 }
 0x85c   : > { %v2807_v36 = vadd.f32 %v2806_v21, %v2735_v32 }
 0x85e   : > { %v2811_v39 = vsel %vm975_vm4, %v2807_v36, 0 }
 0x85f   : > { %v2879_v40 = vand.u32 4294901760, %v2811_v39 }
 0x861   : > { %v2880_v44 = vsub.f32 %v2811_v39, %v2879_v40  ;;  %29508 = vmatmul.mubr.f32.vlgmr.msra.gmra.mxu1 %v2879_v40 }
 0x862   : > { %29516 = vmatpush3.msra.mxu1 %v2844_v11  ;;  %29517 = vmatprep.mubr.msk.f32.mxu1 %vm32161_vm1, %v32160_v10 }
 0x863   : > { %v2881_v46 = vand.u32 4294901760, %v2880_v44  ;;  %29525 = vmatprep.subr.mxu1 %v32160_v10 }
 0x865   : > { %29518 = vmatmul.mubr.f32.vlgmr.msra.gmra.mxu1 %v2881_v46  ;;  %v2882_v34 = vsub.f32 %v2880_v44, %v2881_v46 }
 0x866   : > { %29526 = vmatpush3.msra.mxu1 %v2844_v11  ;;  %29527 = vmatprep.mubr.msk.f32.mxu1 %vm32161_vm1, %v32160_v10 }
 0x867   : > { %v2883_v50 = vand.u32 4294901760, %v2882_v34  ;;  %29535 = vmatprep.subr.mxu1 %v32160_v10 }
 0x869   : > { %29503 = vmatmul.mubr.f32.vlgmr.msra.gmra.mxu0 %v2883_v50  ;;  %29528 = vmatmul.mubr.f32.vlgmr.msra.gmra.mxu1 %v2879_v40 }
 0x86a   : > { %29511 = vmatpush3.msra.mxu0 %v32693_v12  ;;  %29512 = vmatprep.mubr.msk.f32.mxu0 %vm32161_vm1, %v32160_v10 }
 0x86b   : > { %29536 = vmatpush3.msra.mxu1 %v3373_v51  ;;  %29537 = vmatprep.mubr.msk.f32.mxu1 %vm32161_vm1, %v32160_v10 }
 0x86c   : > { %29520 = vmatprep.subr.mxu0 %v32160_v10  ;;  %29545 = vmatprep.subr.mxu1 %v32160_v10 }
 0x86d   : > { %29513 = vmatmul.mubr.f32.vlgmr.msra.gmra.mxu0 %v2880_v44  ;;  %29538 = vmatmul.mubr.f32.vlgmr.msra.gmra.mxu1 %v32708_v45 }
 0x86e   : > { %29521 = vmatpush3.msra.mxu0 %v2922_v13  ;;  %29522 = vmatprep.mubr.msk.f32.mxu0 %vm32161_vm1, %v32160_v10 }
 0x86f   : > { %29546 = vmatpush3.msra.mxu1 %v3293_v29  ;;  %29547 = vmatprep.mubr.msk.f32.mxu1 %vm32161_vm1, %v32160_v10 }
 0x870   : > { %29530 = vmatprep.subr.mxu0 %v32160_v10  ;;  %29555 = vmatprep.subr.mxu1 %v32160_v10 }
 0x871   : > { %29523 = vmatmul.mubr.f32.vlgmr.msra.gmra.mxu0 %v2879_v40  ;;  %29548 = vmatmul.mubr.f32.vlgmr.msra.gmra.mxu1 %v3330_v54 }
 0x872   : > { %29531 = vmatpush3.msra.mxu0 %v3293_v29  ;;  %29556 = vmatpush3.msra.mxu1 %v3293_v29 }
 0x873   : > { %29532 = vmatprep.mubr.msk.f32.mxu0 %vm32161_vm1, %v32160_v10  ;;  %29557 = vmatprep.mubr.msk.f32.mxu1 %vm32161_vm1, %v32160_v10 }
 0x874   : > { %29565 = vmatprep.subr.mxu1 %v32160_v10  ;;  %29540 = vmatprep.subr.mxu0 %v32160_v10 }
 0x875   : > { %29533 = vmatmul.mubr.f32.vlgmr.msra.gmra.mxu0 %v3332_v61  ;;  %29558 = vmatmul.mubr.f32.vlgmr.msra.gmra.mxu1 %v32708_v45 }
 0x876   : > { %29566 = vmatpush3.xpose.msra.mxu1 %v3827_v62  ;;  %29541 = vmatpush3.msra.mxu0 %v32699_v35 }
 0x877   : > { %29542 = vmatprep.mubr.msk.f32.mxu0 %vm32161_vm1, %v32160_v10  ;;  %29567 = vmatprep.mubr.msk.f32.mxu1 %vm32161_vm1, %v32160_v10 }
 0x878   : > { %29575 = vmatprep.subr.mxu1 %v32160_v10  ;;  %29550 = vmatprep.subr.mxu0 %v32160_v10 }
 0x879   : > { %29543 = vmatmul.mubr.f32.vlgmr.msra.gmra.mxu0 %v3329_v49  ;;  %29568 = vmatmul.mubr.f32.vlgmr.msra.gmra.mxu1 %v3782_v57 }
 0x87a   : > { %29576 = vmatpush3.xpose.msra.mxu1 %v32714_v48  ;;  %29551 = vmatpush3.msra.mxu0 %v3371_v41 }
 0x87b   : > { %29552 = vmatprep.mubr.msk.f32.mxu0 %vm32161_vm1, %v32160_v10  ;;  %29560 = vmatprep.subr.mxu0 %v32160_v10 }
 0x87c   : > { %29577 = vmatprep.mubr.msk.f32.mxu1 %vm32161_vm1, %v32160_v10  ;;  %29585 = vmatprep.subr.mxu1 %v32160_v10 }
 0x87d   : > { %29553 = vmatmul.mubr.f32.vlgmr.msra.gmra.mxu0 %v32708_v45  ;;  %29578 = vmatmul.mubr.f32.vlgmr.msra.gmra.mxu1 %v3784_v63 }
 0x87e   : > { %29561 = vmatpush3.xpose.msra.mxu0 %v32714_v48  ;;  %29586 = vmatpush3.xpose.msra.mxu1 %v32714_v48 }
 0x87f   : > { %29562 = vmatprep.mubr.msk.f32.mxu0 %vm32161_vm1, %v32160_v10  ;;  %29570 = vmatprep.subr.mxu0 %v32160_v10 }
 0x880   : > { %29587 = vmatprep.mubr.msk.f32.mxu1 %vm32161_vm1, %v32160_v10  ;;  %29595 = vmatprep.subr.mxu1 %v32160_v10 }
 0x881   : > { %29563 = vmatmul.mubr.f32.vlgmr.msra.gmra.mxu0 %v3786_v1  ;;  %29588 = vmatmul.mubr.f32.vlgmr.msra.gmra.mxu1 %v3782_v57 }
 0x882   : > { %29571 = vmatpush3.xpose.msra.mxu0 %v32721_v52  ;;  %29572 = vmatprep.mubr.msk.f32.mxu0 %vm32161_vm1, %v32160_v10 }
 0x883   : > { %29580 = vmatprep.subr.mxu0 %v32160_v10  ;;  %29597 = vmatprep.mubr.msk.f32.mxu1 %vm32161_vm1, %v32160_v10 }
 0x885   : > { %29573 = vmatmul.mubr.f32.vlgmr.msra.gmra.mxu0 %v3783_v60 }
 0x886   : > { %29581 = vmatpush3.xpose.msra.mxu0 %v3825_v55  ;;  %29582 = vmatprep.mubr.msk.f32.mxu0 %vm32161_vm1, %v32160_v10 }
 0x887   : > { %29590 = vmatprep.subr.mxu0 %v32160_v10 }
 0x889   : > { %29583 = vmatmul.mubr.f32.vlgmr.msra.gmra.mxu0 %v3782_v57 }
 0x88a   : > { %29592 = vmatprep.mubr.msk.f32.mxu0 %vm32161_vm1, %v32160_v10 }
 0x921   : > { %v2961_v2 = vpop.f32.mrf.mxu1 }
 0x923   : > { %v29509_v3 = vpop.f32.mrf.mxu1 }
 0x925   : > { %v3109_v4 = vpop.f32.mrf.mxu1 }
 0x927   : > { %v29519_v5 = vpop.f32.mrf.mxu1 }
 0x929   : > { %v2885_v7 = vpop.f32.mrf.mxu0  ;;  %v3255_v8 = vpop.f32.mrf.mxu1 }
 0x92a   : > { %v2962_v9 = vadd.f32 %v2961_v2, %v2885_v7 }
 0x92b   : > { %v29504_v11 = vpop.f32.mrf.mxu0  ;;  %v29529_v12 = vpop.f32.mrf.mxu1 }
 0x92d   : > { %v3035_v13 = vpop.f32.mrf.mxu0  ;;  %v3410_v14 = vpop.f32.mrf.mxu1 }
 0x92e   : > { %v3036_v15 = vadd.f32 %v3035_v13, %v2962_v9 }
 0x92f   : > { %v29514_v16 = vpop.f32.mrf.mxu0  ;;  %v29539_v17 = vpop.f32.mrf.mxu1 }
 0x930   : > { %v3110_v18 = vadd.f32 %v3109_v4, %v3036_v15  ;;  %v422_v17 = vld [vmem:[#allocation10 + $0x50] sm:$0xff] }
 0x931   : > { %v3183_v19 = vpop.f32.mrf.mxu0  ;;  %v3558_v20 = vpop.f32.mrf.mxu1 }
 0x932   : > { %v3184_v21 = vadd.f32 %v3183_v19, %v3110_v18  ;;  %v4661_v18 = vand.u32 4294901760, %v422_v17 }
 0x933   : > { %v29524_v22 = vpop.f32.mrf.mxu0  ;;  %v29549_v23 = vpop.f32.mrf.mxu1 }
 0x934   : > { %v3256_v24 = vadd.f32 %v3255_v8, %v3184_v21  ;;  %v4738_v19 = vsub.f32 %v422_v17, %v4661_v18 }
 0x935   : > { %v3334_v25 = vpop.f32.mrf.mxu0  ;;  %v3704_v26 = vpop.f32.mrf.mxu1 }
 0x936   : > { %v3335_v27 = vadd.f32 %v3334_v25, %v3256_v24 }
 0x937   : > { %v29534_v28 = vpop.f32.mrf.mxu0  ;;  %v29559_v29 = vpop.f32.mrf.mxu1 }
 0x938   : > { %v3411_v30 = vadd.f32 %v3410_v14, %v3335_v27 }
 0x939   : > { %v3484_v31 = vpop.f32.mrf.mxu0  ;;  %v3864_v32 = vpop.f32.mrf.mxu1 }
 0x93a   : > { %v3485_v33 = vadd.f32 %v3484_v31, %v3411_v30 }
 0x93b   : > { %v29544_v35 = vpop.f32.mrf.mxu0  ;;  %v29569_v36 = vpop.f32.mrf.mxu1 }
 0x93c   : > { %v3559_v37 = vadd.f32 %v3558_v20, %v3485_v33  ;;  %v4739_v20 = vand.u32 4294901760, %v4738_v19 }
 0x93d   : > { %v3632_v39 = vpop.f32.mrf.mxu0  ;;  %v4012_v40 = vpop.f32.mrf.mxu1 }
 0x93e   : > { %v3633_v41 = vadd.f32 %v3632_v39, %v3559_v37  ;;  %v4740_v21 = vsub.f32 %v4738_v19, %v4739_v20 }
 0x93f   : > { %v29554_v42 = vpop.f32.mrf.mxu0  ;;  %v29579_v43 = vpop.f32.mrf.mxu1 }
 0x940   : > { %v32783_v44 = vadd.f32 %v3704_v26, %v3633_v41  ;;  %v4741_v22 = vand.u32 4294901760, %v4740_v21 }
 0x941   : > { %v3788_v45 = vpop.f32.mrf.mxu0  ;;  %v4158_v46 = vpop.f32.mrf.mxu1 }
 0x942   : > { %v3865_v34 = vadd.f32 %v3864_v32, %v3788_v45 }
 0x943   : > { %v29564_v47 = vpop.f32.mrf.mxu0  ;;  %v29589_v48 = vpop.f32.mrf.mxu1 }
 0x945   : > { %v3938_v49 = vpop.f32.mrf.mxu0 }
 0x946   : > { %v3939_v50 = vadd.f32 %v3938_v49, %v3865_v34 }
 0x947   : > { %v29574_v51 = vpop.f32.mrf.mxu0 }
 0x948   : > { %v4013_v52 = vadd.f32 %v4012_v40, %v3939_v50 }
 0x949   : > { %v4086_v53 = vpop.f32.mrf.mxu0 }
 0x94a   : > { %v4087_v54 = vadd.f32 %v4086_v53, %v4013_v52 }
 0x94b   : > { %v29584_v55 = vpop.f32.mrf.mxu0 }
 0x94c   : > { %v4159_v56 = vadd.f32 %v4158_v46, %v4087_v54 }
 0x94e   : > { %v4162_v57 = vmul.f32 0.35355338, %v4159_v56 }
 0x950   : > { %v4163_v58 = vadd.f32 %v4162_v57, %v32613_v38 }
 0x952   : > { %v4164_v59 = vsel %vm975_vm4, %v4163_v58, -inf }
 0x953   : > { %4165 = vmax.xlane.f32.xlu1 %v4164_v59 }
 0x9dc   : > { %v4166_v60 = vpop.xlane.xlu1 %4165 }
 0x9dd   : > { %v4167_v61 = vsub.f32 %v4163_v58, %v4166_v60 }
 0x9df   : > { %v4168_v62 = vmul.f32 1.442695, %v4167_v61 }
 0x9e1   : > { %31811 = vpow2.f32 %v4168_v62 }
 0x9ee   : > { %v31812_v63 = vpop.eup %31811 }
 0x9ef   : > { %v4170_v0 = vsel %vm975_vm4, %v31812_v63, 0.0 }
 0x9f0   : > { %4171 = vadd.xlane.f32.xlu0 %v4170_v0 }
 0xa06   : > { %4175 = vrot.lane.b32.xlu0 %v32587_v6, %s32169_s7 }
 0xa0a   : > { %5079 = vrot.lane.b32.xlu0 %v32587_v6, %s32170_s30 }
 0xa0e   : > { %5077 = vrot.lane.b32.xlu0 %v32587_v6, %s32171_s4 }
 0xa79   : > { %v4172_v38 = vpop.xlane.xlu0 %4171 }
 0xa7a   : > { %31813 = vrcp.f32 %v4172_v38 }
 0xa7d   : > { %v4176_v1 = vpop.permute.xlu0 %4175 }
 0xa7e   : > { %v4212_v2 = vand.u32 4294901760, %v4176_v1 }
 0xa80   : > { %v4289_v3 = vsub.f32 %v4176_v1, %v4212_v2  ;;  %29591 = vmatpush3.msra.mxu0 %v4212_v2 }
 0xa81   : > { %29600 = vmatprep.subr.mxu0 %v32160_v10  ;;  %v5080_v29 = vpop.permute.xlu0 %5079 }
 0xa82   : > { %v4290_v4 = vand.u32 4294901760, %v4289_v3  ;;  %v5083_v33 = vsel %vm975_vm4, %v5080_v29, 0 }
 0xa83   : > { %v5116_v39 = vand.u32 4294901760, %v5083_v33 }
 0xa84   : > { %v4291_v5 = vsub.f32 %v4289_v3, %v4290_v4 }
 0xa85   : > { %v5193_v45 = vsub.f32 %v5083_v33, %v5116_v39  ;;  %v5078_v47 = vpop.permute.xlu0 %5077 }
 0xa86   : > { %v4292_v7 = vand.u32 4294901760, %v4291_v5  ;;  %v5081_v50 = vsel %vm975_vm4, %v5078_v47, 0 }
 0xa87   : > { %v31814_v8 = vpop.eup %31813  ;;  %v5194_v49 = vand.u32 4294901760, %v5193_v45  ;;  %v5151_v52 = vand.u32 4294901760, %v5081_v50 }
 0xa88   : > { %29596 = vmatpush3.msra.mxu1 %v4292_v7  ;;  %v4174_v9 = vmul.f32 %v31814_v8, %v31812_v63 }
 0xa89   : > { %29605 = vmatprep.subr.mxu1 %v32160_v10  ;;  %v5195_v54 = vsub.f32 %v5193_v45, %v5194_v49  ;;  %v5152_v56 = vsub.f32 %v5081_v50, %v5151_v52 }
 0xa8a   : > { %v4179_v11 = vsel %vm975_vm4, %v4174_v9, 0 }
 0xa8b   : > { %v4247_v12 = vand.u32 4294901760, %v4179_v11  ;;  %v5196_v58 = vand.u32 4294901760, %v5195_v54  ;;  %v5153_v59 = vand.u32 4294901760, %v5152_v56 }
 0xa8d   : > { %v4248_v13 = vsub.f32 %v4179_v11, %v4247_v12  ;;  %29598 = vmatmul.mubr.f32.vlgmr.msra.gmra.mxu1 %v4247_v12  ;;  %v5154_v60 = vsub.f32 %v5152_v56, %v5153_v59 }
 0xa8e   : > { %29606 = vmatpush3.msra.mxu1 %v4212_v2  ;;  %29607 = vmatprep.mubr.msk.f32.mxu1 %vm32161_vm1, %v32160_v10 }
 0xa8f   : > { %29615 = vmatprep.subr.mxu1 %v32160_v10  ;;  %v4249_v14 = vand.u32 4294901760, %v4248_v13  ;;  %v5155_v61 = vand.u32 4294901760, %v5154_v60 }
 0xa91   : > { %29608 = vmatmul.mubr.f32.vlgmr.msra.gmra.mxu1 %v4249_v14  ;;  %v4250_v15 = vsub.f32 %v4248_v13, %v4249_v14 }
 0xa92   : > { %29616 = vmatpush3.msra.mxu1 %v4212_v2  ;;  %29617 = vmatprep.mubr.msk.f32.mxu1 %vm32161_vm1, %v32160_v10 }
 0xa93   : > { %v4251_v16 = vand.u32 4294901760, %v4250_v15  ;;  %29625 = vmatprep.subr.mxu1 %v32160_v10 }
 0xa95   : > { %29593 = vmatmul.mubr.f32.vlgmr.msra.gmra.mxu0 %v4251_v16  ;;  %29618 = vmatmul.mubr.f32.vlgmr.msra.gmra.mxu1 %v4247_v12 }
 0xa96   : > { %29601 = vmatpush3.msra.mxu0 %v4289_v3  ;;  %29602 = vmatprep.mubr.msk.f32.mxu0 %vm32161_vm1, %v32160_v10 }
 0xa97   : > { %29610 = vmatprep.subr.mxu0 %v32160_v10  ;;  %29627 = vmatprep.mubr.msk.f32.mxu1 %vm32161_vm1, %v32160_v10 }
 0xa98   : > { %29626 = vmatpush3.msra.mxu1 %v4741_v22 }
 0xa99   : > { %29603 = vmatmul.mubr.f32.vlgmr.msra.gmra.mxu0 %v4248_v13  ;;  %29635 = vmatprep.subr.mxu1 %v32160_v10 }
 0xa9a   : > { %29611 = vmatpush3.msra.mxu0 %v4290_v4  ;;  %29612 = vmatprep.mubr.msk.f32.mxu0 %vm32161_vm1, %v32160_v10 }
 0xa9b   : > { %29620 = vmatprep.subr.mxu0 %v32160_v10 }
 0xa9d   : > { %29613 = vmatmul.mubr.f32.vlgmr.msra.gmra.mxu0 %v4247_v12 }
 0xa9e   : > { %29622 = vmatprep.mubr.msk.f32.mxu0 %vm32161_vm1, %v32160_v10  ;;  %29621 = vmatpush3.msra.mxu0 %v4661_v18 }
 0xa9f   : > { %29630 = vmatprep.subr.mxu0 %v32160_v10 }
 0xb4d   : > { %v4329_v23 = vpop.f32.mrf.mxu1 }
 0xb4f   : > { %v29599_v24 = vpop.f32.mrf.mxu1 }
 0xb51   : > { %v4477_v25 = vpop.f32.mrf.mxu1 }
 0xb53   : > { %v29609_v26 = vpop.f32.mrf.mxu1 }
 0xb55   : > { %v4253_v27 = vpop.f32.mrf.mxu0  ;;  %v4623_v28 = vpop.f32.mrf.mxu1 }
 0xb56   : > { %v4330_v32 = vadd.f32 %v4329_v23, %v4253_v27 }
 0xb57   : > { %v29594_v30 = vpop.f32.mrf.mxu0  ;;  %v29619_v31 = vpop.f32.mrf.mxu1 }
 0xb59   : > { %v4403_v35 = vpop.f32.mrf.mxu0 }
 0xb5a   : > { %v4404_v36 = vadd.f32 %v4403_v35, %v4330_v32 }
 0xb5b   : > { %v29604_v37 = vpop.f32.mrf.mxu0 }
 0xb5c   : > { %v4478_v40 = vadd.f32 %v4477_v25, %v4404_v36  ;;  %v31891_v36 = vld [vmem:[%s32458_s29] sm:$0xff] }
 0xb5d   : > { %v4551_v41 = vpop.f32.mrf.mxu0 }
 0xb5e   : > { %v4552_v42 = vadd.f32 %v4551_v41, %v4478_v40 }
 0xb5f   : > { %v29614_v43 = vpop.f32.mrf.mxu0 }
 0xb60   : > { %v4624_v46 = vadd.f32 %v4623_v28, %v4552_v42 }
 0xb62   : > { %v4628_v48 = vsel %vm975_vm4, %v4624_v46, 0 }
 0xb63   : > { %v4696_v34 = vand.u32 4294901760, %v4628_v48 }
 0xb65   : > { %v4697_v51 = vsub.f32 %v4628_v48, %v4696_v34  ;;  %29628 = vmatmul.mubr.f32.vlgmr.msra.gmra.mxu1 %v4696_v34 }
 0xb66   : > { %29636 = vmatpush3.msra.mxu1 %v4661_v18  ;;  %29637 = vmatprep.mubr.msk.f32.mxu1 %vm32161_vm1, %v32160_v10 }
 0xb67   : > { %v4698_v53 = vand.u32 4294901760, %v4697_v51  ;;  %29645 = vmatprep.subr.mxu1 %v32160_v10 }
 0xb69   : > { %29638 = vmatmul.mubr.f32.vlgmr.msra.gmra.mxu1 %v4698_v53  ;;  %v4699_v55 = vsub.f32 %v4697_v51, %v4698_v53 }
 0xb6a   : > { %29646 = vmatpush3.msra.mxu1 %v4661_v18  ;;  %29647 = vmatprep.mubr.msk.f32.mxu1 %vm32161_vm1, %v32160_v10 }
 0xb6b   : > { %29655 = vmatprep.subr.mxu1 %v32160_v10  ;;  %v4700_v57 = vand.u32 4294901760, %v4699_v55 }
 0xb6d   : > { %29623 = vmatmul.mubr.f32.vlgmr.msra.gmra.mxu0 %v4700_v57  ;;  %29648 = vmatmul.mubr.f32.vlgmr.msra.gmra.mxu1 %v4696_v34 }
 0xb6e   : > { %29656 = vmatpush3.xpose.msra.mxu1 %v5196_v58  ;;  %29631 = vmatpush3.msra.mxu0 %v4738_v19  ;;  %v423_v58 = vld [vmem:[#allocation10 + $0x58] sm:$0xff] }
 0xb6f   : > { %29632 = vmatprep.mubr.msk.f32.mxu0 %vm32161_vm1, %v32160_v10  ;;  %29657 = vmatprep.mubr.msk.f32.mxu1 %vm32161_vm1, %v32160_v10 }
 0xb70   : > { %29665 = vmatprep.subr.mxu1 %v32160_v10  ;;  %29640 = vmatprep.subr.mxu0 %v32160_v10 }
 0xb71   : > { %29633 = vmatmul.mubr.f32.vlgmr.msra.gmra.mxu0 %v4697_v51  ;;  %29658 = vmatmul.mubr.f32.vlgmr.msra.gmra.mxu1 %v5151_v52 }
 0xb72   : > { %29666 = vmatpush3.xpose.msra.mxu1 %v5116_v39  ;;  %29641 = vmatpush3.msra.mxu0 %v4739_v20 }
 0xb73   : > { %29642 = vmatprep.mubr.msk.f32.mxu0 %vm32161_vm1, %v32160_v10  ;;  %29650 = vmatprep.subr.mxu0 %v32160_v10 }
 0xb74   : > { %29667 = vmatprep.mubr.msk.f32.mxu1 %vm32161_vm1, %v32160_v10  ;;  %29675 = vmatprep.subr.mxu1 %v32160_v10 }
 0xb75   : > { %29643 = vmatmul.mubr.f32.vlgmr.msra.gmra.mxu0 %v4696_v34  ;;  %29668 = vmatmul.mubr.f32.vlgmr.msra.gmra.mxu1 %v5153_v59  ;;  %v6030_v59 = vand.u32 4294901760, %v423_v58 }
 0xb76   : > { %29651 = vmatpush3.xpose.msra.mxu0 %v5116_v39  ;;  %29676 = vmatpush3.xpose.msra.mxu1 %v5116_v39 }
 0xb77   : > { %29652 = vmatprep.mubr.msk.f32.mxu0 %vm32161_vm1, %v32160_v10  ;;  %29660 = vmatprep.subr.mxu0 %v32160_v10  ;;  %v6107_v60 = vsub.f32 %v423_v58, %v6030_v59 }
 0xb78   : > { %29677 = vmatprep.mubr.msk.f32.mxu1 %vm32161_vm1, %v32160_v10  ;;  %29685 = vmatprep.subr.mxu1 %v32160_v10 }
 0xb79   : > { %29653 = vmatmul.mubr.f32.vlgmr.msra.gmra.mxu0 %v5155_v61  ;;  %29678 = vmatmul.mubr.f32.vlgmr.msra.gmra.mxu1 %v5151_v52  ;;  %v6108_v61 = vand.u32 4294901760, %v6107_v60 }
 0xb7a   : > { %29661 = vmatpush3.xpose.msra.mxu0 %v5193_v45  ;;  %29662 = vmatprep.mubr.msk.f32.mxu0 %vm32161_vm1, %v32160_v10 }
 0xb7b   : > { %29670 = vmatprep.subr.mxu0 %v32160_v10  ;;  %29687 = vmatprep.mubr.msk.f32.mxu1 %vm32161_vm1, %v32160_v10 }
 0xb7d   : > { %29663 = vmatmul.mubr.f32.vlgmr.msra.gmra.mxu0 %v5152_v56 }
 0xb7e   : > { %29671 = vmatpush3.xpose.msra.mxu0 %v5194_v49  ;;  %29672 = vmatprep.mubr.msk.f32.mxu0 %vm32161_vm1, %v32160_v10 }
 0xb7f   : > { %29680 = vmatprep.subr.mxu0 %v32160_v10 }
 0xb81   : > { %29673 = vmatmul.mubr.f32.vlgmr.msra.gmra.mxu0 %v5151_v52 }
 0xb82   : > { %29682 = vmatprep.mubr.msk.f32.mxu0 %vm32161_vm1, %v32160_v10 }
 0xc25   : > { %v4778_v62 = vpop.f32.mrf.mxu1 }
 0xc27   : > { %v29629_v63 = vpop.f32.mrf.mxu1 }
 0xc29   : > { %v4926_v0 = vpop.f32.mrf.mxu1 }
 0xc2b   : > { %v29639_v38 = vpop.f32.mrf.mxu1 }
 0xc2d   : > { %v4702_v1 = vpop.f32.mrf.mxu0  ;;  %v5072_v2 = vpop.f32.mrf.mxu1 }
 0xc2e   : > { %v4779_v3 = vadd.f32 %v4778_v62, %v4702_v1  ;;  %v6109_v62 = vsub.f32 %v6107_v60, %v6108_v61 }
 0xc2f   : > { %v29624_v4 = vpop.f32.mrf.mxu0  ;;  %v29649_v5 = vpop.f32.mrf.mxu1 }
 0xc30   : > { %v6110_v63 = vand.u32 4294901760, %v6109_v62 }
 0xc31   : > { %v4852_v7 = vpop.f32.mrf.mxu0  ;;  %v5233_v8 = vpop.f32.mrf.mxu1 }
 0xc32   : > { %v4853_v9 = vadd.f32 %v4852_v7, %v4779_v3 }
 0xc33   : > { %v29634_v11 = vpop.f32.mrf.mxu0  ;;  %v29659_v12 = vpop.f32.mrf.mxu1 }
 0xc34   : > { %v4927_v13 = vadd.f32 %v4926_v0, %v4853_v9 }
 0xc35   : > { %v5000_v14 = vpop.f32.mrf.mxu0  ;;  %v5381_v15 = vpop.f32.mrf.mxu1 }
 0xc36   : > { %v5001_v16 = vadd.f32 %v5000_v14, %v4927_v13 }
 0xc37   : > { %v29644_v17 = vpop.f32.mrf.mxu0  ;;  %v29669_v18 = vpop.f32.mrf.mxu1 }
 0xc38   : > { %v5073_v19 = vadd.f32 %v5072_v2, %v5001_v16 }
 0xc39   : > { %v5157_v20 = vpop.f32.mrf.mxu0  ;;  %v5527_v21 = vpop.f32.mrf.mxu1 }
 0xc3a   : > { %v32853_v22 = vadd.f32 %v5073_v19, %v32783_v44  ;;  %v5234_v25 = vadd.f32 %v5233_v8, %v5157_v20 }
 0xc3b   : > { %v29654_v23 = vpop.f32.mrf.mxu0  ;;  %v29679_v24 = vpop.f32.mrf.mxu1 }
 0xc3d   : > { %v5307_v26 = vpop.f32.mrf.mxu0 }
 0xc3e   : > { %v5308_v27 = vadd.f32 %v5307_v26, %v5234_v25 }
 0xc3f   : > { %v29664_v28 = vpop.f32.mrf.mxu0 }
 0xc40   : > { %v5382_v29 = vadd.f32 %v5381_v15, %v5308_v27 }
 0xc41   : > { %v5455_v30 = vpop.f32.mrf.mxu0 }
 0xc42   : > { %v5456_v31 = vadd.f32 %v5455_v30, %v5382_v29 }
 0xc43   : > { %v29674_v32 = vpop.f32.mrf.mxu0 }
 0xc44   : > { %v5528_v33 = vadd.f32 %v5527_v21, %v5456_v31 }
 0xc46   : > { %v5531_v35 = vmul.f32 0.35355338, %v5528_v33 }
 0xc48   : > { %v5532_v37 = vadd.f32 %v31891_v36, %v5531_v35 }
 0xc4a   : > { %v5533_v39 = vsel %vm975_vm4, %v5532_v37, -inf }
 0xc4b   : > { %5534 = vmax.xlane.f32.xlu1 %v5533_v39 }
 0xc5c   : > { %5544 = vrot.lane.b32.xlu1 %v32587_v6, %s32172_s20 }
 0xcd4   : > { %v5535_v44 = vpop.xlane.xlu1 %5534 }
 0xcd5   : > { %v5536_v40 = vsub.f32 %v5532_v37, %v5535_v44 }
 0xcd7   : > { %v5537_v41 = vmul.f32 1.442695, %v5536_v40 }
 0xcd8   : > { %v5545_v42 = vpop.permute.xlu1 %5544 }
 0xcd9   : > { %31815 = vpow2.f32 %v5537_v41  ;;  %v5581_v43 = vand.u32 4294901760, %v5545_v42 }
 0xcdb   : > { %v5658_v45 = vsub.f32 %v5545_v42, %v5581_v43  ;;  %29681 = vmatpush3.msra.mxu0 %v5581_v43 }
 0xcdc   : > { %29690 = vmatprep.subr.mxu0 %v32160_v10 }
 0xcdd   : > { %v5659_v46 = vand.u32 4294901760, %v5658_v45 }
 0xcdf   : > { %v5660_v47 = vsub.f32 %v5658_v45, %v5659_v46 }
 0xce1   : > { %v5661_v48 = vand.u32 4294901760, %v5660_v47  ;;  %v31892_v47 = vld [vmem:[%s328_s12] sm:$0xff]  ;;  %s28278_s12 = sshll.u32 %s32230_s25, 7 }
 0xce3   : > { %29686 = vmatpush3.msra.mxu1 %v5661_v48 }
 0xce4   : > { %29695 = vmatprep.subr.mxu1 %v32160_v10 }
 0xce6   : > { %v31816_v34 = vpop.eup %31815 }
 0xce7   : > { %v5539_v49 = vsel %vm975_vm4, %v31816_v34, 0.0 }
 0xce8   : > { %5540 = vadd.xlane.f32.xlu0 %v5539_v49  ;;  %v419_v49 = vld [vmem:[#allocation10 + $0x38] sm:$0xff] }
 0xd71   : > { %v5541_v6 = vpop.xlane.xlu0 %5540 }
 0xd72   : > { %31817 = vrcp.f32 %v5541_v6  ;;  %v32905_v6 = vand.u32 4294901760, %v419_v49 }
 0xd7f   : > { %v31818_v50 = vpop.eup %31817 }
 0xd80   : > { %v5543_v51 = vmul.f32 %v31818_v50, %v31816_v34  ;;  %v418_v50 = vld [vmem:[#allocation10 + $0x30] sm:$0xff] }
 0xd82   : > { %v5548_v52 = vsel %vm975_vm4, %v5543_v51, 0  ;;  %v32909_v51 = vand.u32 4294901760, %v418_v50 }
 0xd83   : > { %v5616_v53 = vand.u32 4294901760, %v5548_v52 }
 0xd85   : > { %v5617_v54 = vsub.f32 %v5548_v52, %v5616_v53  ;;  %29688 = vmatmul.mubr.f32.vlgmr.msra.gmra.mxu1 %v5616_v53 }
 0xd86   : > { %29696 = vmatpush3.msra.mxu1 %v5581_v43  ;;  %29697 = vmatprep.mubr.msk.f32.mxu1 %vm32161_vm1, %v32160_v10 }
 0xd87   : > { %29705 = vmatprep.subr.mxu1 %v32160_v10  ;;  %v5618_v55 = vand.u32 4294901760, %v5617_v54 }
 0xd89   : > { %29698 = vmatmul.mubr.f32.vlgmr.msra.gmra.mxu1 %v5618_v55  ;;  %v5619_v56 = vsub.f32 %v5617_v54, %v5618_v55 }
 0xd8a   : > { %29706 = vmatpush3.msra.mxu1 %v5581_v43  ;;  %29707 = vmatprep.mubr.msk.f32.mxu1 %vm32161_vm1, %v32160_v10  ;;  %v28254_v43 = vld [vmem:[#allocation11 + $0x2] ss:$0 sm:$0xff] }
 0xd8b   : > { %v5620_v57 = vand.u32 4294901760, %v5619_v56  ;;  %29715 = vmatprep.subr.mxu1 %v32160_v10 }
 0xd8d   : > { %29683 = vmatmul.mubr.f32.vlgmr.msra.gmra.mxu0 %v5620_v57  ;;  %29708 = vmatmul.mubr.f32.vlgmr.msra.gmra.mxu1 %v5616_v53 }
 0xd8e   : > { %29691 = vmatpush3.msra.mxu0 %v5658_v45  ;;  %29692 = vmatprep.mubr.msk.f32.mxu0 %vm32161_vm1, %v32160_v10 }
 0xd8f   : > { %29700 = vmatprep.subr.mxu0 %v32160_v10  ;;  %29717 = vmatprep.mubr.msk.f32.mxu1 %vm32161_vm1, %v32160_v10 }
 0xd90   : > { %29716 = vmatpush3.msra.mxu1 %v6110_v63 }
 0xd91   : > { %29693 = vmatmul.mubr.f32.vlgmr.msra.gmra.mxu0 %v5617_v54  ;;  %29725 = vmatprep.subr.mxu1 %v32160_v10 }
 0xd92   : > { %29701 = vmatpush3.msra.mxu0 %v5659_v46  ;;  %29702 = vmatprep.mubr.msk.f32.mxu0 %vm32161_vm1, %v32160_v10 }
 0xd93   : > { %29710 = vmatprep.subr.mxu0 %v32160_v10 }
 0xd95   : > { %29703 = vmatmul.mubr.f32.vlgmr.msra.gmra.mxu0 %v5616_v53  ;;  %v416_v53 = vld [vmem:[#allocation10 + $0x20] sm:$0xff] }
 0xd96   : > { %29712 = vmatprep.mubr.msk.f32.mxu0 %vm32161_vm1, %v32160_v10  ;;  %29711 = vmatpush3.msra.mxu0 %v6030_v59  ;;  %v32916_v54 = vand.u32 4294901760, %v416_v53 }
 0xd97   : > { %29720 = vmatprep.subr.mxu0 %v32160_v10 }
 0xd98   : > { %v32936_v63 = vsub.f32 %v416_v53, %v32916_v54 }
 0xe45   : > { %v5698_v0 = vpop.f32.mrf.mxu1 }
 0xe47   : > { %v29689_v38 = vpop.f32.mrf.mxu1 }
 0xe49   : > { %v5846_v1 = vpop.f32.mrf.mxu1 }
 0xe4b   : > { %v29699_v2 = vpop.f32.mrf.mxu1 }
 0xe4c   : > { %v6616_v2 = vand.u32 4294901760, %v32936_v63 }
 0xe4d   : > { %v5622_v3 = vpop.f32.mrf.mxu0  ;;  %v5992_v4 = vpop.f32.mrf.mxu1 }
 0xe4e   : > { %v5699_v8 = vadd.f32 %v5698_v0, %v5622_v3 }
 0xe4f   : > { %v29684_v5 = vpop.f32.mrf.mxu0  ;;  %v29709_v7 = vpop.f32.mrf.mxu1 }
 0xe51   : > { %v5772_v9 = vpop.f32.mrf.mxu0 }
 0xe52   : > { %v5773_v11 = vadd.f32 %v5772_v9, %v5699_v8  ;;  %v6617_v9 = vsub.f32 %v32936_v63, %v6616_v2 }
 0xe53   : > { %v29694_v12 = vpop.f32.mrf.mxu0 }
 0xe54   : > { %v5847_v13 = vadd.f32 %v5846_v1, %v5773_v11  ;;  %v6618_v12 = vand.u32 4294901760, %v6617_v9 }
 0xe55   : > { %v5920_v14 = vpop.f32.mrf.mxu0 }
 0xe56   : > { %v5921_v15 = vadd.f32 %v5920_v14, %v5847_v13  ;;  %v32959_v13 = vld [vmem:[#allocation11 + $0x1] ss:$0 sm:$0xff] }
 0xe57   : > { %v29704_v16 = vpop.f32.mrf.mxu0 }
 0xe58   : > { %v5993_v17 = vadd.f32 %v5992_v4, %v5921_v15 }
 0xe5a   : > { %v5997_v18 = vsel %vm975_vm4, %v5993_v17, 0 }
 0xe5b   : > { %v6065_v19 = vand.u32 4294901760, %v5997_v18 }
 0xe5d   : > { %v6066_v20 = vsub.f32 %v5997_v18, %v6065_v19  ;;  %29718 = vmatmul.mubr.f32.vlgmr.msra.gmra.mxu1 %v6065_v19 }
 0xe5e   : > { %29726 = vmatpush3.msra.mxu1 %v6030_v59  ;;  %29727 = vmatprep.mubr.msk.f32.mxu1 %vm32161_vm1, %v32160_v10 }
 0xe5f   : > { %v6067_v21 = vand.u32 4294901760, %v6066_v20  ;;  %29735 = vmatprep.subr.mxu1 %v32160_v10 }
 0xe61   : > { %29728 = vmatmul.mubr.f32.vlgmr.msra.gmra.mxu1 %v6067_v21  ;;  %v6068_v23 = vsub.f32 %v6066_v20, %v6067_v21 }
 0xe62   : > { %29736 = vmatpush3.msra.mxu1 %v6030_v59  ;;  %29737 = vmatprep.mubr.msk.f32.mxu1 %vm32161_vm1, %v32160_v10 }
 0xe63   : > { %v6069_v24 = vand.u32 4294901760, %v6068_v23  ;;  %29751 = vmatprep.subr.mxu1 %v32160_v10  ;;  %v28255_v23 = vld [vmem:[#allocation11 + $0x8] ss:$0 sm:$0xff] }
 0xe65   : > { %29713 = vmatmul.mubr.f32.vlgmr.msra.gmra.mxu0 %v6069_v24  ;;  %29738 = vmatmul.mubr.f32.vlgmr.msra.gmra.mxu1 %v6065_v19 }
 0xe66   : > { %29721 = vmatpush3.msra.mxu0 %v6107_v60  ;;  %29722 = vmatprep.mubr.msk.f32.mxu0 %vm32161_vm1, %v32160_v10  ;;  %v32926_v60 = vsub.f32 %v419_v49, %v32905_v6 }
 0xe67   : > { %29730 = vmatprep.subr.mxu0 %v32160_v10  ;;  %29759 = vmatprep.mubr.msk.f32.mxu1 %vm32161_vm1, %v32160_v10 }
 0xe68   : > { %v6595_v0 = vand.u32 4294901760, %v32926_v60 }
 0xe69   : > { %29723 = vmatmul.mubr.f32.vlgmr.msra.gmra.mxu0 %v6066_v20 }
 0xe6a   : > { %29731 = vmatpush3.msra.mxu0 %v6108_v61  ;;  %29732 = vmatprep.mubr.msk.f32.mxu0 %vm32161_vm1, %v32160_v10  ;;  %v32929_v61 = vsub.f32 %v418_v50, %v32909_v51  ;;  %v6596_v3 = vsub.f32 %v32926_v60, %v6595_v0 }
 0xe6b   : > { %29740 = vmatprep.subr.mxu0 %v32160_v10 }
 0xe6c   : > { %v6602_v38 = vand.u32 4294901760, %v32929_v61  ;;  %v6597_v7 = vand.u32 4294901760, %v6596_v3 }
 0xe6d   : > { %29733 = vmatmul.mubr.f32.vlgmr.msra.gmra.mxu0 %v6065_v19 }
 0xe6e   : > { %29748 = vmatprep.mubr.msk.f32.mxu0 %vm32161_vm1, %v32160_v10  ;;  %29741 = vmatpush3.msra.mxu0 %v32905_v6  ;;  %v6603_v4 = vsub.f32 %v32929_v61, %v6602_v38 }
 0xe6f   : > { %29742 = vmatprep.subr.mxu0 %v32160_v10  ;;  %29752 = vmatpush3.msra.mxu1 %v6597_v7 }
 0xe70   : > { %29743 = vmatpush3.msra.mxu0 %v32909_v51  ;;  %v6604_v8 = vand.u32 4294901760, %v6603_v4  ;;  %29753 = vmatprep.subr.mxu1 %v32160_v10 }
 0xe71   : > { %29744 = vmatprep.subr.mxu0 %v32160_v10 }
 0xe72   : > { %29754 = vmatpush3.msra.mxu1 %v6604_v8 }
 0xe73   : > { %29755 = vmatprep.subr.mxu1 %v32160_v10 }
 0xf1d   : > { %v6147_v25 = vpop.f32.mrf.mxu1 }
 0xf1f   : > { %v29719_v26 = vpop.f32.mrf.mxu1 }
 0xf21   : > { %v6295_v27 = vpop.f32.mrf.mxu1 }
 0xf23   : > { %v29729_v28 = vpop.f32.mrf.mxu1 }
 0xf25   : > { %v6071_v29 = vpop.f32.mrf.mxu0  ;;  %v6441_v30 = vpop.f32.mrf.mxu1 }
 0xf26   : > { %v6148_v33 = vadd.f32 %v6147_v25, %v6071_v29 }
 0xf27   : > { %v29714_v31 = vpop.f32.mrf.mxu0  ;;  %v29739_v32 = vpop.f32.mrf.mxu1 }
 0xf29   : > { %v6221_v35 = vpop.f32.mrf.mxu0 }
 0xf2a   : > { %v6222_v36 = vadd.f32 %v6221_v35, %v6148_v33 }
 0xf2b   : > { %v29724_v37 = vpop.f32.mrf.mxu0 }
 0xf2c   : > { %v6296_v39 = vadd.f32 %v6295_v27, %v6222_v36  ;;  %v28256_v27 = vld [vmem:[#allocation11 + $0x9] ss:$0 sm:$0xff] }
 0xf2d   : > { %v6369_v44 = vpop.f32.mrf.mxu0 }
 0xf2e   : > { %v6370_v40 = vadd.f32 %v6369_v44, %v6296_v39 }
 0xf2f   : > { %v29734_v41 = vpop.f32.mrf.mxu0 }
 0xf30   : > { %v6442_v42 = vadd.f32 %v6441_v30, %v6370_v40 }
 0xf32   : > { %v6445_v45 = vadd.f32 %v6442_v42, %v32853_v22  ;;  %v417_v22 = vld [vmem:[#allocation10 + $0x28] sm:$0xff] }
 0xf33   : > { %v32912_v52 = vand.u32 4294901760, %v417_v22 }
 0xf34   : > { %v6450_v46 = vadd.f32 %v28254_v43, %v6445_v45 }
 0xf35   : > { %29745 = vmatpush3.msra.mxu0 %v32912_v52  ;;  %v32932_v62 = vsub.f32 %v417_v22, %v32912_v52 }
 0xf36   : > { %v32901_v48 = vadd.f32 %v31892_v47, %v6450_v46  ;;  %29746 = vmatprep.subr.mxu0 %v32160_v10 }
 0xf37   : > { %29747 = vmatpush3.msra.mxu0 %v32916_v54  ;;  %v6609_v1 = vand.u32 4294901760, %v32932_v62 }
 0xf38   : > { %v6452_v34 = vsel %vm448_vm0, %v32901_v48, 0.0  ;;  %29762 = vmatprep.subr.mxu0 %v32160_v10 }
 0xf39   : > { %6453 = vadd.xlane.f32.xlu1 %v6452_v34  ;;  %v6610_v5 = vsub.f32 %v32932_v62, %v6609_v1 }
 0xf3b   : > { %v6611_v11 = vand.u32 4294901760, %v6610_v5 }
 0xf3d   : > { %29756 = vmatpush3.msra.mxu1 %v6611_v11 }
 0xf3e   : > { %29757 = vmatprep.subr.mxu1 %v32160_v10 }
 0xf3f   : > { %29758 = vmatpush3.msra.mxu1 %v6618_v12 }
 0xf40   : > { %29773 = vmatprep.subr.mxu1 %v32160_v10 }
 0xf4a   : > { %6982 = vrot.lane.b32.xlu1 %v418_v50, %s32162_s8 }
 0xfc2   : > { %v6454_v55 = vpop.xlane.xlu1 %6453 }
 0xfc3   : > { %v6455_v56 = vmul.f32 0.03125, %v6454_v55  ;;  %v409_v55 = vld [vmem:[%s32451_s5 + $0x8] sm:$0xff] }
 0xfc5   : > { %v6456_v57 = vsub.f32 %v32901_v48, %v6455_v56 }
 0xfc6   : > { %v6983_v33 = vpop.permute.xlu1 %6982 }
 0xfc7   : > { %v6457_v58 = vmul.f32 %v6456_v57, %v6456_v57  ;;  %v6475_v25 = vmul.f32 %v28255_v23, %v6456_v57  ;;  %v32973_v37 = vand.u32 4294901760, %v6983_v33 }
 0xfc9   : > { %v6458_v59 = vsel %vm448_vm0, %v6457_v58, 0.0  ;;  %v32985_v43 = vsub.f32 %v6983_v33, %v32973_v37  ;;  %v6998_v58 = vsel %vm448_vm0, %v409_v55, 0 }
 0xfca   : > { %6459 = vadd.xlane.f32.xlu0 %v6458_v59  ;;  %v33042_v7 = vand.u32 4294901760, %v6998_v58 }
 0xfcb   : > { %v33003_v50 = vand.u32 4294901760, %v32985_v43 }
 0xfcc   : > { %v33055_v11 = vsub.f32 %v6998_v58, %v33042_v7 }
 0xfcd   : > { %v7124_v56 = vsub.f32 %v32985_v43, %v33003_v50 }
 0xfcf   : > { %v7125_v4 = vand.u32 4294901760, %v7124_v56 }
 0xfe0   : > { %6984 = vrot.lane.b32.xlu0 %v419_v49, %s32162_s8 }
 0xfe4   : > { %6980 = vrot.lane.b32.xlu0 %v417_v22, %s32162_s8  ;;  %v408_v22 = vld [vmem:[%s32451_s5] sm:$0xff] }
 0xfe5   : > { %v6995_v57 = vsel %vm448_vm0, %v408_v22, 0 }
 0xfe6   : > { %v33036_v3 = vand.u32 4294901760, %v6995_v57 }
 0xfe8   : > { %6978 = vrot.lane.b32.xlu0 %v416_v53, %s32162_s8  ;;  %v33050_v8 = vsub.f32 %v6995_v57, %v33036_v3 }
 0xfec   : > { %6991 = vrot.lane.b32.xlu0 %v32959_v13, %s32162_s8 }
0x1053   : > { %v6460_v14 = vpop.xlane.xlu0 %6459 }
0x1054   : > { %v6461_v15 = vmul.f32 0.032258064, %v6460_v14 }
0x1056   : > { %31819 = vrsqrt.f32 %v6461_v15  ;;  %vm6464_vm5 = vcmp.eq.f32.partialorder %v6461_v15, inf  ;;  %v6467_v18 = vand.u32 2147483648, %v6461_v15  ;;  %vm6466_vm6 = vcmp.eq.f32.partialorder %v6461_v15, 0.0 }
0x1057   : > { %v6985_v24 = vpop.permute.xlu0 %6984 }
0x1058   : > { %v32966_v35 = vand.u32 4294901760, %v6985_v24 }
0x105a   : > { %v32978_v40 = vsub.f32 %v6985_v24, %v32966_v35 }
0x105b   : > { %v6981_v30 = vpop.permute.xlu0 %6980 }
0x105c   : > { %v32980_v41 = vand.u32 4294901760, %v6981_v30  ;;  %v32995_v34 = vand.u32 4294901760, %v32978_v40 }
0x105e   : > { %v32992_v47 = vsub.f32 %v6981_v30, %v32980_v41  ;;  %v7117_v53 = vsub.f32 %v32978_v40, %v32995_v34 }
0x105f   : > { %v6979_v44 = vpop.permute.xlu0 %6978 }
0x1060   : > { %v32987_v45 = vand.u32 4294901760, %v6979_v44 }
0x1062   : > { %v33000_v49 = vsub.f32 %v6979_v44, %v32987_v45 }
0x1063   : > { %v31820_v16 = vpop.eup %31819  ;;  %v6992_v30 = vpop.permute.xlu0 %6991 }
0x1064   : > { %v6463_v17 = vmul.f32 %v31820_v16, %v6461_v15 }
0x1066   : > { %v6465_v19 = vsel %vm6464_vm5, %v6461_v15, %v6463_v17 }
0x1067   : > { %v6468_v20 = vsel %vm6466_vm6, %v6467_v18, %v6465_v19 }
0x1068   : > { %v6469_v21 = vadd.f32 1e-06, %v6468_v20 }
0x106a   : > { %31821 = vrcp.f32 %v6469_v21 }
0x1077   : > { %v31822_v26 = vpop.eup %31821 }
0x1078   : > { %v6476_v28 = vmul.f32 %v31822_v26, %v6475_v25 }
0x107a   : > { %v6481_v29 = vadd.f32 %v28256_v27, %v6476_v28 }
0x107c   : > { %v6487_v31 = vsel %vm448_vm0, %v6481_v29, 0 }
0x107d   : > { %v32964_v32 = vand.u32 4294901760, %v6487_v31 }
0x107f   : > { %v6559_v36 = vsub.f32 %v6487_v31, %v32964_v32  ;;  %29760 = vmatmul.mubr.f32.vlgmr.msra.gmra.mxu1 %v32964_v32 }
0x1080   : > { %29774 = vmatpush3.msra.mxu1 %v32905_v6  ;;  %29781 = vmatprep.mubr.msk.f32.mxu1 %vm32161_vm1, %v32160_v10 }
0x1081   : > { %29775 = vmatprep.subr.mxu1 %v32160_v10  ;;  %v6560_v39 = vand.u32 4294901760, %v6559_v36 }
0x1082   : > { %29776 = vmatpush3.msra.mxu1 %v32909_v51 }
0x1083   : > { %29777 = vmatprep.subr.mxu1 %v32160_v10  ;;  %v6561_v42 = vsub.f32 %v6559_v36, %v6560_v39 }
0x1084   : > { %29778 = vmatpush3.msra.mxu1 %v32912_v52 }
0x1085   : > { %29779 = vmatprep.subr.mxu1 %v32160_v10  ;;  %v6562_v46 = vand.u32 4294901760, %v6561_v42 }
0x1086   : > { %29780 = vmatpush3.msra.mxu1 %v32916_v54 }
0x1087   : > { %29782 = vmatmul.mubr.f32.vlgmr.msra.gmra.mxu1 %v6560_v39  ;;  %29795 = vmatprep.subr.mxu1 %v32160_v10 }
0x1088   : > { %29749 = vmatmul.mubr.f32.vlgmr.msra.gmra.mxu0 %v6562_v46  ;;  %29796 = vmatpush3.msra.mxu1 %v32905_v6  ;;  %v33013_v6 = vand.u32 4294901760, %v32992_v47 }
0x1089   : > { %29763 = vmatpush3.msra.mxu0 %v32926_v60  ;;  %29797 = vmatprep.subr.mxu1 %v32160_v10  ;;  %v33062_v60 = vand.u32 4294901760, %v33050_v8 }
0x108a   : > { %29764 = vmatprep.subr.mxu0 %v32160_v10  ;;  %29798 = vmatpush3.msra.mxu1 %v32909_v51  ;;  %v33023_v51 = vand.u32 4294901760, %v33000_v49  ;;  %v7131_v59 = vsub.f32 %v32992_v47, %v33013_v6 }
0x108b   : > { %29765 = vmatpush3.msra.mxu0 %v32929_v61  ;;  %29799 = vmatprep.subr.mxu1 %v32160_v10  ;;  %v33067_v61 = vand.u32 4294901760, %v33055_v11 }
0x108c   : > { %29766 = vmatprep.subr.mxu0 %v32160_v10  ;;  %29800 = vmatpush3.msra.mxu1 %v32912_v52  ;;  %v7118_v52 = vand.u32 4294901760, %v7117_v53  ;;  %v7138_v5 = vsub.f32 %v33000_v49, %v33023_v51 }
0x108d   : > { %29767 = vmatpush3.msra.mxu0 %v32932_v62  ;;  %29801 = vmatprep.subr.mxu1 %v32160_v10  ;;  %v7072_v62 = vsub.f32 %v33050_v8, %v33062_v60 }
0x108e   : > { %29768 = vmatprep.subr.mxu0 %v32160_v10  ;;  %29770 = vmatprep.mubr.msk.f32.mxu0 %vm32161_vm1, %v32160_v10  ;;  %v7139_v9 = vand.u32 4294901760, %v7138_v5 }
0x108f   : > { %29769 = vmatpush3.msra.mxu0 %v32936_v63  ;;  %29802 = vmatpush3.msra.mxu1 %v32916_v54  ;;  %v7132_v54 = vand.u32 4294901760, %v7131_v59  ;;  %v7082_v63 = vsub.f32 %v33055_v11, %v33067_v61 }
0x1090   : > { %29803 = vmatprep.mubr.msk.f32.mxu1 %vm32161_vm1, %v32160_v10  ;;  %29771 = vmatmul.mubr.f32.vlgmr.msra.gmra.mxu0 %v6559_v36 }
0x1091   : > { %29784 = vmatprep.subr.mxu0 %v32160_v10  ;;  %29804 = vmatmul.mubr.f32.vlgmr.msra.gmra.mxu1 %v32964_v32 }
0x1092   : > { %29817 = vmatprep.subr.mxu1 %v7118_v52  ;;  %29785 = vmatpush3.msra.mxu0 %v6595_v0  ;;  %v33087_v0 = vand.u32 4294901760, %v7072_v62 }
0x1093   : > { %29818 = vmatpush3.msra.mxu1 %v7118_v52  ;;  %29786 = vmatprep.subr.mxu0 %v32160_v10 }
0x1094   : > { %29819 = vmatprep.subr.mxu1 %v7125_v4  ;;  %29787 = vmatpush3.msra.mxu0 %v6602_v38  ;;  %v33091_v38 = vand.u32 4294901760, %v7082_v63 }
0x1095   : > { %29820 = vmatpush3.msra.mxu1 %v7125_v4  ;;  %29788 = vmatprep.subr.mxu0 %v32160_v10 }
0x1096   : > { %29821 = vmatprep.subr.mxu1 %v7132_v54  ;;  %29789 = vmatpush3.msra.mxu0 %v6609_v1 }
0x1097   : > { %29822 = vmatpush3.msra.mxu1 %v7132_v54  ;;  %29790 = vmatprep.subr.mxu0 %v32160_v10 }
0x1098   : > { %29823 = vmatprep.subr.mxu1 %v7139_v9  ;;  %29791 = vmatpush3.msra.mxu0 %v6616_v2 }
0x1099   : > { %29792 = vmatprep.mubr.msk.f32.mxu0 %vm32161_vm1, %v32160_v10  ;;  %29824 = vmatpush3.msra.mxu1 %v7139_v9 }
0x109a   : > { %29793 = vmatmul.mubr.f32.vlgmr.msra.gmra.mxu0 %v32964_v32  ;;  %29806 = vmatprep.subr.mxu0 %v32966_v35 }
0x109b   : > { %29825 = vmatprep.mubr.f32.mxu1 %v33036_v3  ;;  %29839 = vmatprep.subr.mxu1 %v32966_v35 }
0x109c   : > { %29807 = vmatpush3.msra.mxu0 %v32966_v35  ;;  %29826 = vmatmul.mubr.f32.vlgmr.msra.gmra.mxu1 %v33042_v7 }
0x109d   : > { %29840 = vmatpush3.msra.mxu1 %v32966_v35  ;;  %29808 = vmatprep.subr.mxu0 %v32973_v37 }
0x109e   : > { %29841 = vmatprep.subr.mxu1 %v32973_v37  ;;  %29809 = vmatpush3.msra.mxu0 %v32973_v37 }
0x109f   : > { %29842 = vmatpush3.msra.mxu1 %v32973_v37  ;;  %29810 = vmatprep.subr.mxu0 %v32980_v41 }
0x10a0   : > { %29843 = vmatprep.subr.mxu1 %v32980_v41  ;;  %29811 = vmatpush3.msra.mxu0 %v32980_v41 }
0x10a1   : > { %29844 = vmatpush3.msra.mxu1 %v32980_v41  ;;  %29812 = vmatprep.subr.mxu0 %v32987_v45 }
0x10a2   : > { %29845 = vmatprep.subr.mxu1 %v32987_v45  ;;  %29813 = vmatpush3.msra.mxu0 %v32987_v45 }
0x10a3   : > { %29814 = vmatprep.mubr.f32.mxu0 %v33087_v0  ;;  %29846 = vmatpush3.msra.mxu1 %v32987_v45 }
0x10a4   : > { %29815 = vmatmul.mubr.f32.vlgmr.msra.gmra.mxu0 %v33091_v38  ;;  %29828 = vmatprep.subr.mxu0 %v32978_v40 }
0x10a5   : > { %29847 = vmatprep.mubr.f32.mxu1 %v33062_v60  ;;  %29861 = vmatprep.subr.mxu1 %v32966_v35 }
0x10a6   : > { %29829 = vmatpush3.msra.mxu0 %v32978_v40  ;;  %29848 = vmatmul.mubr.f32.vlgmr.msra.gmra.mxu1 %v33067_v61 }
0x10a7   : > { %29862 = vmatpush3.msra.mxu1 %v32966_v35  ;;  %29830 = vmatprep.subr.mxu0 %v32985_v43 }
0x10a8   : > { %29863 = vmatprep.subr.mxu1 %v32973_v37  ;;  %29831 = vmatpush3.msra.mxu0 %v32985_v43 }
0x10a9   : > { %29864 = vmatpush3.msra.mxu1 %v32973_v37  ;;  %29832 = vmatprep.subr.mxu0 %v32992_v47 }
0x10aa   : > { %29865 = vmatprep.subr.mxu1 %v32980_v41  ;;  %29833 = vmatpush3.msra.mxu0 %v32992_v47 }
0x10ab   : > { %29866 = vmatpush3.msra.mxu1 %v32980_v41  ;;  %29834 = vmatprep.subr.mxu0 %v33000_v49 }
0x10ac   : > { %29867 = vmatprep.subr.mxu1 %v32987_v45  ;;  %29835 = vmatpush3.msra.mxu0 %v33000_v49 }
0x10ad   : > { %29836 = vmatprep.mubr.f32.mxu0 %v33050_v8  ;;  %29868 = vmatpush3.msra.mxu1 %v32987_v45 }
0x10ae   : > { %29837 = vmatmul.mubr.f32.vlgmr.msra.gmra.mxu0 %v33055_v11  ;;  %29850 = vmatprep.subr.mxu0 %v32995_v34 }
0x10af   : > { %29851 = vmatpush3.msra.mxu0 %v32995_v34  ;;  %29858 = vmatprep.mubr.f32.mxu0 %v33036_v3 }
0x10b0   : > { %29852 = vmatprep.subr.mxu0 %v33003_v50  ;;  %29869 = vmatprep.mubr.f32.mxu1 %v33036_v3 }
0x10b1   : > { %29853 = vmatpush3.msra.mxu0 %v33003_v50  ;;  %29870 = vmatmul.mubr.f32.vlgmr.msra.gmra.mxu1 %v33042_v7 }
0x10b2   : > { %29854 = vmatprep.subr.mxu0 %v33013_v6  ;;  %29879 = vmatprep.subr.mxu1 %v32160_v10 }
0x10b3   : > { %29855 = vmatpush3.msra.mxu0 %v33013_v6  ;;  %29883 = vmatprep.mubr.msk.f32.mxu1 %vm32161_vm1, %v32160_v10 }
0x10b4   : > { %29856 = vmatprep.subr.mxu0 %v33023_v51 }
0x10b5   : > { %29857 = vmatpush3.msra.mxu0 %v33023_v51 }
0x10b6   : > { %29859 = vmatmul.mubr.f32.vlgmr.msra.gmra.mxu0 %v33042_v7  ;;  %29872 = vmatprep.subr.mxu0 %v32160_v10 }
0x10b7   : > { %29876 = vmatprep.mubr.msk.f32.mxu0 %vm32161_vm1, %v32160_v10 }
0x113f   : > { %v6655_v1 = vpop.f32.mrf.mxu1 }
0x1141   : > { %v29761_v2 = vpop.f32.mrf.mxu1 }
0x1147   : > { %v6812_v12 = vpop.f32.mrf.mxu1 }
0x1148   : > { %v6564_v14 = vpop.f32.mrf.mxu0 }
0x1149   : > { %v29783_v15 = vpop.f32.mrf.mxu1  ;;  %v6565_v23 = vadd.f32 %v32959_v13, %v6564_v14 }
0x114a   : > { %v29750_v16 = vpop.f32.mrf.mxu0 }
0x114b   : > { %v6656_v25 = vadd.f32 %v6655_v1, %v6565_v23 }
0x1150   : > { %v6735_v17 = vpop.f32.mrf.mxu0 }
0x1151   : > { %v6970_v18 = vpop.f32.mrf.mxu1  ;;  %v6736_v26 = vadd.f32 %v6735_v17, %v6656_v25 }
0x1152   : > { %v29772_v19 = vpop.f32.mrf.mxu0 }
0x1153   : > { %v29805_v20 = vpop.f32.mrf.mxu1  ;;  %v6813_v27 = vadd.f32 %v6812_v12, %v6736_v26 }
0x115a   : > { %v6895_v21 = vpop.f32.mrf.mxu0 }
0x115b   : > { %v6896_v29 = vadd.f32 %v6895_v21, %v6813_v27 }
0x115c   : > { %v29794_v24 = vpop.f32.mrf.mxu0  ;;  %v29827_v31 = vpop.f32.mrf.mxu1 }
0x115d   : > { %v33139_v35 = vadd.f32 %v6970_v18, %v6896_v29 }
0x115e   : > { %v7176_v37 = vpop.f32.mrf.mxu1 }
0x115f   : > { %v7529_v40 = vsel %vm975_vm4, %v33139_v35, 0 }
0x1160   : > { %v7604_v45 = vand.u32 4294901760, %v7529_v40 }
0x1162   : > { %v7605_v22 = vsub.f32 %v7529_v40, %v7604_v45 }
0x1164   : > { %v29816_v28 = vpop.f32.mrf.mxu0  ;;  %v7606_v59 = vand.u32 4294901760, %v7605_v22 }
0x1165   : > { %v7086_v33 = vadd.f32 %v29816_v28, %v6992_v30 }
0x1166   : > { %v7075_v32 = vpop.f32.mrf.mxu0  ;;  %v29849_v13 = vpop.f32.mrf.mxu1  ;;  %v7607_v62 = vsub.f32 %v7605_v22, %v7606_v59 }
0x1167   : > { %v7076_v36 = vadd.f32 %v7075_v32, %v6992_v30  ;;  %v7183_v44 = vadd.f32 %v29827_v31, %v7086_v33 }
0x1168   : > { %v7346_v47 = vpop.f32.mrf.mxu1  ;;  %v7608_v14 = vand.u32 4294901760, %v7607_v62 }
0x1169   : > { %v7177_v42 = vadd.f32 %v7176_v37, %v7076_v36 }
0x116e   : > { %v29838_v39 = vpop.f32.mrf.mxu0 }
0x116f   : > { %v7270_v43 = vadd.f32 %v29838_v39, %v7183_v44  ;;  %v33176_v39 = vld [vmem:[%s32461_s14] sm:$0xff] }
0x1170   : > { %v7262_v41 = vpop.f32.mrf.mxu0 }
0x1171   : > { %v7263_v46 = vadd.f32 %v7262_v41, %v7177_v42  ;;  %v7355_v34 = vadd.f32 %v29849_v13, %v7270_v43  ;;  %v29871_v50 = vpop.f32.mrf.mxu1 }
0x1173   : > { %v7347_v53 = vadd.f32 %v7346_v47, %v7263_v46  ;;  %v7518_v57 = vpop.f32.mrf.mxu1 }
0x1176   : > { %v29860_v49 = vpop.f32.mrf.mxu0 }
0x1177   : > { %v7444_v6 = vadd.f32 %v29860_v49, %v7355_v34 }
0x1178   : > { %v7437_v55 = vpop.f32.mrf.mxu0 }
0x1179   : > { %v33143_v56 = vadd.f32 %v29871_v50, %v7444_v6  ;;  %v7438_v51 = vadd.f32 %v7437_v55, %v7347_v53 }
0x117b   : > { %v33145_v58 = vadd.f32 %v7518_v57, %v7438_v51  ;;  %v7535_v52 = vsel %vm975_vm4, %v33143_v56, 0 }
0x117c   : > { %v7566_v4 = vand.u32 4294901760, %v7535_v52 }
0x117d   : > { %v7532_v5 = vsel %vm975_vm4, %v33145_v58, 0 }
0x117e   : > { %29873 = vmatpush3.xpose.msra.mxu0 %v7566_v4  ;;  %v7644_v54 = vsub.f32 %v7535_v52, %v7566_v4  ;;  %v7569_v9 = vand.u32 4294901760, %v7532_v5 }
0x117f   : > { %29874 = vmatprep.subr.mxu0 %v32160_v10 }
0x1180   : > { %v7651_v63 = vsub.f32 %v7532_v5, %v7569_v9  ;;  %v7645_v1 = vand.u32 4294901760, %v7644_v54 }
0x1182   : > { %29875 = vmatpush3.xpose.msra.mxu0 %v7569_v9  ;;  %v7646_v2 = vsub.f32 %v7644_v54, %v7645_v1  ;;  %v7652_v12 = vand.u32 4294901760, %v7651_v63 }
0x1183   : > { %29886 = vmatprep.subr.mxu0 %v32160_v10 }
0x1184   : > { %v7647_v15 = vand.u32 4294901760, %v7646_v2  ;;  %v7653_v16 = vsub.f32 %v7651_v63, %v7652_v12 }
0x1185   : > { %29877 = vmatmul.mubr.f32.vlgmr.msra.gmra.mxu0 %v7608_v14 }
0x1186   : > { %29880 = vmatpush3.xpose.msra.mxu1 %v7647_v15  ;;  %29887 = vmatpush3.xpose.msra.mxu0 %v7644_v54  ;;  %v7654_v17 = vand.u32 4294901760, %v7653_v16 }
0x1187   : > { %29881 = vmatprep.subr.mxu1 %v32160_v10  ;;  %29888 = vmatprep.subr.mxu0 %v32160_v10 }
0x1188   : > { %29890 = vmatprep.mubr.msk.f32.mxu0 %vm32161_vm1, %v32160_v10 }
0x118a   : > { %29882 = vmatpush3.xpose.msra.mxu1 %v7654_v17  ;;  %29889 = vmatpush3.xpose.msra.mxu0 %v7651_v63 }
0x118b   : > { %29893 = vmatprep.subr.mxu1 %v32160_v10  ;;  %29900 = vmatprep.subr.mxu0 %v32160_v10 }
0x118d   : > { %29884 = vmatmul.mubr.f32.vlgmr.msra.gmra.mxu1 %v7604_v45  ;;  %29891 = vmatmul.mubr.f32.vlgmr.msra.gmra.mxu0 %v7605_v22 }
0x118e   : > { %29894 = vmatpush3.xpose.msra.mxu1 %v7566_v4  ;;  %29901 = vmatpush3.xpose.msra.mxu0 %v7645_v1 }
0x118f   : > { %29895 = vmatprep.subr.mxu1 %v32160_v10  ;;  %29902 = vmatprep.subr.mxu0 %v32160_v10 }
0x1190   : > { %29897 = vmatprep.mubr.msk.f32.mxu1 %vm32161_vm1, %v32160_v10  ;;  %29904 = vmatprep.mubr.msk.f32.mxu0 %vm32161_vm1, %v32160_v10 }
0x1192   : > { %29896 = vmatpush3.xpose.msra.mxu1 %v7569_v9  ;;  %29903 = vmatpush3.xpose.msra.mxu0 %v7652_v12 }
0x1193   : > { %29907 = vmatprep.subr.mxu1 %v32160_v10  ;;  %29914 = vmatprep.subr.mxu0 %v32160_v10 }
0x1195   : > { %29898 = vmatmul.mubr.f32.vlgmr.msra.gmra.mxu1 %v7606_v59  ;;  %29905 = vmatmul.mubr.f32.vlgmr.msra.gmra.mxu0 %v7604_v45 }
0x1196   : > { %29908 = vmatpush3.xpose.msra.mxu1 %v7566_v4  ;;  %29911 = vmatprep.mubr.msk.f32.mxu1 %vm32161_vm1, %v32160_v10 }
0x1197   : > { %29909 = vmatprep.subr.mxu1 %v32160_v10  ;;  %29918 = vmatprep.mubr.msk.f32.mxu0 %vm32161_vm1, %v32160_v10 }
0x119a   : > { %29910 = vmatpush3.xpose.msra.mxu1 %v7569_v9 }
0x119b   : > { %29921 = vmatprep.subr.mxu1 %v32160_v10 }
0x119d   : > { %29912 = vmatmul.mubr.f32.vlgmr.msra.gmra.mxu1 %v7604_v45 }
0x119e   : > { %29925 = vmatprep.mubr.msk.f32.mxu1 %vm32161_vm1, %v32160_v10 }
0x1245   : > { %v7610_v18 = vpop.f32.mrf.mxu0 }
0x1247   : > { %v29878_v19 = vpop.f32.mrf.mxu0 }
0x124d   : > { %v7691_v20 = vpop.f32.mrf.mxu1  ;;  %v7767_v21 = vpop.f32.mrf.mxu0 }
0x124e   : > { %v7692_v25 = vadd.f32 %v7691_v20, %v7610_v18 }
0x124f   : > { %v29885_v23 = vpop.f32.mrf.mxu1  ;;  %v29892_v24 = vpop.f32.mrf.mxu0 }
0x1250   : > { %v7768_v28 = vadd.f32 %v7767_v21, %v7692_v25 }
0x1255   : > { %v7842_v26 = vpop.f32.mrf.mxu1  ;;  %v7919_v27 = vpop.f32.mrf.mxu0 }
0x1256   : > { %v7843_v31 = vadd.f32 %v7842_v26, %v7768_v28 }
0x1257   : > { %v29899_v29 = vpop.f32.mrf.mxu1  ;;  %v29906_v30 = vpop.f32.mrf.mxu0 }
0x1258   : > { %v7920_v32 = vadd.f32 %v7919_v27, %v7843_v31 }
0x125d   : > { %v7992_v33 = vpop.f32.mrf.mxu1 }
0x125e   : > { %v7993_v36 = vadd.f32 %v7992_v33, %v7920_v32 }
0x125f   : > { %v29913_v37 = vpop.f32.mrf.mxu1 }
0x1260   : > { %v7996_v44 = vmul.f32 0.35355338, %v7993_v36 }
0x1262   : > { %v7997_v40 = vadd.f32 %v7996_v44, %v33176_v39 }
0x1264   : > { %v7999_v13 = vsel %vm7998_vm7, %v7997_v40, -inf }
0x1265   : > { %8000 = vmax.xlane.f32.xlu0 %v7999_v13 }
0x127b   : > { %8012 = vrot.lane.b32.xlu0 %v33143_v56, %s32162_s8 }
0x127f   : > { %8482 = vrot.lane.b32.xlu0 %v33143_v56, %s32165_s26 }
0x1283   : > { %8478 = vrot.lane.b32.xlu0 %v33139_v35, %s32165_s26 }
0x12ee   : > { %v8001_v41 = vpop.xlane.xlu0 %8000 }
0x12ef   : > { %v8002_v42 = vsub.f32 %v7997_v40, %v8001_v41 }
0x12f1   : > { %v8003_v43 = vmul.f32 1.442695, %v8002_v42 }
0x12f2   : > { %v8013_v45 = vpop.permute.xlu0 %8012 }
0x12f3   : > { %31823 = vpow2.f32 %v8003_v43  ;;  %v8048_v46 = vand.u32 4294901760, %v8013_v45 }
0x12f5   : > { %v33186_v47 = vsub.f32 %v8013_v45, %v8048_v46  ;;  %29915 = vmatpush3.msra.mxu0 %v8048_v46 }
0x12f6   : > { %29916 = vmatprep.subr.mxu0 %v32160_v10  ;;  %v8483_v57 = vpop.permute.xlu0 %8482 }
0x12f7   : > { %v8127_v34 = vand.u32 4294901760, %v33186_v47  ;;  %v8488_v59 = vsel %vm975_vm4, %v8483_v57, 0 }
0x12f8   : > { %v33201_v9 = vand.u32 4294901760, %v8488_v59 }
0x12f9   : > { %v8128_v49 = vsub.f32 %v33186_v47, %v8127_v34 }
0x12fa   : > { %v33205_v12 = vsub.f32 %v8488_v59, %v33201_v9  ;;  %v8479_v20 = vpop.permute.xlu0 %8478 }
0x12fb   : > { %v8129_v50 = vand.u32 4294901760, %v8128_v49  ;;  %v8484_v26 = vsel %vm975_vm4, %v8479_v20, 0 }
0x12fc   : > { %v8598_v17 = vand.u32 4294901760, %v33205_v12  ;;  %v8557_v29 = vand.u32 4294901760, %v8484_v26 }
0x12fd   : > { %29922 = vmatpush3.msra.mxu1 %v8129_v50 }
0x12fe   : > { %29923 = vmatprep.subr.mxu1 %v32160_v10  ;;  %v8599_v23 = vsub.f32 %v33205_v12, %v8598_v17  ;;  %v8558_v31 = vsub.f32 %v8484_v26, %v8557_v29 }
0x1300   : > { %v31824_v22 = vpop.eup %31823  ;;  %v8600_v28 = vand.u32 4294901760, %v8599_v23  ;;  %v8559_v33 = vand.u32 4294901760, %v8558_v31  ;;  %v31893_v23 = vld [vmem:[#allocation10 + $0x48] sm:$0xff] }
0x1301   : > { %v8005_v53 = vsel %vm7998_vm7, %v31824_v22, 0.0 }
0x1302   : > { %8006 = vadd.xlane.f32.xlu1 %v8005_v53  ;;  %v8560_v36 = vsub.f32 %v8558_v31, %v8559_v33 }
0x1304   : > { %v8561_v37 = vand.u32 4294901760, %v8560_v36 }
0x1313   : > { %8010 = vrot.lane.b32.xlu1 %v33145_v58, %s32162_s8 }
0x1317   : > { %8480 = vrot.lane.b32.xlu1 %v33145_v58, %s32165_s26 }
0x138b   : > { %v8007_v6 = vpop.xlane.xlu1 %8006 }
0x138c   : > { %31825 = vrcp.f32 %v8007_v6 }
0x138f   : > { %v8011_v55 = vpop.permute.xlu1 %8010 }
0x1390   : > { %v8051_v51 = vand.u32 4294901760, %v8011_v55 }
0x1392   : > { %v8133_v52 = vsub.f32 %v8011_v55, %v8051_v51  ;;  %29917 = vmatpush3.msra.mxu0 %v8051_v51 }
0x1393   : > { %29928 = vmatprep.subr.mxu0 %v32160_v10  ;;  %v8481_v5 = vpop.permute.xlu1 %8480 }
0x1394   : > { %v8134_v4 = vand.u32 4294901760, %v8133_v52  ;;  %v8486_v63 = vsel %vm975_vm4, %v8481_v5, 0 }
0x1395   : > { %v33207_v14 = vand.u32 4294901760, %v8486_v63 }
0x1396   : > { %v8135_v54 = vsub.f32 %v8133_v52, %v8134_v4 }
0x1397   : > { %v33213_v18 = vsub.f32 %v8486_v63, %v33207_v14 }
0x1398   : > { %v8136_v62 = vand.u32 4294901760, %v8135_v54 }
0x1399   : > { %v31826_v1 = vpop.eup %31825  ;;  %v8605_v24 = vand.u32 4294901760, %v33213_v18 }
0x139a   : > { %29924 = vmatpush3.msra.mxu1 %v8136_v62  ;;  %v8009_v2 = vmul.f32 %v31826_v1, %v31824_v22 }
0x139b   : > { %29935 = vmatprep.subr.mxu1 %v32160_v10  ;;  %v8606_v30 = vsub.f32 %v33213_v18, %v8605_v24 }
0x139c   : > { %v8017_v15 = vsel %vm7998_vm7, %v8009_v2, 0 }
0x139d   : > { %v8086_v16 = vand.u32 4294901760, %v8017_v15  ;;  %v8607_v32 = vand.u32 4294901760, %v8606_v30 }
0x139f   : > { %v8087_v19 = vsub.f32 %v8017_v15, %v8086_v16  ;;  %29926 = vmatmul.mubr.f32.vlgmr.msra.gmra.mxu1 %v8086_v16 }
0x13a0   : > { %29936 = vmatpush3.msra.mxu1 %v8048_v46  ;;  %29939 = vmatprep.mubr.msk.f32.mxu1 %vm32161_vm1, %v32160_v10 }
0x13a1   : > { %29937 = vmatprep.subr.mxu1 %v32160_v10  ;;  %v8088_v21 = vand.u32 4294901760, %v8087_v19 }
0x13a2   : > { %29938 = vmatpush3.msra.mxu1 %v8051_v51 }
0x13a3   : > { %29949 = vmatprep.subr.mxu1 %v32160_v10  ;;  %29940 = vmatmul.mubr.f32.vlgmr.msra.gmra.mxu1 %v8088_v21  ;;  %v8089_v25 = vsub.f32 %v8087_v19, %v8088_v21 }
0x13a4   : > { %29950 = vmatpush3.msra.mxu1 %v8048_v46  ;;  %29953 = vmatprep.mubr.msk.f32.mxu1 %vm32161_vm1, %v32160_v10 }
0x13a5   : > { %29951 = vmatprep.subr.mxu1 %v32160_v10  ;;  %v8090_v27 = vand.u32 4294901760, %v8089_v25 }
0x13a6   : > { %29952 = vmatpush3.msra.mxu1 %v8051_v51 }
0x13a7   : > { %29963 = vmatprep.subr.mxu1 %v32160_v10  ;;  %29919 = vmatmul.mubr.f32.vlgmr.msra.gmra.mxu0 %v8090_v27 }
0x13a8   : > { %29929 = vmatpush3.msra.mxu0 %v33186_v47  ;;  %29954 = vmatmul.mubr.f32.vlgmr.msra.gmra.mxu1 %v8086_v16 }
0x13a9   : > { %29964 = vmatpush3.xpose.msra.mxu1 %v8600_v28  ;;  %29930 = vmatprep.subr.mxu0 %v32160_v10 }
0x13aa   : > { %29931 = vmatpush3.msra.mxu0 %v8133_v52  ;;  %29932 = vmatprep.mubr.msk.f32.mxu0 %vm32161_vm1, %v32160_v10 }
0x13ab   : > { %29942 = vmatprep.subr.mxu0 %v32160_v10  ;;  %29965 = vmatprep.subr.mxu1 %v32160_v10 }
0x13ac   : > { %29933 = vmatmul.mubr.f32.vlgmr.msra.gmra.mxu0 %v8087_v19  ;;  %29967 = vmatprep.mubr.msk.f32.mxu1 %vm32161_vm1, %v32160_v10 }
0x13ad   : > { %29943 = vmatpush3.msra.mxu0 %v8127_v34  ;;  %29966 = vmatpush3.xpose.msra.mxu1 %v8607_v32 }
0x13ae   : > { %29944 = vmatprep.subr.mxu0 %v32160_v10  ;;  %29946 = vmatprep.mubr.msk.f32.mxu0 %vm32161_vm1, %v32160_v10 }
0x13af   : > { %29945 = vmatpush3.msra.mxu0 %v8134_v4  ;;  %29977 = vmatprep.subr.mxu1 %v32160_v10 }
0x13b0   : > { %29956 = vmatprep.subr.mxu0 %v32160_v10  ;;  %29968 = vmatmul.mubr.f32.vlgmr.msra.gmra.mxu1 %v8557_v29 }
0x13b1   : > { %29947 = vmatmul.mubr.f32.vlgmr.msra.gmra.mxu0 %v8086_v16  ;;  %29978 = vmatpush3.xpose.msra.mxu1 %v33201_v9 }
0x13b2   : > { %29957 = vmatpush3.xpose.msra.mxu0 %v33201_v9  ;;  %29979 = vmatprep.subr.mxu1 %v32160_v10 }
0x13b3   : > { %29958 = vmatprep.subr.mxu0 %v32160_v10  ;;  %29960 = vmatprep.mubr.msk.f32.mxu0 %vm32161_vm1, %v32160_v10 }
0x13b4   : > { %29981 = vmatprep.mubr.msk.f32.mxu1 %vm32161_vm1, %v32160_v10 }
0x13b5   : > { %29980 = vmatpush3.xpose.msra.mxu1 %v33207_v14 }
0x13b6   : > { %29959 = vmatpush3.xpose.msra.mxu0 %v33207_v14  ;;  %29991 = vmatprep.subr.mxu1 %v32160_v10 }
0x13b7   : > { %29970 = vmatprep.subr.mxu0 %v32160_v10 }
0x13b8   : > { %29982 = vmatmul.mubr.f32.vlgmr.msra.gmra.mxu1 %v8559_v33 }
0x13b9   : > { %29961 = vmatmul.mubr.f32.vlgmr.msra.gmra.mxu0 %v8561_v37  ;;  %29992 = vmatpush3.xpose.msra.mxu1 %v33201_v9 }
0x13ba   : > { %29971 = vmatpush3.xpose.msra.mxu0 %v33205_v12  ;;  %29993 = vmatprep.subr.mxu1 %v32160_v10 }
0x13bb   : > { %29972 = vmatprep.subr.mxu0 %v32160_v10  ;;  %29974 = vmatprep.mubr.msk.f32.mxu0 %vm32161_vm1, %v32160_v10 }
0x13bc   : > { %29995 = vmatprep.mubr.msk.f32.mxu1 %vm32161_vm1, %v32160_v10 }
0x13bd   : > { %29994 = vmatpush3.xpose.msra.mxu1 %v33207_v14 }
0x13be   : > { %29973 = vmatpush3.xpose.msra.mxu0 %v33213_v18  ;;  %30005 = vmatprep.subr.mxu1 %v32160_v10 }
0x13bf   : > { %29984 = vmatprep.subr.mxu0 %v32160_v10 }
0x13c0   : > { %29996 = vmatmul.mubr.f32.vlgmr.msra.gmra.mxu1 %v8557_v29 }
0x13c1   : > { %29975 = vmatmul.mubr.f32.vlgmr.msra.gmra.mxu0 %v8558_v31  ;;  %30009 = vmatprep.mubr.msk.f32.mxu1 %vm32161_vm1, %v32160_v10 }
0x13c2   : > { %29985 = vmatpush3.xpose.msra.mxu0 %v8598_v17  ;;  %29988 = vmatprep.mubr.msk.f32.mxu0 %vm32161_vm1, %v32160_v10 }
0x13c3   : > { %29986 = vmatprep.subr.mxu0 %v32160_v10 }
0x13c6   : > { %29987 = vmatpush3.xpose.msra.mxu0 %v8605_v24 }
0x13c7   : > { %29998 = vmatprep.subr.mxu0 %v32160_v10 }
0x13c9   : > { %29989 = vmatmul.mubr.f32.vlgmr.msra.gmra.mxu0 %v8557_v29  ;;  %v31894_v29 = vld [vmem:[#allocation10 + $0x40] sm:$0xff] }
0x13ca   : > { %30002 = vmatprep.mubr.msk.f32.mxu0 %vm32161_vm1, %v32160_v10 }
0x145f   : > { %v8173_v44 = vpop.f32.mrf.mxu1 }
0x1461   : > { %v29927_v40 = vpop.f32.mrf.mxu1 }
0x1463   : > { %v8324_v13 = vpop.f32.mrf.mxu1 }
0x1465   : > { %v29941_v41 = vpop.f32.mrf.mxu1 }
0x1467   : > { %v8092_v42 = vpop.f32.mrf.mxu0 }
0x1468   : > { %v8174_v43 = vadd.f32 %v8173_v44, %v8092_v42  ;;  %v8474_v45 = vpop.f32.mrf.mxu1 }
0x1469   : > { %v29920_v46 = vpop.f32.mrf.mxu0 }
0x146a   : > { %v29955_v47 = vpop.f32.mrf.mxu1 }
0x146c   : > { %v8249_v34 = vpop.f32.mrf.mxu0 }
0x146d   : > { %v8250_v49 = vadd.f32 %v8249_v34, %v8174_v43 }
0x146e   : > { %v29934_v50 = vpop.f32.mrf.mxu0 }
0x146f   : > { %v8325_v22 = vadd.f32 %v8324_v13, %v8250_v49 }
0x1470   : > { %v8644_v53 = vpop.f32.mrf.mxu1 }
0x1471   : > { %v8401_v6 = vpop.f32.mrf.mxu0 }
0x1472   : > { %v8402_v55 = vadd.f32 %v8401_v6, %v8325_v22  ;;  %v29969_v51 = vpop.f32.mrf.mxu1 }
0x1473   : > { %v29948_v57 = vpop.f32.mrf.mxu0 }
0x1474   : > { %v33282_v52 = vadd.f32 %v8474_v45, %v8402_v55 }
0x1478   : > { %v8795_v59 = vpop.f32.mrf.mxu1 }
0x1479   : > { %v8563_v4 = vpop.f32.mrf.mxu0 }
0x147a   : > { %v29983_v5 = vpop.f32.mrf.mxu1  ;;  %v8645_v63 = vadd.f32 %v8644_v53, %v8563_v4 }
0x147b   : > { %v29962_v54 = vpop.f32.mrf.mxu0 }
0x1480   : > { %v8945_v9 = vpop.f32.mrf.mxu1 }
0x1481   : > { %v8720_v62 = vpop.f32.mrf.mxu0 }
0x1482   : > { %v29997_v1 = vpop.f32.mrf.mxu1  ;;  %v8721_v12 = vadd.f32 %v8720_v62, %v8645_v63 }
0x1483   : > { %v29976_v2 = vpop.f32.mrf.mxu0 }
0x1484   : > { %v8796_v14 = vadd.f32 %v8795_v59, %v8721_v12 }
0x1489   : > { %v8872_v15 = vpop.f32.mrf.mxu0 }
0x148a   : > { %v8873_v16 = vadd.f32 %v8872_v15, %v8796_v14 }
0x148b   : > { %v29990_v17 = vpop.f32.mrf.mxu0 }
0x148c   : > { %v8946_v18 = vadd.f32 %v8945_v9, %v8873_v16 }
0x148e   : > { %v8949_v19 = vmul.f32 0.35355338, %v8946_v18 }
0x1490   : > { %v8950_v20 = vadd.f32 %v8949_v19, %v33176_v39 }
0x1492   : > { %v8951_v21 = vsel %vm7998_vm7, %v8950_v20, -inf }
0x1493   : > { %8952 = vmax.xlane.f32.xlu1 %v8951_v21 }
0x14a4   : > { %8962 = vrot.lane.b32.xlu1 %v33145_v58, %s32164_s13 }
0x14a8   : > { %9431 = vrot.lane.b32.xlu1 %v31893_v23, %s32162_s8 }
0x14ac   : > { %10340 = vrot.lane.b32.xlu1 %v33143_v56, %s32168_s17 }
0x14b0   : > { %10336 = vrot.lane.b32.xlu1 %v33139_v35, %s32168_s17 }
0x151c   : > { %v8953_v24 = vpop.xlane.xlu1 %8952 }
0x151d   : > { %v8954_v25 = vsub.f32 %v8950_v20, %v8953_v24 }
0x151f   : > { %v8955_v26 = vmul.f32 1.442695, %v8954_v25 }
0x1520   : > { %v8963_v30 = vpop.permute.xlu1 %8962 }
0x1521   : > { %31827 = vpow2.f32 %v8955_v26  ;;  %v9003_v31 = vand.u32 4294901760, %v8963_v30 }
0x1523   : > { %v9085_v33 = vsub.f32 %v8963_v30, %v9003_v31 }
0x1524   : > { %v9432_v41 = vpop.permute.xlu1 %9431 }
0x1525   : > { %v9086_v44 = vand.u32 4294901760, %v9085_v33  ;;  %v33301_v43 = vand.u32 4294901760, %v9432_v41 }
0x1527   : > { %v9087_v42 = vsub.f32 %v9085_v33, %v9086_v44  ;;  %v33304_v49 = vsub.f32 %v9432_v41, %v33301_v43 }
0x1529   : > { %v9088_v34 = vand.u32 4294901760, %v9087_v42  ;;  %v9546_v6 = vand.u32 4294901760, %v33304_v49 }
0x152b   : > { %v9547_v57 = vsub.f32 %v33304_v49, %v9546_v6 }
0x152d   : > { %v9548_v5 = vand.u32 4294901760, %v9547_v57 }
0x152e   : > { %v31828_v27 = vpop.eup %31827 }
0x152f   : > { %v8957_v28 = vsel %vm7998_vm7, %v31828_v27, 0.0 }
0x1530   : > { %8958 = vadd.xlane.f32.xlu0 %v8957_v28  ;;  %v10341_v28 = vpop.permute.xlu1 %10340 }
0x1546   : > { %8964 = vrot.lane.b32.xlu0 %v33143_v56, %s32164_s13 }
0x154a   : > { %9884 = vrot.lane.b32.xlu0 %v31894_v29, %s32162_s8 }
0x154e   : > { %10338 = vrot.lane.b32.xlu0 %v33145_v58, %s32168_s17 }
0x15b9   : > { %v8959_v32 = vpop.xlane.xlu0 %8958 }
0x15ba   : > { %31829 = vrcp.f32 %v8959_v32  ;;  %v9888_v32 = vsel %vm975_vm4, %v33282_v52, 0 }
0x15bd   : > { %v8965_v36 = vpop.permute.xlu0 %8964 }
0x15be   : > { %v9000_v37 = vand.u32 4294901760, %v8965_v36 }
0x15c0   : > { %v9078_v40 = vsub.f32 %v8965_v36, %v9000_v37  ;;  %29999 = vmatpush3.msra.mxu0 %v9000_v37 }
0x15c1   : > { %30000 = vmatprep.subr.mxu0 %v32160_v10  ;;  %v9885_v16 = vpop.permute.xlu0 %9884 }
0x15c2   : > { %v9079_v13 = vand.u32 4294901760, %v9078_v40  ;;  %30001 = vmatpush3.msra.mxu0 %v9003_v31  ;;  %v9921_v18 = vand.u32 4294901760, %v9885_v16 }
0x15c3   : > { %30012 = vmatprep.subr.mxu0 %v32160_v10 }
0x15c4   : > { %v9080_v45 = vsub.f32 %v9078_v40, %v9079_v13  ;;  %v33336_v24 = vsub.f32 %v9885_v16, %v9921_v18 }
0x15c6   : > { %v9081_v46 = vand.u32 4294901760, %v9080_v45  ;;  %v9999_v29 = vand.u32 4294901760, %v33336_v24 }
0x15c7   : > { %v31830_v47 = vpop.eup %31829 }
0x15c8   : > { %30006 = vmatpush3.msra.mxu1 %v9081_v46  ;;  %v8961_v50 = vmul.f32 %v31830_v47, %v31828_v27 }
0x15c9   : > { %30007 = vmatprep.subr.mxu1 %v32160_v10 }
0x15ca   : > { %30008 = vmatpush3.msra.mxu1 %v9088_v34  ;;  %v8969_v22 = vsel %vm7998_vm7, %v8961_v50, 0 }
0x15cb   : > { %30019 = vmatprep.subr.mxu1 %v32160_v10  ;;  %v9038_v53 = vand.u32 4294901760, %v8969_v22 }
0x15cd   : > { %v9039_v55 = vsub.f32 %v8969_v22, %v9038_v53  ;;  %30010 = vmatmul.mubr.f32.vlgmr.msra.gmra.mxu1 %v9038_v53 }
0x15ce   : > { %30020 = vmatpush3.msra.mxu1 %v9000_v37  ;;  %30023 = vmatprep.mubr.msk.f32.mxu1 %vm32161_vm1, %v32160_v10 }
0x15cf   : > { %30021 = vmatprep.subr.mxu1 %v32160_v10  ;;  %v9040_v51 = vand.u32 4294901760, %v9039_v55 }
0x15d0   : > { %30022 = vmatpush3.msra.mxu1 %v9003_v31 }
0x15d1   : > { %30033 = vmatprep.subr.mxu1 %v32160_v10  ;;  %30024 = vmatmul.mubr.f32.vlgmr.msra.gmra.mxu1 %v9040_v51  ;;  %v9041_v59 = vsub.f32 %v9039_v55, %v9040_v51 }
0x15d2   : > { %30034 = vmatpush3.msra.mxu1 %v9000_v37  ;;  %30037 = vmatprep.mubr.msk.f32.mxu1 %vm32161_vm1, %v32160_v10  ;;  %v10000_v37 = vsub.f32 %v33336_v24, %v9999_v29 }
0x15d3   : > { %30035 = vmatprep.subr.mxu1 %v32160_v10  ;;  %v9042_v4 = vand.u32 4294901760, %v9041_v59 }
0x15d4   : > { %30036 = vmatpush3.msra.mxu1 %v9003_v31  ;;  %v10001_v45 = vand.u32 4294901760, %v10000_v37 }
0x15d5   : > { %30003 = vmatmul.mubr.f32.vlgmr.msra.gmra.mxu0 %v9042_v4  ;;  %30038 = vmatmul.mubr.f32.vlgmr.msra.gmra.mxu1 %v9038_v53 }
0x15d6   : > { %30013 = vmatpush3.msra.mxu0 %v9078_v40  ;;  %30016 = vmatprep.mubr.msk.f32.mxu0 %vm32161_vm1, %v32160_v10  ;;  %v33349_v40 = vand.u32 4294901760, %v9888_v32 }
0x15d7   : > { %30014 = vmatprep.subr.mxu0 %v32160_v10  ;;  %30045 = vmatprep.subr.mxu1 %v32160_v10 }
0x15d8   : > { %30015 = vmatpush3.msra.mxu0 %v9085_v33  ;;  %30046 = vmatpush3.msra.mxu1 %v9548_v5  ;;  %v10346_v33 = vsel %vm975_vm4, %v10341_v28, 0  ;;  %v9957_v46 = vsub.f32 %v9888_v32, %v33349_v40 }
0x15d9   : > { %30026 = vmatprep.subr.mxu0 %v32160_v10  ;;  %30017 = vmatmul.mubr.f32.vlgmr.msra.gmra.mxu0 %v9039_v55  ;;  %v33352_v52 = vand.u32 4294901760, %v10346_v33  ;;  %v10337_v55 = vpop.permute.xlu1 %10336 }
0x15da   : > { %30027 = vmatpush3.msra.mxu0 %v9079_v13  ;;  %30030 = vmatprep.mubr.msk.f32.mxu0 %vm32161_vm1, %v32160_v10  ;;  %v9958_v22 = vand.u32 4294901760, %v9957_v46  ;;  %v10342_v59 = vsel %vm975_vm4, %v10337_v55, 0 }
0x15db   : > { %30028 = vmatprep.subr.mxu0 %v32160_v10  ;;  %30047 = vmatprep.mubr.msk.f32.mxu1 %vm32161_vm1, %v32160_v10  ;;  %v33361_v34 = vsub.f32 %v10346_v33, %v33352_v52 }
0x15dc   : > { %30029 = vmatpush3.msra.mxu0 %v9086_v44  ;;  %30055 = vmatprep.subr.mxu1 %v32160_v10  ;;  %v10339_v44 = vpop.permute.xlu0 %10338  ;;  %v9959_v51 = vsub.f32 %v9957_v46, %v9958_v22 }
0x15dd   : > { %30031 = vmatmul.mubr.f32.vlgmr.msra.gmra.mxu0 %v9038_v53  ;;  %30040 = vmatprep.subr.mxu0 %v32160_v10  ;;  %v10344_v41 = vsel %vm975_vm4, %v10339_v44, 0 }
0x15de   : > { %30041 = vmatpush3.msra.mxu0 %v33301_v43  ;;  %30042 = vmatprep.mubr.msk.f32.mxu0 %vm32161_vm1, %v32160_v10  ;;  %v33363_v50 = vand.u32 4294901760, %v10344_v41 }
0x15df   : > { %30050 = vmatprep.subr.mxu0 %v32160_v10 }
0x15e0   : > { %v33371_v53 = vsub.f32 %v10344_v41, %v33363_v50 }
0x15e2   : > { %v10463_v4 = vand.u32 4294901760, %v33371_v53 }
0x168d   : > { %v9125_v54 = vpop.f32.mrf.mxu1 }
0x168f   : > { %v30011_v9 = vpop.f32.mrf.mxu1 }
0x1691   : > { %v9276_v62 = vpop.f32.mrf.mxu1 }
0x1693   : > { %v30025_v63 = vpop.f32.mrf.mxu1 }
0x1695   : > { %v9044_v1 = vpop.f32.mrf.mxu0  ;;  %v9426_v2 = vpop.f32.mrf.mxu1 }
0x1696   : > { %v9126_v15 = vadd.f32 %v9125_v54, %v9044_v1  ;;  %v10464_v54 = vsub.f32 %v33371_v53, %v10463_v4 }
0x1697   : > { %v30004_v12 = vpop.f32.mrf.mxu0  ;;  %v30039_v14 = vpop.f32.mrf.mxu1 }
0x1699   : > { %v9201_v17 = vpop.f32.mrf.mxu0 }
0x169a   : > { %v9202_v19 = vadd.f32 %v9201_v17, %v9126_v15 }
0x169b   : > { %v30018_v20 = vpop.f32.mrf.mxu0 }
0x169c   : > { %v9277_v21 = vadd.f32 %v9276_v62, %v9202_v19  ;;  %v10465_v62 = vand.u32 4294901760, %v10464_v54 }
0x169d   : > { %v9353_v23 = vpop.f32.mrf.mxu0 }
0x169e   : > { %v9354_v25 = vadd.f32 %v9353_v23, %v9277_v21 }
0x169f   : > { %v30032_v26 = vpop.f32.mrf.mxu0 }
0x16a0   : > { %v9427_v27 = vadd.f32 %v9426_v2, %v9354_v25 }
0x16a2   : > { %v9435_v30 = vsel %vm975_vm4, %v9427_v27, 0 }
0x16a3   : > { %v9503_v31 = vand.u32 4294901760, %v9435_v30 }
0x16a5   : > { %v9504_v36 = vsub.f32 %v9435_v30, %v9503_v31  ;;  %30048 = vmatmul.mubr.f32.vlgmr.msra.gmra.mxu1 %v9503_v31 }
0x16a6   : > { %30056 = vmatpush3.msra.mxu1 %v33301_v43  ;;  %30057 = vmatprep.mubr.msk.f32.mxu1 %vm32161_vm1, %v32160_v10 }
0x16a7   : > { %v9505_v13 = vand.u32 4294901760, %v9504_v36  ;;  %30065 = vmatprep.subr.mxu1 %v32160_v10 }
0x16a9   : > { %v9506_v42 = vsub.f32 %v9504_v36, %v9505_v13  ;;  %30058 = vmatmul.mubr.f32.vlgmr.msra.gmra.mxu1 %v9505_v13 }
0x16aa   : > { %30066 = vmatpush3.msra.mxu1 %v33301_v43  ;;  %30067 = vmatprep.mubr.msk.f32.mxu1 %vm32161_vm1, %v32160_v10  ;;  %v10456_v43 = vand.u32 4294901760, %v33361_v34 }
0x16ab   : > { %v9507_v47 = vand.u32 4294901760, %v9506_v42  ;;  %30075 = vmatprep.subr.mxu1 %v32160_v10 }
0x16ac   : > { %v10457_v57 = vsub.f32 %v33361_v34, %v10456_v43 }
0x16ad   : > { %30043 = vmatmul.mubr.f32.vlgmr.msra.gmra.mxu0 %v9507_v47  ;;  %30068 = vmatmul.mubr.f32.vlgmr.msra.gmra.mxu1 %v9503_v31 }
0x16ae   : > { %30051 = vmatpush3.msra.mxu0 %v33304_v49  ;;  %30076 = vmatpush3.msra.mxu1 %v10001_v45  ;;  %v9960_v49 = vand.u32 4294901760, %v9959_v51  ;;  %v10458_v5 = vand.u32 4294901760, %v10457_v57 }
0x16af   : > { %30052 = vmatprep.mubr.msk.f32.mxu0 %vm32161_vm1, %v32160_v10  ;;  %30060 = vmatprep.subr.mxu0 %v32160_v10 }
0x16b0   : > { %30077 = vmatprep.mubr.msk.f32.mxu1 %vm32161_vm1, %v32160_v10  ;;  %30085 = vmatprep.subr.mxu1 %v32160_v10 }
0x16b1   : > { %30053 = vmatmul.mubr.f32.vlgmr.msra.gmra.mxu0 %v9504_v36  ;;  %30078 = vmatmul.mubr.f32.vlgmr.msra.gmra.mxu1 %v33349_v40 }
0x16b2   : > { %30061 = vmatpush3.msra.mxu0 %v9546_v6  ;;  %30086 = vmatpush3.msra.mxu1 %v9921_v18  ;;  %v10415_v6 = vand.u32 4294901760, %v10342_v59 }
0x16b3   : > { %30062 = vmatprep.mubr.msk.f32.mxu0 %vm32161_vm1, %v32160_v10  ;;  %30070 = vmatprep.subr.mxu0 %v32160_v10 }
0x16b4   : > { %30087 = vmatprep.mubr.msk.f32.mxu1 %vm32161_vm1, %v32160_v10  ;;  %30095 = vmatprep.subr.mxu1 %v32160_v10  ;;  %v10416_v9 = vsub.f32 %v10342_v59, %v10415_v6 }
0x16b5   : > { %30063 = vmatmul.mubr.f32.vlgmr.msra.gmra.mxu0 %v9503_v31  ;;  %30088 = vmatmul.mubr.f32.vlgmr.msra.gmra.mxu1 %v9958_v22 }
0x16b6   : > { %30071 = vmatpush3.msra.mxu0 %v9921_v18  ;;  %30096 = vmatpush3.msra.mxu1 %v9921_v18  ;;  %v10417_v63 = vand.u32 4294901760, %v10416_v9 }
0x16b7   : > { %30072 = vmatprep.mubr.msk.f32.mxu0 %vm32161_vm1, %v32160_v10  ;;  %30080 = vmatprep.subr.mxu0 %v32160_v10 }
0x16b8   : > { %30097 = vmatprep.mubr.msk.f32.mxu1 %vm32161_vm1, %v32160_v10  ;;  %30107 = vmatprep.subr.mxu1 %v32160_v10  ;;  %v10418_v1 = vsub.f32 %v10416_v9, %v10417_v63 }
0x16b9   : > { %30073 = vmatmul.mubr.f32.vlgmr.msra.gmra.mxu0 %v9960_v49  ;;  %30098 = vmatmul.mubr.f32.vlgmr.msra.gmra.mxu1 %v33349_v40 }
0x16ba   : > { %30081 = vmatpush3.msra.mxu0 %v33336_v24  ;;  %30108 = vmatpush3.xpose.msra.mxu1 %v10458_v5  ;;  %v10419_v2 = vand.u32 4294901760, %v10418_v1 }
0x16bb   : > { %30082 = vmatprep.mubr.msk.f32.mxu0 %vm32161_vm1, %v32160_v10  ;;  %30090 = vmatprep.subr.mxu0 %v32160_v10 }
0x16bc   : > { %30109 = vmatprep.subr.mxu1 %v32160_v10  ;;  %30111 = vmatprep.mubr.msk.f32.mxu1 %vm32161_vm1, %v32160_v10 }
0x16bd   : > { %30083 = vmatmul.mubr.f32.vlgmr.msra.gmra.mxu0 %v9957_v46 }
0x16be   : > { %30091 = vmatpush3.msra.mxu0 %v9999_v29  ;;  %30110 = vmatpush3.xpose.msra.mxu1 %v10465_v62 }
0x16bf   : > { %30092 = vmatprep.mubr.msk.f32.mxu0 %vm32161_vm1, %v32160_v10  ;;  %30100 = vmatprep.subr.mxu0 %v32160_v10 }
0x16c0   : > { %30121 = vmatprep.subr.mxu1 %v32160_v10 }
0x16c1   : > { %30112 = vmatmul.mubr.f32.vlgmr.msra.gmra.mxu1 %v10415_v6  ;;  %30093 = vmatmul.mubr.f32.vlgmr.msra.gmra.mxu0 %v33349_v40 }
0x16c2   : > { %30101 = vmatpush3.xpose.msra.mxu0 %v33352_v52  ;;  %30122 = vmatpush3.xpose.msra.mxu1 %v33352_v52 }
0x16c3   : > { %30102 = vmatprep.subr.mxu0 %v32160_v10  ;;  %30123 = vmatprep.subr.mxu1 %v32160_v10 }
0x16c4   : > { %30104 = vmatprep.mubr.msk.f32.mxu0 %vm32161_vm1, %v32160_v10  ;;  %30125 = vmatprep.mubr.msk.f32.mxu1 %vm32161_vm1, %v32160_v10 }
0x16c6   : > { %30103 = vmatpush3.xpose.msra.mxu0 %v33363_v50  ;;  %30124 = vmatpush3.xpose.msra.mxu1 %v33363_v50 }
0x16c7   : > { %30114 = vmatprep.subr.mxu0 %v32160_v10  ;;  %30135 = vmatprep.subr.mxu1 %v32160_v10 }
0x16c9   : > { %30105 = vmatmul.mubr.f32.vlgmr.msra.gmra.mxu0 %v10419_v2  ;;  %30126 = vmatmul.mubr.f32.vlgmr.msra.gmra.mxu1 %v10417_v63 }
0x16ca   : > { %30115 = vmatpush3.xpose.msra.mxu0 %v33361_v34  ;;  %30136 = vmatpush3.xpose.msra.mxu1 %v33352_v52 }
0x16cb   : > { %30116 = vmatprep.subr.mxu0 %v32160_v10  ;;  %30137 = vmatprep.subr.mxu1 %v32160_v10 }
0x16cc   : > { %30118 = vmatprep.mubr.msk.f32.mxu0 %vm32161_vm1, %v32160_v10  ;;  %30139 = vmatprep.mubr.msk.f32.mxu1 %vm32161_vm1, %v32160_v10 }
0x16ce   : > { %30117 = vmatpush3.xpose.msra.mxu0 %v33371_v53  ;;  %30138 = vmatpush3.xpose.msra.mxu1 %v33363_v50 }
0x16cf   : > { %30128 = vmatprep.subr.mxu0 %v32160_v10  ;;  %30149 = vmatprep.subr.mxu1 %v32160_v10 }
0x16d1   : > { %30119 = vmatmul.mubr.f32.vlgmr.msra.gmra.mxu0 %v10416_v9  ;;  %30140 = vmatmul.mubr.f32.vlgmr.msra.gmra.mxu1 %v10415_v6 }
0x16d2   : > { %30129 = vmatpush3.xpose.msra.mxu0 %v10456_v43  ;;  %30132 = vmatprep.mubr.msk.f32.mxu0 %vm32161_vm1, %v32160_v10 }
0x16d3   : > { %30130 = vmatprep.subr.mxu0 %v32160_v10  ;;  %30153 = vmatprep.mubr.msk.f32.mxu1 %vm32161_vm1, %v32160_v10 }
0x16d6   : > { %30131 = vmatpush3.xpose.msra.mxu0 %v10463_v4 }
0x16d7   : > { %30142 = vmatprep.subr.mxu0 %v32160_v10 }
0x16d9   : > { %30133 = vmatmul.mubr.f32.vlgmr.msra.gmra.mxu0 %v10415_v6 }
0x16da   : > { %30146 = vmatprep.mubr.msk.f32.mxu0 %vm32161_vm1, %v32160_v10 }
0x1765   : > { %v9585_v12 = vpop.f32.mrf.mxu1 }
0x1767   : > { %v30049_v14 = vpop.f32.mrf.mxu1 }
0x1769   : > { %v9733_v15 = vpop.f32.mrf.mxu1 }
0x176b   : > { %v30059_v16 = vpop.f32.mrf.mxu1 }
0x176d   : > { %v9509_v17 = vpop.f32.mrf.mxu0  ;;  %v9879_v18 = vpop.f32.mrf.mxu1 }
0x176e   : > { %v9586_v19 = vadd.f32 %v9585_v12, %v9509_v17 }
0x176f   : > { %v30044_v20 = vpop.f32.mrf.mxu0  ;;  %v30069_v21 = vpop.f32.mrf.mxu1 }
0x1771   : > { %v9659_v23 = vpop.f32.mrf.mxu0  ;;  %v10038_v24 = vpop.f32.mrf.mxu1 }
0x1772   : > { %v9660_v25 = vadd.f32 %v9659_v23, %v9586_v19 }
0x1773   : > { %v30054_v26 = vpop.f32.mrf.mxu0  ;;  %v30079_v27 = vpop.f32.mrf.mxu1 }
0x1774   : > { %v9734_v28 = vadd.f32 %v9733_v15, %v9660_v25 }
0x1775   : > { %v9807_v29 = vpop.f32.mrf.mxu0  ;;  %v10186_v30 = vpop.f32.mrf.mxu1 }
0x1776   : > { %v9808_v31 = vadd.f32 %v9807_v29, %v9734_v28 }
0x1777   : > { %v30064_v32 = vpop.f32.mrf.mxu0  ;;  %v30089_v33 = vpop.f32.mrf.mxu1 }
0x1778   : > { %v9880_v36 = vadd.f32 %v9879_v18, %v9808_v31  ;;  %v31895_v18 = vld [vmem:[#allocation10 + $0x50] sm:$0xff] }
0x1779   : > { %v9962_v37 = vpop.f32.mrf.mxu0  ;;  %v10332_v44 = vpop.f32.mrf.mxu1 }
0x177a   : > { %v9963_v40 = vadd.f32 %v9962_v37, %v9880_v36 }
0x177b   : > { %v30074_v13 = vpop.f32.mrf.mxu0  ;;  %v30099_v52 = vpop.f32.mrf.mxu1 }
0x177c   : > { %v10039_v41 = vadd.f32 %v10038_v24, %v9963_v40 }
0x177d   : > { %v10112_v42 = vpop.f32.mrf.mxu0 }
0x177e   : > { %v10113_v45 = vadd.f32 %v10112_v42, %v10039_v41 }
0x177f   : > { %v30084_v46 = vpop.f32.mrf.mxu0 }
0x1780   : > { %v10187_v47 = vadd.f32 %v10186_v30, %v10113_v45 }
0x1781   : > { %v10502_v34 = vpop.f32.mrf.mxu1  ;;  %v10260_v50 = vpop.f32.mrf.mxu0 }
0x1782   : > { %v10261_v22 = vadd.f32 %v10260_v50, %v10187_v47 }
0x1783   : > { %v30113_v43 = vpop.f32.mrf.mxu1  ;;  %v30094_v53 = vpop.f32.mrf.mxu0 }
0x1784   : > { %v33450_v55 = vadd.f32 %v10332_v44, %v10261_v22 }
0x1789   : > { %v10421_v51 = vpop.f32.mrf.mxu0  ;;  %v10653_v57 = vpop.f32.mrf.mxu1 }
0x178a   : > { %v10503_v5 = vadd.f32 %v10502_v34, %v10421_v51 }
0x178b   : > { %v30106_v59 = vpop.f32.mrf.mxu0  ;;  %v30127_v4 = vpop.f32.mrf.mxu1 }
0x1791   : > { %v10578_v49 = vpop.f32.mrf.mxu0  ;;  %v10803_v6 = vpop.f32.mrf.mxu1 }
0x1792   : > { %v10579_v62 = vadd.f32 %v10578_v49, %v10503_v5 }
0x1793   : > { %v30120_v54 = vpop.f32.mrf.mxu0  ;;  %v30141_v9 = vpop.f32.mrf.mxu1 }
0x1794   : > { %v10654_v63 = vadd.f32 %v10653_v57, %v10579_v62 }
0x1799   : > { %v10730_v1 = vpop.f32.mrf.mxu0 }
0x179a   : > { %v10731_v2 = vadd.f32 %v10730_v1, %v10654_v63 }
0x179b   : > { %v30134_v12 = vpop.f32.mrf.mxu0 }
0x179c   : > { %v10804_v14 = vadd.f32 %v10803_v6, %v10731_v2 }
0x179e   : > { %v10807_v15 = vmul.f32 0.35355338, %v10804_v14 }
0x17a0   : > { %v10808_v16 = vadd.f32 %v10807_v15, %v33176_v39 }
0x17a2   : > { %v10809_v17 = vsel %vm7998_vm7, %v10808_v16, -inf }
0x17a3   : > { %10810 = vmax.xlane.f32.xlu0 %v10809_v17 }
0x17b9   : > { %10822 = vrot.lane.b32.xlu0 %v33143_v56, %s32167_s16 }
0x17bd   : > { %11289 = vrot.lane.b32.xlu0 %v31895_v18, %s32162_s8 }
0x17c1   : > { %11744 = vrot.lane.b32.xlu0 %v33145_v58, %s32171_s4 }
0x182c   : > { %v10811_v19 = vpop.xlane.xlu0 %10810 }
0x182d   : > { %v10812_v20 = vsub.f32 %v10808_v16, %v10811_v19 }
0x182f   : > { %v10813_v21 = vmul.f32 1.442695, %v10812_v20 }
0x1830   : > { %v10823_v23 = vpop.permute.xlu0 %10822 }
0x1831   : > { %31831 = vpow2.f32 %v10813_v21  ;;  %v10858_v24 = vand.u32 4294901760, %v10823_v23 }
0x1833   : > { %v10936_v25 = vsub.f32 %v10823_v23, %v10858_v24  ;;  %30143 = vmatpush3.msra.mxu0 %v10858_v24 }
0x1834   : > { %30144 = vmatprep.subr.mxu0 %v32160_v10  ;;  %v11290_v37 = vpop.permute.xlu0 %11289 }
0x1835   : > { %v10937_v39 = vand.u32 4294901760, %v10936_v25  ;;  %v33469_v44 = vand.u32 4294901760, %v11290_v37 }
0x1837   : > { %v10938_v26 = vsub.f32 %v10936_v25, %v10937_v39  ;;  %v33472_v41 = vsub.f32 %v11290_v37, %v33469_v44 }
0x1838   : > { %v11745_v2 = vpop.permute.xlu0 %11744 }
0x1839   : > { %v10939_v27 = vand.u32 4294901760, %v10938_v26  ;;  %v11404_v46 = vand.u32 4294901760, %v33472_v41  ;;  %v11750_v17 = vsel %vm975_vm4, %v11745_v2, 0 }
0x183a   : > { %v33507_v21 = vand.u32 4294901760, %v11750_v17 }
0x183b   : > { %30150 = vmatpush3.msra.mxu1 %v10939_v27  ;;  %v11405_v50 = vsub.f32 %v33472_v41, %v11404_v46 }
0x183c   : > { %30151 = vmatprep.subr.mxu1 %v32160_v10  ;;  %v33514_v26 = vsub.f32 %v11750_v17, %v33507_v21 }
0x183d   : > { %v11406_v53 = vand.u32 4294901760, %v11405_v50 }
0x183e   : > { %v31832_v28 = vpop.eup %31831 }
0x183f   : > { %v10815_v29 = vsel %vm7998_vm7, %v31832_v28, 0.0 }
0x1840   : > { %10816 = vadd.xlane.f32.xlu1 %v10815_v29 }
0x1851   : > { %10820 = vrot.lane.b32.xlu1 %v33145_v58, %s32167_s16 }
0x1855   : > { %11746 = vrot.lane.b32.xlu1 %v33143_v56, %s32171_s4 }
0x1859   : > { %11742 = vrot.lane.b32.xlu1 %v33139_v35, %s32171_s4 }
0x18c9   : > { %v10817_v30 = vpop.xlane.xlu1 %10816 }
0x18ca   : > { %31833 = vrcp.f32 %v10817_v30 }
0x18cd   : > { %v10821_v31 = vpop.permute.xlu1 %10820 }
0x18ce   : > { %v10861_v32 = vand.u32 4294901760, %v10821_v31 }
0x18d0   : > { %v10943_v33 = vsub.f32 %v10821_v31, %v10861_v32  ;;  %30145 = vmatpush3.msra.mxu0 %v10861_v32  ;;  %v11869_v31 = vand.u32 4294901760, %v33514_v26 }
0x18d1   : > { %30156 = vmatprep.subr.mxu0 %v32160_v10  ;;  %v11747_v5 = vpop.permute.xlu1 %11746 }
0x18d2   : > { %v10944_v36 = vand.u32 4294901760, %v10943_v33  ;;  %v11752_v63 = vsel %vm975_vm4, %v11747_v5, 0 }
0x18d3   : > { %v33504_v15 = vand.u32 4294901760, %v11752_v63 }
0x18d4   : > { %v10945_v40 = vsub.f32 %v10943_v33, %v10944_v36 }
0x18d5   : > { %v33510_v23 = vsub.f32 %v11752_v63, %v33504_v15 }
0x18d6   : > { %v10946_v13 = vand.u32 4294901760, %v10945_v40 }
0x18d7   : > { %v31834_v52 = vpop.eup %31833  ;;  %v11862_v27 = vand.u32 4294901760, %v33510_v23 }
0x18d8   : > { %v10819_v42 = vmul.f32 %v31834_v52, %v31832_v28  ;;  %30152 = vmatpush3.msra.mxu1 %v10946_v13  ;;  %v11743_v28 = vpop.permute.xlu1 %11742  ;;  %v11870_v13 = vsub.f32 %v33514_v26, %v11869_v31 }
0x18d9   : > { %30163 = vmatprep.subr.mxu1 %v32160_v10 }
0x18da   : > { %v10827_v35 = vsel %vm7998_vm7, %v10819_v42, 0 }
0x18db   : > { %v10896_v45 = vand.u32 4294901760, %v10827_v35 }
0x18dd   : > { %v10897_v47 = vsub.f32 %v10827_v35, %v10896_v45  ;;  %30154 = vmatmul.mubr.f32.vlgmr.msra.gmra.mxu1 %v10896_v45 }
0x18de   : > { %30164 = vmatpush3.msra.mxu1 %v10858_v24  ;;  %30167 = vmatprep.mubr.msk.f32.mxu1 %vm32161_vm1, %v32160_v10 }
0x18df   : > { %30165 = vmatprep.subr.mxu1 %v32160_v10  ;;  %v10898_v34 = vand.u32 4294901760, %v10897_v47 }
0x18e0   : > { %30166 = vmatpush3.msra.mxu1 %v10861_v32 }
0x18e1   : > { %30177 = vmatprep.subr.mxu1 %v32160_v10  ;;  %30168 = vmatmul.mubr.f32.vlgmr.msra.gmra.mxu1 %v10898_v34  ;;  %v10899_v22 = vsub.f32 %v10897_v47, %v10898_v34 }
0x18e2   : > { %30178 = vmatpush3.msra.mxu1 %v10858_v24  ;;  %30181 = vmatprep.mubr.msk.f32.mxu1 %vm32161_vm1, %v32160_v10 }
0x18e3   : > { %30179 = vmatprep.subr.mxu1 %v32160_v10  ;;  %v10900_v43 = vand.u32 4294901760, %v10899_v22 }
0x18e4   : > { %30180 = vmatpush3.msra.mxu1 %v10861_v32  ;;  %v11863_v32 = vsub.f32 %v33510_v23, %v11862_v27 }
0x18e5   : > { %30147 = vmatmul.mubr.f32.vlgmr.msra.gmra.mxu0 %v10900_v43  ;;  %30182 = vmatmul.mubr.f32.vlgmr.msra.gmra.mxu1 %v10896_v45 }
0x18e6   : > { %30157 = vmatpush3.msra.mxu0 %v10936_v25  ;;  %30160 = vmatprep.mubr.msk.f32.mxu0 %vm32161_vm1, %v32160_v10  ;;  %v11864_v52 = vand.u32 4294901760, %v11863_v32 }
0x18e7   : > { %30158 = vmatprep.subr.mxu0 %v32160_v10  ;;  %30189 = vmatprep.subr.mxu1 %v32160_v10 }
0x18e8   : > { %30159 = vmatpush3.msra.mxu0 %v10943_v33  ;;  %30190 = vmatpush3.msra.mxu1 %v11406_v53  ;;  %v11748_v33 = vsel %vm975_vm4, %v11743_v28, 0 }
0x18e9   : > { %30170 = vmatprep.subr.mxu0 %v32160_v10  ;;  %30161 = vmatmul.mubr.f32.vlgmr.msra.gmra.mxu0 %v10897_v47  ;;  %v11821_v37 = vand.u32 4294901760, %v11748_v33 }
0x18ea   : > { %30171 = vmatpush3.msra.mxu0 %v10937_v39  ;;  %30174 = vmatprep.mubr.msk.f32.mxu0 %vm32161_vm1, %v32160_v10 }
0x18eb   : > { %30172 = vmatprep.subr.mxu0 %v32160_v10  ;;  %30191 = vmatprep.mubr.msk.f32.mxu1 %vm32161_vm1, %v32160_v10  ;;  %v11822_v42 = vsub.f32 %v11748_v33, %v11821_v37 }
0x18ec   : > { %30173 = vmatpush3.msra.mxu0 %v10944_v36  ;;  %30199 = vmatprep.subr.mxu1 %v32160_v10 }
0x18ed   : > { %30175 = vmatmul.mubr.f32.vlgmr.msra.gmra.mxu0 %v10896_v45  ;;  %30184 = vmatprep.subr.mxu0 %v32160_v10  ;;  %v11823_v35 = vand.u32 4294901760, %v11822_v42 }
0x18ee   : > { %30185 = vmatpush3.msra.mxu0 %v33469_v44  ;;  %30186 = vmatprep.mubr.msk.f32.mxu0 %vm32161_vm1, %v32160_v10 }
0x18ef   : > { %30194 = vmatprep.subr.mxu0 %v32160_v10  ;;  %v11824_v45 = vsub.f32 %v11822_v42, %v11823_v35 }
0x199d   : > { %v10983_v51 = vpop.f32.mrf.mxu1 }
0x199f   : > { %v30155_v57 = vpop.f32.mrf.mxu1 }
0x19a1   : > { %v11134_v59 = vpop.f32.mrf.mxu1 }
0x19a3   : > { %v30169_v4 = vpop.f32.mrf.mxu1 }
0x19a5   : > { %v10902_v49 = vpop.f32.mrf.mxu0  ;;  %v11284_v6 = vpop.f32.mrf.mxu1 }
0x19a6   : > { %v10984_v62 = vadd.f32 %v10983_v51, %v10902_v49 }
0x19a7   : > { %v30148_v54 = vpop.f32.mrf.mxu0  ;;  %v30183_v9 = vpop.f32.mrf.mxu1 }
0x19a9   : > { %v11059_v1 = vpop.f32.mrf.mxu0 }
0x19aa   : > { %v11060_v12 = vadd.f32 %v11059_v1, %v10984_v62 }
0x19ab   : > { %v30162_v14 = vpop.f32.mrf.mxu0 }
0x19ac   : > { %v11135_v16 = vadd.f32 %v11134_v59, %v11060_v12 }
0x19ad   : > { %v11211_v18 = vpop.f32.mrf.mxu0 }
0x19ae   : > { %v11212_v19 = vadd.f32 %v11211_v18, %v11135_v16 }
0x19af   : > { %v30176_v20 = vpop.f32.mrf.mxu0 }
0x19b0   : > { %v11285_v24 = vadd.f32 %v11284_v6, %v11212_v19 }
0x19b2   : > { %v11293_v25 = vsel %vm975_vm4, %v11285_v24, 0 }
0x19b3   : > { %v11361_v39 = vand.u32 4294901760, %v11293_v25 }
0x19b5   : > { %v11362_v29 = vsub.f32 %v11293_v25, %v11361_v39  ;;  %30192 = vmatmul.mubr.f32.vlgmr.msra.gmra.mxu1 %v11361_v39 }
0x19b6   : > { %30200 = vmatpush3.msra.mxu1 %v33469_v44  ;;  %30201 = vmatprep.mubr.msk.f32.mxu1 %vm32161_vm1, %v32160_v10 }
0x19b7   : > { %v11363_v30 = vand.u32 4294901760, %v11362_v29  ;;  %30209 = vmatprep.subr.mxu1 %v32160_v10 }
0x19b9   : > { %v11364_v36 = vsub.f32 %v11362_v29, %v11363_v30  ;;  %30202 = vmatmul.mubr.f32.vlgmr.msra.gmra.mxu1 %v11363_v30 }
0x19ba   : > { %30210 = vmatpush3.msra.mxu1 %v33469_v44  ;;  %30211 = vmatprep.mubr.msk.f32.mxu1 %vm32161_vm1, %v32160_v10  ;;  %v11871_v44 = vand.u32 4294901760, %v11870_v13 }
0x19bb   : > { %v11365_v40 = vand.u32 4294901760, %v11364_v36  ;;  %30221 = vmatprep.subr.mxu1 %v32160_v10 }
0x19bd   : > { %30187 = vmatmul.mubr.f32.vlgmr.msra.gmra.mxu0 %v11365_v40  ;;  %30212 = vmatmul.mubr.f32.vlgmr.msra.gmra.mxu1 %v11361_v39 }
0x19be   : > { %30195 = vmatpush3.msra.mxu0 %v33472_v41  ;;  %30222 = vmatpush3.xpose.msra.mxu1 %v11864_v52  ;;  %v11825_v41 = vand.u32 4294901760, %v11824_v45 }
0x19bf   : > { %30196 = vmatprep.mubr.msk.f32.mxu0 %vm32161_vm1, %v32160_v10  ;;  %30204 = vmatprep.subr.mxu0 %v32160_v10 }
0x19c0   : > { %30223 = vmatprep.subr.mxu1 %v32160_v10  ;;  %30225 = vmatprep.mubr.msk.f32.mxu1 %vm32161_vm1, %v32160_v10 }
0x19c1   : > { %30197 = vmatmul.mubr.f32.vlgmr.msra.gmra.mxu0 %v11362_v29  ;;  %v31896_v29 = vld [vmem:[%s32461_s14] sm:$0xff] }
0x19c2   : > { %30205 = vmatpush3.msra.mxu0 %v11404_v46  ;;  %30224 = vmatpush3.xpose.msra.mxu1 %v11871_v44 }
0x19c3   : > { %30206 = vmatprep.mubr.msk.f32.mxu0 %vm32161_vm1, %v32160_v10  ;;  %30214 = vmatprep.subr.mxu0 %v32160_v10 }
0x19c4   : > { %30235 = vmatprep.subr.mxu1 %v32160_v10 }
0x19c5   : > { %30226 = vmatmul.mubr.f32.vlgmr.msra.gmra.mxu1 %v11821_v37  ;;  %30207 = vmatmul.mubr.f32.vlgmr.msra.gmra.mxu0 %v11361_v39 }
0x19c6   : > { %30215 = vmatpush3.xpose.msra.mxu0 %v33504_v15  ;;  %30236 = vmatpush3.xpose.msra.mxu1 %v33504_v15 }
0x19c7   : > { %30216 = vmatprep.subr.mxu0 %v32160_v10  ;;  %30237 = vmatprep.subr.mxu1 %v32160_v10 }
0x19c8   : > { %30218 = vmatprep.mubr.msk.f32.mxu0 %vm32161_vm1, %v32160_v10  ;;  %30239 = vmatprep.mubr.msk.f32.mxu1 %vm32161_vm1, %v32160_v10 }
0x19ca   : > { %30217 = vmatpush3.xpose.msra.mxu0 %v33507_v21  ;;  %30238 = vmatpush3.xpose.msra.mxu1 %v33507_v21 }
0x19cb   : > { %30228 = vmatprep.subr.mxu0 %v32160_v10  ;;  %30249 = vmatprep.subr.mxu1 %v32160_v10 }
0x19cd   : > { %30219 = vmatmul.mubr.f32.vlgmr.msra.gmra.mxu0 %v11825_v41  ;;  %30240 = vmatmul.mubr.f32.vlgmr.msra.gmra.mxu1 %v11823_v35 }
0x19ce   : > { %30229 = vmatpush3.xpose.msra.mxu0 %v33510_v23  ;;  %30250 = vmatpush3.xpose.msra.mxu1 %v33504_v15 }
0x19cf   : > { %30230 = vmatprep.subr.mxu0 %v32160_v10  ;;  %30251 = vmatprep.subr.mxu1 %v32160_v10 }
0x19d0   : > { %30232 = vmatprep.mubr.msk.f32.mxu0 %vm32161_vm1, %v32160_v10  ;;  %30253 = vmatprep.mubr.msk.f32.mxu1 %vm32161_vm1, %v32160_v10 }
0x19d2   : > { %30231 = vmatpush3.xpose.msra.mxu0 %v33514_v26  ;;  %30252 = vmatpush3.xpose.msra.mxu1 %v33507_v21 }
0x19d3   : > { %30242 = vmatprep.subr.mxu0 %v32160_v10  ;;  %30263 = vmatprep.subr.mxu1 %v32160_v10 }
0x19d5   : > { %30233 = vmatmul.mubr.f32.vlgmr.msra.gmra.mxu0 %v11822_v42  ;;  %30254 = vmatmul.mubr.f32.vlgmr.msra.gmra.mxu1 %v11821_v37 }
0x19d6   : > { %30243 = vmatpush3.xpose.msra.mxu0 %v11862_v27  ;;  %30246 = vmatprep.mubr.msk.f32.mxu0 %vm32161_vm1, %v32160_v10 }
0x19d7   : > { %30244 = vmatprep.subr.mxu0 %v32160_v10  ;;  %30267 = vmatprep.mubr.msk.f32.mxu1 %vm32161_vm1, %v32160_v10 }
0x19da   : > { %30245 = vmatpush3.xpose.msra.mxu0 %v11869_v31  ;;  %v31897_v31 = vld [vmem:[#allocation10 + $0x58] sm:$0xff] }
0x19db   : > { %30256 = vmatprep.subr.mxu0 %v32160_v10 }
0x19dd   : > { %30247 = vmatmul.mubr.f32.vlgmr.msra.gmra.mxu0 %v11821_v37 }
0x19de   : > { %30260 = vmatprep.mubr.msk.f32.mxu0 %vm32161_vm1, %v32160_v10 }
0x1a75   : > { %v11443_v46 = vpop.f32.mrf.mxu1 }
0x1a77   : > { %v30193_v47 = vpop.f32.mrf.mxu1 }
0x1a79   : > { %v11591_v34 = vpop.f32.mrf.mxu1 }
0x1a7b   : > { %v30203_v50 = vpop.f32.mrf.mxu1 }
0x1a7d   : > { %v11367_v22 = vpop.f32.mrf.mxu0  ;;  %v11737_v43 = vpop.f32.mrf.mxu1 }
0x1a7e   : > { %v11444_v53 = vadd.f32 %v11443_v46, %v11367_v22 }
0x1a7f   : > { %v30188_v51 = vpop.f32.mrf.mxu0  ;;  %v30213_v57 = vpop.f32.mrf.mxu1 }
0x1a81   : > { %v11517_v59 = vpop.f32.mrf.mxu0 }
0x1a82   : > { %v11518_v4 = vadd.f32 %v11517_v59, %v11444_v53 }
0x1a83   : > { %v30198_v49 = vpop.f32.mrf.mxu0 }
0x1a84   : > { %v11592_v6 = vadd.f32 %v11591_v34, %v11518_v4 }
0x1a85   : > { %v11908_v5 = vpop.f32.mrf.mxu1  ;;  %v11665_v54 = vpop.f32.mrf.mxu0 }
0x1a86   : > { %v11666_v9 = vadd.f32 %v11665_v54, %v11592_v6 }
0x1a87   : > { %v30227_v62 = vpop.f32.mrf.mxu1  ;;  %v30208_v63 = vpop.f32.mrf.mxu0 }
0x1a88   : > { %v11738_v1 = vadd.f32 %v11737_v43, %v11666_v9 }
0x1a8a   : > { %v33579_v2 = vadd.f32 %v11738_v1, %v33450_v55 }
0x1a8d   : > { %v11827_v12 = vpop.f32.mrf.mxu0  ;;  %v12059_v14 = vpop.f32.mrf.mxu1 }
0x1a8e   : > { %v11909_v19 = vadd.f32 %v11908_v5, %v11827_v12 }
0x1a8f   : > { %v30220_v15 = vpop.f32.mrf.mxu0  ;;  %v30241_v16 = vpop.f32.mrf.mxu1 }
0x1a95   : > { %v11984_v17 = vpop.f32.mrf.mxu0  ;;  %v12209_v18 = vpop.f32.mrf.mxu1 }
0x1a96   : > { %v11985_v23 = vadd.f32 %v11984_v17, %v11909_v19 }
0x1a97   : > { %v30234_v20 = vpop.f32.mrf.mxu0  ;;  %v30255_v21 = vpop.f32.mrf.mxu1 }
0x1a98   : > { %v12060_v24 = vadd.f32 %v12059_v14, %v11985_v23 }
0x1a9d   : > { %v12136_v25 = vpop.f32.mrf.mxu0 }
0x1a9e   : > { %v12137_v39 = vadd.f32 %v12136_v25, %v12060_v24 }
0x1a9f   : > { %v30248_v26 = vpop.f32.mrf.mxu0 }
0x1aa0   : > { %v12210_v27 = vadd.f32 %v12209_v18, %v12137_v39 }
0x1aa2   : > { %v12213_v28 = vmul.f32 0.35355338, %v12210_v27 }
0x1aa4   : > { %v12214_v55 = vadd.f32 %v31896_v29, %v12213_v28 }
0x1aa6   : > { %v12215_v30 = vsel %vm7998_vm7, %v12214_v55, -inf }
0x1aa7   : > { %12216 = vmax.xlane.f32.xlu0 %v12215_v30 }
0x1abd   : > { %12228 = vrot.lane.b32.xlu0 %v33143_v56, %s32170_s30 }
0x1ac1   : > { %12695 = vrot.lane.b32.xlu0 %v31897_v31, %s32162_s8 }
0x1b30   : > { %v12217_v32 = vpop.xlane.xlu0 %12216 }
0x1b31   : > { %v12218_v33 = vsub.f32 %v12214_v55, %v12217_v32 }
0x1b33   : > { %v12219_v36 = vmul.f32 1.442695, %v12218_v33 }
0x1b34   : > { %v12229_v37 = vpop.permute.xlu0 %12228 }
0x1b35   : > { %31835 = vpow2.f32 %v12219_v36  ;;  %v12264_v40 = vand.u32 4294901760, %v12229_v37 }
0x1b37   : > { %v12342_v13 = vsub.f32 %v12229_v37, %v12264_v40  ;;  %30257 = vmatpush3.msra.mxu0 %v12264_v40 }
0x1b38   : > { %30258 = vmatprep.subr.mxu0 %v32160_v10  ;;  %v12696_v6 = vpop.permute.xlu0 %12695 }
0x1b39   : > { %v12343_v52 = vand.u32 4294901760, %v12342_v13  ;;  %v12732_v5 = vand.u32 4294901760, %v12696_v6 }
0x1b3b   : > { %v12344_v42 = vsub.f32 %v12342_v13, %v12343_v52  ;;  %v12809_v54 = vsub.f32 %v12696_v6, %v12732_v5 }
0x1b3d   : > { %v12345_v44 = vand.u32 4294901760, %v12344_v42  ;;  %v12810_v9 = vand.u32 4294901760, %v12809_v54 }
0x1b3f   : > { %30264 = vmatpush3.msra.mxu1 %v12345_v44  ;;  %v12811_v62 = vsub.f32 %v12809_v54, %v12810_v9 }
0x1b40   : > { %30265 = vmatprep.subr.mxu1 %v32160_v10 }
0x1b41   : > { %v12812_v63 = vand.u32 4294901760, %v12811_v62  ;;  %v426_v62 = vld [vmem:[#allocation10 + $0x70] sm:$0xff] }
0x1b42   : > { %v31836_v56 = vpop.eup %31835 }
0x1b43   : > { %v12221_v35 = vsel %vm7998_vm7, %v31836_v56, 0.0 }
0x1b44   : > { %12222 = vadd.xlane.f32.xlu1 %v12221_v35 }
0x1b55   : > { %12226 = vrot.lane.b32.xlu1 %v33145_v58, %s32170_s30 }
0x1bcd   : > { %v12223_v45 = vpop.xlane.xlu1 %12222 }
0x1bce   : > { %31837 = vrcp.f32 %v12223_v45 }
0x1bd1   : > { %v12227_v41 = vpop.permute.xlu1 %12226 }
0x1bd2   : > { %v12267_v46 = vand.u32 4294901760, %v12227_v41 }
0x1bd4   : > { %v12349_v47 = vsub.f32 %v12227_v41, %v12267_v46  ;;  %30259 = vmatpush3.msra.mxu0 %v12267_v46 }
0x1bd5   : > { %30270 = vmatprep.subr.mxu0 %v32160_v10 }
0x1bd6   : > { %v12350_v34 = vand.u32 4294901760, %v12349_v47 }
0x1bd8   : > { %v12351_v50 = vsub.f32 %v12349_v47, %v12350_v34 }
0x1bda   : > { %v12352_v22 = vand.u32 4294901760, %v12351_v50 }
0x1bdb   : > { %v31838_v43 = vpop.eup %31837 }
0x1bdc   : > { %v12225_v53 = vmul.f32 %v31838_v43, %v31836_v56  ;;  %30266 = vmatpush3.msra.mxu1 %v12352_v22 }
0x1bdd   : > { %30277 = vmatprep.subr.mxu1 %v32160_v10 }
0x1bde   : > { %v12233_v51 = vsel %vm7998_vm7, %v12225_v53, 0  ;;  %v28258_v53 = vld [vmem:[#allocation11 + $0x3] ss:$0 sm:$0xff] }
0x1bdf   : > { %v12302_v57 = vand.u32 4294901760, %v12233_v51 }
0x1be1   : > { %v12303_v58 = vsub.f32 %v12233_v51, %v12302_v57  ;;  %30268 = vmatmul.mubr.f32.vlgmr.msra.gmra.mxu1 %v12302_v57 }
0x1be2   : > { %30278 = vmatpush3.msra.mxu1 %v12264_v40  ;;  %30281 = vmatprep.mubr.msk.f32.mxu1 %vm32161_vm1, %v32160_v10 }
0x1be3   : > { %30279 = vmatprep.subr.mxu1 %v32160_v10  ;;  %v12304_v59 = vand.u32 4294901760, %v12303_v58 }
0x1be4   : > { %30280 = vmatpush3.msra.mxu1 %v12267_v46 }
0x1be5   : > { %30291 = vmatprep.subr.mxu1 %v32160_v10  ;;  %30282 = vmatmul.mubr.f32.vlgmr.msra.gmra.mxu1 %v12304_v59  ;;  %v12305_v4 = vsub.f32 %v12303_v58, %v12304_v59 }
0x1be6   : > { %30292 = vmatpush3.msra.mxu1 %v12264_v40  ;;  %30295 = vmatprep.mubr.msk.f32.mxu1 %vm32161_vm1, %v32160_v10 }
0x1be7   : > { %30293 = vmatprep.subr.mxu1 %v32160_v10  ;;  %v12306_v49 = vand.u32 4294901760, %v12305_v4 }
0x1be8   : > { %30294 = vmatpush3.msra.mxu1 %v12267_v46 }
0x1be9   : > { %30261 = vmatmul.mubr.f32.vlgmr.msra.gmra.mxu0 %v12306_v49  ;;  %30296 = vmatmul.mubr.f32.vlgmr.msra.gmra.mxu1 %v12302_v57 }
0x1bea   : > { %30271 = vmatpush3.msra.mxu0 %v12342_v13  ;;  %30274 = vmatprep.mubr.msk.f32.mxu0 %vm32161_vm1, %v32160_v10 }
0x1beb   : > { %30272 = vmatprep.subr.mxu0 %v32160_v10  ;;  %30303 = vmatprep.subr.mxu1 %v32160_v10 }
0x1bec   : > { %30273 = vmatpush3.msra.mxu0 %v12349_v47  ;;  %30305 = vmatprep.mubr.msk.f32.mxu1 %vm32161_vm1, %v32160_v10 }
0x1bed   : > { %30284 = vmatprep.subr.mxu0 %v32160_v10  ;;  %30275 = vmatmul.mubr.f32.vlgmr.msra.gmra.mxu0 %v12303_v58 }
0x1bee   : > { %30285 = vmatpush3.msra.mxu0 %v12343_v52  ;;  %30288 = vmatprep.mubr.msk.f32.mxu0 %vm32161_vm1, %v32160_v10 }
0x1bef   : > { %30286 = vmatprep.subr.mxu0 %v32160_v10  ;;  %30304 = vmatpush3.msra.mxu1 %v12812_v63  ;;  %v425_v63 = vld [vmem:[#allocation10 + $0x68] sm:$0xff] }
0x1bf0   : > { %30287 = vmatpush3.msra.mxu0 %v12350_v34  ;;  %30313 = vmatprep.subr.mxu1 %v32160_v10 }
0x1bf1   : > { %30289 = vmatmul.mubr.f32.vlgmr.msra.gmra.mxu0 %v12302_v57  ;;  %30298 = vmatprep.subr.mxu0 %v32160_v10 }
0x1bf2   : > { %30300 = vmatprep.mubr.msk.f32.mxu0 %vm32161_vm1, %v32160_v10  ;;  %30299 = vmatpush3.msra.mxu0 %v12732_v5 }
0x1bf3   : > { %30308 = vmatprep.subr.mxu0 %v32160_v10 }
0x1ca1   : > { %v12389_v1 = vpop.f32.mrf.mxu1 }
0x1ca3   : > { %v30269_v12 = vpop.f32.mrf.mxu1 }
0x1ca4   : > { %v424_v12 = vld [vmem:[#allocation10 + $0x60] sm:$0xff] }
0x1ca5   : > { %v12540_v14 = vpop.f32.mrf.mxu1 }
0x1ca7   : > { %v30283_v15 = vpop.f32.mrf.mxu1 }
0x1ca9   : > { %v12308_v16 = vpop.f32.mrf.mxu0  ;;  %v12690_v17 = vpop.f32.mrf.mxu1 }
0x1caa   : > { %v12390_v20 = vadd.f32 %v12389_v1, %v12308_v16  ;;  %v33643_v1 = vand.u32 4294901760, %v426_v62 }
0x1cab   : > { %v30262_v18 = vpop.f32.mrf.mxu0  ;;  %v30297_v19 = vpop.f32.mrf.mxu1 }
0x1cac   : > { %v33653_v16 = vsub.f32 %v426_v62, %v33643_v1 }
0x1cad   : > { %v12465_v21 = vpop.f32.mrf.mxu0 }
0x1cae   : > { %v12466_v23 = vadd.f32 %v12465_v21, %v12390_v20  ;;  %v13304_v20 = vand.u32 4294901760, %v33653_v16 }
0x1caf   : > { %v30276_v24 = vpop.f32.mrf.mxu0 }
0x1cb0   : > { %v12541_v25 = vadd.f32 %v12540_v14, %v12466_v23  ;;  %v33647_v14 = vand.u32 4294901760, %v424_v12 }
0x1cb1   : > { %v12617_v39 = vpop.f32.mrf.mxu0 }
0x1cb2   : > { %v12618_v26 = vadd.f32 %v12617_v39, %v12541_v25  ;;  %v33660_v18 = vsub.f32 %v424_v12, %v33647_v14  ;;  %v13305_v25 = vsub.f32 %v33653_v16, %v13304_v20 }
0x1cb3   : > { %v30290_v27 = vpop.f32.mrf.mxu0 }
0x1cb4   : > { %v12691_v28 = vadd.f32 %v12690_v17, %v12618_v26  ;;  %v13318_v23 = vand.u32 4294901760, %v33660_v18  ;;  %v13306_v27 = vand.u32 4294901760, %v13305_v25 }
0x1cb6   : > { %v12699_v29 = vsel %vm975_vm4, %v12691_v28, 0  ;;  %v13319_v28 = vsub.f32 %v33660_v18, %v13318_v23 }
0x1cb7   : > { %v12767_v55 = vand.u32 4294901760, %v12699_v29 }
0x1cb9   : > { %v12768_v30 = vsub.f32 %v12699_v29, %v12767_v55  ;;  %30306 = vmatmul.mubr.f32.vlgmr.msra.gmra.mxu1 %v12767_v55 }
0x1cba   : > { %30314 = vmatpush3.msra.mxu1 %v12732_v5  ;;  %30315 = vmatprep.mubr.msk.f32.mxu1 %vm32161_vm1, %v32160_v10 }
0x1cbb   : > { %v12769_v31 = vand.u32 4294901760, %v12768_v30  ;;  %30323 = vmatprep.subr.mxu1 %v32160_v10 }
0x1cbd   : > { %v12770_v32 = vsub.f32 %v12768_v30, %v12769_v31  ;;  %30316 = vmatmul.mubr.f32.vlgmr.msra.gmra.mxu1 %v12769_v31 }
0x1cbe   : > { %30324 = vmatpush3.msra.mxu1 %v12732_v5  ;;  %30325 = vmatprep.mubr.msk.f32.mxu1 %vm32161_vm1, %v32160_v10 }
0x1cbf   : > { %v12771_v33 = vand.u32 4294901760, %v12770_v32  ;;  %30339 = vmatprep.subr.mxu1 %v32160_v10 }
0x1cc1   : > { %30301 = vmatmul.mubr.f32.vlgmr.msra.gmra.mxu0 %v12771_v33  ;;  %30326 = vmatmul.mubr.f32.vlgmr.msra.gmra.mxu1 %v12767_v55 }
0x1cc2   : > { %30309 = vmatpush3.msra.mxu0 %v12809_v54  ;;  %30310 = vmatprep.mubr.msk.f32.mxu0 %vm32161_vm1, %v32160_v10 }
0x1cc3   : > { %30318 = vmatprep.subr.mxu0 %v32160_v10  ;;  %30347 = vmatprep.mubr.msk.f32.mxu1 %vm32161_vm1, %v32160_v10 }
0x1cc5   : > { %30311 = vmatmul.mubr.f32.vlgmr.msra.gmra.mxu0 %v12768_v30 }
0x1cc6   : > { %30319 = vmatpush3.msra.mxu0 %v12810_v9  ;;  %30320 = vmatprep.mubr.msk.f32.mxu0 %vm32161_vm1, %v32160_v10  ;;  %v427_v9 = vld [vmem:[#allocation10 + $0x78] sm:$0xff] }
0x1cc7   : > { %30328 = vmatprep.subr.mxu0 %v32160_v10 }
0x1cc9   : > { %30321 = vmatmul.mubr.f32.vlgmr.msra.gmra.mxu0 %v12767_v55  ;;  %v13320_v55 = vand.u32 4294901760, %v13319_v28 }
0x1cca   : > { %30336 = vmatprep.mubr.msk.f32.mxu0 %vm32161_vm1, %v32160_v10 }
0x1d79   : > { %v12849_v36 = vpop.f32.mrf.mxu1 }
0x1d7b   : > { %v30307_v37 = vpop.f32.mrf.mxu1 }
0x1d7d   : > { %v12997_v40 = vpop.f32.mrf.mxu1 }
0x1d7f   : > { %v30317_v13 = vpop.f32.mrf.mxu1 }
0x1d81   : > { %v12773_v52 = vpop.f32.mrf.mxu0  ;;  %v13143_v42 = vpop.f32.mrf.mxu1 }
0x1d82   : > { %v12850_v35 = vadd.f32 %v12849_v36, %v12773_v52  ;;  %v28259_v52 = vld [vmem:[#allocation11 + $0xa] ss:$0 sm:$0xff] }
0x1d83   : > { %v30302_v44 = vpop.f32.mrf.mxu0  ;;  %v30327_v56 = vpop.f32.mrf.mxu1 }
0x1d84   : > { %v28260_v56 = vld [vmem:[#allocation11 + $0xb] ss:$0 sm:$0xff] }
0x1d85   : > { %v12923_v45 = vpop.f32.mrf.mxu0 }
0x1d86   : > { %v12924_v41 = vadd.f32 %v12923_v45, %v12850_v35 }
0x1d87   : > { %v30312_v46 = vpop.f32.mrf.mxu0 }
0x1d88   : > { %v12998_v47 = vadd.f32 %v12997_v40, %v12924_v41 }
0x1d89   : > { %v13071_v34 = vpop.f32.mrf.mxu0 }
0x1d8a   : > { %v13072_v50 = vadd.f32 %v13071_v34, %v12998_v47 }
0x1d8b   : > { %v30322_v22 = vpop.f32.mrf.mxu0 }
0x1d8c   : > { %v13144_v43 = vadd.f32 %v13143_v42, %v13072_v50 }
0x1d8e   : > { %v13147_v51 = vadd.f32 %v13144_v43, %v33579_v2  ;;  %v33641_v2 = vand.u32 4294901760, %v427_v9  ;;  %v435_v43 = vld [vmem:[#allocation10 + $0xb8] sm:$0xff] }
0x1d90   : > { %v13152_v57 = vadd.f32 %v28258_v53, %v13147_v51  ;;  %v33650_v15 = vsub.f32 %v427_v9, %v33641_v2  ;;  %30329 = vmatpush3.msra.mxu0 %v33641_v2  ;;  %v33738_v53 = vand.u32 4294901760, %v435_v43  ;;  %v434_v51 = vld [vmem:[#allocation10 + $0xb0] sm:$0xff] }
0x1d91   : > { %30330 = vmatprep.subr.mxu0 %v32160_v10 }
0x1d92   : > { %v33635_v58 = vadd.f32 %v13152_v57, %v32901_v48  ;;  %v33645_v48 = vand.u32 4294901760, %v425_v63  ;;  %v13297_v19 = vand.u32 4294901760, %v33650_v15  ;;  %30331 = vmatpush3.msra.mxu0 %v33643_v1  ;;  %v33741_v57 = vsub.f32 %v435_v43, %v33738_v53  ;;  %v28261_v43 = vld [vmem:[#allocation11 + $0x4] ss:$0 sm:$0xff] }
0x1d93   : > { %30332 = vmatprep.subr.mxu0 %v32160_v10 }
0x1d94   : > { %v13154_v59 = vsel %vm448_vm0, %v33635_v58, 0.0  ;;  %v33656_v17 = vsub.f32 %v425_v63, %v33645_v48  ;;  %v13298_v24 = vsub.f32 %v33650_v15, %v13297_v19  ;;  %30333 = vmatpush3.msra.mxu0 %v33645_v48 }
0x1d95   : > { %13155 = vadd.xlane.f32.xlu1 %v13154_v59  ;;  %30334 = vmatprep.subr.mxu0 %v32160_v10  ;;  %v33743_v59 = vand.u32 4294901760, %v434_v51 }
0x1d96   : > { %v13311_v21 = vand.u32 4294901760, %v33656_v17  ;;  %v13299_v26 = vand.u32 4294901760, %v13298_v24  ;;  %30335 = vmatpush3.msra.mxu0 %v33647_v14  ;;  %v429_v24 = vld [vmem:[#allocation10 + $0x88] sm:$0xff] }
0x1d97   : > { %30350 = vmatprep.subr.mxu0 %v32160_v10 }
0x1d98   : > { %v13312_v39 = vsub.f32 %v33656_v17, %v13311_v21  ;;  %30340 = vmatpush3.msra.mxu1 %v13299_v26 }
0x1d99   : > { %30341 = vmatprep.subr.mxu1 %v32160_v10 }
0x1d9a   : > { %v13313_v29 = vand.u32 4294901760, %v13312_v39  ;;  %30342 = vmatpush3.msra.mxu1 %v13306_v27  ;;  %v33794_v27 = vand.u32 4294901760, %v429_v24 }
0x1d9b   : > { %30343 = vmatprep.subr.mxu1 %v32160_v10 }
0x1d9c   : > { %30344 = vmatpush3.msra.mxu1 %v13313_v29  ;;  %v428_v29 = vld [vmem:[#allocation10 + $0x80] sm:$0xff] }
0x1d9d   : > { %30345 = vmatprep.subr.mxu1 %v32160_v10 }
0x1d9e   : > { %30346 = vmatpush3.msra.mxu1 %v13320_v55 }
0x1d9f   : > { %30361 = vmatprep.subr.mxu1 %v32160_v10 }
0x1e1e   : > { %v13156_v4 = vpop.xlane.xlu1 %13155 }
0x1e1f   : > { %v13157_v49 = vmul.f32 0.03125, %v13156_v4  ;;  %v433_v4 = vld [vmem:[#allocation10 + $0xa8] sm:$0xff] }
0x1e21   : > { %v13158_v6 = vsub.f32 %v33635_v58, %v13157_v49  ;;  %v13783_v49 = vand.u32 4294901760, %v33741_v57 }
0x1e23   : > { %v13159_v5 = vmul.f32 %v13158_v6, %v13158_v6  ;;  %v13177_v42 = vmul.f32 %v28259_v52, %v13158_v6  ;;  %v33749_v6 = vsub.f32 %v434_v51, %v33743_v59  ;;  %v13784_v9 = vsub.f32 %v33741_v57, %v13783_v49 }
0x1e25   : > { %v13160_v54 = vsel %vm448_vm0, %v13159_v5, 0.0  ;;  %v33751_v5 = vand.u32 4294901760, %v433_v4  ;;  %v13790_v62 = vand.u32 4294901760, %v33749_v6 }
0x1e26   : > { %13161 = vadd.xlane.f32.xlu0 %v13160_v54  ;;  %v432_v54 = vld [vmem:[#allocation10 + $0xa0] sm:$0xff] }
0x1e27   : > { %v33760_v63 = vsub.f32 %v433_v4, %v33751_v5  ;;  %v13791_v12 = vsub.f32 %v33749_v6, %v13790_v62 }
0x1eaf   : > { %v13162_v30 = vpop.xlane.xlu0 %13161 }
0x1eb0   : > { %v13163_v31 = vmul.f32 0.032258064, %v13162_v30 }
0x1eb2   : > { %31839 = vrsqrt.f32 %v13163_v31  ;;  %vm13166_vm8 = vcmp.eq.f32.partialorder %v13163_v31, inf  ;;  %v13169_v36 = vand.u32 2147483648, %v13163_v31  ;;  %vm13168_vm9 = vcmp.eq.f32.partialorder %v13163_v31, 0.0 }
0x1ebf   : > { %v31840_v32 = vpop.eup %31839 }
0x1ec0   : > { %v13165_v33 = vmul.f32 %v31840_v32, %v13163_v31  ;;  %v33804_v32 = vand.u32 4294901760, %v428_v29 }
0x1ec2   : > { %v13167_v37 = vsel %vm13166_vm8, %v13163_v31, %v13165_v33  ;;  %v33802_v31 = vsub.f32 %v429_v24, %v33794_v27 }
0x1ec3   : > { %v13170_v40 = vsel %vm13168_vm9, %v13169_v36, %v13167_v37 }
0x1ec4   : > { %v13171_v13 = vadd.f32 1e-06, %v13170_v40  ;;  %v13825_v37 = vand.u32 4294901760, %v33802_v31  ;;  %v33817_v40 = vsub.f32 %v428_v29, %v33804_v32 }
0x1ec6   : > { %31841 = vrcp.f32 %v13171_v13 }
0x1ed3   : > { %v31842_v44 = vpop.eup %31841 }
0x1ed4   : > { %v13178_v35 = vmul.f32 %v31842_v44, %v13177_v42  ;;  %v13826_v42 = vsub.f32 %v33802_v31, %v13825_v37  ;;  %v13832_v44 = vand.u32 4294901760, %v33817_v40 }
0x1ed6   : > { %v13183_v45 = vadd.f32 %v28260_v56, %v13178_v35  ;;  %v13827_v56 = vand.u32 4294901760, %v13826_v42  ;;  %v13833_v35 = vsub.f32 %v33817_v40, %v13832_v44 }
0x1ed8   : > { %v13189_v41 = vsel %vm448_vm0, %v13183_v45, 0  ;;  %v13834_v45 = vand.u32 4294901760, %v13833_v35  ;;  %v14228_v35 = vld [vmem:[#allocation10 + $0xd8] sm:$0xff] }
0x1ed9   : > { %v13260_v46 = vand.u32 4294901760, %v13189_v41 }
0x1edb   : > { %v13261_v47 = vsub.f32 %v13189_v41, %v13260_v46  ;;  %30348 = vmatmul.mubr.f32.vlgmr.msra.gmra.mxu1 %v13260_v46 }
0x1edc   : > { %30362 = vmatpush3.msra.mxu1 %v33641_v2  ;;  %30369 = vmatprep.mubr.msk.f32.mxu1 %vm32161_vm1, %v32160_v10 }
0x1edd   : > { %30363 = vmatprep.subr.mxu1 %v32160_v10  ;;  %v13262_v34 = vand.u32 4294901760, %v13261_v47 }
0x1ede   : > { %30364 = vmatpush3.msra.mxu1 %v33643_v1 }
0x1edf   : > { %30365 = vmatprep.subr.mxu1 %v32160_v10  ;;  %v13263_v50 = vsub.f32 %v13261_v47, %v13262_v34 }
0x1ee0   : > { %30366 = vmatpush3.msra.mxu1 %v33645_v48 }
0x1ee1   : > { %30367 = vmatprep.subr.mxu1 %v32160_v10  ;;  %v13264_v22 = vand.u32 4294901760, %v13263_v50 }
0x1ee2   : > { %30368 = vmatpush3.msra.mxu1 %v33647_v14 }
0x1ee3   : > { %30370 = vmatmul.mubr.f32.vlgmr.msra.gmra.mxu1 %v13262_v34  ;;  %30383 = vmatprep.subr.mxu1 %v32160_v10 }
0x1ee4   : > { %30337 = vmatmul.mubr.f32.vlgmr.msra.gmra.mxu0 %v13264_v22  ;;  %30384 = vmatpush3.msra.mxu1 %v33641_v2  ;;  %v33762_v2 = vand.u32 4294901760, %v432_v54 }
0x1ee5   : > { %30351 = vmatpush3.msra.mxu0 %v33650_v15  ;;  %30385 = vmatprep.subr.mxu1 %v32160_v10 }
0x1ee6   : > { %30352 = vmatprep.subr.mxu0 %v32160_v10  ;;  %30386 = vmatpush3.msra.mxu1 %v33643_v1  ;;  %v431_v1 = vld [vmem:[#allocation10 + $0x98] sm:$0xff]  ;;  %v33771_v15 = vsub.f32 %v432_v54, %v33762_v2 }
0x1ee7   : > { %30353 = vmatpush3.msra.mxu0 %v33653_v16  ;;  %30387 = vmatprep.subr.mxu1 %v32160_v10  ;;  %v33774_v16 = vand.u32 4294901760, %v431_v1 }
0x1ee8   : > { %30354 = vmatprep.subr.mxu0 %v32160_v10  ;;  %30388 = vmatpush3.msra.mxu1 %v33645_v48  ;;  %v13785_v48 = vand.u32 4294901760, %v13784_v9 }
0x1ee9   : > { %30355 = vmatpush3.msra.mxu0 %v33656_v17  ;;  %30389 = vmatprep.subr.mxu1 %v32160_v10  ;;  %v430_v17 = vld [vmem:[#allocation10 + $0x90] sm:$0xff] }
0x1eea   : > { %30356 = vmatprep.subr.mxu0 %v32160_v10  ;;  %30358 = vmatprep.mubr.msk.f32.mxu0 %vm32161_vm1, %v32160_v10 }
0x1eeb   : > { %30357 = vmatpush3.msra.mxu0 %v33660_v18  ;;  %30390 = vmatpush3.msra.mxu1 %v33647_v14  ;;  %v13797_v14 = vand.u32 4294901760, %v33760_v63  ;;  %v13792_v18 = vand.u32 4294901760, %v13791_v12 }
0x1eec   : > { %30391 = vmatprep.mubr.msk.f32.mxu1 %vm32161_vm1, %v32160_v10  ;;  %30359 = vmatmul.mubr.f32.vlgmr.msra.gmra.mxu0 %v13261_v47 }
0x1eed   : > { %30372 = vmatprep.subr.mxu0 %v32160_v10  ;;  %30392 = vmatmul.mubr.f32.vlgmr.msra.gmra.mxu1 %v13260_v46 }
0x1eee   : > { %30373 = vmatpush3.msra.mxu0 %v13297_v19  ;;  %30380 = vmatprep.mubr.msk.f32.mxu0 %vm32161_vm1, %v32160_v10  ;;  %v13798_v19 = vsub.f32 %v33760_v63, %v13797_v14 }
0x1eef   : > { %30374 = vmatprep.subr.mxu0 %v32160_v10  ;;  %30413 = vmatprep.subr.mxu1 %v32160_v10 }
0x1ef0   : > { %30375 = vmatpush3.msra.mxu0 %v13304_v20  ;;  %30429 = vmatprep.mubr.msk.f32.mxu1 %vm32161_vm1, %v32160_v10  ;;  %v13804_v20 = vand.u32 4294901760, %v33771_v15  ;;  %v13799_v25 = vand.u32 4294901760, %v13798_v19 }
0x1ef1   : > { %30376 = vmatprep.subr.mxu0 %v32160_v10  ;;  %30414 = vmatpush3.msra.mxu1 %v13785_v48 }
0x1ef2   : > { %30377 = vmatpush3.msra.mxu0 %v13311_v21  ;;  %v33781_v21 = vand.u32 4294901760, %v430_v17  ;;  %30415 = vmatprep.subr.mxu1 %v32160_v10  ;;  %v13805_v39 = vsub.f32 %v33771_v15, %v13804_v20 }
0x1ef3   : > { %30378 = vmatprep.subr.mxu0 %v32160_v10  ;;  %30416 = vmatpush3.msra.mxu1 %v13792_v18 }
0x1ef4   : > { %30379 = vmatpush3.msra.mxu0 %v13318_v23  ;;  %v33785_v23 = vsub.f32 %v431_v1, %v33774_v16  ;;  %v33792_v26 = vsub.f32 %v430_v17, %v33781_v21  ;;  %30417 = vmatprep.subr.mxu1 %v32160_v10  ;;  %v13806_v55 = vand.u32 4294901760, %v13805_v39 }
0x1ef5   : > { %30381 = vmatmul.mubr.f32.vlgmr.msra.gmra.mxu0 %v13260_v46  ;;  %30394 = vmatprep.subr.mxu0 %v32160_v10 }
0x1ef6   : > { %30410 = vmatprep.mubr.msk.f32.mxu0 %vm32161_vm1, %v32160_v10  ;;  %30395 = vmatpush3.msra.mxu0 %v33738_v53  ;;  %v13811_v28 = vand.u32 4294901760, %v33785_v23  ;;  %v13818_v30 = vand.u32 4294901760, %v33792_v26 }
0x1ef7   : > { %30396 = vmatprep.subr.mxu0 %v32160_v10  ;;  %30418 = vmatpush3.msra.mxu1 %v13799_v25 }
0x1ef8   : > { %30397 = vmatpush3.msra.mxu0 %v33743_v59  ;;  %30419 = vmatprep.subr.mxu1 %v32160_v10  ;;  %v13812_v33 = vsub.f32 %v33785_v23, %v13811_v28  ;;  %v13819_v36 = vsub.f32 %v33792_v26, %v13818_v30 }
0x1ef9   : > { %30398 = vmatprep.subr.mxu0 %v32160_v10  ;;  %30420 = vmatpush3.msra.mxu1 %v13806_v55 }
0x1efa   : > { %30399 = vmatpush3.msra.mxu0 %v33751_v5  ;;  %30421 = vmatprep.subr.mxu1 %v32160_v10  ;;  %v13813_v13 = vand.u32 4294901760, %v13812_v33  ;;  %v13820_v52 = vand.u32 4294901760, %v13819_v36 }
0x1efb   : > { %30400 = vmatprep.subr.mxu0 %v32160_v10 }
0x1efc   : > { %30401 = vmatpush3.msra.mxu0 %v33762_v2  ;;  %30422 = vmatpush3.msra.mxu1 %v13813_v13 }
0x1efd   : > { %30402 = vmatprep.subr.mxu0 %v32160_v10  ;;  %30423 = vmatprep.subr.mxu1 %v32160_v10 }
0x1efe   : > { %30403 = vmatpush3.msra.mxu0 %v33774_v16  ;;  %30424 = vmatpush3.msra.mxu1 %v13820_v52 }
0x1eff   : > { %30404 = vmatprep.subr.mxu0 %v32160_v10  ;;  %30425 = vmatprep.subr.mxu1 %v32160_v10 }
0x1f00   : > { %30405 = vmatpush3.msra.mxu0 %v33781_v21  ;;  %30426 = vmatpush3.msra.mxu1 %v13827_v56 }
0x1f01   : > { %30406 = vmatprep.subr.mxu0 %v32160_v10  ;;  %30427 = vmatprep.subr.mxu1 %v32160_v10 }
0x1f02   : > { %30407 = vmatpush3.msra.mxu0 %v33794_v27  ;;  %30428 = vmatpush3.msra.mxu1 %v13834_v45  ;;  %v14227_v45 = vld [vmem:[#allocation10 + $0xd0] sm:$0xff] }
0x1f03   : > { %30408 = vmatprep.subr.mxu0 %v32160_v10  ;;  %30451 = vmatprep.subr.mxu1 %v32160_v10 }
0x1f04   : > { %30409 = vmatpush3.msra.mxu0 %v33804_v32 }
0x1f05   : > { %30432 = vmatprep.subr.mxu0 %v32160_v10 }
0x1f9b   : > { %v13357_v41 = vpop.f32.mrf.mxu1 }
0x1f9d   : > { %v30349_v46 = vpop.f32.mrf.mxu1 }
0x1f9e   : > { %v33932_v46 = vand.u32 4294901760, %v14228_v35 }
0x1fa3   : > { %v13514_v47 = vpop.f32.mrf.mxu1 }
0x1fa4   : > { %v13266_v34 = vpop.f32.mrf.mxu0 }
0x1fa5   : > { %v30371_v50 = vpop.f32.mrf.mxu1  ;;  %v13267_v51 = vadd.f32 %v28261_v43, %v13266_v34  ;;  %v14225_v34 = vld [vmem:[#allocation10 + $0xc0] sm:$0xff] }
0x1fa6   : > { %v30338_v22 = vpop.f32.mrf.mxu0  ;;  %v33938_v50 = vand.u32 4294901760, %v14225_v34 }
0x1fa7   : > { %v13358_v9 = vadd.f32 %v13357_v41, %v13267_v51  ;;  %v14226_v41 = vld [vmem:[#allocation10 + $0xc8] sm:$0xff]  ;;  %v33941_v22 = vsub.f32 %v14228_v35, %v33932_v46 }
0x1fac   : > { %v13437_v4 = vpop.f32.mrf.mxu0 }
0x1fad   : > { %v13672_v54 = vpop.f32.mrf.mxu1  ;;  %v13438_v12 = vadd.f32 %v13437_v4, %v13358_v9  ;;  %v33951_v4 = vsub.f32 %v14225_v34, %v33938_v50 }
0x1fae   : > { %v30360_v1 = vpop.f32.mrf.mxu0 }
0x1faf   : > { %v30393_v48 = vpop.f32.mrf.mxu1  ;;  %v13515_v17 = vadd.f32 %v13514_v47, %v13438_v12  ;;  %v33936_v47 = vand.u32 4294901760, %v14226_v41 }
0x1fb0   : > { %v14426_v48 = vand.u32 4294901760, %v33951_v4 }
0x1fb1   : > { %v33947_v51 = vsub.f32 %v14226_v41, %v33936_v47 }
0x1fb3   : > { %v14419_v1 = vand.u32 4294901760, %v33947_v51 }
0x1fb5   : > { %v13597_v18 = vpop.f32.mrf.mxu0 }
0x1fb6   : > { %v13598_v19 = vadd.f32 %v13597_v18, %v13515_v17  ;;  %v14420_v18 = vsub.f32 %v33947_v51, %v14419_v1 }
0x1fb7   : > { %v30382_v24 = vpop.f32.mrf.mxu0 }
0x1fb8   : > { %v13673_v25 = vadd.f32 %v13672_v54, %v13598_v19  ;;  %v14405_v54 = vand.u32 4294901760, %v33941_v22 }
0x1fba   : > { %v13676_v39 = vmax.f32 %v13673_v25, 0.0  ;;  %v14406_v12 = vsub.f32 %v33941_v22, %v14405_v54  ;;  %v14427_v25 = vsub.f32 %v33951_v4, %v14426_v48 }
0x1fbc   : > { %v13679_v29 = vsel %vm13677_vm10, %v13676_v39, 0  ;;  %v14407_v19 = vand.u32 4294901760, %v14406_v12  ;;  %v14421_v39 = vand.u32 4294901760, %v14420_v18 }
0x1fbd   : > { %v33835_v55 = vand.u32 4294901760, %v13679_v29 }
0x1fbf   : > { %v13755_v33 = vsub.f32 %v13679_v29, %v33835_v55  ;;  %30430 = vmatmul.mubr.f32.vlgmr.msra.gmra.mxu1 %v33835_v55  ;;  %v14428_v29 = vand.u32 4294901760, %v14427_v25 }
0x1fc0   : > { %30452 = vmatpush3.msra.mxu1 %v33738_v53  ;;  %30467 = vmatprep.mubr.msk.f32.mxu1 %vm32161_vm1, %v32160_v10 }
0x1fc1   : > { %v13756_v36 = vand.u32 4294901760, %v13755_v33  ;;  %30453 = vmatprep.subr.mxu1 %v32160_v10 }
0x1fc2   : > { %30454 = vmatpush3.msra.mxu1 %v33743_v59 }
0x1fc3   : > { %v13757_v13 = vsub.f32 %v13755_v33, %v13756_v36  ;;  %30455 = vmatprep.subr.mxu1 %v32160_v10 }
0x1fc4   : > { %30456 = vmatpush3.msra.mxu1 %v33751_v5 }
0x1fc5   : > { %v13758_v52 = vand.u32 4294901760, %v13757_v13  ;;  %30457 = vmatprep.subr.mxu1 %v32160_v10 }
0x1fc6   : > { %30458 = vmatpush3.msra.mxu1 %v33762_v2 }
0x1fc7   : > { %30459 = vmatprep.subr.mxu1 %v32160_v10  ;;  %30411 = vmatmul.mubr.f32.vlgmr.msra.gmra.mxu0 %v13758_v52 }
0x1fc8   : > { %30433 = vmatpush3.msra.mxu0 %v33741_v57  ;;  %30460 = vmatpush3.msra.mxu1 %v33774_v16 }
0x1fc9   : > { %30434 = vmatprep.subr.mxu0 %v32160_v10  ;;  %30461 = vmatprep.subr.mxu1 %v32160_v10 }
0x1fca   : > { %30435 = vmatpush3.msra.mxu0 %v33749_v6  ;;  %30462 = vmatpush3.msra.mxu1 %v33781_v21 }
0x1fcb   : > { %30436 = vmatprep.subr.mxu0 %v32160_v10  ;;  %30463 = vmatprep.subr.mxu1 %v32160_v10 }
0x1fcc   : > { %30437 = vmatpush3.msra.mxu0 %v33760_v63  ;;  %30464 = vmatpush3.msra.mxu1 %v33794_v27 }
0x1fcd   : > { %30438 = vmatprep.subr.mxu0 %v32160_v10  ;;  %30465 = vmatprep.subr.mxu1 %v32160_v10 }
0x1fce   : > { %30439 = vmatpush3.msra.mxu0 %v33771_v15  ;;  %30466 = vmatpush3.msra.mxu1 %v33804_v32 }
0x1fcf   : > { %30440 = vmatprep.subr.mxu0 %v32160_v10  ;;  %30468 = vmatmul.mubr.f32.vlgmr.msra.gmra.mxu1 %v13756_v36 }
0x1fd0   : > { %30489 = vmatprep.subr.mxu1 %v32160_v10  ;;  %30441 = vmatpush3.msra.mxu0 %v33785_v23 }
0x1fd1   : > { %30490 = vmatpush3.msra.mxu1 %v33738_v53  ;;  %30442 = vmatprep.subr.mxu0 %v32160_v10 }
0x1fd2   : > { %30491 = vmatprep.subr.mxu1 %v32160_v10  ;;  %30443 = vmatpush3.msra.mxu0 %v33792_v26 }
0x1fd3   : > { %30492 = vmatpush3.msra.mxu1 %v33743_v59  ;;  %30444 = vmatprep.subr.mxu0 %v32160_v10 }
0x1fd4   : > { %30493 = vmatprep.subr.mxu1 %v32160_v10  ;;  %30445 = vmatpush3.msra.mxu0 %v33802_v31 }
0x1fd5   : > { %30494 = vmatpush3.msra.mxu1 %v33751_v5  ;;  %30446 = vmatprep.subr.mxu0 %v32160_v10 }
0x1fd6   : > { %30495 = vmatprep.subr.mxu1 %v32160_v10  ;;  %30447 = vmatpush3.msra.mxu0 %v33817_v40 }
0x1fd7   : > { %30448 = vmatprep.mubr.msk.f32.mxu0 %vm32161_vm1, %v32160_v10  ;;  %30496 = vmatpush3.msra.mxu1 %v33762_v2 }
0x1fd8   : > { %30449 = vmatmul.mubr.f32.vlgmr.msra.gmra.mxu0 %v13755_v33  ;;  %30470 = vmatprep.subr.mxu0 %v32160_v10 }
0x1fd9   : > { %30497 = vmatprep.subr.mxu1 %v32160_v10  ;;  %30471 = vmatpush3.msra.mxu0 %v13783_v49 }
0x1fda   : > { %30498 = vmatpush3.msra.mxu1 %v33774_v16  ;;  %30472 = vmatprep.subr.mxu0 %v32160_v10 }
0x1fdb   : > { %30499 = vmatprep.subr.mxu1 %v32160_v10  ;;  %30473 = vmatpush3.msra.mxu0 %v13790_v62 }
0x1fdc   : > { %30500 = vmatpush3.msra.mxu1 %v33781_v21  ;;  %30474 = vmatprep.subr.mxu0 %v32160_v10 }
0x1fdd   : > { %30501 = vmatprep.subr.mxu1 %v32160_v10  ;;  %30475 = vmatpush3.msra.mxu0 %v13797_v14 }
0x1fde   : > { %30502 = vmatpush3.msra.mxu1 %v33794_v27  ;;  %30476 = vmatprep.subr.mxu0 %v32160_v10 }
0x1fdf   : > { %30503 = vmatprep.subr.mxu1 %v32160_v10  ;;  %30477 = vmatpush3.msra.mxu0 %v13804_v20 }
0x1fe0   : > { %30504 = vmatpush3.msra.mxu1 %v33804_v32  ;;  %30505 = vmatprep.mubr.msk.f32.mxu1 %vm32161_vm1, %v32160_v10 }
0x1fe1   : > { %30478 = vmatprep.subr.mxu0 %v32160_v10  ;;  %30506 = vmatmul.mubr.f32.vlgmr.msra.gmra.mxu1 %v33835_v55 }
0x1fe2   : > { %30479 = vmatpush3.msra.mxu0 %v13811_v28  ;;  %30486 = vmatprep.mubr.msk.f32.mxu0 %vm32161_vm1, %v32160_v10  ;;  %v28262_v28 = vld [vmem:[#allocation11 + $0x5] ss:$0 sm:$0xff] }
0x1fe3   : > { %30480 = vmatprep.subr.mxu0 %v32160_v10  ;;  %30519 = vmatprep.subr.mxu1 %v32160_v10 }
0x1fe4   : > { %30481 = vmatpush3.msra.mxu0 %v13818_v30  ;;  %30527 = vmatprep.mubr.msk.f32.mxu1 %vm32161_vm1, %v32160_v10 }
0x1fe5   : > { %30482 = vmatprep.subr.mxu0 %v32160_v10  ;;  %30520 = vmatpush3.msra.mxu1 %v14407_v19 }
0x1fe6   : > { %30483 = vmatpush3.msra.mxu0 %v13825_v37  ;;  %30521 = vmatprep.subr.mxu1 %v32160_v10 }
0x1fe7   : > { %30484 = vmatprep.subr.mxu0 %v32160_v10 }
0x1fe8   : > { %30485 = vmatpush3.msra.mxu0 %v13832_v44 }
0x1fe9   : > { %30487 = vmatmul.mubr.f32.vlgmr.msra.gmra.mxu0 %v33835_v55  ;;  %30508 = vmatprep.subr.mxu0 %v32160_v10 }
0x1fea   : > { %30516 = vmatprep.mubr.msk.f32.mxu0 %vm32161_vm1, %v32160_v10  ;;  %30509 = vmatpush3.msra.mxu0 %v33932_v46 }
0x1feb   : > { %30510 = vmatprep.subr.mxu0 %v32160_v10 }
0x207f   : > { %v13871_v53 = vpop.f32.mrf.mxu1 }
0x2081   : > { %v30431_v57 = vpop.f32.mrf.mxu1 }
0x2087   : > { %v13760_v59 = vpop.f32.mrf.mxu0 }
0x2088   : > { %v13872_v14 = vadd.f32 %v13871_v53, %v13760_v59 }
0x2089   : > { %v30412_v49 = vpop.f32.mrf.mxu0 }
0x208a   : > { %v28263_v49 = vld [vmem:[#allocation11 + $0x16] ss:$0 sm:$0xff] }
0x208f   : > { %v14040_v6 = vpop.f32.mrf.mxu1 }
0x2091   : > { %v30469_v5 = vpop.f32.mrf.mxu1 }
0x2098   : > { %v13959_v62 = vpop.f32.mrf.mxu0 }
0x2099   : > { %v13960_v16 = vadd.f32 %v13959_v62, %v13872_v14  ;;  %v28264_v62 = vld [vmem:[#allocation11 + $0x17] ss:$0 sm:$0xff] }
0x209a   : > { %v30450_v63 = vpop.f32.mrf.mxu0 }
0x209b   : > { %v14041_v20 = vadd.f32 %v14040_v6, %v13960_v16 }
0x20a1   : > { %v14214_v2 = vpop.f32.mrf.mxu1 }
0x20a3   : > { %v30507_v15 = vpop.f32.mrf.mxu1 }
0x20a9   : > { %v14135_v21 = vpop.f32.mrf.mxu0 }
0x20aa   : > { %v14136_v23 = vadd.f32 %v14135_v21, %v14041_v20 }
0x20ab   : > { %v30488_v26 = vpop.f32.mrf.mxu0 }
0x20ac   : > { %v14215_v27 = vadd.f32 %v14214_v2, %v14136_v23 }
0x20ae   : > { %v14218_v30 = vadd.f32 %v14215_v27, %v33635_v58  ;;  %v33934_v58 = vand.u32 4294901760, %v14227_v45 }
0x20b0   : > { %v33926_v31 = vadd.f32 %v28262_v28, %v14218_v30  ;;  %v33944_v43 = vsub.f32 %v14227_v45, %v33934_v58  ;;  %30511 = vmatpush3.msra.mxu0 %v33934_v58 }
0x20b1   : > { %30512 = vmatprep.subr.mxu0 %v32160_v10 }
0x20b2   : > { %v14262_v32 = vsel %vm448_vm0, %v33926_v31, 0.0  ;;  %v14412_v9 = vand.u32 4294901760, %v33944_v43  ;;  %30513 = vmatpush3.msra.mxu0 %v33936_v47 }
0x20b3   : > { %14263 = vadd.xlane.f32.xlu0 %v14262_v32  ;;  %30514 = vmatprep.subr.mxu0 %v32160_v10 }
0x20b4   : > { %v14413_v17 = vsub.f32 %v33944_v43, %v14412_v9  ;;  %30515 = vmatpush3.msra.mxu0 %v33938_v50 }
0x20b5   : > { %30530 = vmatprep.subr.mxu0 %v32160_v10 }
0x20b6   : > { %v14414_v24 = vand.u32 4294901760, %v14413_v17 }
0x20b8   : > { %30522 = vmatpush3.msra.mxu1 %v14414_v24 }
0x20b9   : > { %30523 = vmatprep.subr.mxu1 %v32160_v10 }
0x20ba   : > { %30524 = vmatpush3.msra.mxu1 %v14421_v39 }
0x20bb   : > { %30525 = vmatprep.subr.mxu1 %v32160_v10 }
0x20bc   : > { %30526 = vmatpush3.msra.mxu1 %v14428_v29 }
0x20bd   : > { %30541 = vmatprep.subr.mxu1 %v32160_v10 }
0x213c   : > { %v14264_v37 = vpop.xlane.xlu0 %14263 }
0x213d   : > { %v14265_v40 = vmul.f32 0.03125, %v14264_v37 }
0x213f   : > { %v14266_v42 = vsub.f32 %v33926_v31, %v14265_v40  ;;  %v28265_v40 = vld [vmem:[#allocation11 + $0x10] ss:$0 sm:$0xff] }
0x2141   : > { %v14267_v44 = vmul.f32 %v14266_v42, %v14266_v42  ;;  %v14285_v6 = vmul.f32 %v28263_v49, %v14266_v42 }
0x2143   : > { %v14268_v56 = vsel %vm448_vm0, %v14267_v44, 0.0 }
0x2144   : > { %14269 = vadd.xlane.f32.xlu0 %v14268_v56 }
0x21cd   : > { %v14270_v55 = vpop.xlane.xlu0 %14269 }
0x21ce   : > { %v14271_v33 = vmul.f32 0.032258064, %v14270_v55 }
0x21d0   : > { %31843 = vrsqrt.f32 %v14271_v33  ;;  %vm14274_vm11 = vcmp.eq.f32.partialorder %v14271_v33, inf  ;;  %v14277_v52 = vand.u32 2147483648, %v14271_v33  ;;  %vm14276_vm12 = vcmp.eq.f32.partialorder %v14271_v33, 0.0 }
0x21dd   : > { %v31844_v36 = vpop.eup %31843 }
0x21de   : > { %v14273_v13 = vmul.f32 %v31844_v36, %v14271_v33 }
0x21e0   : > { %v14275_v53 = vsel %vm14274_vm11, %v14271_v33, %v14273_v13 }
0x21e1   : > { %v14278_v57 = vsel %vm14276_vm12, %v14277_v52, %v14275_v53 }
0x21e2   : > { %v14279_v59 = vadd.f32 1e-06, %v14278_v57 }
0x21e4   : > { %31845 = vrcp.f32 %v14279_v59 }
0x21f1   : > { %v31846_v5 = vpop.eup %31845 }
0x21f2   : > { %v14286_v63 = vmul.f32 %v31846_v5, %v14285_v6 }
0x21f4   : > { %v14291_v2 = vadd.f32 %v28264_v62, %v14286_v63 }
0x21f6   : > { %v14297_v14 = vsel %vm448_vm0, %v14291_v2, 0 }
0x21f7   : > { %v14368_v15 = vand.u32 4294901760, %v14297_v14 }
0x21f9   : > { %v14369_v16 = vsub.f32 %v14297_v14, %v14368_v15  ;;  %30528 = vmatmul.mubr.f32.vlgmr.msra.gmra.mxu1 %v14368_v15 }
0x21fa   : > { %30542 = vmatpush3.msra.mxu1 %v33932_v46  ;;  %30549 = vmatprep.mubr.msk.f32.mxu1 %vm32161_vm1, %v32160_v10 }
0x21fb   : > { %30543 = vmatprep.subr.mxu1 %v32160_v10  ;;  %v14370_v20 = vand.u32 4294901760, %v14369_v16 }
0x21fc   : > { %30544 = vmatpush3.msra.mxu1 %v33934_v58 }
0x21fd   : > { %30545 = vmatprep.subr.mxu1 %v32160_v10  ;;  %v14371_v21 = vsub.f32 %v14369_v16, %v14370_v20 }
0x21fe   : > { %30546 = vmatpush3.msra.mxu1 %v33936_v47 }
0x21ff   : > { %30547 = vmatprep.subr.mxu1 %v32160_v10  ;;  %v14372_v23 = vand.u32 4294901760, %v14371_v21 }
0x2200   : > { %30548 = vmatpush3.msra.mxu1 %v33938_v50 }
0x2201   : > { %30550 = vmatmul.mubr.f32.vlgmr.msra.gmra.mxu1 %v14370_v20  ;;  %30563 = vmatprep.subr.mxu1 %v32160_v10 }
0x2202   : > { %30517 = vmatmul.mubr.f32.vlgmr.msra.gmra.mxu0 %v14372_v23  ;;  %30564 = vmatpush3.msra.mxu1 %v33932_v46 }
0x2203   : > { %30531 = vmatpush3.msra.mxu0 %v33941_v22  ;;  %30565 = vmatprep.subr.mxu1 %v32160_v10 }
0x2204   : > { %30532 = vmatprep.subr.mxu0 %v32160_v10  ;;  %30566 = vmatpush3.msra.mxu1 %v33934_v58 }
0x2205   : > { %30533 = vmatpush3.msra.mxu0 %v33944_v43  ;;  %30567 = vmatprep.subr.mxu1 %v32160_v10 }
0x2206   : > { %30534 = vmatprep.subr.mxu0 %v32160_v10  ;;  %30568 = vmatpush3.msra.mxu1 %v33936_v47 }
0x2207   : > { %30535 = vmatpush3.msra.mxu0 %v33947_v51  ;;  %30569 = vmatprep.subr.mxu1 %v32160_v10 }
0x2208   : > { %30536 = vmatprep.subr.mxu0 %v32160_v10  ;;  %30538 = vmatprep.mubr.msk.f32.mxu0 %vm32161_vm1, %v32160_v10 }
0x2209   : > { %30537 = vmatpush3.msra.mxu0 %v33951_v4  ;;  %30570 = vmatpush3.msra.mxu1 %v33938_v50 }
0x220a   : > { %30571 = vmatprep.mubr.msk.f32.mxu1 %vm32161_vm1, %v32160_v10  ;;  %30539 = vmatmul.mubr.f32.vlgmr.msra.gmra.mxu0 %v14369_v16  ;;  %v34059_v16 = vld [vmem:[%s32458_s29] sm:$0xff] }
0x220b   : > { %30552 = vmatprep.subr.mxu0 %v32160_v10  ;;  %30572 = vmatmul.mubr.f32.vlgmr.msra.gmra.mxu1 %v14368_v15 }
0x220c   : > { %30553 = vmatpush3.msra.mxu0 %v14405_v54  ;;  %30560 = vmatprep.mubr.msk.f32.mxu0 %vm32161_vm1, %v32160_v10 }
0x220d   : > { %30554 = vmatprep.subr.mxu0 %v32160_v10  ;;  %30579 = vmatprep.subr.mxu1 %v32160_v10 }
0x220e   : > { %30555 = vmatpush3.msra.mxu0 %v14412_v9  ;;  %30581 = vmatprep.mubr.msk.f32.mxu1 %vm32161_vm1, %v32160_v10 }
0x220f   : > { %30556 = vmatprep.subr.mxu0 %v32160_v10 }
0x2210   : > { %30557 = vmatpush3.msra.mxu0 %v14419_v1 }
0x2211   : > { %30558 = vmatprep.subr.mxu0 %v32160_v10 }
0x2212   : > { %30559 = vmatpush3.msra.mxu0 %v14426_v48 }
0x2213   : > { %30561 = vmatmul.mubr.f32.vlgmr.msra.gmra.mxu0 %v14368_v15  ;;  %30574 = vmatprep.subr.mxu0 %v32160_v10 }
0x2214   : > { %30576 = vmatprep.mubr.msk.f32.mxu0 %vm32161_vm1, %v32160_v10 }
0x22b9   : > { %v14465_v26 = vpop.f32.mrf.mxu1 }
0x22bb   : > { %v30529_v27 = vpop.f32.mrf.mxu1 }
0x22c1   : > { %v14622_v28 = vpop.f32.mrf.mxu1 }
0x22c2   : > { %v14374_v30 = vpop.f32.mrf.mxu0 }
0x22c3   : > { %v30551_v32 = vpop.f32.mrf.mxu1  ;;  %v14375_v42 = vadd.f32 %v28265_v40, %v14374_v30 }
0x22c4   : > { %v30518_v37 = vpop.f32.mrf.mxu0 }
0x22c5   : > { %v14466_v35 = vadd.f32 %v14465_v26, %v14375_v42 }
0x22ca   : > { %v14545_v44 = vpop.f32.mrf.mxu0 }
0x22cb   : > { %v14780_v56 = vpop.f32.mrf.mxu1  ;;  %v14546_v46 = vadd.f32 %v14545_v44, %v14466_v35 }
0x22cc   : > { %v30540_v45 = vpop.f32.mrf.mxu0 }
0x22cd   : > { %v30573_v41 = vpop.f32.mrf.mxu1  ;;  %v14623_v58 = vadd.f32 %v14622_v28, %v14546_v46 }
0x22d3   : > { %v14705_v47 = vpop.f32.mrf.mxu0 }
0x22d4   : > { %v14706_v34 = vadd.f32 %v14705_v47, %v14623_v58 }
0x22d5   : > { %v30562_v50 = vpop.f32.mrf.mxu0 }
0x22d6   : > { %v34029_v22 = vadd.f32 %v14780_v56, %v14706_v34 }
0x22d8   : > { %14785 = vrot.lane.b32.xlu1 %v34029_v22, %s32162_s8  ;;  %v14787_v43 = vsel %vm975_vm4, %v34029_v22, 0 }
0x22d9   : > { %v14857_v51 = vand.u32 4294901760, %v14787_v43 }
0x22db   : > { %v14858_v4 = vsub.f32 %v14787_v43, %v14857_v51 }
0x22dc   : > { %15704 = vrot.lane.b32.xlu1 %v34029_v22, %s32164_s13 }
0x22dd   : > { %v14859_v54 = vand.u32 4294901760, %v14858_v4 }
0x22df   : > { %v14860_v48 = vsub.f32 %v14858_v4, %v14859_v54 }
0x22e0   : > { %15702 = vrot.lane.b32.xlu1 %v34029_v22, %s32165_s26 }
0x22e1   : > { %v14861_v18 = vand.u32 4294901760, %v14860_v48 }
0x234a   : > { %v14786_v9 = vpop.permute.xlu1 %14785 }
0x234b   : > { %v14789_v1 = vsel %vm975_vm4, %v14786_v9, 0 }
0x234c   : > { %v14822_v12 = vand.u32 4294901760, %v14789_v1 }
0x234e   : > { %v14899_v17 = vsub.f32 %v14789_v1, %v14822_v12  ;;  %30575 = vmatpush3.xpose.msra.mxu0 %v14822_v12  ;;  %v15705_v40 = vpop.permute.xlu1 %15704 }
0x234f   : > { %30584 = vmatprep.subr.mxu0 %v32160_v10  ;;  %v15708_v56 = vsel %vm975_vm4, %v15705_v40, 0 }
0x2350   : > { %v14900_v19 = vand.u32 4294901760, %v14899_v17  ;;  %v15741_v45 = vand.u32 4294901760, %v15708_v56 }
0x2351   : > { %30577 = vmatmul.mubr.f32.vlgmr.msra.gmra.mxu0 %v14861_v18 }
0x2352   : > { %v14901_v24 = vsub.f32 %v14899_v17, %v14900_v19  ;;  %30585 = vmatpush3.xpose.msra.mxu0 %v14899_v17  ;;  %30586 = vmatprep.mubr.msk.f32.mxu0 %vm32161_vm1, %v32160_v10  ;;  %v15818_v47 = vsub.f32 %v15708_v56, %v15741_v45  ;;  %v15703_v50 = vpop.permute.xlu1 %15702 }
0x2353   : > { %30594 = vmatprep.subr.mxu0 %v32160_v10 }
0x2354   : > { %v14902_v25 = vand.u32 4294901760, %v14901_v24 }
0x2355   : > { %30587 = vmatmul.mubr.f32.vlgmr.msra.gmra.mxu0 %v14858_v4  ;;  %v15819_v4 = vand.u32 4294901760, %v15818_v47 }
0x2356   : > { %30580 = vmatpush3.xpose.msra.mxu1 %v14902_v25  ;;  %30595 = vmatpush3.xpose.msra.mxu0 %v14900_v19 }
0x2357   : > { %30596 = vmatprep.mubr.msk.f32.mxu0 %vm32161_vm1, %v32160_v10  ;;  %30589 = vmatprep.subr.mxu1 %v32160_v10 }
0x2358   : > { %30604 = vmatprep.subr.mxu0 %v32160_v10 }
0x2359   : > { %30582 = vmatmul.mubr.f32.vlgmr.msra.gmra.mxu1 %v14857_v51  ;;  %30597 = vmatmul.mubr.f32.vlgmr.msra.gmra.mxu0 %v14857_v51 }
0x235a   : > { %30590 = vmatpush3.xpose.msra.mxu1 %v14822_v12  ;;  %30591 = vmatprep.mubr.msk.f32.mxu1 %vm32161_vm1, %v32160_v10 }
0x235b   : > { %30599 = vmatprep.subr.mxu1 %v32160_v10  ;;  %30606 = vmatprep.mubr.msk.f32.mxu0 %vm32161_vm1, %v32160_v10 }
0x235d   : > { %30592 = vmatmul.mubr.f32.vlgmr.msra.gmra.mxu1 %v14859_v54  ;;  %v15706_v54 = vsel %vm975_vm4, %v15703_v50, 0 }
0x235e   : > { %30600 = vmatpush3.xpose.msra.mxu1 %v14822_v12  ;;  %30601 = vmatprep.mubr.msk.f32.mxu1 %vm32161_vm1, %v32160_v10  ;;  %v15776_v1 = vand.u32 4294901760, %v15706_v54  ;;  %v15820_v12 = vsub.f32 %v15818_v47, %v15819_v4 }
0x235f   : > { %30609 = vmatprep.subr.mxu1 %v32160_v10 }
0x2360   : > { %v15777_v18 = vsub.f32 %v15706_v54, %v15776_v1  ;;  %v15821_v24 = vand.u32 4294901760, %v15820_v12 }
0x2361   : > { %30602 = vmatmul.mubr.f32.vlgmr.msra.gmra.mxu1 %v14857_v51 }
0x2362   : > { %30611 = vmatprep.mubr.msk.f32.mxu1 %vm32161_vm1, %v32160_v10  ;;  %v15778_v25 = vand.u32 4294901760, %v15777_v18 }
0x2411   : > { %v14863_v39 = vpop.f32.mrf.mxu0 }
0x2413   : > { %v30578_v29 = vpop.f32.mrf.mxu0 }
0x2415   : > { %v15013_v55 = vpop.f32.mrf.mxu0 }
0x2417   : > { %v30588_v33 = vpop.f32.mrf.mxu0 }
0x2419   : > { %v14939_v36 = vpop.f32.mrf.mxu1  ;;  %v15161_v13 = vpop.f32.mrf.mxu0 }
0x241a   : > { %v14940_v52 = vadd.f32 %v14939_v36, %v14863_v39  ;;  %v15779_v39 = vsub.f32 %v15777_v18, %v15778_v25 }
0x241b   : > { %v30583_v53 = vpop.f32.mrf.mxu1  ;;  %v30598_v57 = vpop.f32.mrf.mxu0 }
0x241c   : > { %v15014_v59 = vadd.f32 %v15013_v55, %v14940_v52  ;;  %v15780_v29 = vand.u32 4294901760, %v15779_v39 }
0x241d   : > { %v15087_v49 = vpop.f32.mrf.mxu1 }
0x241e   : > { %v15088_v6 = vadd.f32 %v15087_v49, %v15014_v59 }
0x241f   : > { %v30593_v5 = vpop.f32.mrf.mxu1 }
0x2420   : > { %v15162_v62 = vadd.f32 %v15161_v13, %v15088_v6 }
0x2421   : > { %v15233_v63 = vpop.f32.mrf.mxu1 }
0x2422   : > { %v15234_v2 = vadd.f32 %v15233_v63, %v15162_v62 }
0x2423   : > { %v30603_v14 = vpop.f32.mrf.mxu1 }
0x2424   : > { %v15237_v15 = vmul.f32 0.35355338, %v15234_v2 }
0x2426   : > { %v15238_v20 = vadd.f32 %v34059_v16, %v15237_v15 }
0x2428   : > { %v15239_v21 = vsel %vm975_vm4, %v15238_v20, -inf }
0x2429   : > { %15240 = vmax.xlane.f32.xlu0 %v15239_v21 }
0x24b2   : > { %v15241_v23 = vpop.xlane.xlu0 %15240 }
0x24b3   : > { %v15242_v26 = vsub.f32 %v15238_v20, %v15241_v23 }
0x24b5   : > { %v15243_v27 = vmul.f32 1.442695, %v15242_v26 }
0x24b7   : > { %31847 = vpow2.f32 %v15243_v27 }
0x24c4   : > { %v31848_v28 = vpop.eup %31847 }
0x24c5   : > { %v15245_v30 = vsel %vm975_vm4, %v31848_v28, 0.0 }
0x24c6   : > { %15246 = vadd.xlane.f32.xlu0 %v15245_v30 }
0x24dc   : > { %15250 = vrot.lane.b32.xlu0 %v34029_v22, %s32163_s1 }
0x254f   : > { %v15247_v32 = vpop.xlane.xlu0 %15246 }
0x2550   : > { %31849 = vrcp.f32 %v15247_v32 }
0x2553   : > { %v15251_v37 = vpop.permute.xlu0 %15250 }
0x2554   : > { %v15287_v42 = vand.u32 4294901760, %v15251_v37 }
0x2556   : > { %v15364_v44 = vsub.f32 %v15251_v37, %v15287_v42  ;;  %30605 = vmatpush3.msra.mxu0 %v15287_v42 }
0x2557   : > { %30614 = vmatprep.subr.mxu0 %v32160_v10 }
0x2558   : > { %v15365_v35 = vand.u32 4294901760, %v15364_v44 }
0x255a   : > { %v15366_v41 = vsub.f32 %v15364_v44, %v15365_v35 }
0x255c   : > { %v15367_v46 = vand.u32 4294901760, %v15366_v41 }
0x255d   : > { %v31850_v58 = vpop.eup %31849 }
0x255e   : > { %v15249_v34 = vmul.f32 %v31850_v58, %v31848_v28  ;;  %30610 = vmatpush3.msra.mxu1 %v15367_v46 }
0x255f   : > { %30619 = vmatprep.subr.mxu1 %v32160_v10 }
0x2560   : > { %v15254_v43 = vsel %vm975_vm4, %v15249_v34, 0 }
0x2561   : > { %v15322_v51 = vand.u32 4294901760, %v15254_v43 }
0x2563   : > { %v15323_v9 = vsub.f32 %v15254_v43, %v15322_v51  ;;  %30612 = vmatmul.mubr.f32.vlgmr.msra.gmra.mxu1 %v15322_v51 }
0x2564   : > { %30620 = vmatpush3.msra.mxu1 %v15287_v42  ;;  %30621 = vmatprep.mubr.msk.f32.mxu1 %vm32161_vm1, %v32160_v10 }
0x2565   : > { %30629 = vmatprep.subr.mxu1 %v32160_v10  ;;  %v15324_v48 = vand.u32 4294901760, %v15323_v9 }
0x2567   : > { %30622 = vmatmul.mubr.f32.vlgmr.msra.gmra.mxu1 %v15324_v48  ;;  %v15325_v17 = vsub.f32 %v15323_v9, %v15324_v48 }
0x2568   : > { %30630 = vmatpush3.msra.mxu1 %v15287_v42  ;;  %30631 = vmatprep.mubr.msk.f32.mxu1 %vm32161_vm1, %v32160_v10 }
0x2569   : > { %30639 = vmatprep.subr.mxu1 %v32160_v10  ;;  %v15326_v19 = vand.u32 4294901760, %v15325_v17 }
0x256b   : > { %30607 = vmatmul.mubr.f32.vlgmr.msra.gmra.mxu0 %v15326_v19  ;;  %30632 = vmatmul.mubr.f32.vlgmr.msra.gmra.mxu1 %v15322_v51 }
0x256c   : > { %30615 = vmatpush3.msra.mxu0 %v15364_v44  ;;  %30640 = vmatpush3.xpose.msra.mxu1 %v15821_v24 }
0x256d   : > { %30616 = vmatprep.mubr.msk.f32.mxu0 %vm32161_vm1, %v32160_v10  ;;  %30624 = vmatprep.subr.mxu0 %v32160_v10 }
0x256e   : > { %30641 = vmatprep.mubr.msk.f32.mxu1 %vm32161_vm1, %v32160_v10  ;;  %30649 = vmatprep.subr.mxu1 %v32160_v10 }
0x256f   : > { %30617 = vmatmul.mubr.f32.vlgmr.msra.gmra.mxu0 %v15323_v9  ;;  %30642 = vmatmul.mubr.f32.vlgmr.msra.gmra.mxu1 %v15776_v1 }
0x2570   : > { %30625 = vmatpush3.msra.mxu0 %v15365_v35  ;;  %30650 = vmatpush3.xpose.msra.mxu1 %v15741_v45 }
0x2571   : > { %30626 = vmatprep.mubr.msk.f32.mxu0 %vm32161_vm1, %v32160_v10  ;;  %30634 = vmatprep.subr.mxu0 %v32160_v10 }
0x2572   : > { %30651 = vmatprep.mubr.msk.f32.mxu1 %vm32161_vm1, %v32160_v10  ;;  %30659 = vmatprep.subr.mxu1 %v32160_v10 }
0x2573   : > { %30627 = vmatmul.mubr.f32.vlgmr.msra.gmra.mxu0 %v15322_v51  ;;  %30652 = vmatmul.mubr.f32.vlgmr.msra.gmra.mxu1 %v15778_v25 }
0x2574   : > { %30635 = vmatpush3.xpose.msra.mxu0 %v15741_v45  ;;  %30660 = vmatpush3.xpose.msra.mxu1 %v15741_v45 }
0x2575   : > { %30636 = vmatprep.mubr.msk.f32.mxu0 %vm32161_vm1, %v32160_v10  ;;  %30644 = vmatprep.subr.mxu0 %v32160_v10 }
0x2576   : > { %30661 = vmatprep.mubr.msk.f32.mxu1 %vm32161_vm1, %v32160_v10  ;;  %30669 = vmatprep.subr.mxu1 %v32160_v10 }
0x2577   : > { %30637 = vmatmul.mubr.f32.vlgmr.msra.gmra.mxu0 %v15780_v29  ;;  %30662 = vmatmul.mubr.f32.vlgmr.msra.gmra.mxu1 %v15776_v1 }
0x2578   : > { %30645 = vmatpush3.xpose.msra.mxu0 %v15818_v47  ;;  %30646 = vmatprep.mubr.msk.f32.mxu0 %vm32161_vm1, %v32160_v10 }
0x2579   : > { %30654 = vmatprep.subr.mxu0 %v32160_v10  ;;  %30671 = vmatprep.mubr.msk.f32.mxu1 %vm32161_vm1, %v32160_v10 }
0x257b   : > { %30647 = vmatmul.mubr.f32.vlgmr.msra.gmra.mxu0 %v15777_v18 }
0x257c   : > { %30655 = vmatpush3.xpose.msra.mxu0 %v15819_v4  ;;  %30656 = vmatprep.mubr.msk.f32.mxu0 %vm32161_vm1, %v32160_v10 }
0x257d   : > { %30664 = vmatprep.subr.mxu0 %v32160_v10 }
0x257f   : > { %30657 = vmatmul.mubr.f32.vlgmr.msra.gmra.mxu0 %v15776_v1 }
0x2580   : > { %30666 = vmatprep.mubr.msk.f32.mxu0 %vm32161_vm1, %v32160_v10 }
0x2623   : > { %v15404_v55 = vpop.f32.mrf.mxu1 }
0x2625   : > { %v30613_v33 = vpop.f32.mrf.mxu1 }
0x2627   : > { %v15552_v36 = vpop.f32.mrf.mxu1 }
0x2629   : > { %v30623_v13 = vpop.f32.mrf.mxu1 }
0x262b   : > { %v15328_v52 = vpop.f32.mrf.mxu0  ;;  %v15698_v53 = vpop.f32.mrf.mxu1 }
0x262c   : > { %v15405_v57 = vadd.f32 %v15404_v55, %v15328_v52 }
0x262d   : > { %v30608_v59 = vpop.f32.mrf.mxu0  ;;  %v30633_v49 = vpop.f32.mrf.mxu1 }
0x262f   : > { %v15478_v6 = vpop.f32.mrf.mxu0  ;;  %v15858_v5 = vpop.f32.mrf.mxu1 }
0x2630   : > { %v15479_v62 = vadd.f32 %v15478_v6, %v15405_v57 }
0x2631   : > { %v30618_v63 = vpop.f32.mrf.mxu0  ;;  %v30643_v2 = vpop.f32.mrf.mxu1 }
0x2632   : > { %v15553_v14 = vadd.f32 %v15552_v36, %v15479_v62 }
0x2633   : > { %v15626_v15 = vpop.f32.mrf.mxu0  ;;  %v16006_v20 = vpop.f32.mrf.mxu1 }
0x2634   : > { %v15627_v21 = vadd.f32 %v15626_v15, %v15553_v14 }
0x2635   : > { %v30628_v23 = vpop.f32.mrf.mxu0  ;;  %v30653_v26 = vpop.f32.mrf.mxu1 }
0x2636   : > { %v34105_v27 = vadd.f32 %v15698_v53, %v15627_v21  ;;  %v14234_v53 = vld [vmem:[#allocation10 + $0x108] sm:$0xff] }
0x2637   : > { %v15782_v28 = vpop.f32.mrf.mxu0  ;;  %v16152_v30 = vpop.f32.mrf.mxu1  ;;  %v16655_v57 = vand.u32 4294901760, %v14234_v53 }
0x2638   : > { %v15859_v40 = vadd.f32 %v15858_v5, %v15782_v28  ;;  %v14233_v28 = vld [vmem:[#allocation10 + $0x100] sm:$0xff] }
0x2639   : > { %v30638_v32 = vpop.f32.mrf.mxu0  ;;  %v30663_v37 = vpop.f32.mrf.mxu1  ;;  %v34135_v59 = vsub.f32 %v14234_v53, %v16655_v57 }
0x263b   : > { %v15932_v42 = vpop.f32.mrf.mxu0  ;;  %v16733_v49 = vand.u32 4294901760, %v34135_v59 }
0x263c   : > { %v15933_v44 = vadd.f32 %v15932_v42, %v15859_v40  ;;  %v17104_v40 = vand.u32 4294901760, %v14233_v28 }
0x263d   : > { %v30648_v56 = vpop.f32.mrf.mxu0  ;;  %v16734_v6 = vsub.f32 %v34135_v59, %v16733_v49 }
0x263e   : > { %v16007_v35 = vadd.f32 %v16006_v20, %v15933_v44 }
0x263f   : > { %v16080_v45 = vpop.f32.mrf.mxu0  ;;  %v16735_v5 = vand.u32 4294901760, %v16734_v6 }
0x2640   : > { %v16081_v41 = vadd.f32 %v16080_v45, %v16007_v35  ;;  %v34141_v45 = vsub.f32 %v14233_v28, %v17104_v40 }
0x2641   : > { %v30658_v46 = vpop.f32.mrf.mxu0 }
0x2642   : > { %v16153_v58 = vadd.f32 %v16152_v30, %v16081_v41 }
0x2644   : > { %v16156_v47 = vmul.f32 0.35355338, %v16153_v58 }
0x2646   : > { %v16157_v34 = vadd.f32 %v34059_v16, %v16156_v47 }
0x2648   : > { %v16158_v50 = vsel %vm975_vm4, %v16157_v34, -inf }
0x2649   : > { %16159 = vmax.xlane.f32.xlu1 %v16158_v50  ;;  %v17071_v50 = vsel %vm975_vm4, %v34105_v27, 0 }
0x265a   : > { %16169 = vrot.lane.b32.xlu1 %v34029_v22, %s32166_s19 }
0x265e   : > { %17519 = vrot.lane.b32.xlu1 %v34029_v22, %s32168_s17 }
0x26d2   : > { %v16160_v43 = vpop.xlane.xlu1 %16159 }
0x26d3   : > { %v16161_v51 = vsub.f32 %v16157_v34, %v16160_v43  ;;  %v17182_v34 = vand.u32 4294901760, %v34141_v45 }
0x26d5   : > { %v16162_v4 = vmul.f32 1.442695, %v16161_v51 }
0x26d6   : > { %v16170_v54 = vpop.permute.xlu1 %16169 }
0x26d7   : > { %31851 = vpow2.f32 %v16162_v4  ;;  %v16206_v9 = vand.u32 4294901760, %v16170_v54  ;;  %v34150_v4 = vand.u32 4294901760, %v17071_v50 }
0x26d9   : > { %v16283_v1 = vsub.f32 %v16170_v54, %v16206_v9  ;;  %30665 = vmatpush3.msra.mxu0 %v16206_v9 }
0x26da   : > { %30674 = vmatprep.subr.mxu0 %v32160_v10 }
0x26db   : > { %v16284_v48 = vand.u32 4294901760, %v16283_v1 }
0x26dd   : > { %v16285_v12 = vsub.f32 %v16283_v1, %v16284_v48 }
0x26df   : > { %v16286_v17 = vand.u32 4294901760, %v16285_v12 }
0x26e1   : > { %30670 = vmatpush3.msra.mxu1 %v16286_v17 }
0x26e2   : > { %30679 = vmatprep.subr.mxu1 %v32160_v10 }
0x26e4   : > { %v31852_v18 = vpop.eup %31851 }
0x26e5   : > { %v16164_v19 = vsel %vm975_vm4, %v31852_v18, 0.0 }
0x26e6   : > { %16165 = vadd.xlane.f32.xlu0 %v16164_v19  ;;  %v17520_v19 = vpop.permute.xlu1 %17519 }
0x26fc   : > { %17521 = vrot.lane.b32.xlu0 %v34029_v22, %s32167_s16 }
0x276f   : > { %v16166_v24 = vpop.xlane.xlu0 %16165 }
0x2770   : > { %31853 = vrcp.f32 %v16166_v24 }
0x2773   : > { %v17522_v46 = vpop.permute.xlu0 %17521 }
0x2774   : > { %v17525_v43 = vsel %vm975_vm4, %v17522_v46, 0 }
0x277d   : > { %v31854_v25 = vpop.eup %31853 }
0x277e   : > { %v16168_v39 = vmul.f32 %v31854_v25, %v31852_v18  ;;  %v17523_v25 = vsel %vm975_vm4, %v17520_v19, 0 }
0x2780   : > { %v16173_v29 = vsel %vm975_vm4, %v16168_v39, 0 }
0x2781   : > { %v16241_v55 = vand.u32 4294901760, %v16173_v29 }
0x2783   : > { %v16242_v33 = vsub.f32 %v16173_v29, %v16241_v55  ;;  %30672 = vmatmul.mubr.f32.vlgmr.msra.gmra.mxu1 %v16241_v55 }
0x2784   : > { %30680 = vmatpush3.msra.mxu1 %v16206_v9  ;;  %30681 = vmatprep.mubr.msk.f32.mxu1 %vm32161_vm1, %v32160_v10 }
0x2785   : > { %30689 = vmatprep.subr.mxu1 %v32160_v10  ;;  %v16243_v36 = vand.u32 4294901760, %v16242_v33 }
0x2787   : > { %30682 = vmatmul.mubr.f32.vlgmr.msra.gmra.mxu1 %v16243_v36  ;;  %v16244_v13 = vsub.f32 %v16242_v33, %v16243_v36 }
0x2788   : > { %30690 = vmatpush3.msra.mxu1 %v16206_v9  ;;  %30691 = vmatprep.mubr.msk.f32.mxu1 %vm32161_vm1, %v32160_v10  ;;  %v17183_v9 = vsub.f32 %v34141_v45, %v17182_v34 }
0x2789   : > { %v16245_v52 = vand.u32 4294901760, %v16244_v13  ;;  %30699 = vmatprep.subr.mxu1 %v32160_v10 }
0x278a   : > { %v17184_v17 = vand.u32 4294901760, %v17183_v9 }
0x278b   : > { %30667 = vmatmul.mubr.f32.vlgmr.msra.gmra.mxu0 %v16245_v52  ;;  %30692 = vmatmul.mubr.f32.vlgmr.msra.gmra.mxu1 %v16241_v55 }
0x278c   : > { %30675 = vmatpush3.msra.mxu0 %v16283_v1  ;;  %30676 = vmatprep.mubr.msk.f32.mxu0 %vm32161_vm1, %v32160_v10  ;;  %v34156_v1 = vand.u32 4294901760, %v17525_v43 }
0x278d   : > { %30684 = vmatprep.subr.mxu0 %v32160_v10  ;;  %30701 = vmatprep.mubr.msk.f32.mxu1 %vm32161_vm1, %v32160_v10 }
0x278e   : > { %30700 = vmatpush3.msra.mxu1 %v16735_v5  ;;  %v34163_v18 = vsub.f32 %v17525_v43, %v34156_v1 }
0x278f   : > { %30677 = vmatmul.mubr.f32.vlgmr.msra.gmra.mxu0 %v16242_v33  ;;  %30709 = vmatprep.subr.mxu1 %v32160_v10 }
0x2790   : > { %30685 = vmatpush3.msra.mxu0 %v16284_v48  ;;  %30686 = vmatprep.mubr.msk.f32.mxu0 %vm32161_vm1, %v32160_v10  ;;  %v17140_v48 = vsub.f32 %v17071_v50, %v34150_v4  ;;  %v17636_v39 = vand.u32 4294901760, %v34163_v18 }
0x2791   : > { %30694 = vmatprep.subr.mxu0 %v32160_v10 }
0x2792   : > { %v17141_v24 = vand.u32 4294901760, %v17140_v48  ;;  %v17637_v33 = vsub.f32 %v34163_v18, %v17636_v39 }
0x2793   : > { %30687 = vmatmul.mubr.f32.vlgmr.msra.gmra.mxu0 %v16241_v55  ;;  %v17593_v55 = vand.u32 4294901760, %v17523_v25 }
0x2794   : > { %30696 = vmatprep.mubr.msk.f32.mxu0 %vm32161_vm1, %v32160_v10  ;;  %30695 = vmatpush3.msra.mxu0 %v16655_v57  ;;  %v17142_v29 = vsub.f32 %v17140_v48, %v17141_v24  ;;  %v17638_v52 = vand.u32 4294901760, %v17637_v33 }
0x2795   : > { %30704 = vmatprep.subr.mxu0 %v32160_v10  ;;  %v17594_v13 = vsub.f32 %v17523_v25, %v17593_v55 }
0x2796   : > { %v17143_v36 = vand.u32 4294901760, %v17142_v29 }
0x2797   : > { %v17595_v53 = vand.u32 4294901760, %v17594_v13 }
0x2843   : > { %v16323_v62 = vpop.f32.mrf.mxu1 }
0x2845   : > { %v30673_v63 = vpop.f32.mrf.mxu1 }
0x2847   : > { %v16471_v2 = vpop.f32.mrf.mxu1 }
0x2849   : > { %v30683_v14 = vpop.f32.mrf.mxu1 }
0x284b   : > { %v16247_v15 = vpop.f32.mrf.mxu0  ;;  %v16617_v20 = vpop.f32.mrf.mxu1 }
0x284c   : > { %v16324_v26 = vadd.f32 %v16323_v62, %v16247_v15 }
0x284d   : > { %v30668_v21 = vpop.f32.mrf.mxu0  ;;  %v30693_v23 = vpop.f32.mrf.mxu1 }
0x284f   : > { %v16397_v30 = vpop.f32.mrf.mxu0 }
0x2850   : > { %v16398_v32 = vadd.f32 %v16397_v30, %v16324_v26 }
0x2851   : > { %v30678_v37 = vpop.f32.mrf.mxu0 }
0x2852   : > { %v16472_v42 = vadd.f32 %v16471_v2, %v16398_v32 }
0x2853   : > { %v16545_v44 = vpop.f32.mrf.mxu0 }
0x2854   : > { %v16546_v56 = vadd.f32 %v16545_v44, %v16472_v42 }
0x2855   : > { %v30688_v35 = vpop.f32.mrf.mxu0 }
0x2856   : > { %v16618_v41 = vadd.f32 %v16617_v20, %v16546_v56 }
0x2858   : > { %v16622_v58 = vsel %vm975_vm4, %v16618_v41, 0 }
0x2859   : > { %v16690_v47 = vand.u32 4294901760, %v16622_v58 }
0x285b   : > { %v16691_v51 = vsub.f32 %v16622_v58, %v16690_v47  ;;  %30702 = vmatmul.mubr.f32.vlgmr.msra.gmra.mxu1 %v16690_v47 }
0x285c   : > { %30710 = vmatpush3.msra.mxu1 %v16655_v57  ;;  %30711 = vmatprep.mubr.msk.f32.mxu1 %vm32161_vm1, %v32160_v10 }
0x285d   : > { %v16692_v54 = vand.u32 4294901760, %v16691_v51  ;;  %30719 = vmatprep.subr.mxu1 %v32160_v10 }
0x285f   : > { %v16693_v27 = vsub.f32 %v16691_v51, %v16692_v54  ;;  %30712 = vmatmul.mubr.f32.vlgmr.msra.gmra.mxu1 %v16692_v54 }
0x2860   : > { %30720 = vmatpush3.msra.mxu1 %v16655_v57  ;;  %30721 = vmatprep.mubr.msk.f32.mxu1 %vm32161_vm1, %v32160_v10  ;;  %v17596_v57 = vsub.f32 %v17594_v13, %v17595_v53 }
0x2861   : > { %v16694_v12 = vand.u32 4294901760, %v16693_v27  ;;  %30729 = vmatprep.subr.mxu1 %v32160_v10 }
0x2863   : > { %30697 = vmatmul.mubr.f32.vlgmr.msra.gmra.mxu0 %v16694_v12  ;;  %30722 = vmatmul.mubr.f32.vlgmr.msra.gmra.mxu1 %v16690_v47 }
0x2864   : > { %30705 = vmatpush3.msra.mxu0 %v34135_v59  ;;  %30706 = vmatprep.mubr.msk.f32.mxu0 %vm32161_vm1, %v32160_v10  ;;  %v17597_v59 = vand.u32 4294901760, %v17596_v57 }
0x2865   : > { %30730 = vmatpush3.msra.mxu1 %v17184_v17  ;;  %30731 = vmatprep.mubr.msk.f32.mxu1 %vm32161_vm1, %v32160_v10 }
0x2866   : > { %30714 = vmatprep.subr.mxu0 %v32160_v10  ;;  %30739 = vmatprep.subr.mxu1 %v32160_v10 }
0x2867   : > { %30707 = vmatmul.mubr.f32.vlgmr.msra.gmra.mxu0 %v16691_v51  ;;  %30732 = vmatmul.mubr.f32.vlgmr.msra.gmra.mxu1 %v34150_v4 }
0x2868   : > { %30715 = vmatpush3.msra.mxu0 %v16733_v49  ;;  %30716 = vmatprep.mubr.msk.f32.mxu0 %vm32161_vm1, %v32160_v10 }
0x2869   : > { %30740 = vmatpush3.msra.mxu1 %v17104_v40  ;;  %30741 = vmatprep.mubr.msk.f32.mxu1 %vm32161_vm1, %v32160_v10 }
0x286a   : > { %30724 = vmatprep.subr.mxu0 %v32160_v10  ;;  %30749 = vmatprep.subr.mxu1 %v32160_v10 }
0x286b   : > { %30717 = vmatmul.mubr.f32.vlgmr.msra.gmra.mxu0 %v16690_v47  ;;  %30742 = vmatmul.mubr.f32.vlgmr.msra.gmra.mxu1 %v17141_v24 }
0x286c   : > { %30725 = vmatpush3.msra.mxu0 %v17104_v40  ;;  %30750 = vmatpush3.msra.mxu1 %v17104_v40 }
0x286d   : > { %30726 = vmatprep.mubr.msk.f32.mxu0 %vm32161_vm1, %v32160_v10  ;;  %30751 = vmatprep.mubr.msk.f32.mxu1 %vm32161_vm1, %v32160_v10 }
0x286e   : > { %30759 = vmatprep.subr.mxu1 %v32160_v10  ;;  %30734 = vmatprep.subr.mxu0 %v32160_v10 }
0x286f   : > { %30727 = vmatmul.mubr.f32.vlgmr.msra.gmra.mxu0 %v17143_v36  ;;  %30752 = vmatmul.mubr.f32.vlgmr.msra.gmra.mxu1 %v34150_v4 }
0x2870   : > { %30760 = vmatpush3.xpose.msra.mxu1 %v17638_v52  ;;  %30735 = vmatpush3.msra.mxu0 %v34141_v45 }
0x2871   : > { %30736 = vmatprep.mubr.msk.f32.mxu0 %vm32161_vm1, %v32160_v10  ;;  %30761 = vmatprep.mubr.msk.f32.mxu1 %vm32161_vm1, %v32160_v10 }
0x2872   : > { %30769 = vmatprep.subr.mxu1 %v32160_v10  ;;  %30744 = vmatprep.subr.mxu0 %v32160_v10 }
0x2873   : > { %30737 = vmatmul.mubr.f32.vlgmr.msra.gmra.mxu0 %v17140_v48  ;;  %30762 = vmatmul.mubr.f32.vlgmr.msra.gmra.mxu1 %v17593_v55 }
0x2874   : > { %30770 = vmatpush3.xpose.msra.mxu1 %v34156_v1  ;;  %30745 = vmatpush3.msra.mxu0 %v17182_v34 }
0x2875   : > { %30746 = vmatprep.mubr.msk.f32.mxu0 %vm32161_vm1, %v32160_v10  ;;  %30754 = vmatprep.subr.mxu0 %v32160_v10 }
0x2876   : > { %30771 = vmatprep.mubr.msk.f32.mxu1 %vm32161_vm1, %v32160_v10  ;;  %30779 = vmatprep.subr.mxu1 %v32160_v10 }
0x2877   : > { %30747 = vmatmul.mubr.f32.vlgmr.msra.gmra.mxu0 %v34150_v4  ;;  %30772 = vmatmul.mubr.f32.vlgmr.msra.gmra.mxu1 %v17595_v53 }
0x2878   : > { %30755 = vmatpush3.xpose.msra.mxu0 %v34156_v1  ;;  %30780 = vmatpush3.xpose.msra.mxu1 %v34156_v1 }
0x2879   : > { %30756 = vmatprep.mubr.msk.f32.mxu0 %vm32161_vm1, %v32160_v10  ;;  %30764 = vmatprep.subr.mxu0 %v32160_v10 }
0x287a   : > { %30781 = vmatprep.mubr.msk.f32.mxu1 %vm32161_vm1, %v32160_v10  ;;  %30789 = vmatprep.subr.mxu1 %v32160_v10 }
0x287b   : > { %30757 = vmatmul.mubr.f32.vlgmr.msra.gmra.mxu0 %v17597_v59  ;;  %30782 = vmatmul.mubr.f32.vlgmr.msra.gmra.mxu1 %v17593_v55 }
0x287c   : > { %30765 = vmatpush3.xpose.msra.mxu0 %v34163_v18  ;;  %30766 = vmatprep.mubr.msk.f32.mxu0 %vm32161_vm1, %v32160_v10 }
0x287d   : > { %30774 = vmatprep.subr.mxu0 %v32160_v10  ;;  %30791 = vmatprep.mubr.msk.f32.mxu1 %vm32161_vm1, %v32160_v10 }
0x287f   : > { %30767 = vmatmul.mubr.f32.vlgmr.msra.gmra.mxu0 %v17594_v13 }
0x2880   : > { %30775 = vmatpush3.xpose.msra.mxu0 %v17636_v39  ;;  %30776 = vmatprep.mubr.msk.f32.mxu0 %vm32161_vm1, %v32160_v10 }
0x2881   : > { %30784 = vmatprep.subr.mxu0 %v32160_v10 }
0x2883   : > { %30777 = vmatmul.mubr.f32.vlgmr.msra.gmra.mxu0 %v17593_v55 }
0x2884   : > { %30786 = vmatprep.mubr.msk.f32.mxu0 %vm32161_vm1, %v32160_v10 }
0x291b   : > { %v16772_v49 = vpop.f32.mrf.mxu1 }
0x291d   : > { %v30703_v6 = vpop.f32.mrf.mxu1 }
0x291f   : > { %v16920_v5 = vpop.f32.mrf.mxu1 }
0x2921   : > { %v30713_v62 = vpop.f32.mrf.mxu1 }
0x2923   : > { %v16696_v63 = vpop.f32.mrf.mxu0  ;;  %v17066_v2 = vpop.f32.mrf.mxu1 }
0x2924   : > { %v16773_v14 = vadd.f32 %v16772_v49, %v16696_v63 }
0x2925   : > { %v30698_v15 = vpop.f32.mrf.mxu0  ;;  %v30723_v20 = vpop.f32.mrf.mxu1 }
0x2927   : > { %v16846_v21 = vpop.f32.mrf.mxu0  ;;  %v17221_v23 = vpop.f32.mrf.mxu1 }
0x2928   : > { %v16847_v26 = vadd.f32 %v16846_v21, %v16773_v14 }
0x2929   : > { %v30708_v28 = vpop.f32.mrf.mxu0  ;;  %v30733_v30 = vpop.f32.mrf.mxu1 }
0x292a   : > { %v16921_v32 = vadd.f32 %v16920_v5, %v16847_v26 }
0x292b   : > { %v16994_v37 = vpop.f32.mrf.mxu0  ;;  %v17369_v40 = vpop.f32.mrf.mxu1 }
0x292c   : > { %v16995_v42 = vadd.f32 %v16994_v37, %v16921_v32 }
0x292d   : > { %v30718_v44 = vpop.f32.mrf.mxu0  ;;  %v30743_v56 = vpop.f32.mrf.mxu1 }
0x292e   : > { %v17067_v35 = vadd.f32 %v17066_v2, %v16995_v42 }
0x292f   : > { %v17145_v45 = vpop.f32.mrf.mxu0  ;;  %v17515_v41 = vpop.f32.mrf.mxu1 }
0x2930   : > { %v17146_v46 = vadd.f32 %v17145_v45, %v17067_v35 }
0x2931   : > { %v30728_v58 = vpop.f32.mrf.mxu0  ;;  %v30753_v47 = vpop.f32.mrf.mxu1 }
0x2932   : > { %v17222_v34 = vadd.f32 %v17221_v23, %v17146_v46 }
0x2933   : > { %v17295_v50 = vpop.f32.mrf.mxu0  ;;  %v17675_v43 = vpop.f32.mrf.mxu1 }
0x2934   : > { %v17296_v51 = vadd.f32 %v17295_v50, %v17222_v34 }
0x2935   : > { %v30738_v4 = vpop.f32.mrf.mxu0  ;;  %v30763_v54 = vpop.f32.mrf.mxu1 }
0x2936   : > { %v17370_v9 = vadd.f32 %v17369_v40, %v17296_v51 }
0x2937   : > { %v17443_v1 = vpop.f32.mrf.mxu0  ;;  %v17823_v27 = vpop.f32.mrf.mxu1 }
0x2938   : > { %v17444_v48 = vadd.f32 %v17443_v1, %v17370_v9 }
0x2939   : > { %v30748_v12 = vpop.f32.mrf.mxu0  ;;  %v30773_v17 = vpop.f32.mrf.mxu1 }
0x293a   : > { %v34225_v18 = vadd.f32 %v17515_v41, %v17444_v48  ;;  %v14235_v41 = vld [vmem:[#allocation10 + $0x110] sm:$0xff] }
0x293b   : > { %v17599_v19 = vpop.f32.mrf.mxu0  ;;  %v17969_v24 = vpop.f32.mrf.mxu1  ;;  %v18472_v46 = vand.u32 4294901760, %v14235_v41 }
0x293c   : > { %v17676_v29 = vadd.f32 %v17675_v43, %v17599_v19 }
0x293d   : > { %v30758_v25 = vpop.f32.mrf.mxu0  ;;  %v30783_v39 = vpop.f32.mrf.mxu1  ;;  %v18549_v58 = vsub.f32 %v14235_v41, %v18472_v46 }
0x293f   : > { %v17749_v55 = vpop.f32.mrf.mxu0  ;;  %v18550_v47 = vand.u32 4294901760, %v18549_v58 }
0x2940   : > { %v17750_v33 = vadd.f32 %v17749_v55, %v17676_v29 }
0x2941   : > { %v30768_v36 = vpop.f32.mrf.mxu0  ;;  %v18551_v34 = vsub.f32 %v18549_v58, %v18550_v47 }
0x2942   : > { %v17824_v13 = vadd.f32 %v17823_v27, %v17750_v33 }
0x2943   : > { %v17897_v52 = vpop.f32.mrf.mxu0  ;;  %v18552_v50 = vand.u32 4294901760, %v18551_v34 }
0x2944   : > { %v17898_v53 = vadd.f32 %v17897_v52, %v17824_v13 }
0x2945   : > { %v30778_v57 = vpop.f32.mrf.mxu0 }
0x2946   : > { %v17970_v59 = vadd.f32 %v17969_v24, %v17898_v53 }
0x2948   : > { %v17973_v49 = vmul.f32 0.35355338, %v17970_v59 }
0x294a   : > { %v17974_v6 = vadd.f32 %v34059_v16, %v17973_v49 }
0x294c   : > { %v17975_v5 = vsel %vm975_vm4, %v17974_v6, -inf }
0x294d   : > { %17976 = vmax.xlane.f32.xlu1 %v17975_v5 }
0x295e   : > { %18890 = vrot.lane.b32.xlu1 %v34029_v22, %s32170_s30 }
0x2962   : > { %18888 = vrot.lane.b32.xlu1 %v34029_v22, %s32171_s4 }
0x29d6   : > { %v17977_v62 = vpop.xlane.xlu1 %17976 }
0x29d7   : > { %v17978_v63 = vsub.f32 %v17974_v6, %v17977_v62 }
0x29d9   : > { %v17979_v2 = vmul.f32 1.442695, %v17978_v63 }
0x29da   : > { %v18891_v27 = vpop.permute.xlu1 %18890 }
0x29db   : > { %31855 = vpow2.f32 %v17979_v2  ;;  %v18894_v19 = vsel %vm975_vm4, %v18891_v27, 0 }
0x29dc   : > { %v18927_v29 = vand.u32 4294901760, %v18894_v19 }
0x29de   : > { %v19004_v52 = vsub.f32 %v18894_v19, %v18927_v29  ;;  %v18889_v57 = vpop.permute.xlu1 %18888 }
0x29df   : > { %v18892_v5 = vsel %vm975_vm4, %v18889_v57, 0  ;;  %v31899_v57 = vld [vmem:[%s32458_s29] sm:$0xff]  ;;  %s28072_s29 = scalar_lea.hbm %s35378_s6, %s28278_s12 }
0x29e0   : > { %v19005_v6 = vand.u32 4294901760, %v19004_v52  ;;  %v18962_v63 = vand.u32 4294901760, %v18892_v5 }
0x29e8   : > { %v31856_v14 = vpop.eup %31855 }
0x29e9   : > { %v17981_v15 = vsel %vm975_vm4, %v31856_v14, 0.0 }
0x29ea   : > { %17982 = vadd.xlane.f32.xlu0 %v17981_v15 }
0x2a00   : > { %17986 = vrot.lane.b32.xlu0 %v34029_v22, %s32169_s7 }
0x2a73   : > { %v17983_v16 = vpop.xlane.xlu0 %17982 }
0x2a74   : > { %31857 = vrcp.f32 %v17983_v16  ;;  %v18963_v16 = vsub.f32 %v18892_v5, %v18962_v63 }
0x2a77   : > { %v17987_v20 = vpop.permute.xlu0 %17986 }
0x2a78   : > { %v18023_v21 = vand.u32 4294901760, %v17987_v20 }
0x2a7a   : > { %v18100_v23 = vsub.f32 %v17987_v20, %v18023_v21  ;;  %30785 = vmatpush3.msra.mxu0 %v18023_v21 }
0x2a7b   : > { %30794 = vmatprep.subr.mxu0 %v32160_v10 }
0x2a7c   : > { %v18101_v26 = vand.u32 4294901760, %v18100_v23 }
0x2a7e   : > { %v18102_v28 = vsub.f32 %v18100_v23, %v18101_v26 }
0x2a80   : > { %v18103_v30 = vand.u32 4294901760, %v18102_v28 }
0x2a81   : > { %v31858_v32 = vpop.eup %31857 }
0x2a82   : > { %v17985_v37 = vmul.f32 %v31858_v32, %v31856_v14  ;;  %30790 = vmatpush3.msra.mxu1 %v18103_v30  ;;  %v19006_v14 = vsub.f32 %v19004_v52, %v19005_v6 }
0x2a83   : > { %30799 = vmatprep.subr.mxu1 %v32160_v10 }
0x2a84   : > { %v17990_v40 = vsel %vm975_vm4, %v17985_v37, 0 }
0x2a85   : > { %v18058_v42 = vand.u32 4294901760, %v17990_v40 }
0x2a87   : > { %v18059_v44 = vsub.f32 %v17990_v40, %v18058_v42  ;;  %30792 = vmatmul.mubr.f32.vlgmr.msra.gmra.mxu1 %v18058_v42 }
0x2a88   : > { %30800 = vmatpush3.msra.mxu1 %v18023_v21  ;;  %30801 = vmatprep.mubr.msk.f32.mxu1 %vm32161_vm1, %v32160_v10 }
0x2a89   : > { %30809 = vmatprep.subr.mxu1 %v32160_v10  ;;  %v18060_v56 = vand.u32 4294901760, %v18059_v44 }
0x2a8b   : > { %30802 = vmatmul.mubr.f32.vlgmr.msra.gmra.mxu1 %v18060_v56  ;;  %v18061_v35 = vsub.f32 %v18059_v44, %v18060_v56 }
0x2a8c   : > { %30810 = vmatpush3.msra.mxu1 %v18023_v21  ;;  %30811 = vmatprep.mubr.msk.f32.mxu1 %vm32161_vm1, %v32160_v10  ;;  %v19007_v21 = vand.u32 4294901760, %v19006_v14 }
0x2a8d   : > { %v18062_v45 = vand.u32 4294901760, %v18061_v35  ;;  %30819 = vmatprep.subr.mxu1 %v32160_v10 }
0x2a8f   : > { %30787 = vmatmul.mubr.f32.vlgmr.msra.gmra.mxu0 %v18062_v45  ;;  %30812 = vmatmul.mubr.f32.vlgmr.msra.gmra.mxu1 %v18058_v42 }
0x2a90   : > { %30795 = vmatpush3.msra.mxu0 %v18100_v23  ;;  %30796 = vmatprep.mubr.msk.f32.mxu0 %vm32161_vm1, %v32160_v10  ;;  %v18964_v23 = vand.u32 4294901760, %v18963_v16 }
0x2a91   : > { %30804 = vmatprep.subr.mxu0 %v32160_v10  ;;  %30821 = vmatprep.mubr.msk.f32.mxu1 %vm32161_vm1, %v32160_v10 }
0x2a92   : > { %30820 = vmatpush3.msra.mxu1 %v18552_v50 }
0x2a93   : > { %30797 = vmatmul.mubr.f32.vlgmr.msra.gmra.mxu0 %v18059_v44  ;;  %30829 = vmatprep.subr.mxu1 %v32160_v10 }
0x2a94   : > { %30805 = vmatpush3.msra.mxu0 %v18101_v26  ;;  %30806 = vmatprep.mubr.msk.f32.mxu0 %vm32161_vm1, %v32160_v10  ;;  %v18965_v26 = vsub.f32 %v18963_v16, %v18964_v23 }
0x2a95   : > { %30814 = vmatprep.subr.mxu0 %v32160_v10 }
0x2a96   : > { %v18966_v28 = vand.u32 4294901760, %v18965_v26 }
0x2a97   : > { %30807 = vmatmul.mubr.f32.vlgmr.msra.gmra.mxu0 %v18058_v42 }
0x2a98   : > { %30816 = vmatprep.mubr.msk.f32.mxu0 %vm32161_vm1, %v32160_v10  ;;  %30815 = vmatpush3.msra.mxu0 %v18472_v46 }
0x2a99   : > { %30824 = vmatprep.subr.mxu0 %v32160_v10 }
0x2b47   : > { %v18140_v43 = vpop.f32.mrf.mxu1 }
0x2b49   : > { %v30793_v51 = vpop.f32.mrf.mxu1 }
0x2b4b   : > { %v18288_v4 = vpop.f32.mrf.mxu1 }
0x2b4d   : > { %v30803_v54 = vpop.f32.mrf.mxu1 }
0x2b4f   : > { %v18064_v9 = vpop.f32.mrf.mxu0  ;;  %v18434_v1 = vpop.f32.mrf.mxu1 }
0x2b50   : > { %v18141_v17 = vadd.f32 %v18140_v43, %v18064_v9 }
0x2b51   : > { %v30788_v48 = vpop.f32.mrf.mxu0  ;;  %v30813_v12 = vpop.f32.mrf.mxu1 }
0x2b53   : > { %v18214_v24 = vpop.f32.mrf.mxu0 }
0x2b54   : > { %v18215_v25 = vadd.f32 %v18214_v24, %v18141_v17 }
0x2b55   : > { %v30798_v39 = vpop.f32.mrf.mxu0 }
0x2b56   : > { %v18289_v55 = vadd.f32 %v18288_v4, %v18215_v25 }
0x2b57   : > { %v18362_v33 = vpop.f32.mrf.mxu0 }
0x2b58   : > { %v18363_v36 = vadd.f32 %v18362_v33, %v18289_v55 }
0x2b59   : > { %v30808_v13 = vpop.f32.mrf.mxu0 }
0x2b5a   : > { %v18435_v53 = vadd.f32 %v18434_v1, %v18363_v36 }
0x2b5c   : > { %v18439_v59 = vsel %vm975_vm4, %v18435_v53, 0 }
0x2b5d   : > { %v18507_v49 = vand.u32 4294901760, %v18439_v59 }
0x2b5f   : > { %v18508_v62 = vsub.f32 %v18439_v59, %v18507_v49  ;;  %30822 = vmatmul.mubr.f32.vlgmr.msra.gmra.mxu1 %v18507_v49 }
0x2b60   : > { %30830 = vmatpush3.msra.mxu1 %v18472_v46  ;;  %30831 = vmatprep.mubr.msk.f32.mxu1 %vm32161_vm1, %v32160_v10 }
0x2b61   : > { %v18509_v2 = vand.u32 4294901760, %v18508_v62  ;;  %30839 = vmatprep.subr.mxu1 %v32160_v10 }
0x2b63   : > { %v18510_v15 = vsub.f32 %v18508_v62, %v18509_v2  ;;  %30832 = vmatmul.mubr.f32.vlgmr.msra.gmra.mxu1 %v18509_v2 }
0x2b64   : > { %30840 = vmatpush3.msra.mxu1 %v18472_v46  ;;  %30841 = vmatprep.mubr.msk.f32.mxu1 %vm32161_vm1, %v32160_v10 }
0x2b65   : > { %v18511_v20 = vand.u32 4294901760, %v18510_v15  ;;  %30849 = vmatprep.subr.mxu1 %v32160_v10 }
0x2b67   : > { %30817 = vmatmul.mubr.f32.vlgmr.msra.gmra.mxu0 %v18511_v20  ;;  %30842 = vmatmul.mubr.f32.vlgmr.msra.gmra.mxu1 %v18507_v49 }
0x2b68   : > { %30850 = vmatpush3.xpose.msra.mxu1 %v19007_v21  ;;  %30825 = vmatpush3.msra.mxu0 %v18549_v58 }
0x2b69   : > { %30826 = vmatprep.mubr.msk.f32.mxu0 %vm32161_vm1, %v32160_v10  ;;  %30851 = vmatprep.mubr.msk.f32.mxu1 %vm32161_vm1, %v32160_v10 }
0x2b6a   : > { %30859 = vmatprep.subr.mxu1 %v32160_v10  ;;  %30834 = vmatprep.subr.mxu0 %v32160_v10 }
0x2b6b   : > { %30827 = vmatmul.mubr.f32.vlgmr.msra.gmra.mxu0 %v18508_v62  ;;  %30852 = vmatmul.mubr.f32.vlgmr.msra.gmra.mxu1 %v18962_v63 }
0x2b6c   : > { %30860 = vmatpush3.xpose.msra.mxu1 %v18927_v29  ;;  %30835 = vmatpush3.msra.mxu0 %v18550_v47 }
0x2b6d   : > { %30836 = vmatprep.mubr.msk.f32.mxu0 %vm32161_vm1, %v32160_v10  ;;  %30844 = vmatprep.subr.mxu0 %v32160_v10 }
0x2b6e   : > { %30861 = vmatprep.mubr.msk.f32.mxu1 %vm32161_vm1, %v32160_v10  ;;  %30869 = vmatprep.subr.mxu1 %v32160_v10 }
0x2b6f   : > { %30837 = vmatmul.mubr.f32.vlgmr.msra.gmra.mxu0 %v18507_v49  ;;  %30862 = vmatmul.mubr.f32.vlgmr.msra.gmra.mxu1 %v18964_v23 }
0x2b70   : > { %30845 = vmatpush3.xpose.msra.mxu0 %v18927_v29  ;;  %30870 = vmatpush3.xpose.msra.mxu1 %v18927_v29 }
0x2b71   : > { %30846 = vmatprep.mubr.msk.f32.mxu0 %vm32161_vm1, %v32160_v10  ;;  %30854 = vmatprep.subr.mxu0 %v32160_v10 }
0x2b72   : > { %30871 = vmatprep.mubr.msk.f32.mxu1 %vm32161_vm1, %v32160_v10  ;;  %30879 = vmatprep.subr.mxu1 %v32160_v10 }
0x2b73   : > { %30847 = vmatmul.mubr.f32.vlgmr.msra.gmra.mxu0 %v18966_v28  ;;  %30872 = vmatmul.mubr.f32.vlgmr.msra.gmra.mxu1 %v18962_v63 }
0x2b74   : > { %30855 = vmatpush3.xpose.msra.mxu0 %v19004_v52  ;;  %30856 = vmatprep.mubr.msk.f32.mxu0 %vm32161_vm1, %v32160_v10 }
0x2b75   : > { %30864 = vmatprep.subr.mxu0 %v32160_v10  ;;  %30881 = vmatprep.mubr.msk.f32.mxu1 %vm32161_vm1, %v32160_v10 }
0x2b77   : > { %30857 = vmatmul.mubr.f32.vlgmr.msra.gmra.mxu0 %v18963_v16 }
0x2b78   : > { %30865 = vmatpush3.xpose.msra.mxu0 %v19005_v6  ;;  %30866 = vmatprep.mubr.msk.f32.mxu0 %vm32161_vm1, %v32160_v10 }
0x2b79   : > { %30874 = vmatprep.subr.mxu0 %v32160_v10 }
0x2b7b   : > { %30867 = vmatmul.mubr.f32.vlgmr.msra.gmra.mxu0 %v18962_v63 }
0x2b7c   : > { %30876 = vmatprep.mubr.msk.f32.mxu0 %vm32161_vm1, %v32160_v10 }
0x2c1f   : > { %v18589_v30 = vpop.f32.mrf.mxu1 }
0x2c21   : > { %v30823_v32 = vpop.f32.mrf.mxu1 }
0x2c23   : > { %v18737_v37 = vpop.f32.mrf.mxu1 }
0x2c25   : > { %v30833_v40 = vpop.f32.mrf.mxu1 }
0x2c27   : > { %v18513_v42 = vpop.f32.mrf.mxu0  ;;  %v18883_v44 = vpop.f32.mrf.mxu1 }
0x2c28   : > { %v18590_v56 = vadd.f32 %v18589_v30, %v18513_v42 }
0x2c29   : > { %v30818_v35 = vpop.f32.mrf.mxu0  ;;  %v30843_v45 = vpop.f32.mrf.mxu1 }
0x2c2b   : > { %v18663_v41 = vpop.f32.mrf.mxu0  ;;  %v19044_v46 = vpop.f32.mrf.mxu1 }
0x2c2c   : > { %v18664_v58 = vadd.f32 %v18663_v41, %v18590_v56 }
0x2c2d   : > { %v30828_v47 = vpop.f32.mrf.mxu0  ;;  %v30853_v34 = vpop.f32.mrf.mxu1 }
0x2c2e   : > { %v18738_v50 = vadd.f32 %v18737_v37, %v18664_v58 }
0x2c2f   : > { %v18811_v43 = vpop.f32.mrf.mxu0  ;;  %v19192_v51 = vpop.f32.mrf.mxu1 }
0x2c30   : > { %v18812_v4 = vadd.f32 %v18811_v43, %v18738_v50 }
0x2c31   : > { %v30838_v54 = vpop.f32.mrf.mxu0  ;;  %v30863_v9 = vpop.f32.mrf.mxu1 }
0x2c32   : > { %v18884_v1 = vadd.f32 %v18883_v44, %v18812_v4  ;;  %v14236_v44 = vld [vmem:[#allocation10 + $0x118] sm:$0xff] }
0x2c33   : > { %v18968_v27 = vpop.f32.mrf.mxu0  ;;  %v19338_v48 = vpop.f32.mrf.mxu1  ;;  %v19841_v56 = vand.u32 4294901760, %v14236_v44 }
0x2c34   : > { %v34295_v12 = vadd.f32 %v18884_v1, %v34225_v18  ;;  %v19045_v24 = vadd.f32 %v19044_v46, %v18968_v27 }
0x2c35   : > { %v30848_v17 = vpop.f32.mrf.mxu0  ;;  %v30873_v19 = vpop.f32.mrf.mxu1  ;;  %v19918_v35 = vsub.f32 %v14236_v44, %v19841_v56 }
0x2c37   : > { %v19118_v25 = vpop.f32.mrf.mxu0  ;;  %v19919_v45 = vand.u32 4294901760, %v19918_v35 }
0x2c38   : > { %v19119_v39 = vadd.f32 %v19118_v25, %v19045_v24 }
0x2c39   : > { %v30858_v29 = vpop.f32.mrf.mxu0  ;;  %v19920_v41 = vsub.f32 %v19918_v35, %v19919_v45 }
0x2c3a   : > { %v19193_v55 = vadd.f32 %v19192_v51, %v19119_v39 }
0x2c3b   : > { %v19266_v33 = vpop.f32.mrf.mxu0  ;;  %v19921_v46 = vand.u32 4294901760, %v19920_v41 }
0x2c3c   : > { %v19267_v36 = vadd.f32 %v19266_v33, %v19193_v55 }
0x2c3d   : > { %v30868_v13 = vpop.f32.mrf.mxu0 }
0x2c3e   : > { %v19339_v52 = vadd.f32 %v19338_v48, %v19267_v36 }
0x2c40   : > { %v19342_v53 = vmul.f32 0.35355338, %v19339_v52 }
0x2c42   : > { %v19343_v59 = vadd.f32 %v31899_v57, %v19342_v53 }
0x2c44   : > { %v19344_v49 = vsel %vm975_vm4, %v19343_v59, -inf }
0x2c45   : > { %19345 = vmax.xlane.f32.xlu1 %v19344_v49 }
0x2cce   : > { %v19346_v6 = vpop.xlane.xlu1 %19345 }
0x2ccf   : > { %v19347_v18 = vsub.f32 %v19343_v59, %v19346_v6 }
0x2cd1   : > { %v19348_v5 = vmul.f32 1.442695, %v19347_v18 }
0x2cd3   : > { %31859 = vpow2.f32 %v19348_v5 }
0x2ce0   : > { %v31860_v62 = vpop.eup %31859 }
0x2ce1   : > { %v19350_v63 = vsel %vm975_vm4, %v31860_v62, 0.0 }
0x2ce2   : > { %19351 = vadd.xlane.f32.xlu0 %v19350_v63 }
0x2cf8   : > { %19355 = vrot.lane.b32.xlu0 %v34029_v22, %s32172_s20 }
0x2d6b   : > { %v19352_v2 = vpop.xlane.xlu0 %19351 }
0x2d6c   : > { %31861 = vrcp.f32 %v19352_v2 }
0x2d6f   : > { %v19356_v14 = vpop.permute.xlu0 %19355 }
0x2d70   : > { %v19392_v15 = vand.u32 4294901760, %v19356_v14 }
0x2d72   : > { %v19469_v16 = vsub.f32 %v19356_v14, %v19392_v15  ;;  %30875 = vmatpush3.msra.mxu0 %v19392_v15 }
0x2d73   : > { %30884 = vmatprep.subr.mxu0 %v32160_v10 }
0x2d74   : > { %v19470_v20 = vand.u32 4294901760, %v19469_v16 }
0x2d76   : > { %v19471_v21 = vsub.f32 %v19469_v16, %v19470_v20 }
0x2d78   : > { %v19472_v23 = vand.u32 4294901760, %v19471_v21 }
0x2d79   : > { %v31862_v26 = vpop.eup %31861 }
0x2d7a   : > { %v19354_v28 = vmul.f32 %v31862_v26, %v31860_v62  ;;  %30880 = vmatpush3.msra.mxu1 %v19472_v23 }
0x2d7b   : > { %30889 = vmatprep.subr.mxu1 %v32160_v10 }
0x2d7c   : > { %v19359_v30 = vsel %vm975_vm4, %v19354_v28, 0  ;;  %v28266_v28 = vld [vmem:[#allocation11 + $0x12] ss:$0 sm:$0xff] }
0x2d7d   : > { %v19427_v32 = vand.u32 4294901760, %v19359_v30 }
0x2d7f   : > { %v19428_v22 = vsub.f32 %v19359_v30, %v19427_v32  ;;  %30882 = vmatmul.mubr.f32.vlgmr.msra.gmra.mxu1 %v19427_v32 }
0x2d80   : > { %30890 = vmatpush3.msra.mxu1 %v19392_v15  ;;  %30891 = vmatprep.mubr.msk.f32.mxu1 %vm32161_vm1, %v32160_v10 }
0x2d81   : > { %30899 = vmatprep.subr.mxu1 %v32160_v10  ;;  %v19429_v37 = vand.u32 4294901760, %v19428_v22 }
0x2d83   : > { %30892 = vmatmul.mubr.f32.vlgmr.msra.gmra.mxu1 %v19429_v37  ;;  %v19430_v40 = vsub.f32 %v19428_v22, %v19429_v37 }
0x2d84   : > { %30900 = vmatpush3.msra.mxu1 %v19392_v15  ;;  %30901 = vmatprep.mubr.msk.f32.mxu1 %vm32161_vm1, %v32160_v10 }
0x2d85   : > { %v19431_v42 = vand.u32 4294901760, %v19430_v40  ;;  %30909 = vmatprep.subr.mxu1 %v32160_v10  ;;  %v14231_v40 = vld [vmem:[#allocation10 + $0xf0] sm:$0xff] }
0x2d86   : > { %20793 = vrot.lane.b32.xlu0 %v14231_v40, %s32162_s8 }
0x2d87   : > { %30877 = vmatmul.mubr.f32.vlgmr.msra.gmra.mxu0 %v19431_v42  ;;  %30902 = vmatmul.mubr.f32.vlgmr.msra.gmra.mxu1 %v19427_v32  ;;  %v14232_v42 = vld [vmem:[#allocation10 + $0xf8] sm:$0xff] }
0x2d88   : > { %30885 = vmatpush3.msra.mxu0 %v19469_v16  ;;  %30886 = vmatprep.mubr.msk.f32.mxu0 %vm32161_vm1, %v32160_v10  ;;  %v34347_v44 = vand.u32 4294901760, %v14232_v42 }
0x2d89   : > { %30894 = vmatprep.subr.mxu0 %v32160_v10  ;;  %30911 = vmatprep.mubr.msk.f32.mxu1 %vm32161_vm1, %v32160_v10 }
0x2d8a   : > { %30910 = vmatpush3.msra.mxu1 %v19921_v46 }
0x2d8b   : > { %30887 = vmatmul.mubr.f32.vlgmr.msra.gmra.mxu0 %v19428_v22  ;;  %30919 = vmatprep.subr.mxu1 %v32160_v10 }
0x2d8c   : > { %30895 = vmatpush3.msra.mxu0 %v19470_v20  ;;  %30896 = vmatprep.mubr.msk.f32.mxu0 %vm32161_vm1, %v32160_v10 }
0x2d8d   : > { %30904 = vmatprep.subr.mxu0 %v32160_v10 }
0x2d8f   : > { %30897 = vmatmul.mubr.f32.vlgmr.msra.gmra.mxu0 %v19427_v32 }
0x2d90   : > { %30906 = vmatprep.mubr.msk.f32.mxu0 %vm32161_vm1, %v32160_v10  ;;  %30905 = vmatpush3.msra.mxu0 %v19841_v56 }
0x2d91   : > { %30914 = vmatprep.subr.mxu0 %v32160_v10 }
0x2e3f   : > { %v19509_v58 = vpop.f32.mrf.mxu1 }
0x2e41   : > { %v30883_v47 = vpop.f32.mrf.mxu1 }
0x2e43   : > { %v19657_v34 = vpop.f32.mrf.mxu1 }
0x2e45   : > { %v30893_v50 = vpop.f32.mrf.mxu1 }
0x2e47   : > { %v19433_v43 = vpop.f32.mrf.mxu0  ;;  %v19803_v51 = vpop.f32.mrf.mxu1 }
0x2e48   : > { %v19510_v9 = vadd.f32 %v19509_v58, %v19433_v43  ;;  %v34372_v43 = vsub.f32 %v14232_v42, %v34347_v44 }
0x2e49   : > { %v30878_v4 = vpop.f32.mrf.mxu0  ;;  %v30903_v54 = vpop.f32.mrf.mxu1 }
0x2e4b   : > { %v19583_v1 = vpop.f32.mrf.mxu0 }
0x2e4c   : > { %v19584_v27 = vadd.f32 %v19583_v1, %v19510_v9  ;;  %v20406_v9 = vand.u32 4294901760, %v34372_v43 }
0x2e4d   : > { %v30888_v48 = vpop.f32.mrf.mxu0 }
0x2e4e   : > { %v19658_v17 = vadd.f32 %v19657_v34, %v19584_v27  ;;  %v20407_v48 = vsub.f32 %v34372_v43, %v20406_v9 }
0x2e4f   : > { %v19731_v19 = vpop.f32.mrf.mxu0 }
0x2e50   : > { %v19732_v24 = vadd.f32 %v19731_v19, %v19658_v17 }
0x2e51   : > { %v30898_v25 = vpop.f32.mrf.mxu0 }
0x2e52   : > { %v19804_v39 = vadd.f32 %v19803_v51, %v19732_v24  ;;  %v20408_v24 = vand.u32 4294901760, %v20407_v48 }
0x2e54   : > { %v19808_v29 = vsel %vm975_vm4, %v19804_v39, 0 }
0x2e55   : > { %v19876_v55 = vand.u32 4294901760, %v19808_v29 }
0x2e57   : > { %v19877_v33 = vsub.f32 %v19808_v29, %v19876_v55  ;;  %30912 = vmatmul.mubr.f32.vlgmr.msra.gmra.mxu1 %v19876_v55 }
0x2e58   : > { %30920 = vmatpush3.msra.mxu1 %v19841_v56  ;;  %30921 = vmatprep.mubr.msk.f32.mxu1 %vm32161_vm1, %v32160_v10 }
0x2e59   : > { %v19878_v36 = vand.u32 4294901760, %v19877_v33  ;;  %30929 = vmatprep.subr.mxu1 %v32160_v10 }
0x2e5b   : > { %v19879_v13 = vsub.f32 %v19877_v33, %v19878_v36  ;;  %30922 = vmatmul.mubr.f32.vlgmr.msra.gmra.mxu1 %v19878_v36 }
0x2e5c   : > { %30930 = vmatpush3.msra.mxu1 %v19841_v56  ;;  %30931 = vmatprep.mubr.msk.f32.mxu1 %vm32161_vm1, %v32160_v10  ;;  %v34349_v56 = vand.u32 4294901760, %v14231_v40 }
0x2e5d   : > { %v19880_v52 = vand.u32 4294901760, %v19879_v13  ;;  %30945 = vmatprep.subr.mxu1 %v32160_v10 }
0x2e5e   : > { %v34369_v50 = vsub.f32 %v14231_v40, %v34349_v56 }
0x2e5f   : > { %30907 = vmatmul.mubr.f32.vlgmr.msra.gmra.mxu0 %v19880_v52  ;;  %30932 = vmatmul.mubr.f32.vlgmr.msra.gmra.mxu1 %v19876_v55 }
0x2e60   : > { %30915 = vmatpush3.msra.mxu0 %v19918_v35  ;;  %30916 = vmatprep.mubr.msk.f32.mxu0 %vm32161_vm1, %v32160_v10  ;;  %v14229_v35 = vld [vmem:[#allocation10 + $0xe0] sm:$0xff]  ;;  %v20413_v54 = vand.u32 4294901760, %v34369_v50 }
0x2e61   : > { %30924 = vmatprep.subr.mxu0 %v32160_v10  ;;  %30953 = vmatprep.mubr.msk.f32.mxu1 %vm32161_vm1, %v32160_v10 }
0x2e62   : > { %v20414_v17 = vsub.f32 %v34369_v50, %v20413_v54  ;;  %30946 = vmatpush3.msra.mxu1 %v20408_v24 }
0x2e63   : > { %30917 = vmatmul.mubr.f32.vlgmr.msra.gmra.mxu0 %v19877_v33  ;;  %30947 = vmatprep.subr.mxu1 %v32160_v10  ;;  %v34400_v33 = vld [vmem:[#allocation11 + $0x11] ss:$0 sm:$0xff] }
0x2e64   : > { %30925 = vmatpush3.msra.mxu0 %v19919_v45  ;;  %30926 = vmatprep.mubr.msk.f32.mxu0 %vm32161_vm1, %v32160_v10  ;;  %v34358_v45 = vand.u32 4294901760, %v14229_v35  ;;  %v20415_v25 = vand.u32 4294901760, %v20414_v17 }
0x2e65   : > { %30934 = vmatprep.subr.mxu0 %v32160_v10 }
0x2e66   : > { %v34378_v4 = vsub.f32 %v14229_v35, %v34358_v45  ;;  %30948 = vmatpush3.msra.mxu1 %v20415_v25 }
0x2e67   : > { %30927 = vmatmul.mubr.f32.vlgmr.msra.gmra.mxu0 %v19876_v55  ;;  %30949 = vmatprep.subr.mxu1 %v32160_v10 }
0x2e68   : > { %30942 = vmatprep.mubr.msk.f32.mxu0 %vm32161_vm1, %v32160_v10  ;;  %30935 = vmatpush3.msra.mxu0 %v34347_v44  ;;  %v20427_v27 = vand.u32 4294901760, %v34378_v4 }
0x2e69   : > { %30936 = vmatprep.subr.mxu0 %v32160_v10 }
0x2e6a   : > { %30937 = vmatpush3.msra.mxu0 %v34349_v56  ;;  %v20428_v39 = vsub.f32 %v34378_v4, %v20427_v27 }
0x2e6b   : > { %30938 = vmatprep.subr.mxu0 %v32160_v10 }
0x2e6c   : > { %v20429_v55 = vand.u32 4294901760, %v20428_v39 }
0x2f17   : > { %v19958_v53 = vpop.f32.mrf.mxu1 }
0x2f19   : > { %v30913_v57 = vpop.f32.mrf.mxu1 }
0x2f1b   : > { %v20106_v59 = vpop.f32.mrf.mxu1 }
0x2f1d   : > { %v30923_v49 = vpop.f32.mrf.mxu1 }
0x2f1f   : > { %v19882_v6 = vpop.f32.mrf.mxu0  ;;  %v20252_v18 = vpop.f32.mrf.mxu1 }
0x2f20   : > { %v19959_v63 = vadd.f32 %v19958_v53, %v19882_v6 }
0x2f21   : > { %v30908_v5 = vpop.f32.mrf.mxu0  ;;  %v30933_v62 = vpop.f32.mrf.mxu1 }
0x2f23   : > { %v20032_v2 = vpop.f32.mrf.mxu0 }
0x2f24   : > { %v20033_v14 = vadd.f32 %v20032_v2, %v19959_v63  ;;  %v28268_v63 = vld [vmem:[#allocation11 + $0x19] ss:$0 sm:$0xff] }
0x2f25   : > { %v30918_v15 = vpop.f32.mrf.mxu0 }
0x2f26   : > { %v20107_v16 = vadd.f32 %v20106_v59, %v20033_v14  ;;  %v20794_v14 = vpop.permute.xlu0 %20793 }
0x2f27   : > { %v20180_v20 = vpop.f32.mrf.mxu0 }
0x2f28   : > { %v20181_v21 = vadd.f32 %v20180_v20, %v20107_v16 }
0x2f29   : > { %v30928_v23 = vpop.f32.mrf.mxu0 }
0x2f2a   : > { %v20253_v26 = vadd.f32 %v20252_v18, %v20181_v21  ;;  %v28267_v18 = vld [vmem:[#allocation11 + $0x18] ss:$0 sm:$0xff] }
0x2f2c   : > { %v20256_v30 = vadd.f32 %v20253_v26, %v34295_v12 }
0x2f2e   : > { %v20261_v32 = vadd.f32 %v28266_v28, %v20256_v30  ;;  %v34412_v30 = vand.u32 4294901760, %v20794_v14 }
0x2f30   : > { %v34342_v22 = vadd.f32 %v20261_v32, %v33926_v31  ;;  %v14230_v31 = vld [vmem:[#allocation10 + $0xe8] sm:$0xff] }
0x2f31   : > { %v34355_v12 = vand.u32 4294901760, %v14230_v31  ;;  %20791 = vrot.lane.b32.xlu0 %v14230_v31, %s32162_s8 }
0x2f32   : > { %v20263_v37 = vsel %vm448_vm0, %v34342_v22, 0.0 }
0x2f33   : > { %20264 = vadd.xlane.f32.xlu1 %v20263_v37  ;;  %30939 = vmatpush3.msra.mxu0 %v34355_v12  ;;  %v34375_v51 = vsub.f32 %v14230_v31, %v34355_v12 }
0x2f34   : > { %30940 = vmatprep.subr.mxu0 %v32160_v10 }
0x2f35   : > { %30941 = vmatpush3.msra.mxu0 %v34358_v45  ;;  %v20420_v1 = vand.u32 4294901760, %v34375_v51  ;;  %20802 = vrot.lane.b32.xlu0 %v34400_v33, %s32162_s8 }
0x2f36   : > { %30956 = vmatprep.subr.mxu0 %v32160_v10 }
0x2f37   : > { %v20421_v19 = vsub.f32 %v34375_v51, %v20420_v1 }
0x2f39   : > { %v20422_v29 = vand.u32 4294901760, %v20421_v19 }
0x2f3b   : > { %30950 = vmatpush3.msra.mxu1 %v20422_v29 }
0x2f3c   : > { %30951 = vmatprep.subr.mxu1 %v32160_v10 }
0x2f3d   : > { %30952 = vmatpush3.msra.mxu1 %v20429_v55 }
0x2f3e   : > { %30967 = vmatprep.subr.mxu1 %v32160_v10 }
0x2fa3   : > { %v20792_v28 = vpop.permute.xlu0 %20791 }
0x2fbc   : > { %v20265_v41 = vpop.xlane.xlu1 %20264 }
0x2fbd   : > { %v20266_v46 = vmul.f32 0.03125, %v20265_v41 }
0x2fbf   : > { %v20267_v58 = vsub.f32 %v34342_v22, %v20266_v46 }
0x2fc1   : > { %v20268_v47 = vmul.f32 %v20267_v58, %v20267_v58  ;;  %v20286_v5 = vmul.f32 %v28267_v18, %v20267_v58 }
0x2fc3   : > { %v20269_v34 = vsel %vm448_vm0, %v20268_v47, 0.0 }
0x2fc4   : > { %20270 = vadd.xlane.f32.xlu1 %v20269_v34 }
0x2fd5   : > { %20795 = vrot.lane.b32.xlu1 %v14232_v42, %s32162_s8  ;;  %v34421_v42 = vand.u32 4294901760, %v20792_v28 }
0x2fd7   : > { %v34433_v58 = vsub.f32 %v20792_v28, %v34421_v42 }
0x2fd9   : > { %20789 = vrot.lane.b32.xlu1 %v14229_v35, %s32162_s8  ;;  %v34425_v35 = vsub.f32 %v20794_v14, %v34412_v30  ;;  %v34453_v19 = vand.u32 4294901760, %v34433_v58 }
0x2fdb   : > { %v34444_v48 = vand.u32 4294901760, %v34425_v35  ;;  %v20936_v25 = vsub.f32 %v34433_v58, %v34453_v19 }
0x2fdd   : > { %v20937_v29 = vand.u32 4294901760, %v20936_v25 }
0x304d   : > { %v20271_v36 = vpop.xlane.xlu1 %20270 }
0x304e   : > { %v20272_v13 = vmul.f32 0.032258064, %v20271_v36 }
0x3050   : > { %31863 = vrsqrt.f32 %v20272_v13  ;;  %vm20275_vm13 = vcmp.eq.f32.partialorder %v20272_v13, inf  ;;  %v20278_v57 = vand.u32 2147483648, %v20272_v13  ;;  %vm20277_vm14 = vcmp.eq.f32.partialorder %v20272_v13, 0.0 }
0x3051   : > { %v20796_v16 = vpop.permute.xlu1 %20795 }
0x3052   : > { %v34407_v23 = vand.u32 4294901760, %v20796_v16 }
0x3054   : > { %v34419_v40 = vsub.f32 %v20796_v16, %v34407_v23 }
0x3055   : > { %v20790_v37 = vpop.permute.xlu1 %20789 }
0x3056   : > { %v34428_v41 = vand.u32 4294901760, %v20790_v37  ;;  %v34436_v47 = vand.u32 4294901760, %v34419_v40 }
0x3058   : > { %v34441_v34 = vsub.f32 %v20790_v37, %v34428_v41  ;;  %v20922_v17 = vsub.f32 %v34419_v40, %v34436_v47 }
0x305a   : > { %v34462_v24 = vand.u32 4294901760, %v34441_v34 }
0x305c   : > { %v20943_v39 = vsub.f32 %v34441_v34, %v34462_v24 }
0x305d   : > { %v31864_v52 = vpop.eup %31863 }
0x305e   : > { %v20274_v53 = vmul.f32 %v31864_v52, %v20272_v13 }
0x3060   : > { %v20276_v59 = vsel %vm20275_vm13, %v20272_v13, %v20274_v53  ;;  %v20803_v13 = vpop.permute.xlu0 %20802 }
0x3061   : > { %v20279_v49 = vsel %vm20277_vm14, %v20278_v57, %v20276_v59 }
0x3062   : > { %v20280_v6 = vadd.f32 1e-06, %v20279_v49 }
0x3064   : > { %31865 = vrcp.f32 %v20280_v6 }
0x3071   : > { %v31866_v62 = vpop.eup %31865 }
0x3072   : > { %v20287_v2 = vmul.f32 %v31866_v62, %v20286_v5 }
0x3074   : > { %v20292_v15 = vadd.f32 %v28268_v63, %v20287_v2 }
0x3076   : > { %v20298_v20 = vsel %vm448_vm0, %v20292_v15, 0 }
0x3077   : > { %v34405_v21 = vand.u32 4294901760, %v20298_v20 }
0x3079   : > { %v20370_v26 = vsub.f32 %v20298_v20, %v34405_v21  ;;  %30954 = vmatmul.mubr.f32.vlgmr.msra.gmra.mxu1 %v34405_v21 }
0x307a   : > { %30968 = vmatpush3.msra.mxu1 %v34347_v44  ;;  %30975 = vmatprep.mubr.msk.f32.mxu1 %vm32161_vm1, %v32160_v10 }
0x307b   : > { %30969 = vmatprep.subr.mxu1 %v32160_v10  ;;  %v20371_v32 = vand.u32 4294901760, %v20370_v26 }
0x307c   : > { %30970 = vmatpush3.msra.mxu1 %v34349_v56 }
0x307d   : > { %30971 = vmatprep.subr.mxu1 %v32160_v10  ;;  %v20372_v31 = vsub.f32 %v20370_v26, %v20371_v32 }
0x307e   : > { %30972 = vmatpush3.msra.mxu1 %v34355_v12 }
0x307f   : > { %30973 = vmatprep.subr.mxu1 %v32160_v10  ;;  %v20373_v46 = vand.u32 4294901760, %v20372_v31 }
0x3080   : > { %30974 = vmatpush3.msra.mxu1 %v34358_v45 }
0x3081   : > { %30976 = vmatmul.mubr.f32.vlgmr.msra.gmra.mxu1 %v20371_v32  ;;  %30989 = vmatprep.subr.mxu1 %v32160_v10 }
0x3082   : > { %30943 = vmatmul.mubr.f32.vlgmr.msra.gmra.mxu0 %v20373_v46  ;;  %30990 = vmatpush3.msra.mxu1 %v34347_v44  ;;  %v20929_v44 = vsub.f32 %v34425_v35, %v34444_v48 }
0x3083   : > { %30957 = vmatpush3.msra.mxu0 %v34372_v43  ;;  %30991 = vmatprep.subr.mxu1 %v32160_v10 }
0x3084   : > { %30958 = vmatprep.subr.mxu0 %v32160_v10  ;;  %30992 = vmatpush3.msra.mxu1 %v34349_v56  ;;  %v20923_v56 = vand.u32 4294901760, %v20922_v17 }
0x3085   : > { %30959 = vmatpush3.msra.mxu0 %v34369_v50  ;;  %30993 = vmatprep.subr.mxu1 %v32160_v10 }
0x3086   : > { %30960 = vmatprep.subr.mxu0 %v32160_v10  ;;  %30994 = vmatpush3.msra.mxu1 %v34355_v12  ;;  %v20930_v12 = vand.u32 4294901760, %v20929_v44 }
0x3087   : > { %30961 = vmatpush3.msra.mxu0 %v34375_v51  ;;  %30995 = vmatprep.subr.mxu1 %v32160_v10 }
0x3088   : > { %30962 = vmatprep.subr.mxu0 %v32160_v10  ;;  %30964 = vmatprep.mubr.msk.f32.mxu0 %vm32161_vm1, %v32160_v10 }
0x3089   : > { %30963 = vmatpush3.msra.mxu0 %v34378_v4  ;;  %30996 = vmatpush3.msra.mxu1 %v34358_v45  ;;  %v20944_v45 = vand.u32 4294901760, %v20943_v39 }
0x308a   : > { %30997 = vmatprep.mubr.msk.f32.mxu1 %vm32161_vm1, %v32160_v10  ;;  %30965 = vmatmul.mubr.f32.vlgmr.msra.gmra.mxu0 %v20370_v26 }
0x308b   : > { %30978 = vmatprep.subr.mxu0 %v32160_v10  ;;  %30998 = vmatmul.mubr.f32.vlgmr.msra.gmra.mxu1 %v34405_v21 }
0x308c   : > { %31011 = vmatprep.subr.mxu1 %v20923_v56  ;;  %30979 = vmatpush3.msra.mxu0 %v20406_v9 }
0x308d   : > { %31012 = vmatpush3.msra.mxu1 %v20923_v56  ;;  %30980 = vmatprep.subr.mxu0 %v32160_v10 }
0x308e   : > { %31013 = vmatprep.subr.mxu1 %v20930_v12  ;;  %30981 = vmatpush3.msra.mxu0 %v20413_v54 }
0x308f   : > { %31014 = vmatpush3.msra.mxu1 %v20930_v12  ;;  %30982 = vmatprep.subr.mxu0 %v32160_v10 }
0x3090   : > { %31015 = vmatprep.subr.mxu1 %v20937_v29  ;;  %30983 = vmatpush3.msra.mxu0 %v20420_v1 }
0x3091   : > { %31016 = vmatpush3.msra.mxu1 %v20937_v29  ;;  %30984 = vmatprep.subr.mxu0 %v32160_v10 }
0x3092   : > { %31017 = vmatprep.subr.mxu1 %v20944_v45  ;;  %30985 = vmatpush3.msra.mxu0 %v20427_v27 }
0x3093   : > { %30986 = vmatprep.mubr.msk.f32.mxu0 %vm32161_vm1, %v32160_v10  ;;  %31018 = vmatpush3.msra.mxu1 %v20944_v45 }
0x3094   : > { %30987 = vmatmul.mubr.f32.vlgmr.msra.gmra.mxu0 %v34405_v21  ;;  %31000 = vmatprep.subr.mxu0 %v34407_v23 }
0x3095   : > { %31019 = vmatprep.mubr.f32.mxu1 %v33036_v3  ;;  %31033 = vmatprep.subr.mxu1 %v34407_v23 }
0x3096   : > { %31001 = vmatpush3.msra.mxu0 %v34407_v23  ;;  %31020 = vmatmul.mubr.f32.vlgmr.msra.gmra.mxu1 %v33042_v7 }
0x3097   : > { %31034 = vmatpush3.msra.mxu1 %v34407_v23  ;;  %31002 = vmatprep.subr.mxu0 %v34412_v30 }
0x3098   : > { %31035 = vmatprep.subr.mxu1 %v34412_v30  ;;  %31003 = vmatpush3.msra.mxu0 %v34412_v30 }
0x3099   : > { %31036 = vmatpush3.msra.mxu1 %v34412_v30  ;;  %31004 = vmatprep.subr.mxu0 %v34421_v42 }
0x309a   : > { %31037 = vmatprep.subr.mxu1 %v34421_v42  ;;  %31005 = vmatpush3.msra.mxu0 %v34421_v42 }
0x309b   : > { %31038 = vmatpush3.msra.mxu1 %v34421_v42  ;;  %31006 = vmatprep.subr.mxu0 %v34428_v41 }
0x309c   : > { %31039 = vmatprep.subr.mxu1 %v34428_v41  ;;  %31007 = vmatpush3.msra.mxu0 %v34428_v41 }
0x309d   : > { %31008 = vmatprep.mubr.f32.mxu0 %v33087_v0  ;;  %31040 = vmatpush3.msra.mxu1 %v34428_v41 }
0x309e   : > { %31009 = vmatmul.mubr.f32.vlgmr.msra.gmra.mxu0 %v33091_v38  ;;  %31022 = vmatprep.subr.mxu0 %v34419_v40 }
0x309f   : > { %31041 = vmatprep.mubr.f32.mxu1 %v33062_v60  ;;  %31055 = vmatprep.subr.mxu1 %v34407_v23 }
0x30a0   : > { %31023 = vmatpush3.msra.mxu0 %v34419_v40  ;;  %31042 = vmatmul.mubr.f32.vlgmr.msra.gmra.mxu1 %v33067_v61 }
0x30a1   : > { %31056 = vmatpush3.msra.mxu1 %v34407_v23  ;;  %31024 = vmatprep.subr.mxu0 %v34425_v35 }
0x30a2   : > { %31057 = vmatprep.subr.mxu1 %v34412_v30  ;;  %31025 = vmatpush3.msra.mxu0 %v34425_v35 }
0x30a3   : > { %31058 = vmatpush3.msra.mxu1 %v34412_v30  ;;  %31026 = vmatprep.subr.mxu0 %v34433_v58 }
0x30a4   : > { %31059 = vmatprep.subr.mxu1 %v34421_v42  ;;  %31027 = vmatpush3.msra.mxu0 %v34433_v58 }
0x30a5   : > { %31060 = vmatpush3.msra.mxu1 %v34421_v42  ;;  %31028 = vmatprep.subr.mxu0 %v34441_v34 }
0x30a6   : > { %31061 = vmatprep.subr.mxu1 %v34428_v41  ;;  %31029 = vmatpush3.msra.mxu0 %v34441_v34 }
0x30a7   : > { %31030 = vmatprep.mubr.f32.mxu0 %v33050_v8  ;;  %31062 = vmatpush3.msra.mxu1 %v34428_v41 }
0x30a8   : > { %31031 = vmatmul.mubr.f32.vlgmr.msra.gmra.mxu0 %v33055_v11  ;;  %31044 = vmatprep.subr.mxu0 %v34436_v47 }
0x30a9   : > { %31045 = vmatpush3.msra.mxu0 %v34436_v47  ;;  %31052 = vmatprep.mubr.f32.mxu0 %v33036_v3 }
0x30aa   : > { %31046 = vmatprep.subr.mxu0 %v34444_v48  ;;  %31063 = vmatprep.mubr.f32.mxu1 %v33036_v3 }
0x30ab   : > { %31047 = vmatpush3.msra.mxu0 %v34444_v48  ;;  %31064 = vmatmul.mubr.f32.vlgmr.msra.gmra.mxu1 %v33042_v7 }
0x30ac   : > { %31048 = vmatprep.subr.mxu0 %v34453_v19  ;;  %31073 = vmatprep.subr.mxu1 %v32160_v10 }
0x30ad   : > { %31049 = vmatpush3.msra.mxu0 %v34453_v19  ;;  %31077 = vmatprep.mubr.msk.f32.mxu1 %vm32161_vm1, %v32160_v10 }
0x30ae   : > { %31050 = vmatprep.subr.mxu0 %v34462_v24 }
0x30af   : > { %31051 = vmatpush3.msra.mxu0 %v34462_v24 }
0x30b0   : > { %31053 = vmatmul.mubr.f32.vlgmr.msra.gmra.mxu0 %v33042_v7  ;;  %31066 = vmatprep.subr.mxu0 %v32160_v10 }
0x30b1   : > { %31070 = vmatprep.mubr.msk.f32.mxu0 %vm32161_vm1, %v32160_v10 }
0x3139   : > { %v20466_v3 = vpop.f32.mrf.mxu1 }
0x313b   : > { %v30955_v8 = vpop.f32.mrf.mxu1 }
0x3141   : > { %v20623_v11 = vpop.f32.mrf.mxu1 }
0x3142   : > { %v20375_v60 = vpop.f32.mrf.mxu0 }
0x3143   : > { %v30977_v61 = vpop.f32.mrf.mxu1  ;;  %v20376_v54 = vadd.f32 %v34400_v33, %v20375_v60 }
0x3144   : > { %v30944_v0 = vpop.f32.mrf.mxu0 }
0x3145   : > { %v20467_v7 = vadd.f32 %v20466_v3, %v20376_v54 }
0x314a   : > { %v20546_v38 = vpop.f32.mrf.mxu0 }
0x314b   : > { %v20781_v50 = vpop.f32.mrf.mxu1  ;;  %v20547_v1 = vadd.f32 %v20546_v38, %v20467_v7 }
0x314c   : > { %v30966_v43 = vpop.f32.mrf.mxu0 }
0x314d   : > { %v30999_v51 = vpop.f32.mrf.mxu1  ;;  %v20624_v27 = vadd.f32 %v20623_v11, %v20547_v1 }
0x3154   : > { %v20706_v4 = vpop.f32.mrf.mxu0 }
0x3155   : > { %v20707_v36 = vadd.f32 %v20706_v4, %v20624_v27 }
0x3156   : > { %v30988_v9 = vpop.f32.mrf.mxu0  ;;  %v31021_v53 = vpop.f32.mrf.mxu1 }
0x3157   : > { %v34552_v59 = vadd.f32 %v20781_v50, %v20707_v36  ;;  %v34589_v36 = vld [vmem:[%s32461_s14] sm:$0xff] }
0x3158   : > { %v20981_v6 = vpop.f32.mrf.mxu1 }
0x3159   : > { %v21334_v62 = vsel %vm975_vm4, %v34552_v59, 0 }
0x315a   : > { %v21409_v15 = vand.u32 4294901760, %v21334_v62 }
0x315c   : > { %v21410_v28 = vsub.f32 %v21334_v62, %v21409_v15 }
0x315e   : > { %v31010_v55 = vpop.f32.mrf.mxu0  ;;  %v21411_v46 = vand.u32 4294901760, %v21410_v28 }
0x315f   : > { %v20891_v57 = vadd.f32 %v31010_v55, %v20803_v13 }
0x3160   : > { %v20880_v52 = vpop.f32.mrf.mxu0  ;;  %v31043_v63 = vpop.f32.mrf.mxu1  ;;  %v21412_v17 = vsub.f32 %v21410_v28, %v21411_v46 }
0x3161   : > { %v20881_v49 = vadd.f32 %v20880_v52, %v20803_v13  ;;  %v20988_v5 = vadd.f32 %v31021_v53, %v20891_v57 }
0x3162   : > { %v21151_v20 = vpop.f32.mrf.mxu1  ;;  %v21413_v25 = vand.u32 4294901760, %v21412_v17 }
0x3163   : > { %v20982_v2 = vadd.f32 %v20981_v6, %v20881_v49 }
0x3168   : > { %v31032_v18 = vpop.f32.mrf.mxu0 }
0x3169   : > { %v21075_v14 = vadd.f32 %v31032_v18, %v20988_v5 }
0x316a   : > { %v21067_v33 = vpop.f32.mrf.mxu0 }
0x316b   : > { %v21068_v16 = vadd.f32 %v21067_v33, %v20982_v2  ;;  %v21160_v21 = vadd.f32 %v31043_v63, %v21075_v14  ;;  %v31065_v26 = vpop.f32.mrf.mxu1 }
0x316d   : > { %v21152_v30 = vadd.f32 %v21151_v20, %v21068_v16  ;;  %v21323_v31 = vpop.f32.mrf.mxu1 }
0x3170   : > { %v31054_v23 = vpop.f32.mrf.mxu0 }
0x3171   : > { %v21249_v32 = vadd.f32 %v31054_v23, %v21160_v21 }
0x3172   : > { %v21242_v37 = vpop.f32.mrf.mxu0 }
0x3173   : > { %v34556_v40 = vadd.f32 %v31065_v26, %v21249_v32  ;;  %v21243_v42 = vadd.f32 %v21242_v37, %v21152_v30 }
0x3175   : > { %v34558_v35 = vadd.f32 %v21323_v31, %v21243_v42  ;;  %v21340_v41 = vsel %vm975_vm4, %v34556_v40, 0 }
0x3176   : > { %v21371_v58 = vand.u32 4294901760, %v21340_v41 }
0x3177   : > { %v21337_v47 = vsel %vm975_vm4, %v34558_v35, 0 }
0x3178   : > { %31067 = vmatpush3.xpose.msra.mxu0 %v21371_v58  ;;  %v21449_v34 = vsub.f32 %v21340_v41, %v21371_v58  ;;  %v21374_v48 = vand.u32 4294901760, %v21337_v47 }
0x3179   : > { %31068 = vmatprep.subr.mxu0 %v32160_v10 }
0x317a   : > { %v21456_v19 = vsub.f32 %v21337_v47, %v21374_v48  ;;  %v21450_v44 = vand.u32 4294901760, %v21449_v34 }
0x317c   : > { %31069 = vmatpush3.xpose.msra.mxu0 %v21374_v48  ;;  %v21451_v24 = vsub.f32 %v21449_v34, %v21450_v44  ;;  %v21457_v56 = vand.u32 4294901760, %v21456_v19 }
0x317d   : > { %31080 = vmatprep.subr.mxu0 %v32160_v10 }
0x317e   : > { %v21452_v12 = vand.u32 4294901760, %v21451_v24  ;;  %v21458_v39 = vsub.f32 %v21456_v19, %v21457_v56 }
0x317f   : > { %31071 = vmatmul.mubr.f32.vlgmr.msra.gmra.mxu0 %v21413_v25 }
0x3180   : > { %31074 = vmatpush3.xpose.msra.mxu1 %v21452_v12  ;;  %31081 = vmatpush3.xpose.msra.mxu0 %v21449_v34  ;;  %v21459_v29 = vand.u32 4294901760, %v21458_v39 }
0x3181   : > { %31075 = vmatprep.subr.mxu1 %v32160_v10  ;;  %31082 = vmatprep.subr.mxu0 %v32160_v10 }
0x3182   : > { %31084 = vmatprep.mubr.msk.f32.mxu0 %vm32161_vm1, %v32160_v10 }
0x3184   : > { %31076 = vmatpush3.xpose.msra.mxu1 %v21459_v29  ;;  %31083 = vmatpush3.xpose.msra.mxu0 %v21456_v19 }
0x3185   : > { %31087 = vmatprep.subr.mxu1 %v32160_v10  ;;  %31094 = vmatprep.subr.mxu0 %v32160_v10 }
0x3187   : > { %31078 = vmatmul.mubr.f32.vlgmr.msra.gmra.mxu1 %v21409_v15  ;;  %31085 = vmatmul.mubr.f32.vlgmr.msra.gmra.mxu0 %v21410_v28 }
0x3188   : > { %31088 = vmatpush3.xpose.msra.mxu1 %v21371_v58  ;;  %31095 = vmatpush3.xpose.msra.mxu0 %v21450_v44 }
0x3189   : > { %31089 = vmatprep.subr.mxu1 %v32160_v10  ;;  %31096 = vmatprep.subr.mxu0 %v32160_v10 }
0x318a   : > { %31091 = vmatprep.mubr.msk.f32.mxu1 %vm32161_vm1, %v32160_v10  ;;  %31098 = vmatprep.mubr.msk.f32.mxu0 %vm32161_vm1, %v32160_v10 }
0x318c   : > { %31090 = vmatpush3.xpose.msra.mxu1 %v21374_v48  ;;  %31097 = vmatpush3.xpose.msra.mxu0 %v21457_v56 }
0x318d   : > { %31101 = vmatprep.subr.mxu1 %v32160_v10  ;;  %31108 = vmatprep.subr.mxu0 %v32160_v10 }
0x318f   : > { %31092 = vmatmul.mubr.f32.vlgmr.msra.gmra.mxu1 %v21411_v46  ;;  %31099 = vmatmul.mubr.f32.vlgmr.msra.gmra.mxu0 %v21409_v15 }
0x3190   : > { %31102 = vmatpush3.xpose.msra.mxu1 %v21371_v58  ;;  %31105 = vmatprep.mubr.msk.f32.mxu1 %vm32161_vm1, %v32160_v10 }
0x3191   : > { %31103 = vmatprep.subr.mxu1 %v32160_v10  ;;  %31112 = vmatprep.mubr.msk.f32.mxu0 %vm32161_vm1, %v32160_v10 }
0x3194   : > { %31104 = vmatpush3.xpose.msra.mxu1 %v21374_v48 }
0x3195   : > { %31115 = vmatprep.subr.mxu1 %v32160_v10 }
0x3197   : > { %31106 = vmatmul.mubr.f32.vlgmr.msra.gmra.mxu1 %v21409_v15 }
0x3198   : > { %31119 = vmatprep.mubr.msk.f32.mxu1 %vm32161_vm1, %v32160_v10 }
0x323f   : > { %v21415_v45 = vpop.f32.mrf.mxu0 }
0x3241   : > { %v31072_v3 = vpop.f32.mrf.mxu0 }
0x3247   : > { %v21496_v8 = vpop.f32.mrf.mxu1  ;;  %v21572_v11 = vpop.f32.mrf.mxu0 }
0x3248   : > { %v21497_v0 = vadd.f32 %v21496_v8, %v21415_v45 }
0x3249   : > { %v31079_v60 = vpop.f32.mrf.mxu1  ;;  %v31086_v61 = vpop.f32.mrf.mxu0 }
0x324a   : > { %v21573_v43 = vadd.f32 %v21572_v11, %v21497_v0 }
0x324f   : > { %v21647_v38 = vpop.f32.mrf.mxu1  ;;  %v21724_v50 = vpop.f32.mrf.mxu0 }
0x3250   : > { %v21648_v54 = vadd.f32 %v21647_v38, %v21573_v43 }
0x3251   : > { %v31093_v51 = vpop.f32.mrf.mxu1  ;;  %v31100_v4 = vpop.f32.mrf.mxu0 }
0x3252   : > { %v21725_v9 = vadd.f32 %v21724_v50, %v21648_v54 }
0x3257   : > { %v21797_v7 = vpop.f32.mrf.mxu1 }
0x3258   : > { %v21798_v1 = vadd.f32 %v21797_v7, %v21725_v9 }
0x3259   : > { %v31107_v27 = vpop.f32.mrf.mxu1 }
0x325a   : > { %v21801_v55 = vmul.f32 0.35355338, %v21798_v1 }
0x325c   : > { %v21802_v13 = vadd.f32 %v34589_v36, %v21801_v55 }
0x325e   : > { %v21803_v52 = vsel %vm7998_vm7, %v21802_v13, -inf }
0x325f   : > { %21804 = vmax.xlane.f32.xlu1 %v21803_v52 }
0x3270   : > { %21814 = vrot.lane.b32.xlu1 %v34558_v35, %s32162_s8 }
0x3274   : > { %22286 = vrot.lane.b32.xlu1 %v34556_v40, %s32165_s26 }
0x3278   : > { %22282 = vrot.lane.b32.xlu1 %v34552_v59, %s32165_s26 }
0x32e8   : > { %v21805_v53 = vpop.xlane.xlu1 %21804 }
0x32e9   : > { %v21806_v57 = vsub.f32 %v21802_v13, %v21805_v53 }
0x32eb   : > { %v21807_v49 = vmul.f32 1.442695, %v21806_v57 }
0x32ec   : > { %v21815_v5 = vpop.permute.xlu1 %21814 }
0x32ed   : > { %31867 = vpow2.f32 %v21807_v49  ;;  %v21855_v62 = vand.u32 4294901760, %v21815_v5 }
0x32ef   : > { %v34604_v63 = vsub.f32 %v21815_v5, %v21855_v62 }
0x32f0   : > { %v22287_v15 = vpop.permute.xlu1 %22286 }
0x32f1   : > { %v21938_v16 = vand.u32 4294901760, %v34604_v63  ;;  %v22292_v21 = vsel %vm975_vm4, %v22287_v15, 0 }
0x32f2   : > { %v34613_v32 = vand.u32 4294901760, %v22292_v21 }
0x32f3   : > { %v21939_v28 = vsub.f32 %v34604_v63, %v21938_v16 }
0x32f4   : > { %v34617_v58 = vsub.f32 %v22292_v21, %v34613_v32  ;;  %v22283_v24 = vpop.permute.xlu1 %22282 }
0x32f5   : > { %v21940_v41 = vand.u32 4294901760, %v21939_v28  ;;  %v22288_v29 = vsel %vm975_vm4, %v22283_v24, 0 }
0x32f6   : > { %v22402_v17 = vand.u32 4294901760, %v34617_v58  ;;  %v22361_v8 = vand.u32 4294901760, %v22288_v29 }
0x32f8   : > { %v22403_v25 = vsub.f32 %v34617_v58, %v22402_v17  ;;  %v22362_v60 = vsub.f32 %v22288_v29, %v22361_v8 }
0x32fa   : > { %v31868_v6 = vpop.eup %31867  ;;  %v22404_v3 = vand.u32 4294901760, %v22403_v25  ;;  %v22363_v0 = vand.u32 4294901760, %v22362_v60 }
0x32fb   : > { %v21809_v18 = vsel %vm7998_vm7, %v31868_v6, 0.0 }
0x32fc   : > { %21810 = vadd.xlane.f32.xlu0 %v21809_v18  ;;  %v22364_v38 = vsub.f32 %v22362_v60, %v22363_v0 }
0x32fe   : > { %v22365_v50 = vand.u32 4294901760, %v22364_v38 }
0x3312   : > { %21816 = vrot.lane.b32.xlu0 %v34556_v40, %s32162_s8 }
0x3316   : > { %22284 = vrot.lane.b32.xlu0 %v34558_v35, %s32165_s26 }
0x3385   : > { %v21811_v33 = vpop.xlane.xlu0 %21810 }
0x3386   : > { %31869 = vrcp.f32 %v21811_v33 }
0x3389   : > { %v21817_v2 = vpop.permute.xlu0 %21816 }
0x338a   : > { %v21852_v14 = vand.u32 4294901760, %v21817_v2 }
0x338c   : > { %v21930_v20 = vsub.f32 %v21817_v2, %v21852_v14  ;;  %31109 = vmatpush3.msra.mxu0 %v21852_v14 }
0x338d   : > { %31110 = vmatprep.subr.mxu0 %v32160_v10  ;;  %v22285_v26 = vpop.permute.xlu0 %22284 }
0x338e   : > { %v21931_v23 = vand.u32 4294901760, %v21930_v20  ;;  %31111 = vmatpush3.msra.mxu0 %v21855_v62  ;;  %v22290_v42 = vsel %vm975_vm4, %v22285_v26, 0 }
0x338f   : > { %31122 = vmatprep.subr.mxu0 %v32160_v10  ;;  %v34619_v47 = vand.u32 4294901760, %v22290_v42 }
0x3390   : > { %v21932_v30 = vsub.f32 %v21930_v20, %v21931_v23 }
0x3391   : > { %v34626_v19 = vsub.f32 %v22290_v42, %v34619_v47 }
0x3392   : > { %v21933_v37 = vand.u32 4294901760, %v21932_v30 }
0x3393   : > { %v31870_v31 = vpop.eup %31869  ;;  %v22409_v12 = vand.u32 4294901760, %v34626_v19 }
0x3394   : > { %v21813_v46 = vmul.f32 %v31870_v31, %v31868_v6  ;;  %31116 = vmatpush3.msra.mxu1 %v21933_v37 }
0x3395   : > { %31117 = vmatprep.subr.mxu1 %v32160_v10  ;;  %v22410_v11 = vsub.f32 %v34626_v19, %v22409_v12 }
0x3396   : > { %31118 = vmatpush3.msra.mxu1 %v21940_v41  ;;  %v21821_v34 = vsel %vm7998_vm7, %v21813_v46, 0 }
0x3397   : > { %31129 = vmatprep.subr.mxu1 %v32160_v10  ;;  %v21890_v48 = vand.u32 4294901760, %v21821_v34  ;;  %v22411_v61 = vand.u32 4294901760, %v22410_v11 }
0x3399   : > { %v21891_v44 = vsub.f32 %v21821_v34, %v21890_v48  ;;  %31120 = vmatmul.mubr.f32.vlgmr.msra.gmra.mxu1 %v21890_v48 }
0x339a   : > { %31130 = vmatpush3.msra.mxu1 %v21852_v14  ;;  %31133 = vmatprep.mubr.msk.f32.mxu1 %vm32161_vm1, %v32160_v10 }
0x339b   : > { %31131 = vmatprep.subr.mxu1 %v32160_v10  ;;  %v21892_v56 = vand.u32 4294901760, %v21891_v44 }
0x339c   : > { %31132 = vmatpush3.msra.mxu1 %v21855_v62 }
0x339d   : > { %31143 = vmatprep.subr.mxu1 %v32160_v10  ;;  %31134 = vmatmul.mubr.f32.vlgmr.msra.gmra.mxu1 %v21892_v56  ;;  %v21893_v39 = vsub.f32 %v21891_v44, %v21892_v56 }
0x339e   : > { %31144 = vmatpush3.msra.mxu1 %v21852_v14  ;;  %31147 = vmatprep.mubr.msk.f32.mxu1 %vm32161_vm1, %v32160_v10 }
0x339f   : > { %31145 = vmatprep.subr.mxu1 %v32160_v10  ;;  %v21894_v45 = vand.u32 4294901760, %v21893_v39 }
0x33a0   : > { %31146 = vmatpush3.msra.mxu1 %v21855_v62 }
0x33a1   : > { %31157 = vmatprep.subr.mxu1 %v32160_v10  ;;  %31113 = vmatmul.mubr.f32.vlgmr.msra.gmra.mxu0 %v21894_v45  ;;  %v31902_v45 = vld [vmem:[#allocation10 + $0x100] sm:$0xff] }
0x33a2   : > { %31123 = vmatpush3.msra.mxu0 %v21930_v20  ;;  %31148 = vmatmul.mubr.f32.vlgmr.msra.gmra.mxu1 %v21890_v48 }
0x33a3   : > { %31158 = vmatpush3.xpose.msra.mxu1 %v22404_v3  ;;  %31124 = vmatprep.subr.mxu0 %v32160_v10 }
0x33a4   : > { %31125 = vmatpush3.msra.mxu0 %v34604_v63  ;;  %31126 = vmatprep.mubr.msk.f32.mxu0 %vm32161_vm1, %v32160_v10 }
0x33a5   : > { %31136 = vmatprep.subr.mxu0 %v32160_v10  ;;  %31159 = vmatprep.subr.mxu1 %v32160_v10 }
0x33a6   : > { %31127 = vmatmul.mubr.f32.vlgmr.msra.gmra.mxu0 %v21891_v44  ;;  %31161 = vmatprep.mubr.msk.f32.mxu1 %vm32161_vm1, %v32160_v10 }
0x33a7   : > { %31137 = vmatpush3.msra.mxu0 %v21931_v23  ;;  %31160 = vmatpush3.xpose.msra.mxu1 %v22411_v61 }
0x33a8   : > { %31138 = vmatprep.subr.mxu0 %v32160_v10  ;;  %31140 = vmatprep.mubr.msk.f32.mxu0 %vm32161_vm1, %v32160_v10 }
0x33a9   : > { %31139 = vmatpush3.msra.mxu0 %v21938_v16  ;;  %31171 = vmatprep.subr.mxu1 %v32160_v10 }
0x33aa   : > { %31150 = vmatprep.subr.mxu0 %v32160_v10  ;;  %31162 = vmatmul.mubr.f32.vlgmr.msra.gmra.mxu1 %v22361_v8 }
0x33ab   : > { %31141 = vmatmul.mubr.f32.vlgmr.msra.gmra.mxu0 %v21890_v48  ;;  %31172 = vmatpush3.xpose.msra.mxu1 %v34613_v32 }
0x33ac   : > { %31151 = vmatpush3.xpose.msra.mxu0 %v34613_v32  ;;  %31173 = vmatprep.subr.mxu1 %v32160_v10 }
0x33ad   : > { %31152 = vmatprep.subr.mxu0 %v32160_v10  ;;  %31154 = vmatprep.mubr.msk.f32.mxu0 %vm32161_vm1, %v32160_v10 }
0x33ae   : > { %31175 = vmatprep.mubr.msk.f32.mxu1 %vm32161_vm1, %v32160_v10 }
0x33af   : > { %31174 = vmatpush3.xpose.msra.mxu1 %v34619_v47 }
0x33b0   : > { %31153 = vmatpush3.xpose.msra.mxu0 %v34619_v47  ;;  %31185 = vmatprep.subr.mxu1 %v32160_v10 }
0x33b1   : > { %31164 = vmatprep.subr.mxu0 %v32160_v10 }
0x33b2   : > { %31176 = vmatmul.mubr.f32.vlgmr.msra.gmra.mxu1 %v22363_v0 }
0x33b3   : > { %31155 = vmatmul.mubr.f32.vlgmr.msra.gmra.mxu0 %v22365_v50  ;;  %31186 = vmatpush3.xpose.msra.mxu1 %v34613_v32 }
0x33b4   : > { %31165 = vmatpush3.xpose.msra.mxu0 %v34617_v58  ;;  %31187 = vmatprep.subr.mxu1 %v32160_v10 }
0x33b5   : > { %31166 = vmatprep.subr.mxu0 %v32160_v10  ;;  %31168 = vmatprep.mubr.msk.f32.mxu0 %vm32161_vm1, %v32160_v10 }
0x33b6   : > { %31189 = vmatprep.mubr.msk.f32.mxu1 %vm32161_vm1, %v32160_v10 }
0x33b7   : > { %31188 = vmatpush3.xpose.msra.mxu1 %v34619_v47  ;;  %v31901_v47 = vld [vmem:[#allocation10 + $0x108] sm:$0xff] }
0x33b8   : > { %31167 = vmatpush3.xpose.msra.mxu0 %v34626_v19  ;;  %31199 = vmatprep.subr.mxu1 %v32160_v10 }
0x33b9   : > { %31178 = vmatprep.subr.mxu0 %v32160_v10 }
0x33ba   : > { %31190 = vmatmul.mubr.f32.vlgmr.msra.gmra.mxu1 %v22361_v8 }
0x33bb   : > { %31169 = vmatmul.mubr.f32.vlgmr.msra.gmra.mxu0 %v22362_v60  ;;  %31203 = vmatprep.mubr.msk.f32.mxu1 %vm32161_vm1, %v32160_v10 }
0x33bc   : > { %31179 = vmatpush3.xpose.msra.mxu0 %v22402_v17  ;;  %31182 = vmatprep.mubr.msk.f32.mxu0 %vm32161_vm1, %v32160_v10 }
0x33bd   : > { %31180 = vmatprep.subr.mxu0 %v32160_v10 }
0x33c0   : > { %31181 = vmatpush3.xpose.msra.mxu0 %v22409_v12 }
0x33c1   : > { %31192 = vmatprep.subr.mxu0 %v32160_v10 }
0x33c3   : > { %31183 = vmatmul.mubr.f32.vlgmr.msra.gmra.mxu0 %v22361_v8 }
0x33c4   : > { %31196 = vmatprep.mubr.msk.f32.mxu0 %vm32161_vm1, %v32160_v10 }
0x3459   : > { %v21977_v43 = vpop.f32.mrf.mxu1 }
0x345b   : > { %v31121_v51 = vpop.f32.mrf.mxu1 }
0x345d   : > { %v22128_v4 = vpop.f32.mrf.mxu1 }
0x345f   : > { %v31135_v54 = vpop.f32.mrf.mxu1 }
0x3461   : > { %v21896_v9 = vpop.f32.mrf.mxu0 }
0x3462   : > { %v21978_v7 = vadd.f32 %v21977_v43, %v21896_v9  ;;  %v22278_v1 = vpop.f32.mrf.mxu1 }
0x3463   : > { %v31114_v27 = vpop.f32.mrf.mxu0 }
0x3464   : > { %v31149_v55 = vpop.f32.mrf.mxu1 }
0x3466   : > { %v22053_v13 = vpop.f32.mrf.mxu0 }
0x3467   : > { %v22054_v52 = vadd.f32 %v22053_v13, %v21978_v7 }
0x3468   : > { %v31128_v53 = vpop.f32.mrf.mxu0 }
0x3469   : > { %v22129_v57 = vadd.f32 %v22128_v4, %v22054_v52 }
0x346a   : > { %v22448_v49 = vpop.f32.mrf.mxu1 }
0x346b   : > { %v22205_v6 = vpop.f32.mrf.mxu0 }
0x346c   : > { %v22206_v18 = vadd.f32 %v22205_v6, %v22129_v57  ;;  %v31163_v5 = vpop.f32.mrf.mxu1 }
0x346d   : > { %v31142_v62 = vpop.f32.mrf.mxu0 }
0x346e   : > { %v34695_v33 = vadd.f32 %v22278_v1, %v22206_v18 }
0x3472   : > { %v22599_v63 = vpop.f32.mrf.mxu1 }
0x3473   : > { %v22367_v2 = vpop.f32.mrf.mxu0 }
0x3474   : > { %v31177_v14 = vpop.f32.mrf.mxu1  ;;  %v22449_v21 = vadd.f32 %v22448_v49, %v22367_v2 }
0x3475   : > { %v31156_v15 = vpop.f32.mrf.mxu0 }
0x347a   : > { %v22749_v16 = vpop.f32.mrf.mxu1 }
0x347b   : > { %v22524_v20 = vpop.f32.mrf.mxu0 }
0x347c   : > { %v31191_v23 = vpop.f32.mrf.mxu1  ;;  %v22525_v28 = vadd.f32 %v22524_v20, %v22449_v21 }
0x347d   : > { %v31170_v26 = vpop.f32.mrf.mxu0 }
0x347e   : > { %v22600_v30 = vadd.f32 %v22599_v63, %v22525_v28 }
0x3483   : > { %v22676_v32 = vpop.f32.mrf.mxu0 }
0x3484   : > { %v22677_v37 = vadd.f32 %v22676_v32, %v22600_v30 }
0x3485   : > { %v31184_v42 = vpop.f32.mrf.mxu0 }
0x3486   : > { %v22750_v31 = vadd.f32 %v22749_v16, %v22677_v37 }
0x3488   : > { %v22753_v41 = vmul.f32 0.35355338, %v22750_v31 }
0x348a   : > { %v22754_v46 = vadd.f32 %v34589_v36, %v22753_v41 }
0x348c   : > { %v22755_v58 = vsel %vm7998_vm7, %v22754_v46, -inf }
0x348d   : > { %22756 = vmax.xlane.f32.xlu0 %v22755_v58 }
0x34a3   : > { %22768 = vrot.lane.b32.xlu0 %v34556_v40, %s32164_s13 }
0x34a7   : > { %23235 = vrot.lane.b32.xlu0 %v31901_v47, %s32162_s8 }
0x34ab   : > { %24144 = vrot.lane.b32.xlu0 %v34556_v40, %s32168_s17 }
0x34af   : > { %24140 = vrot.lane.b32.xlu0 %v34552_v59, %s32168_s17 }
0x3516   : > { %v22757_v34 = vpop.xlane.xlu0 %22756 }
0x3517   : > { %v22758_v48 = vsub.f32 %v22754_v46, %v22757_v34  ;;  %v23692_v34 = vsel %vm975_vm4, %v34695_v33, 0 }
0x3519   : > { %v22759_v17 = vmul.f32 1.442695, %v22758_v48 }
0x351a   : > { %v22769_v19 = vpop.permute.xlu0 %22768 }
0x351b   : > { %31871 = vpow2.f32 %v22759_v17  ;;  %v22804_v44 = vand.u32 4294901760, %v22769_v19 }
0x351d   : > { %v22882_v24 = vsub.f32 %v22769_v19, %v22804_v44  ;;  %31193 = vmatpush3.msra.mxu0 %v22804_v44 }
0x351e   : > { %31194 = vmatprep.subr.mxu0 %v32160_v10  ;;  %v23236_v0 = vpop.permute.xlu0 %23235 }
0x351f   : > { %v22883_v56 = vand.u32 4294901760, %v22882_v24  ;;  %v34715_v38 = vand.u32 4294901760, %v23236_v0 }
0x3521   : > { %v22884_v25 = vsub.f32 %v22882_v24, %v22883_v56  ;;  %v34718_v4 = vsub.f32 %v23236_v0, %v34715_v38 }
0x3522   : > { %v24145_v41 = vpop.permute.xlu0 %24144 }
0x3523   : > { %v22885_v12 = vand.u32 4294901760, %v22884_v25  ;;  %v23350_v1 = vand.u32 4294901760, %v34718_v4  ;;  %v24150_v48 = vsel %vm975_vm4, %v24145_v41, 0 }
0x3524   : > { %v34765_v33 = vand.u32 4294901760, %v24150_v48 }
0x3525   : > { %31200 = vmatpush3.msra.mxu1 %v22885_v12  ;;  %v23351_v13 = vsub.f32 %v34718_v4, %v23350_v1 }
0x3526   : > { %31201 = vmatprep.subr.mxu1 %v32160_v10  ;;  %v24141_v0 = vpop.permute.xlu0 %24140 }
0x3527   : > { %v23352_v57 = vand.u32 4294901760, %v23351_v13 }
0x3528   : > { %v31872_v39 = vpop.eup %31871 }
0x3529   : > { %v22761_v29 = vsel %vm7998_vm7, %v31872_v39, 0.0 }
0x352a   : > { %22762 = vadd.xlane.f32.xlu1 %v22761_v29 }
0x353b   : > { %22766 = vrot.lane.b32.xlu1 %v34558_v35, %s32164_s13 }
0x353f   : > { %23688 = vrot.lane.b32.xlu1 %v31902_v45, %s32162_s8 }
0x3543   : > { %24142 = vrot.lane.b32.xlu1 %v34558_v35, %s32168_s17 }
0x35b3   : > { %v22763_v3 = vpop.xlane.xlu1 %22762 }
0x35b4   : > { %31873 = vrcp.f32 %v22763_v3  ;;  %v34774_v3 = vsub.f32 %v24150_v48, %v34765_v33 }
0x35b7   : > { %v22767_v8 = vpop.permute.xlu1 %22766 }
0x35b8   : > { %v22807_v11 = vand.u32 4294901760, %v22767_v8 }
0x35ba   : > { %v22889_v60 = vsub.f32 %v22767_v8, %v22807_v11  ;;  %31195 = vmatpush3.msra.mxu0 %v22807_v11 }
0x35bb   : > { %31206 = vmatprep.subr.mxu0 %v32160_v10  ;;  %v23689_v16 = vpop.permute.xlu1 %23688 }
0x35bc   : > { %v22890_v61 = vand.u32 4294901760, %v22889_v60  ;;  %v23725_v21 = vand.u32 4294901760, %v23689_v16 }
0x35be   : > { %v22891_v50 = vsub.f32 %v22889_v60, %v22890_v61  ;;  %v34749_v32 = vsub.f32 %v23689_v16, %v23725_v21 }
0x35c0   : > { %v22892_v43 = vand.u32 4294901760, %v22891_v50  ;;  %v23803_v46 = vand.u32 4294901760, %v34749_v32 }
0x35c1   : > { %v31874_v51 = vpop.eup %31873 }
0x35c2   : > { %v22765_v54 = vmul.f32 %v31874_v51, %v31872_v39  ;;  %31202 = vmatpush3.msra.mxu1 %v22892_v43  ;;  %v23804_v19 = vsub.f32 %v34749_v32, %v23803_v46  ;;  %v24146_v43 = vsel %vm975_vm4, %v24141_v0, 0 }
0x35c3   : > { %31213 = vmatprep.subr.mxu1 %v32160_v10 }
0x35c4   : > { %v22773_v9 = vsel %vm7998_vm7, %v22765_v54, 0  ;;  %v23805_v39 = vand.u32 4294901760, %v23804_v19  ;;  %v24219_v54 = vand.u32 4294901760, %v24146_v43 }
0x35c5   : > { %v22842_v7 = vand.u32 4294901760, %v22773_v9 }
0x35c7   : > { %v22843_v27 = vsub.f32 %v22773_v9, %v22842_v7  ;;  %31204 = vmatmul.mubr.f32.vlgmr.msra.gmra.mxu1 %v22842_v7 }
0x35c8   : > { %31214 = vmatpush3.msra.mxu1 %v22804_v44  ;;  %31217 = vmatprep.mubr.msk.f32.mxu1 %vm32161_vm1, %v32160_v10 }
0x35c9   : > { %31215 = vmatprep.subr.mxu1 %v32160_v10  ;;  %v22844_v55 = vand.u32 4294901760, %v22843_v27 }
0x35ca   : > { %31216 = vmatpush3.msra.mxu1 %v22807_v11 }
0x35cb   : > { %31227 = vmatprep.subr.mxu1 %v32160_v10  ;;  %31218 = vmatmul.mubr.f32.vlgmr.msra.gmra.mxu1 %v22844_v55  ;;  %v22845_v52 = vsub.f32 %v22843_v27, %v22844_v55 }
0x35cc   : > { %31228 = vmatpush3.msra.mxu1 %v22804_v44  ;;  %31231 = vmatprep.mubr.msk.f32.mxu1 %vm32161_vm1, %v32160_v10  ;;  %v24143_v44 = vpop.permute.xlu1 %24142 }
0x35cd   : > { %31229 = vmatprep.subr.mxu1 %v32160_v10  ;;  %v22846_v53 = vand.u32 4294901760, %v22845_v52  ;;  %v24148_v25 = vsel %vm975_vm4, %v24143_v44, 0 }
0x35ce   : > { %31230 = vmatpush3.msra.mxu1 %v22807_v11  ;;  %v34776_v8 = vand.u32 4294901760, %v24148_v25 }
0x35cf   : > { %31197 = vmatmul.mubr.f32.vlgmr.msra.gmra.mxu0 %v22846_v53  ;;  %31232 = vmatmul.mubr.f32.vlgmr.msra.gmra.mxu1 %v22842_v7 }
0x35d0   : > { %31207 = vmatpush3.msra.mxu0 %v22882_v24  ;;  %31210 = vmatprep.mubr.msk.f32.mxu0 %vm32161_vm1, %v32160_v10  ;;  %v34762_v24 = vand.u32 4294901760, %v23692_v34 }
0x35d1   : > { %31208 = vmatprep.subr.mxu0 %v32160_v10  ;;  %31239 = vmatprep.subr.mxu1 %v32160_v10 }
0x35d2   : > { %31209 = vmatpush3.msra.mxu0 %v22889_v60  ;;  %31240 = vmatpush3.msra.mxu1 %v23352_v57  ;;  %v23761_v29 = vsub.f32 %v23692_v34, %v34762_v24  ;;  %v24260_v60 = vand.u32 4294901760, %v34774_v3 }
0x35d3   : > { %31220 = vmatprep.subr.mxu0 %v32160_v10  ;;  %31211 = vmatmul.mubr.f32.vlgmr.msra.gmra.mxu0 %v22843_v27 }
0x35d4   : > { %31221 = vmatpush3.msra.mxu0 %v22883_v56  ;;  %31224 = vmatprep.mubr.msk.f32.mxu0 %vm32161_vm1, %v32160_v10  ;;  %v23762_v11 = vand.u32 4294901760, %v23761_v29  ;;  %v24261_v50 = vsub.f32 %v34774_v3, %v24260_v60 }
0x35d5   : > { %31222 = vmatprep.subr.mxu0 %v32160_v10  ;;  %31241 = vmatprep.mubr.msk.f32.mxu1 %vm32161_vm1, %v32160_v10 }
0x35d6   : > { %31223 = vmatpush3.msra.mxu0 %v22890_v61  ;;  %31249 = vmatprep.subr.mxu1 %v32160_v10  ;;  %v34784_v61 = vsub.f32 %v24148_v25, %v34776_v8  ;;  %v24262_v9 = vand.u32 4294901760, %v24261_v50 }
0x35d7   : > { %31225 = vmatmul.mubr.f32.vlgmr.msra.gmra.mxu0 %v22842_v7  ;;  %31234 = vmatprep.subr.mxu0 %v32160_v10 }
0x35d8   : > { %31235 = vmatpush3.msra.mxu0 %v34715_v38  ;;  %31236 = vmatprep.mubr.msk.f32.mxu0 %vm32161_vm1, %v32160_v10  ;;  %v24267_v51 = vand.u32 4294901760, %v34784_v61 }
0x35d9   : > { %31244 = vmatprep.subr.mxu0 %v32160_v10 }
0x35da   : > { %v24268_v7 = vsub.f32 %v34784_v61, %v24267_v51 }
0x35dc   : > { %v24269_v27 = vand.u32 4294901760, %v24268_v7 }
0x3687   : > { %v22929_v49 = vpop.f32.mrf.mxu1 }
0x3689   : > { %v31205_v6 = vpop.f32.mrf.mxu1 }
0x368b   : > { %v23080_v18 = vpop.f32.mrf.mxu1 }
0x368d   : > { %v31219_v5 = vpop.f32.mrf.mxu1 }
0x368f   : > { %v22848_v62 = vpop.f32.mrf.mxu0  ;;  %v23230_v63 = vpop.f32.mrf.mxu1 }
0x3690   : > { %v22930_v15 = vadd.f32 %v22929_v49, %v22848_v62 }
0x3691   : > { %v31198_v2 = vpop.f32.mrf.mxu0  ;;  %v31233_v14 = vpop.f32.mrf.mxu1 }
0x3693   : > { %v23005_v20 = vpop.f32.mrf.mxu0 }
0x3694   : > { %v23006_v23 = vadd.f32 %v23005_v20, %v22930_v15 }
0x3695   : > { %v31212_v26 = vpop.f32.mrf.mxu0 }
0x3696   : > { %v23081_v28 = vadd.f32 %v23080_v18, %v23006_v23 }
0x3697   : > { %v23157_v30 = vpop.f32.mrf.mxu0 }
0x3698   : > { %v23158_v37 = vadd.f32 %v23157_v30, %v23081_v28 }
0x3699   : > { %v31226_v42 = vpop.f32.mrf.mxu0 }
0x369a   : > { %v23231_v31 = vadd.f32 %v23230_v63, %v23158_v37 }
0x369c   : > { %v23239_v58 = vsel %vm975_vm4, %v23231_v31, 0 }
0x369d   : > { %v23307_v47 = vand.u32 4294901760, %v23239_v58 }
0x369f   : > { %v23308_v17 = vsub.f32 %v23239_v58, %v23307_v47  ;;  %31242 = vmatmul.mubr.f32.vlgmr.msra.gmra.mxu1 %v23307_v47 }
0x36a0   : > { %31250 = vmatpush3.msra.mxu1 %v34715_v38  ;;  %31251 = vmatprep.mubr.msk.f32.mxu1 %vm32161_vm1, %v32160_v10 }
0x36a1   : > { %v23309_v56 = vand.u32 4294901760, %v23308_v17  ;;  %31259 = vmatprep.subr.mxu1 %v32160_v10 }
0x36a3   : > { %v23310_v12 = vsub.f32 %v23308_v17, %v23309_v56  ;;  %31252 = vmatmul.mubr.f32.vlgmr.msra.gmra.mxu1 %v23309_v56 }
0x36a4   : > { %31260 = vmatpush3.msra.mxu1 %v34715_v38  ;;  %31261 = vmatprep.mubr.msk.f32.mxu1 %vm32161_vm1, %v32160_v10  ;;  %v23763_v38 = vsub.f32 %v23761_v29, %v23762_v11 }
0x36a5   : > { %v23311_v45 = vand.u32 4294901760, %v23310_v12  ;;  %31269 = vmatprep.subr.mxu1 %v32160_v10 }
0x36a7   : > { %31237 = vmatmul.mubr.f32.vlgmr.msra.gmra.mxu0 %v23311_v45  ;;  %31262 = vmatmul.mubr.f32.vlgmr.msra.gmra.mxu1 %v23307_v47 }
0x36a8   : > { %31245 = vmatpush3.msra.mxu0 %v34718_v4  ;;  %31270 = vmatpush3.msra.mxu1 %v23805_v39  ;;  %v23764_v4 = vand.u32 4294901760, %v23763_v38 }
0x36a9   : > { %31246 = vmatprep.mubr.msk.f32.mxu0 %vm32161_vm1, %v32160_v10  ;;  %31254 = vmatprep.subr.mxu0 %v32160_v10 }
0x36aa   : > { %31271 = vmatprep.mubr.msk.f32.mxu1 %vm32161_vm1, %v32160_v10  ;;  %31279 = vmatprep.subr.mxu1 %v32160_v10 }
0x36ab   : > { %31247 = vmatmul.mubr.f32.vlgmr.msra.gmra.mxu0 %v23308_v17  ;;  %31272 = vmatmul.mubr.f32.vlgmr.msra.gmra.mxu1 %v34762_v24 }
0x36ac   : > { %31255 = vmatpush3.msra.mxu0 %v23350_v1  ;;  %31280 = vmatpush3.msra.mxu1 %v23725_v21  ;;  %v24220_v1 = vsub.f32 %v24146_v43, %v24219_v54 }
0x36ad   : > { %31256 = vmatprep.mubr.msk.f32.mxu0 %vm32161_vm1, %v32160_v10  ;;  %31264 = vmatprep.subr.mxu0 %v32160_v10 }
0x36ae   : > { %31281 = vmatprep.mubr.msk.f32.mxu1 %vm32161_vm1, %v32160_v10  ;;  %31289 = vmatprep.subr.mxu1 %v32160_v10  ;;  %v24221_v55 = vand.u32 4294901760, %v24220_v1 }
0x36af   : > { %31257 = vmatmul.mubr.f32.vlgmr.msra.gmra.mxu0 %v23307_v47  ;;  %31282 = vmatmul.mubr.f32.vlgmr.msra.gmra.mxu1 %v23762_v11 }
0x36b0   : > { %31265 = vmatpush3.msra.mxu0 %v23725_v21  ;;  %31290 = vmatpush3.msra.mxu1 %v23725_v21  ;;  %v24222_v13 = vsub.f32 %v24220_v1, %v24221_v55 }
0x36b1   : > { %31266 = vmatprep.mubr.msk.f32.mxu0 %vm32161_vm1, %v32160_v10  ;;  %31274 = vmatprep.subr.mxu0 %v32160_v10 }
0x36b2   : > { %31291 = vmatprep.mubr.msk.f32.mxu1 %vm32161_vm1, %v32160_v10  ;;  %31301 = vmatprep.subr.mxu1 %v32160_v10  ;;  %v24223_v52 = vand.u32 4294901760, %v24222_v13 }
0x36b3   : > { %31267 = vmatmul.mubr.f32.vlgmr.msra.gmra.mxu0 %v23764_v4  ;;  %31292 = vmatmul.mubr.f32.vlgmr.msra.gmra.mxu1 %v34762_v24 }
0x36b4   : > { %31275 = vmatpush3.msra.mxu0 %v34749_v32  ;;  %31302 = vmatpush3.xpose.msra.mxu1 %v24262_v9 }
0x36b5   : > { %31276 = vmatprep.mubr.msk.f32.mxu0 %vm32161_vm1, %v32160_v10  ;;  %31284 = vmatprep.subr.mxu0 %v32160_v10 }
0x36b6   : > { %31303 = vmatprep.subr.mxu1 %v32160_v10  ;;  %31305 = vmatprep.mubr.msk.f32.mxu1 %vm32161_vm1, %v32160_v10 }
0x36b7   : > { %31277 = vmatmul.mubr.f32.vlgmr.msra.gmra.mxu0 %v23761_v29 }
0x36b8   : > { %31285 = vmatpush3.msra.mxu0 %v23803_v46  ;;  %31304 = vmatpush3.xpose.msra.mxu1 %v24269_v27 }
0x36b9   : > { %31286 = vmatprep.mubr.msk.f32.mxu0 %vm32161_vm1, %v32160_v10  ;;  %31294 = vmatprep.subr.mxu0 %v32160_v10 }
0x36ba   : > { %31315 = vmatprep.subr.mxu1 %v32160_v10 }
0x36bb   : > { %31306 = vmatmul.mubr.f32.vlgmr.msra.gmra.mxu1 %v24219_v54  ;;  %31287 = vmatmul.mubr.f32.vlgmr.msra.gmra.mxu0 %v34762_v24 }
0x36bc   : > { %31295 = vmatpush3.xpose.msra.mxu0 %v34765_v33  ;;  %31316 = vmatpush3.xpose.msra.mxu1 %v34765_v33 }
0x36bd   : > { %31296 = vmatprep.subr.mxu0 %v32160_v10  ;;  %31317 = vmatprep.subr.mxu1 %v32160_v10 }
0x36be   : > { %31298 = vmatprep.mubr.msk.f32.mxu0 %vm32161_vm1, %v32160_v10  ;;  %31319 = vmatprep.mubr.msk.f32.mxu1 %vm32161_vm1, %v32160_v10 }
0x36c0   : > { %31297 = vmatpush3.xpose.msra.mxu0 %v34776_v8  ;;  %31318 = vmatpush3.xpose.msra.mxu1 %v34776_v8 }
0x36c1   : > { %31308 = vmatprep.subr.mxu0 %v32160_v10  ;;  %31329 = vmatprep.subr.mxu1 %v32160_v10 }
0x36c3   : > { %31299 = vmatmul.mubr.f32.vlgmr.msra.gmra.mxu0 %v24223_v52  ;;  %31320 = vmatmul.mubr.f32.vlgmr.msra.gmra.mxu1 %v24221_v55  ;;  %v31903_v55 = vld [vmem:[#allocation10 + $0x110] sm:$0xff] }
0x36c4   : > { %31309 = vmatpush3.xpose.msra.mxu0 %v34774_v3  ;;  %31330 = vmatpush3.xpose.msra.mxu1 %v34765_v33 }
0x36c5   : > { %31310 = vmatprep.subr.mxu0 %v32160_v10  ;;  %31331 = vmatprep.subr.mxu1 %v32160_v10 }
0x36c6   : > { %31312 = vmatprep.mubr.msk.f32.mxu0 %vm32161_vm1, %v32160_v10  ;;  %31333 = vmatprep.mubr.msk.f32.mxu1 %vm32161_vm1, %v32160_v10 }
0x36c8   : > { %31311 = vmatpush3.xpose.msra.mxu0 %v34784_v61  ;;  %31332 = vmatpush3.xpose.msra.mxu1 %v34776_v8 }
0x36c9   : > { %31322 = vmatprep.subr.mxu0 %v32160_v10  ;;  %31343 = vmatprep.subr.mxu1 %v32160_v10 }
0x36cb   : > { %31313 = vmatmul.mubr.f32.vlgmr.msra.gmra.mxu0 %v24220_v1  ;;  %31334 = vmatmul.mubr.f32.vlgmr.msra.gmra.mxu1 %v24219_v54 }
0x36cc   : > { %31323 = vmatpush3.xpose.msra.mxu0 %v24260_v60  ;;  %31326 = vmatprep.mubr.msk.f32.mxu0 %vm32161_vm1, %v32160_v10 }
0x36cd   : > { %31324 = vmatprep.subr.mxu0 %v32160_v10  ;;  %31347 = vmatprep.mubr.msk.f32.mxu1 %vm32161_vm1, %v32160_v10 }
0x36d0   : > { %31325 = vmatpush3.xpose.msra.mxu0 %v24267_v51 }
0x36d1   : > { %31336 = vmatprep.subr.mxu0 %v32160_v10 }
0x36d3   : > { %31327 = vmatmul.mubr.f32.vlgmr.msra.gmra.mxu0 %v24219_v54 }
0x36d4   : > { %31340 = vmatprep.mubr.msk.f32.mxu0 %vm32161_vm1, %v32160_v10 }
0x375f   : > { %v23389_v53 = vpop.f32.mrf.mxu1 }
0x3761   : > { %v31243_v57 = vpop.f32.mrf.mxu1 }
0x3763   : > { %v23537_v49 = vpop.f32.mrf.mxu1 }
0x3765   : > { %v31253_v6 = vpop.f32.mrf.mxu1 }
0x3767   : > { %v23313_v18 = vpop.f32.mrf.mxu0  ;;  %v23683_v5 = vpop.f32.mrf.mxu1 }
0x3768   : > { %v23390_v62 = vadd.f32 %v23389_v53, %v23313_v18 }
0x3769   : > { %v31238_v63 = vpop.f32.mrf.mxu0  ;;  %v31263_v2 = vpop.f32.mrf.mxu1 }
0x376b   : > { %v23463_v14 = vpop.f32.mrf.mxu0  ;;  %v23842_v15 = vpop.f32.mrf.mxu1 }
0x376c   : > { %v23464_v16 = vadd.f32 %v23463_v14, %v23390_v62 }
0x376d   : > { %v31248_v20 = vpop.f32.mrf.mxu0  ;;  %v31273_v21 = vpop.f32.mrf.mxu1 }
0x376e   : > { %v23538_v23 = vadd.f32 %v23537_v49, %v23464_v16 }
0x376f   : > { %v23611_v26 = vpop.f32.mrf.mxu0  ;;  %v23990_v28 = vpop.f32.mrf.mxu1 }
0x3770   : > { %v23612_v30 = vadd.f32 %v23611_v26, %v23538_v23 }
0x3771   : > { %v31258_v32 = vpop.f32.mrf.mxu0  ;;  %v31283_v37 = vpop.f32.mrf.mxu1 }
0x3772   : > { %v23684_v42 = vadd.f32 %v23683_v5, %v23612_v30 }
0x3773   : > { %v23766_v31 = vpop.f32.mrf.mxu0  ;;  %v24136_v41 = vpop.f32.mrf.mxu1 }
0x3774   : > { %v23767_v46 = vadd.f32 %v23766_v31, %v23684_v42 }
0x3775   : > { %v31268_v58 = vpop.f32.mrf.mxu0  ;;  %v31293_v47 = vpop.f32.mrf.mxu1 }
0x3776   : > { %v23843_v34 = vadd.f32 %v23842_v15, %v23767_v46 }
0x3777   : > { %v23916_v48 = vpop.f32.mrf.mxu0 }
0x3778   : > { %v23917_v17 = vadd.f32 %v23916_v48, %v23843_v34 }
0x3779   : > { %v31278_v19 = vpop.f32.mrf.mxu0 }
0x377a   : > { %v23991_v44 = vadd.f32 %v23990_v28, %v23917_v17 }
0x377b   : > { %v24306_v24 = vpop.f32.mrf.mxu1  ;;  %v24064_v56 = vpop.f32.mrf.mxu0 }
0x377c   : > { %v24065_v33 = vadd.f32 %v24064_v56, %v23991_v44 }
0x377d   : > { %v31307_v25 = vpop.f32.mrf.mxu1  ;;  %v31288_v12 = vpop.f32.mrf.mxu0 }
0x377e   : > { %v34863_v39 = vadd.f32 %v24136_v41, %v24065_v33 }
0x3783   : > { %v24225_v29 = vpop.f32.mrf.mxu0  ;;  %v24457_v45 = vpop.f32.mrf.mxu1 }
0x3784   : > { %v24307_v61 = vadd.f32 %v24306_v24, %v24225_v29 }
0x3785   : > { %v31300_v3 = vpop.f32.mrf.mxu0  ;;  %v31321_v8 = vpop.f32.mrf.mxu1 }
0x378b   : > { %v24382_v11 = vpop.f32.mrf.mxu0  ;;  %v24607_v60 = vpop.f32.mrf.mxu1 }
0x378c   : > { %v24383_v50 = vadd.f32 %v24382_v11, %v24307_v61 }
0x378d   : > { %v31314_v0 = vpop.f32.mrf.mxu0  ;;  %v31335_v38 = vpop.f32.mrf.mxu1 }
0x378e   : > { %v24458_v43 = vadd.f32 %v24457_v45, %v24383_v50 }
0x3793   : > { %v24534_v51 = vpop.f32.mrf.mxu0 }
0x3794   : > { %v24535_v4 = vadd.f32 %v24534_v51, %v24458_v43 }
0x3795   : > { %v31328_v54 = vpop.f32.mrf.mxu0 }
0x3796   : > { %v24608_v9 = vadd.f32 %v24607_v60, %v24535_v4 }
0x3798   : > { %v24611_v7 = vmul.f32 0.35355338, %v24608_v9 }
0x379a   : > { %v24612_v1 = vadd.f32 %v34589_v36, %v24611_v7 }
0x379c   : > { %v24613_v27 = vsel %vm7998_vm7, %v24612_v1, -inf }
0x379d   : > { %24614 = vmax.xlane.f32.xlu1 %v24613_v27 }
0x37ae   : > { %24624 = vrot.lane.b32.xlu1 %v34558_v35, %s32167_s16 }
0x37b2   : > { %25093 = vrot.lane.b32.xlu1 %v31903_v55, %s32162_s8 }
0x37b6   : > { %25548 = vrot.lane.b32.xlu1 %v34558_v35, %s32171_s4 }
0x3826   : > { %v24615_v13 = vpop.xlane.xlu1 %24614 }
0x3827   : > { %v24616_v52 = vsub.f32 %v24612_v1, %v24615_v13 }
0x3829   : > { %v24617_v53 = vmul.f32 1.442695, %v24616_v52 }
0x382a   : > { %v24625_v36 = vpop.permute.xlu1 %24624 }
0x382b   : > { %31875 = vpow2.f32 %v24617_v53  ;;  %v24665_v6 = vand.u32 4294901760, %v24625_v36 }
0x382d   : > { %v24747_v5 = vsub.f32 %v24625_v36, %v24665_v6 }
0x382e   : > { %v25094_v16 = vpop.permute.xlu1 %25093 }
0x382f   : > { %v24748_v2 = vand.u32 4294901760, %v24747_v5  ;;  %v34881_v21 = vand.u32 4294901760, %v25094_v16 }
0x3831   : > { %v24749_v20 = vsub.f32 %v24747_v5, %v24748_v2  ;;  %v34884_v30 = vsub.f32 %v25094_v16, %v34881_v21 }
0x3832   : > { %v25549_v11 = vpop.permute.xlu1 %25548 }
0x3833   : > { %v24750_v28 = vand.u32 4294901760, %v24749_v20  ;;  %v25208_v31 = vand.u32 4294901760, %v34884_v30  ;;  %v25554_v50 = vsel %vm975_vm4, %v25549_v11, 0 }
0x3834   : > { %v34920_v54 = vand.u32 4294901760, %v25554_v50 }
0x3835   : > { %v25209_v58 = vsub.f32 %v34884_v30, %v25208_v31 }
0x3836   : > { %v34927_v55 = vsub.f32 %v25554_v50, %v34920_v54 }
0x3837   : > { %v25210_v48 = vand.u32 4294901760, %v25209_v58 }
0x3838   : > { %v31876_v57 = vpop.eup %31875 }
0x3839   : > { %v24619_v49 = vsel %vm7998_vm7, %v31876_v57, 0.0 }
0x383a   : > { %24620 = vadd.xlane.f32.xlu0 %v24619_v49  ;;  %v25673_v49 = vand.u32 4294901760, %v34927_v55 }
0x3850   : > { %24626 = vrot.lane.b32.xlu0 %v34556_v40, %s32167_s16 }
0x3854   : > { %25550 = vrot.lane.b32.xlu0 %v34556_v40, %s32171_s4 }
0x3858   : > { %25546 = vrot.lane.b32.xlu0 %v34552_v59, %s32171_s4 }
0x38c3   : > { %v24621_v18 = vpop.xlane.xlu0 %24620 }
0x38c4   : > { %31877 = vrcp.f32 %v24621_v18 }
0x38c7   : > { %v24627_v62 = vpop.permute.xlu0 %24626 }
0x38c8   : > { %v24662_v63 = vand.u32 4294901760, %v24627_v62 }
0x38ca   : > { %v24740_v14 = vsub.f32 %v24627_v62, %v24662_v63  ;;  %31337 = vmatpush3.msra.mxu0 %v24662_v63 }
0x38cb   : > { %31338 = vmatprep.subr.mxu0 %v32160_v10  ;;  %v25551_v25 = vpop.permute.xlu0 %25550 }
0x38cc   : > { %v24741_v15 = vand.u32 4294901760, %v24740_v14  ;;  %31339 = vmatpush3.msra.mxu0 %v24665_v6  ;;  %v25556_v3 = vsel %vm975_vm4, %v25551_v25, 0 }
0x38cd   : > { %31350 = vmatprep.subr.mxu0 %v32160_v10  ;;  %v34917_v0 = vand.u32 4294901760, %v25556_v3 }
0x38ce   : > { %v24742_v59 = vsub.f32 %v24740_v14, %v24741_v15 }
0x38cf   : > { %v34923_v9 = vsub.f32 %v25556_v3, %v34917_v0  ;;  %v25547_v52 = vpop.permute.xlu0 %25546 }
0x38d0   : > { %v24743_v23 = vand.u32 4294901760, %v24742_v59 }
0x38d1   : > { %v31878_v26 = vpop.eup %31877  ;;  %v25666_v13 = vand.u32 4294901760, %v34923_v9 }
0x38d2   : > { %v24623_v32 = vmul.f32 %v31878_v26, %v31876_v57  ;;  %31344 = vmatpush3.msra.mxu1 %v24743_v23 }
0x38d3   : > { %31345 = vmatprep.subr.mxu1 %v32160_v10  ;;  %v25667_v36 = vsub.f32 %v34923_v9, %v25666_v13 }
0x38d4   : > { %31346 = vmatpush3.msra.mxu1 %v24750_v28  ;;  %v24631_v37 = vsel %vm7998_vm7, %v24623_v32, 0 }
0x38d5   : > { %31357 = vmatprep.subr.mxu1 %v32160_v10  ;;  %v24700_v42 = vand.u32 4294901760, %v24631_v37 }
0x38d7   : > { %v24701_v41 = vsub.f32 %v24631_v37, %v24700_v42  ;;  %31348 = vmatmul.mubr.f32.vlgmr.msra.gmra.mxu1 %v24700_v42 }
0x38d8   : > { %31358 = vmatpush3.msra.mxu1 %v24662_v63  ;;  %31361 = vmatprep.mubr.msk.f32.mxu1 %vm32161_vm1, %v32160_v10 }
0x38d9   : > { %31359 = vmatprep.subr.mxu1 %v32160_v10  ;;  %v24702_v46 = vand.u32 4294901760, %v24701_v41 }
0x38da   : > { %31360 = vmatpush3.msra.mxu1 %v24665_v6 }
0x38db   : > { %31371 = vmatprep.subr.mxu1 %v32160_v10  ;;  %31362 = vmatmul.mubr.f32.vlgmr.msra.gmra.mxu1 %v24702_v46  ;;  %v24703_v47 = vsub.f32 %v24701_v41, %v24702_v46 }
0x38dc   : > { %31372 = vmatpush3.msra.mxu1 %v24662_v63  ;;  %31375 = vmatprep.mubr.msk.f32.mxu1 %vm32161_vm1, %v32160_v10  ;;  %v25674_v63 = vsub.f32 %v34927_v55, %v25673_v49 }
0x38dd   : > { %31373 = vmatprep.subr.mxu1 %v32160_v10  ;;  %v24704_v34 = vand.u32 4294901760, %v24703_v47 }
0x38de   : > { %31374 = vmatpush3.msra.mxu1 %v24665_v6  ;;  %v25552_v6 = vsel %vm975_vm4, %v25547_v52, 0 }
0x38df   : > { %31341 = vmatmul.mubr.f32.vlgmr.msra.gmra.mxu0 %v24704_v34  ;;  %31376 = vmatmul.mubr.f32.vlgmr.msra.gmra.mxu1 %v24700_v42 }
0x38e0   : > { %31351 = vmatpush3.msra.mxu0 %v24740_v14  ;;  %31354 = vmatprep.mubr.msk.f32.mxu0 %vm32161_vm1, %v32160_v10 }
0x38e1   : > { %31352 = vmatprep.subr.mxu0 %v32160_v10  ;;  %31383 = vmatprep.subr.mxu1 %v32160_v10 }
0x38e2   : > { %31353 = vmatpush3.msra.mxu0 %v24747_v5  ;;  %31384 = vmatpush3.msra.mxu1 %v25210_v48  ;;  %v25625_v5 = vand.u32 4294901760, %v25552_v6 }
0x38e3   : > { %31364 = vmatprep.subr.mxu0 %v32160_v10  ;;  %31355 = vmatmul.mubr.f32.vlgmr.msra.gmra.mxu0 %v24701_v41 }
0x38e4   : > { %31365 = vmatpush3.msra.mxu0 %v24741_v15  ;;  %31368 = vmatprep.mubr.msk.f32.mxu0 %vm32161_vm1, %v32160_v10  ;;  %v25626_v14 = vsub.f32 %v25552_v6, %v25625_v5  ;;  %v25675_v15 = vand.u32 4294901760, %v25674_v63 }
0x38e5   : > { %31366 = vmatprep.subr.mxu0 %v32160_v10  ;;  %31385 = vmatprep.mubr.msk.f32.mxu1 %vm32161_vm1, %v32160_v10 }
0x38e6   : > { %31367 = vmatpush3.msra.mxu0 %v24748_v2  ;;  %31393 = vmatprep.subr.mxu1 %v32160_v10  ;;  %v25668_v2 = vand.u32 4294901760, %v25667_v36  ;;  %v25627_v16 = vand.u32 4294901760, %v25626_v14 }
0x38e7   : > { %31369 = vmatmul.mubr.f32.vlgmr.msra.gmra.mxu0 %v24700_v42  ;;  %31378 = vmatprep.subr.mxu0 %v32160_v10 }
0x38e8   : > { %31379 = vmatpush3.msra.mxu0 %v34881_v21  ;;  %31380 = vmatprep.mubr.msk.f32.mxu0 %vm32161_vm1, %v32160_v10  ;;  %v25628_v20 = vsub.f32 %v25626_v14, %v25627_v16 }
0x38e9   : > { %31388 = vmatprep.subr.mxu0 %v32160_v10 }
0x3997   : > { %v24787_v17 = vpop.f32.mrf.mxu1 }
0x3999   : > { %v31349_v19 = vpop.f32.mrf.mxu1 }
0x399b   : > { %v24938_v44 = vpop.f32.mrf.mxu1 }
0x399d   : > { %v31363_v24 = vpop.f32.mrf.mxu1 }
0x399f   : > { %v24706_v56 = vpop.f32.mrf.mxu0  ;;  %v25088_v33 = vpop.f32.mrf.mxu1 }
0x39a0   : > { %v24788_v45 = vadd.f32 %v24787_v17, %v24706_v56 }
0x39a1   : > { %v31342_v12 = vpop.f32.mrf.mxu0  ;;  %v31377_v29 = vpop.f32.mrf.mxu1 }
0x39a3   : > { %v24863_v8 = vpop.f32.mrf.mxu0 }
0x39a4   : > { %v24864_v60 = vadd.f32 %v24863_v8, %v24788_v45 }
0x39a5   : > { %v31356_v61 = vpop.f32.mrf.mxu0 }
0x39a6   : > { %v24939_v38 = vadd.f32 %v24938_v44, %v24864_v60 }
0x39a7   : > { %v25015_v43 = vpop.f32.mrf.mxu0 }
0x39a8   : > { %v25016_v51 = vadd.f32 %v25015_v43, %v24939_v38 }
0x39a9   : > { %v31370_v4 = vpop.f32.mrf.mxu0 }
0x39aa   : > { %v25089_v7 = vadd.f32 %v25088_v33, %v25016_v51 }
0x39ac   : > { %v25097_v1 = vsel %vm975_vm4, %v25089_v7, 0  ;;  %v31905_v7 = vld [vmem:[#allocation10 + $0x118] sm:$0xff] }
0x39ad   : > { %v25165_v27 = vand.u32 4294901760, %v25097_v1 }
0x39af   : > { %v25166_v53 = vsub.f32 %v25097_v1, %v25165_v27  ;;  %31386 = vmatmul.mubr.f32.vlgmr.msra.gmra.mxu1 %v25165_v27 }
0x39b0   : > { %31394 = vmatpush3.msra.mxu1 %v34881_v21  ;;  %31395 = vmatprep.mubr.msk.f32.mxu1 %vm32161_vm1, %v32160_v10 }
0x39b1   : > { %v25167_v57 = vand.u32 4294901760, %v25166_v53  ;;  %31403 = vmatprep.subr.mxu1 %v32160_v10 }
0x39b3   : > { %v25168_v18 = vsub.f32 %v25166_v53, %v25167_v57  ;;  %31396 = vmatmul.mubr.f32.vlgmr.msra.gmra.mxu1 %v25167_v57 }
0x39b4   : > { %31404 = vmatpush3.msra.mxu1 %v34881_v21  ;;  %31405 = vmatprep.mubr.msk.f32.mxu1 %vm32161_vm1, %v32160_v10  ;;  %v25629_v21 = vand.u32 4294901760, %v25628_v20 }
0x39b5   : > { %v25169_v62 = vand.u32 4294901760, %v25168_v18  ;;  %31415 = vmatprep.subr.mxu1 %v32160_v10 }
0x39b7   : > { %31381 = vmatmul.mubr.f32.vlgmr.msra.gmra.mxu0 %v25169_v62  ;;  %31406 = vmatmul.mubr.f32.vlgmr.msra.gmra.mxu1 %v25165_v27 }
0x39b8   : > { %31389 = vmatpush3.msra.mxu0 %v34884_v30  ;;  %31416 = vmatpush3.xpose.msra.mxu1 %v25668_v2 }
0x39b9   : > { %31390 = vmatprep.mubr.msk.f32.mxu0 %vm32161_vm1, %v32160_v10  ;;  %31398 = vmatprep.subr.mxu0 %v32160_v10 }
0x39ba   : > { %31417 = vmatprep.subr.mxu1 %v32160_v10  ;;  %31419 = vmatprep.mubr.msk.f32.mxu1 %vm32161_vm1, %v32160_v10 }
0x39bb   : > { %31391 = vmatmul.mubr.f32.vlgmr.msra.gmra.mxu0 %v25166_v53 }
0x39bc   : > { %31399 = vmatpush3.msra.mxu0 %v25208_v31  ;;  %31418 = vmatpush3.xpose.msra.mxu1 %v25675_v15 }
0x39bd   : > { %31400 = vmatprep.mubr.msk.f32.mxu0 %vm32161_vm1, %v32160_v10  ;;  %31408 = vmatprep.subr.mxu0 %v32160_v10 }
0x39be   : > { %31429 = vmatprep.subr.mxu1 %v32160_v10 }
0x39bf   : > { %31420 = vmatmul.mubr.f32.vlgmr.msra.gmra.mxu1 %v25625_v5  ;;  %31401 = vmatmul.mubr.f32.vlgmr.msra.gmra.mxu0 %v25165_v27 }
0x39c0   : > { %31409 = vmatpush3.xpose.msra.mxu0 %v34917_v0  ;;  %31430 = vmatpush3.xpose.msra.mxu1 %v34917_v0 }
0x39c1   : > { %31410 = vmatprep.subr.mxu0 %v32160_v10  ;;  %31431 = vmatprep.subr.mxu1 %v32160_v10 }
0x39c2   : > { %31412 = vmatprep.mubr.msk.f32.mxu0 %vm32161_vm1, %v32160_v10  ;;  %31433 = vmatprep.mubr.msk.f32.mxu1 %vm32161_vm1, %v32160_v10 }
0x39c4   : > { %31411 = vmatpush3.xpose.msra.mxu0 %v34920_v54  ;;  %31432 = vmatpush3.xpose.msra.mxu1 %v34920_v54 }
0x39c5   : > { %31422 = vmatprep.subr.mxu0 %v32160_v10  ;;  %31443 = vmatprep.subr.mxu1 %v32160_v10 }
0x39c7   : > { %31413 = vmatmul.mubr.f32.vlgmr.msra.gmra.mxu0 %v25629_v21  ;;  %31434 = vmatmul.mubr.f32.vlgmr.msra.gmra.mxu1 %v25627_v16 }
0x39c8   : > { %31423 = vmatpush3.xpose.msra.mxu0 %v34923_v9  ;;  %31444 = vmatpush3.xpose.msra.mxu1 %v34917_v0 }
0x39c9   : > { %31424 = vmatprep.subr.mxu0 %v32160_v10  ;;  %31445 = vmatprep.subr.mxu1 %v32160_v10 }
0x39ca   : > { %31426 = vmatprep.mubr.msk.f32.mxu0 %vm32161_vm1, %v32160_v10  ;;  %31447 = vmatprep.mubr.msk.f32.mxu1 %vm32161_vm1, %v32160_v10 }
0x39cc   : > { %31425 = vmatpush3.xpose.msra.mxu0 %v34927_v55  ;;  %31446 = vmatpush3.xpose.msra.mxu1 %v34920_v54  ;;  %v31904_v54 = vld [vmem:[%s32461_s14] sm:$0xff]  ;;  %s32070_s14 = scalar_lea.vmem %s28075_s28, 128 }
0x39cd   : > { %31436 = vmatprep.subr.mxu0 %v32160_v10  ;;  %31457 = vmatprep.subr.mxu1 %v32160_v10  ;;  %p32071_p9 = scmp.ne.s32.totalorder %s28075_s28, %s32070_s14 }
0x39cf   : > { %31427 = vmatmul.mubr.f32.vlgmr.msra.gmra.mxu0 %v25626_v14  ;;  %31448 = vmatmul.mubr.f32.vlgmr.msra.gmra.mxu1 %v25625_v5  ;;  %p32072_p1 = pnand %p32071_p9, %p35421_p10 }
0x39d0   : > { %31437 = vmatpush3.xpose.msra.mxu0 %v25666_v13  ;;  %31440 = vmatprep.mubr.msk.f32.mxu0 %vm32161_vm1, %v32160_v10 }
0x39d1   : > { %31438 = vmatprep.subr.mxu0 %v32160_v10  ;;  %31461 = vmatprep.mubr.msk.f32.mxu1 %vm32161_vm1, %v32160_v10  ;;  %p32073_p5 = pneg %p32072_p1 }
0x39d4   : > { %31439 = vmatpush3.xpose.msra.mxu0 %v25673_v49 }
0x39d5   : > { %31450 = vmatprep.subr.mxu0 %v32160_v10 }
0x39d7   : > { %31441 = vmatmul.mubr.f32.vlgmr.msra.gmra.mxu0 %v25625_v5 }
0x39d8   : > { %31454 = vmatprep.mubr.msk.f32.mxu0 %vm32161_vm1, %v32160_v10 }
0x3a6f   : > { %v25247_v59 = vpop.f32.mrf.mxu1 }
0x3a71   : > { %v31387_v23 = vpop.f32.mrf.mxu1 }
0x3a73   : > { %v25395_v26 = vpop.f32.mrf.mxu1 }
0x3a75   : > { %v31397_v28 = vpop.f32.mrf.mxu1 }
0x3a77   : > { %v25171_v30 = vpop.f32.mrf.mxu0  ;;  %v25541_v32 = vpop.f32.mrf.mxu1 }
0x3a78   : > { %v25248_v37 = vadd.f32 %v25247_v59, %v25171_v30 }
0x3a79   : > { %v31382_v42 = vpop.f32.mrf.mxu0  ;;  %v31407_v31 = vpop.f32.mrf.mxu1 }
0x3a7b   : > { %v25321_v41 = vpop.f32.mrf.mxu0 }
0x3a7c   : > { %v25322_v46 = vadd.f32 %v25321_v41, %v25248_v37 }
0x3a7d   : > { %v31392_v58 = vpop.f32.mrf.mxu0 }
0x3a7e   : > { %v25396_v47 = vadd.f32 %v25395_v26, %v25322_v46 }
0x3a7f   : > { %v25712_v34 = vpop.f32.mrf.mxu1  ;;  %v25469_v48 = vpop.f32.mrf.mxu0 }
0x3a80   : > { %v25470_v17 = vadd.f32 %v25469_v48, %v25396_v47 }
0x3a81   : > { %v31421_v19 = vpop.f32.mrf.mxu1  ;;  %v31402_v44 = vpop.f32.mrf.mxu0 }
0x3a82   : > { %v25542_v24 = vadd.f32 %v25541_v32, %v25470_v17 }
0x3a84   : > { %v34992_v56 = vadd.f32 %v25542_v24, %v34863_v39 }
0x3a87   : > { %v25631_v33 = vpop.f32.mrf.mxu0  ;;  %v25863_v25 = vpop.f32.mrf.mxu1 }
0x3a88   : > { %v25713_v8 = vadd.f32 %v25712_v34, %v25631_v33 }
0x3a89   : > { %v31414_v12 = vpop.f32.mrf.mxu0  ;;  %v31435_v29 = vpop.f32.mrf.mxu1 }
0x3a8f   : > { %v25788_v45 = vpop.f32.mrf.mxu0  ;;  %v26013_v3 = vpop.f32.mrf.mxu1 }
0x3a90   : > { %v25789_v61 = vadd.f32 %v25788_v45, %v25713_v8 }
0x3a91   : > { %v31428_v11 = vpop.f32.mrf.mxu0  ;;  %v31449_v60 = vpop.f32.mrf.mxu1 }
0x3a92   : > { %v25864_v0 = vadd.f32 %v25863_v25, %v25789_v61 }
0x3a97   : > { %v25940_v38 = vpop.f32.mrf.mxu0 }
0x3a98   : > { %v25941_v50 = vadd.f32 %v25940_v38, %v25864_v0 }
0x3a99   : > { %v31442_v43 = vpop.f32.mrf.mxu0 }
0x3a9a   : > { %v26014_v51 = vadd.f32 %v26013_v3, %v25941_v50 }
0x3a9c   : > { %v26017_v4 = vmul.f32 0.35355338, %v26014_v51 }
0x3a9e   : > { %v26018_v39 = vadd.f32 %v31904_v54, %v26017_v4 }
0x3aa0   : > { %v26019_v9 = vsel %vm7998_vm7, %v26018_v39, -inf }
0x3aa1   : > { %26020 = vmax.xlane.f32.xlu1 %v26019_v9 }
0x3ab2   : > { %26030 = vrot.lane.b32.xlu1 %v34558_v35, %s32170_s30 }
0x3ab6   : > { %26499 = vrot.lane.b32.xlu1 %v31905_v7, %s32162_s8  ;;  %s32173_s8 = smov [#allocation13]  }
0x3ab7   : > { %s32074_s1 = sshll.u32 %s32173_s8, 4  ;;  %s32075_s1 = int_to_ptr.vmem [resolvable:$false] %s32074_s1 }
0x3ab8   : > { %s32076_s25 = scalar_lea.vmem %s32075_s1, 256  ;;  %p32077_p12 = scmp.lt.s32.totalorder %s28075_s28, %s32075_s1 }
0x3ab9   : > { %p32078_p6 = scmp.lt.s32.totalorder %s32076_s25, %s32070_s14 }
0x3abb   : > { %p32079_p13 = por %p32078_p6, %p32077_p12 }
0x3abd   : > { %p32080_p2 = pnand %p32079_p13, %p32073_p5 }
0x3b2a   : > { %v26021_v1 = vpop.xlane.xlu1 %26020 }
0x3b2b   : > { %v26022_v27 = vsub.f32 %v26018_v39, %v26021_v1 }
0x3b2d   : > { %v26023_v55 = vmul.f32 1.442695, %v26022_v27 }
0x3b2e   : > { %v26031_v53 = vpop.permute.xlu1 %26030 }
0x3b2f   : > { %31879 = vpow2.f32 %v26023_v55  ;;  %v26071_v57 = vand.u32 4294901760, %v26031_v53 }
0x3b31   : > { %v26153_v36 = vsub.f32 %v26031_v53, %v26071_v57 }
0x3b32   : > { %v26500_v30 = vpop.permute.xlu1 %26499 }
0x3b33   : > { %v26154_v18 = vand.u32 4294901760, %v26153_v36  ;;  %v26536_v32 = vand.u32 4294901760, %v26500_v30 }
0x3b35   : > { %v26155_v63 = vsub.f32 %v26153_v36, %v26154_v18  ;;  %v26613_v37 = vsub.f32 %v26500_v30, %v26536_v32 }
0x3b37   : > { %v26156_v15 = vand.u32 4294901760, %v26155_v63  ;;  %v26614_v42 = vand.u32 4294901760, %v26613_v37 }
0x3b39   : > { %v26615_v31 = vsub.f32 %v26613_v37, %v26614_v42 }
0x3b3b   : > { %v26616_v41 = vand.u32 4294901760, %v26615_v31 }
0x3b3c   : > { %v31880_v13 = vpop.eup %31879 }
0x3b3d   : > { %v26025_v52 = vsel %vm7998_vm7, %v31880_v13, 0.0 }
0x3b3e   : > { %26026 = vadd.xlane.f32.xlu0 %v26025_v52 }
0x3b54   : > { %26032 = vrot.lane.b32.xlu0 %v34556_v40, %s32170_s30 }
0x3bc7   : > { %v26027_v49 = vpop.xlane.xlu0 %26026 }
0x3bc8   : > { %31881 = vrcp.f32 %v26027_v49 }
0x3bcb   : > { %v26033_v35 = vpop.permute.xlu0 %26032 }
0x3bcc   : > { %v26068_v6 = vand.u32 4294901760, %v26033_v35 }
0x3bce   : > { %v26146_v5 = vsub.f32 %v26033_v35, %v26068_v6  ;;  %31451 = vmatpush3.msra.mxu0 %v26068_v6 }
0x3bcf   : > { %31452 = vmatprep.subr.mxu0 %v32160_v10 }
0x3bd0   : > { %v26147_v62 = vand.u32 4294901760, %v26146_v5  ;;  %31453 = vmatpush3.msra.mxu0 %v26071_v57 }
0x3bd1   : > { %31464 = vmatprep.subr.mxu0 %v32160_v10 }
0x3bd2   : > { %v26148_v2 = vsub.f32 %v26146_v5, %v26147_v62 }
0x3bd4   : > { %v26149_v14 = vand.u32 4294901760, %v26148_v2 }
0x3bd5   : > { %v31882_v40 = vpop.eup %31881 }
0x3bd6   : > { %v26029_v16 = vmul.f32 %v31882_v40, %v31880_v13  ;;  %31458 = vmatpush3.msra.mxu1 %v26149_v14 }
0x3bd7   : > { %31459 = vmatprep.subr.mxu1 %v32160_v10 }
0x3bd8   : > { %31460 = vmatpush3.msra.mxu1 %v26156_v15  ;;  %v26037_v20 = vsel %vm7998_vm7, %v26029_v16, 0 }
0x3bd9   : > { %31471 = vmatprep.subr.mxu1 %v32160_v10  ;;  %v26106_v21 = vand.u32 4294901760, %v26037_v20 }
0x3bdb   : > { %v26107_v59 = vsub.f32 %v26037_v20, %v26106_v21  ;;  %31462 = vmatmul.mubr.f32.vlgmr.msra.gmra.mxu1 %v26106_v21 }
0x3bdc   : > { %31472 = vmatpush3.msra.mxu1 %v26068_v6  ;;  %31475 = vmatprep.mubr.msk.f32.mxu1 %vm32161_vm1, %v32160_v10 }
0x3bdd   : > { %31473 = vmatprep.subr.mxu1 %v32160_v10  ;;  %v26108_v23 = vand.u32 4294901760, %v26107_v59 }
0x3bde   : > { %31474 = vmatpush3.msra.mxu1 %v26071_v57 }
0x3bdf   : > { %31485 = vmatprep.subr.mxu1 %v32160_v10  ;;  %31476 = vmatmul.mubr.f32.vlgmr.msra.gmra.mxu1 %v26108_v23  ;;  %v26109_v26 = vsub.f32 %v26107_v59, %v26108_v23  ;;  %v14238_v23 = vld [vmem:[#allocation10 + $0x128] sm:$0xff] }
0x3be0   : > { %31486 = vmatpush3.msra.mxu1 %v26068_v6  ;;  %31489 = vmatprep.mubr.msk.f32.mxu1 %vm32161_vm1, %v32160_v10 }
0x3be1   : > { %31487 = vmatprep.subr.mxu1 %v32160_v10  ;;  %v26110_v28 = vand.u32 4294901760, %v26109_v26 }
0x3be2   : > { %31488 = vmatpush3.msra.mxu1 %v26071_v57 }
0x3be3   : > { %31455 = vmatmul.mubr.f32.vlgmr.msra.gmra.mxu0 %v26110_v28  ;;  %31490 = vmatmul.mubr.f32.vlgmr.msra.gmra.mxu1 %v26106_v21  ;;  %v14237_v28 = vld [vmem:[#allocation10 + $0x120] sm:$0xff] }
0x3be4   : > { %31465 = vmatpush3.msra.mxu0 %v26146_v5  ;;  %31468 = vmatprep.mubr.msk.f32.mxu0 %vm32161_vm1, %v32160_v10  ;;  %v35060_v30 = vand.u32 4294901760, %v14237_v28 }
0x3be5   : > { %31466 = vmatprep.subr.mxu0 %v32160_v10  ;;  %31497 = vmatprep.subr.mxu1 %v32160_v10 }
0x3be6   : > { %31467 = vmatpush3.msra.mxu0 %v26153_v36  ;;  %31499 = vmatprep.mubr.msk.f32.mxu1 %vm32161_vm1, %v32160_v10  ;;  %v35073_v31 = vsub.f32 %v14237_v28, %v35060_v30 }
0x3be7   : > { %31478 = vmatprep.subr.mxu0 %v32160_v10  ;;  %31469 = vmatmul.mubr.f32.vlgmr.msra.gmra.mxu0 %v26107_v59  ;;  %v14239_v59 = vld [vmem:[#allocation10 + $0x130] sm:$0xff] }
0x3be8   : > { %31479 = vmatpush3.msra.mxu0 %v26147_v62  ;;  %31482 = vmatprep.mubr.msk.f32.mxu0 %vm32161_vm1, %v32160_v10  ;;  %v35056_v26 = vand.u32 4294901760, %v14239_v59 }
0x3be9   : > { %31480 = vmatprep.subr.mxu0 %v32160_v10  ;;  %31498 = vmatpush3.msra.mxu1 %v26616_v41 }
0x3bea   : > { %31481 = vmatpush3.msra.mxu0 %v26154_v18  ;;  %31507 = vmatprep.subr.mxu1 %v32160_v10  ;;  %v28270_v18 = vld [vmem:[#allocation11 + $0x13] ss:$0 sm:$0xff] }
0x3beb   : > { %31483 = vmatmul.mubr.f32.vlgmr.msra.gmra.mxu0 %v26106_v21  ;;  %31492 = vmatprep.subr.mxu0 %v32160_v10  ;;  %v14240_v21 = vld [vmem:[#allocation10 + $0x138] sm:$0xff] }
0x3bec   : > { %31494 = vmatprep.mubr.msk.f32.mxu0 %vm32161_vm1, %v32160_v10  ;;  %31493 = vmatpush3.msra.mxu0 %v26536_v32 }
0x3bed   : > { %31502 = vmatprep.subr.mxu0 %v32160_v10 }
0x3c9b   : > { %v26193_v46 = vpop.f32.mrf.mxu1 }
0x3c9d   : > { %v31463_v58 = vpop.f32.mrf.mxu1 }
0x3c9f   : > { %v26344_v47 = vpop.f32.mrf.mxu1 }
0x3ca1   : > { %v31477_v34 = vpop.f32.mrf.mxu1 }
0x3ca3   : > { %v26112_v48 = vpop.f32.mrf.mxu0  ;;  %v26494_v17 = vpop.f32.mrf.mxu1 }
0x3ca4   : > { %v26194_v24 = vadd.f32 %v26193_v46, %v26112_v48 }
0x3ca5   : > { %v31456_v19 = vpop.f32.mrf.mxu0  ;;  %v31491_v44 = vpop.f32.mrf.mxu1 }
0x3ca7   : > { %v26269_v33 = vpop.f32.mrf.mxu0 }
0x3ca8   : > { %v26270_v25 = vadd.f32 %v26269_v33, %v26194_v24 }
0x3ca9   : > { %v31470_v12 = vpop.f32.mrf.mxu0 }
0x3caa   : > { %v26345_v29 = vadd.f32 %v26344_v47, %v26270_v25  ;;  %v27122_v47 = vand.u32 4294901760, %v35073_v31 }
0x3cab   : > { %v26421_v45 = vpop.f32.mrf.mxu0 }
0x3cac   : > { %v26422_v3 = vadd.f32 %v26421_v45, %v26345_v29  ;;  %v27123_v24 = vsub.f32 %v35073_v31, %v27122_v47 }
0x3cad   : > { %v31484_v8 = vpop.f32.mrf.mxu0 }
0x3cae   : > { %v26495_v11 = vadd.f32 %v26494_v17, %v26422_v3  ;;  %v27124_v25 = vand.u32 4294901760, %v27123_v24 }
0x3cb0   : > { %v26503_v60 = vsel %vm975_vm4, %v26495_v11, 0 }
0x3cb1   : > { %v26571_v61 = vand.u32 4294901760, %v26503_v60 }
0x3cb3   : > { %v26572_v0 = vsub.f32 %v26503_v60, %v26571_v61  ;;  %31500 = vmatmul.mubr.f32.vlgmr.msra.gmra.mxu1 %v26571_v61 }
0x3cb4   : > { %31508 = vmatpush3.msra.mxu1 %v26536_v32  ;;  %31509 = vmatprep.mubr.msk.f32.mxu1 %vm32161_vm1, %v32160_v10 }
0x3cb5   : > { %v26573_v38 = vand.u32 4294901760, %v26572_v0  ;;  %31517 = vmatprep.subr.mxu1 %v32160_v10 }
0x3cb7   : > { %v26574_v50 = vsub.f32 %v26572_v0, %v26573_v38  ;;  %31510 = vmatmul.mubr.f32.vlgmr.msra.gmra.mxu1 %v26573_v38 }
0x3cb8   : > { %31518 = vmatpush3.msra.mxu1 %v26536_v32  ;;  %31519 = vmatprep.mubr.msk.f32.mxu1 %vm32161_vm1, %v32160_v10 }
0x3cb9   : > { %v26575_v43 = vand.u32 4294901760, %v26574_v50  ;;  %31533 = vmatprep.subr.mxu1 %v32160_v10 }
0x3cbb   : > { %31495 = vmatmul.mubr.f32.vlgmr.msra.gmra.mxu0 %v26575_v43  ;;  %31520 = vmatmul.mubr.f32.vlgmr.msra.gmra.mxu1 %v26571_v61  ;;  %v28272_v43 = vld [vmem:[#allocation11 + $0x1b] ss:$0 sm:$0xff] }
0x3cbc   : > { %31503 = vmatpush3.msra.mxu0 %v26613_v37  ;;  %31504 = vmatprep.mubr.msk.f32.mxu0 %vm32161_vm1, %v32160_v10  ;;  %v35066_v37 = vsub.f32 %v14239_v59, %v35056_v26 }
0x3cbd   : > { %31512 = vmatprep.subr.mxu0 %v32160_v10  ;;  %31541 = vmatprep.mubr.msk.f32.mxu1 %vm32161_vm1, %v32160_v10 }
0x3cbe   : > { %v27108_v46 = vand.u32 4294901760, %v35066_v37 }
0x3cbf   : > { %31505 = vmatmul.mubr.f32.vlgmr.msra.gmra.mxu0 %v26572_v0  ;;  %v28271_v0 = vld [vmem:[#allocation11 + $0x1a] ss:$0 sm:$0xff] }
0x3cc0   : > { %31513 = vmatpush3.msra.mxu0 %v26614_v42  ;;  %31514 = vmatprep.mubr.msk.f32.mxu0 %vm32161_vm1, %v32160_v10  ;;  %v27109_v48 = vsub.f32 %v35066_v37, %v27108_v46 }
0x3cc1   : > { %31522 = vmatprep.subr.mxu0 %v32160_v10 }
0x3cc2   : > { %v27110_v44 = vand.u32 4294901760, %v27109_v48 }
0x3cc3   : > { %31515 = vmatmul.mubr.f32.vlgmr.msra.gmra.mxu0 %v26571_v61 }
0x3cc4   : > { %31530 = vmatprep.mubr.msk.f32.mxu0 %vm32161_vm1, %v32160_v10 }
0x3d73   : > { %v26653_v51 = vpop.f32.mrf.mxu1 }
0x3d75   : > { %v31501_v4 = vpop.f32.mrf.mxu1 }
0x3d77   : > { %v26801_v54 = vpop.f32.mrf.mxu1 }
0x3d79   : > { %v31511_v39 = vpop.f32.mrf.mxu1 }
0x3d7b   : > { %v26577_v9 = vpop.f32.mrf.mxu0  ;;  %v26947_v7 = vpop.f32.mrf.mxu1 }
0x3d7c   : > { %v26654_v55 = vadd.f32 %v26653_v51, %v26577_v9 }
0x3d7d   : > { %v31496_v1 = vpop.f32.mrf.mxu0  ;;  %v31521_v27 = vpop.f32.mrf.mxu1 }
0x3d7f   : > { %v26727_v13 = vpop.f32.mrf.mxu0 }
0x3d80   : > { %v26728_v52 = vadd.f32 %v26727_v13, %v26654_v55  ;;  %v14248_v55 = vld [vmem:[#allocation10 + $0x178] sm:$0xff] }
0x3d81   : > { %v31506_v53 = vpop.f32.mrf.mxu0  ;;  %v35151_v13 = vand.u32 4294901760, %v14248_v55 }
0x3d82   : > { %v26802_v57 = vadd.f32 %v26801_v54, %v26728_v52  ;;  %v14247_v52 = vld [vmem:[#allocation10 + $0x170] sm:$0xff] }
0x3d83   : > { %v26875_v49 = vpop.f32.mrf.mxu0  ;;  %v35154_v53 = vsub.f32 %v14248_v55, %v35151_v13 }
0x3d84   : > { %v26876_v36 = vadd.f32 %v26875_v49, %v26802_v57  ;;  %v35156_v57 = vand.u32 4294901760, %v14247_v52  ;;  %v14246_v49 = vld [vmem:[#allocation10 + $0x168] sm:$0xff] }
0x3d85   : > { %v31516_v35 = vpop.f32.mrf.mxu0 }
0x3d86   : > { %v26948_v6 = vadd.f32 %v26947_v7, %v26876_v36  ;;  %v27586_v36 = vand.u32 4294901760, %v35154_v53  ;;  %v35162_v35 = vsub.f32 %v14247_v52, %v35156_v57 }
0x3d88   : > { %v26951_v5 = vadd.f32 %v26948_v6, %v34992_v56  ;;  %v35054_v56 = vand.u32 4294901760, %v14240_v21  ;;  %v35164_v6 = vand.u32 4294901760, %v14246_v49 }
0x3d8a   : > { %v26956_v62 = vadd.f32 %v28270_v18, %v26951_v5  ;;  %v35063_v32 = vsub.f32 %v14240_v21, %v35054_v56  ;;  %31523 = vmatpush3.msra.mxu0 %v35054_v56  ;;  %v14245_v18 = vld [vmem:[#allocation10 + $0x160] sm:$0xff]  ;;  %v27587_v5 = vsub.f32 %v35154_v53, %v27586_v36 }
0x3d8b   : > { %31524 = vmatprep.subr.mxu0 %v32160_v10 }
0x3d8c   : > { %v35048_v63 = vadd.f32 %v26956_v62, %v34342_v22  ;;  %v35058_v22 = vand.u32 4294901760, %v14238_v23  ;;  %v27101_v41 = vand.u32 4294901760, %v35063_v32  ;;  %31525 = vmatpush3.msra.mxu0 %v35056_v26  ;;  %v27593_v62 = vand.u32 4294901760, %v35162_v35 }
0x3d8d   : > { %31526 = vmatprep.subr.mxu0 %v32160_v10 }
0x3d8e   : > { %v26958_v2 = vsel %vm448_vm0, %v35048_v63, 0.0  ;;  %v35069_v42 = vsub.f32 %v14238_v23, %v35058_v22  ;;  %v27102_v34 = vsub.f32 %v35063_v32, %v27101_v41  ;;  %31527 = vmatpush3.msra.mxu0 %v35058_v22  ;;  %v14243_v23 = vld [vmem:[#allocation10 + $0x150] sm:$0xff] }
0x3d8f   : > { %26959 = vadd.xlane.f32.xlu0 %v26958_v2  ;;  %31528 = vmatprep.subr.mxu0 %v32160_v10  ;;  %v35173_v2 = vsub.f32 %v14246_v49, %v35164_v6  ;;  %v35194_v28 = vand.u32 4294901760, %v14243_v23 }
0x3d90   : > { %v27115_v58 = vand.u32 4294901760, %v35069_v42  ;;  %v27103_v19 = vand.u32 4294901760, %v27102_v34  ;;  %31529 = vmatpush3.msra.mxu0 %v35060_v30 }
0x3d91   : > { %31544 = vmatprep.subr.mxu0 %v32160_v10 }
0x3d92   : > { %v27116_v17 = vsub.f32 %v35069_v42, %v27115_v58  ;;  %31534 = vmatpush3.msra.mxu1 %v27103_v19 }
0x3d93   : > { %31535 = vmatprep.subr.mxu1 %v32160_v10 }
0x3d94   : > { %v27117_v33 = vand.u32 4294901760, %v27116_v17  ;;  %31536 = vmatpush3.msra.mxu1 %v27110_v44 }
0x3d95   : > { %31537 = vmatprep.subr.mxu1 %v32160_v10 }
0x3d96   : > { %31538 = vmatpush3.msra.mxu1 %v27117_v33 }
0x3d97   : > { %31539 = vmatprep.subr.mxu1 %v32160_v10 }
0x3d98   : > { %31540 = vmatpush3.msra.mxu1 %v27124_v25 }
0x3d99   : > { %31555 = vmatprep.subr.mxu1 %v32160_v10 }
0x3e18   : > { %v26960_v14 = vpop.xlane.xlu0 %26959 }
0x3e19   : > { %v26961_v40 = vmul.f32 0.03125, %v26960_v14  ;;  %v35175_v14 = vand.u32 4294901760, %v14245_v18 }
0x3e1b   : > { %v26962_v15 = vsub.f32 %v35048_v63, %v26961_v40  ;;  %v14244_v40 = vld [vmem:[#allocation10 + $0x158] sm:$0xff]  ;;  %v35184_v21 = vsub.f32 %v14245_v18, %v35175_v14 }
0x3e1c   : > { %v35187_v59 = vand.u32 4294901760, %v14244_v40 }
0x3e1d   : > { %v26963_v16 = vmul.f32 %v26962_v15, %v26962_v15  ;;  %v26981_v38 = vmul.f32 %v28271_v0, %v26962_v15  ;;  %v27588_v15 = vand.u32 4294901760, %v27587_v5 }
0x3e1f   : > { %v26964_v20 = vsel %vm448_vm0, %v26963_v16, 0.0  ;;  %v27594_v16 = vsub.f32 %v35162_v35, %v27593_v62 }
0x3e20   : > { %26965 = vadd.xlane.f32.xlu1 %v26964_v20  ;;  %v27600_v20 = vand.u32 4294901760, %v35173_v2 }
0x3ea9   : > { %v26966_v12 = vpop.xlane.xlu1 %26965 }
0x3eaa   : > { %v26967_v29 = vmul.f32 0.032258064, %v26966_v12 }
0x3eac   : > { %31883 = vrsqrt.f32 %v26967_v29  ;;  %vm26970_vm15 = vcmp.eq.f32.partialorder %v26967_v29, inf  ;;  %v26973_v8 = vand.u32 2147483648, %v26967_v29  ;;  %vm26972_vm2 = vcmp.eq.f32.partialorder %v26967_v29, 0.0 }
0x3eb9   : > { %v31884_v45 = vpop.eup %31883 }
0x3eba   : > { %v26969_v3 = vmul.f32 %v31884_v45, %v26967_v29 }
0x3ebc   : > { %v26971_v11 = vsel %vm26970_vm15, %v26967_v29, %v26969_v3 }
0x3ebd   : > { %v26974_v60 = vsel %vm26972_vm2, %v26973_v8, %v26971_v11 }
0x3ebe   : > { %v26975_v61 = vadd.f32 1e-06, %v26974_v60 }
0x3ec0   : > { %31885 = vrcp.f32 %v26975_v61 }
0x3ecd   : > { %v31886_v50 = vpop.eup %31885 }
0x3ece   : > { %v26982_v51 = vmul.f32 %v31886_v50, %v26981_v38 }
0x3ed0   : > { %v26987_v4 = vadd.f32 %v28272_v43, %v26982_v51  ;;  %v28273_v51 = vld [vmem:[#allocation11 + $0x14] ss:$0 sm:$0xff] }
0x3ed2   : > { %v26993_v54 = vsel %vm448_vm0, %v26987_v4, 0 }
0x3ed3   : > { %v27064_v39 = vand.u32 4294901760, %v26993_v54 }
0x3ed5   : > { %v27065_v9 = vsub.f32 %v26993_v54, %v27064_v39  ;;  %31542 = vmatmul.mubr.f32.vlgmr.msra.gmra.mxu1 %v27064_v39 }
0x3ed6   : > { %31556 = vmatpush3.msra.mxu1 %v35054_v56  ;;  %31563 = vmatprep.mubr.msk.f32.mxu1 %vm32161_vm1, %v32160_v10 }
0x3ed7   : > { %31557 = vmatprep.subr.mxu1 %v32160_v10  ;;  %v27066_v7 = vand.u32 4294901760, %v27065_v9 }
0x3ed8   : > { %31558 = vmatpush3.msra.mxu1 %v35056_v26 }
0x3ed9   : > { %31559 = vmatprep.subr.mxu1 %v32160_v10  ;;  %v27067_v1 = vsub.f32 %v27065_v9, %v27066_v7 }
0x3eda   : > { %31560 = vmatpush3.msra.mxu1 %v35058_v22 }
0x3edb   : > { %31561 = vmatprep.subr.mxu1 %v32160_v10  ;;  %v27068_v27 = vand.u32 4294901760, %v27067_v1 }
0x3edc   : > { %31562 = vmatpush3.msra.mxu1 %v35060_v30 }
0x3edd   : > { %31564 = vmatmul.mubr.f32.vlgmr.msra.gmra.mxu1 %v27066_v7  ;;  %31577 = vmatprep.subr.mxu1 %v32160_v10 }
0x3ede   : > { %31531 = vmatmul.mubr.f32.vlgmr.msra.gmra.mxu0 %v27068_v27  ;;  %31578 = vmatpush3.msra.mxu1 %v35054_v56  ;;  %v27595_v56 = vand.u32 4294901760, %v27594_v16 }
0x3edf   : > { %31545 = vmatpush3.msra.mxu0 %v35063_v32  ;;  %31579 = vmatprep.subr.mxu1 %v32160_v10  ;;  %v14242_v32 = vld [vmem:[#allocation10 + $0x148] sm:$0xff] }
0x3ee0   : > { %31546 = vmatprep.subr.mxu0 %v32160_v10  ;;  %31580 = vmatpush3.msra.mxu1 %v35056_v26  ;;  %v27601_v26 = vsub.f32 %v35173_v2, %v27600_v20 }
0x3ee1   : > { %31547 = vmatpush3.msra.mxu0 %v35066_v37  ;;  %31581 = vmatprep.subr.mxu1 %v32160_v10 }
0x3ee2   : > { %31548 = vmatprep.subr.mxu0 %v32160_v10  ;;  %31582 = vmatpush3.msra.mxu1 %v35058_v22  ;;  %v27607_v22 = vand.u32 4294901760, %v35184_v21  ;;  %v27602_v37 = vand.u32 4294901760, %v27601_v26 }
0x3ee3   : > { %31549 = vmatpush3.msra.mxu0 %v35069_v42  ;;  %31583 = vmatprep.subr.mxu1 %v32160_v10 }
0x3ee4   : > { %31550 = vmatprep.subr.mxu0 %v32160_v10  ;;  %31552 = vmatprep.mubr.msk.f32.mxu0 %vm32161_vm1, %v32160_v10  ;;  %v27608_v42 = vsub.f32 %v35184_v21, %v27607_v22 }
0x3ee5   : > { %31551 = vmatpush3.msra.mxu0 %v35073_v31  ;;  %31584 = vmatpush3.msra.mxu1 %v35060_v30  ;;  %v35198_v30 = vsub.f32 %v14244_v40, %v35187_v59  ;;  %v35205_v31 = vsub.f32 %v14243_v23, %v35194_v28 }
0x3ee6   : > { %31585 = vmatprep.mubr.msk.f32.mxu1 %vm32161_vm1, %v32160_v10  ;;  %31553 = vmatmul.mubr.f32.vlgmr.msra.gmra.mxu0 %v27065_v9 }
0x3ee7   : > { %31566 = vmatprep.subr.mxu0 %v32160_v10  ;;  %31586 = vmatmul.mubr.f32.vlgmr.msra.gmra.mxu1 %v27064_v39  ;;  %v27621_v34 = vand.u32 4294901760, %v35205_v31 }
0x3ee8   : > { %31567 = vmatpush3.msra.mxu0 %v27101_v41  ;;  %31574 = vmatprep.mubr.msk.f32.mxu0 %vm32161_vm1, %v32160_v10  ;;  %v35207_v41 = vand.u32 4294901760, %v14242_v32 }
0x3ee9   : > { %31568 = vmatprep.subr.mxu0 %v32160_v10  ;;  %31607 = vmatprep.subr.mxu1 %v32160_v10  ;;  %v27622_v44 = vsub.f32 %v35205_v31, %v27621_v34 }
0x3eea   : > { %31569 = vmatpush3.msra.mxu0 %v27108_v46  ;;  %31623 = vmatprep.mubr.msk.f32.mxu1 %vm32161_vm1, %v32160_v10  ;;  %v27614_v46 = vand.u32 4294901760, %v35198_v30  ;;  %v35215_v48 = vsub.f32 %v14242_v32, %v35207_v41 }
0x3eeb   : > { %31570 = vmatprep.subr.mxu0 %v32160_v10  ;;  %31608 = vmatpush3.msra.mxu1 %v27588_v15  ;;  %v27623_v12 = vand.u32 4294901760, %v27622_v44 }
0x3eec   : > { %31571 = vmatpush3.msra.mxu0 %v27115_v58  ;;  %31609 = vmatprep.subr.mxu1 %v32160_v10  ;;  %v14241_v58 = vld [vmem:[#allocation10 + $0x140] sm:$0xff]  ;;  %v27615_v19 = vsub.f32 %v35198_v30, %v27614_v46  ;;  %v27628_v24 = vand.u32 4294901760, %v35215_v48 }
0x3eed   : > { %31572 = vmatprep.subr.mxu0 %v32160_v10  ;;  %31610 = vmatpush3.msra.mxu1 %v27595_v56  ;;  %v35217_v17 = vand.u32 4294901760, %v14241_v58 }
0x3eee   : > { %31573 = vmatpush3.msra.mxu0 %v27122_v47  ;;  %31611 = vmatprep.subr.mxu1 %v32160_v10  ;;  %v27609_v47 = vand.u32 4294901760, %v27608_v42  ;;  %v27616_v25 = vand.u32 4294901760, %v27615_v19  ;;  %v27629_v29 = vsub.f32 %v35215_v48, %v27628_v24  ;;  %v28274_v42 = vld [vmem:[#allocation11 + $0x15] ss:$0 sm:$0xff] }
0x3eef   : > { %31575 = vmatmul.mubr.f32.vlgmr.msra.gmra.mxu0 %v27064_v39  ;;  %31588 = vmatprep.subr.mxu0 %v32160_v10  ;;  %v35230_v33 = vsub.f32 %v14241_v58, %v35217_v17 }
0x3ef0   : > { %31604 = vmatprep.mubr.msk.f32.mxu0 %vm32161_vm1, %v32160_v10  ;;  %31589 = vmatpush3.msra.mxu0 %v35151_v13  ;;  %v27630_v3 = vand.u32 4294901760, %v27629_v29 }
0x3ef1   : > { %31590 = vmatprep.subr.mxu0 %v32160_v10  ;;  %31612 = vmatpush3.msra.mxu1 %v27602_v37  ;;  %v27635_v45 = vand.u32 4294901760, %v35230_v33 }
0x3ef2   : > { %31591 = vmatpush3.msra.mxu0 %v35156_v57  ;;  %31613 = vmatprep.subr.mxu1 %v32160_v10 }
0x3ef3   : > { %31592 = vmatprep.subr.mxu0 %v32160_v10  ;;  %31614 = vmatpush3.msra.mxu1 %v27609_v47  ;;  %v27636_v8 = vsub.f32 %v35230_v33, %v27635_v45 }
0x3ef4   : > { %31593 = vmatpush3.msra.mxu0 %v35164_v6  ;;  %31615 = vmatprep.subr.mxu1 %v32160_v10 }
0x3ef5   : > { %31594 = vmatprep.subr.mxu0 %v32160_v10  ;;  %31616 = vmatpush3.msra.mxu1 %v27616_v25  ;;  %v27637_v11 = vand.u32 4294901760, %v27636_v8 }
0x3ef6   : > { %31595 = vmatpush3.msra.mxu0 %v35175_v14  ;;  %31617 = vmatprep.subr.mxu1 %v32160_v10 }
0x3ef7   : > { %31596 = vmatprep.subr.mxu0 %v32160_v10  ;;  %31618 = vmatpush3.msra.mxu1 %v27623_v12 }
0x3ef8   : > { %31597 = vmatpush3.msra.mxu0 %v35187_v59  ;;  %31619 = vmatprep.subr.mxu1 %v32160_v10 }
0x3ef9   : > { %31598 = vmatprep.subr.mxu0 %v32160_v10  ;;  %31620 = vmatpush3.msra.mxu1 %v27630_v3 }
0x3efa   : > { %31599 = vmatpush3.msra.mxu0 %v35194_v28  ;;  %31621 = vmatprep.subr.mxu1 %v32160_v10 }
0x3efb   : > { %31600 = vmatprep.subr.mxu0 %v32160_v10  ;;  %31622 = vmatpush3.msra.mxu1 %v27637_v11  ;;  %v28276_v11 = vld [vmem:[#allocation11 + $0x1d] ss:$0 sm:$0xff] }
0x3efc   : > { %31601 = vmatpush3.msra.mxu0 %v35207_v41  ;;  %31645 = vmatprep.subr.mxu1 %v32160_v10 }
0x3efd   : > { %31602 = vmatprep.subr.mxu0 %v32160_v10 }
0x3efe   : > { %31603 = vmatpush3.msra.mxu0 %v35217_v17 }
0x3eff   : > { %31626 = vmatprep.subr.mxu0 %v32160_v10 }
0x3f95   : > { %v27161_v60 = vpop.f32.mrf.mxu1 }
0x3f97   : > { %v31543_v61 = vpop.f32.mrf.mxu1 }
0x3f9d   : > { %v27318_v0 = vpop.f32.mrf.mxu1 }
0x3f9e   : > { %v27070_v38 = vpop.f32.mrf.mxu0 }
0x3f9f   : > { %v31565_v50 = vpop.f32.mrf.mxu1  ;;  %v27071_v4 = vadd.f32 %v28273_v51, %v27070_v38 }
0x3fa0   : > { %v31532_v43 = vpop.f32.mrf.mxu0 }
0x3fa1   : > { %v27162_v9 = vadd.f32 %v27161_v60, %v27071_v4 }
0x3fa6   : > { %v27241_v54 = vpop.f32.mrf.mxu0 }
0x3fa7   : > { %v27476_v39 = vpop.f32.mrf.mxu1  ;;  %v27242_v27 = vadd.f32 %v27241_v54, %v27162_v9 }
0x3fa8   : > { %v31554_v7 = vpop.f32.mrf.mxu0 }
0x3fa9   : > { %v31587_v1 = vpop.f32.mrf.mxu1  ;;  %v27319_v55 = vadd.f32 %v27318_v0, %v27242_v27 }
0x3faf   : > { %v27401_v52 = vpop.f32.mrf.mxu0 }
0x3fb0   : > { %v27402_v49 = vadd.f32 %v27401_v52, %v27319_v55 }
0x3fb1   : > { %v31576_v18 = vpop.f32.mrf.mxu0 }
0x3fb2   : > { %v27477_v5 = vadd.f32 %v27476_v39, %v27402_v49 }
0x3fb4   : > { %v27480_v40 = vmax.f32 %v27477_v5, 0.0 }
0x3fb6   : > { %v27482_v15 = vsel %vm13677_vm10, %v27480_v40, 0 }
0x3fb7   : > { %v35248_v16 = vand.u32 4294901760, %v27482_v15 }
0x3fb9   : > { %v27558_v23 = vsub.f32 %v27482_v15, %v35248_v16  ;;  %31624 = vmatmul.mubr.f32.vlgmr.msra.gmra.mxu1 %v35248_v16 }
0x3fba   : > { %31646 = vmatpush3.msra.mxu1 %v35151_v13  ;;  %31661 = vmatprep.mubr.msk.f32.mxu1 %vm32161_vm1, %v32160_v10 }
0x3fbb   : > { %v27559_v56 = vand.u32 4294901760, %v27558_v23  ;;  %31647 = vmatprep.subr.mxu1 %v32160_v10 }
0x3fbc   : > { %31648 = vmatpush3.msra.mxu1 %v35156_v57 }
0x3fbd   : > { %v27560_v26 = vsub.f32 %v27558_v23, %v27559_v56  ;;  %31649 = vmatprep.subr.mxu1 %v32160_v10 }
0x3fbe   : > { %31650 = vmatpush3.msra.mxu1 %v35164_v6 }
0x3fbf   : > { %v27561_v32 = vand.u32 4294901760, %v27560_v26  ;;  %31651 = vmatprep.subr.mxu1 %v32160_v10 }
0x3fc0   : > { %31652 = vmatpush3.msra.mxu1 %v35175_v14 }
0x3fc1   : > { %31653 = vmatprep.subr.mxu1 %v32160_v10  ;;  %31605 = vmatmul.mubr.f32.vlgmr.msra.gmra.mxu0 %v27561_v32 }
0x3fc2   : > { %31627 = vmatpush3.msra.mxu0 %v35154_v53  ;;  %31654 = vmatpush3.msra.mxu1 %v35187_v59 }
0x3fc3   : > { %31628 = vmatprep.subr.mxu0 %v32160_v10  ;;  %31655 = vmatprep.subr.mxu1 %v32160_v10 }
0x3fc4   : > { %31629 = vmatpush3.msra.mxu0 %v35162_v35  ;;  %31656 = vmatpush3.msra.mxu1 %v35194_v28 }
0x3fc5   : > { %31630 = vmatprep.subr.mxu0 %v32160_v10  ;;  %31657 = vmatprep.subr.mxu1 %v32160_v10 }
0x3fc6   : > { %31631 = vmatpush3.msra.mxu0 %v35173_v2  ;;  %31658 = vmatpush3.msra.mxu1 %v35207_v41 }
0x3fc7   : > { %31632 = vmatprep.subr.mxu0 %v32160_v10  ;;  %31659 = vmatprep.subr.mxu1 %v32160_v10 }
0x3fc8   : > { %31633 = vmatpush3.msra.mxu0 %v35184_v21  ;;  %31660 = vmatpush3.msra.mxu1 %v35217_v17 }
0x3fc9   : > { %31634 = vmatprep.subr.mxu0 %v32160_v10  ;;  %31662 = vmatmul.mubr.f32.vlgmr.msra.gmra.mxu1 %v27559_v56 }
0x3fca   : > { %31683 = vmatprep.subr.mxu1 %v32160_v10  ;;  %31635 = vmatpush3.msra.mxu0 %v35198_v30 }
0x3fcb   : > { %31684 = vmatpush3.msra.mxu1 %v35151_v13  ;;  %31636 = vmatprep.subr.mxu0 %v32160_v10 }
0x3fcc   : > { %31685 = vmatprep.subr.mxu1 %v32160_v10  ;;  %31637 = vmatpush3.msra.mxu0 %v35205_v31 }
0x3fcd   : > { %31686 = vmatpush3.msra.mxu1 %v35156_v57  ;;  %31638 = vmatprep.subr.mxu0 %v32160_v10 }
0x3fce   : > { %31687 = vmatprep.subr.mxu1 %v32160_v10  ;;  %31639 = vmatpush3.msra.mxu0 %v35215_v48 }
0x3fcf   : > { %31688 = vmatpush3.msra.mxu1 %v35164_v6  ;;  %31640 = vmatprep.subr.mxu0 %v32160_v10 }
0x3fd0   : > { %31689 = vmatprep.subr.mxu1 %v32160_v10  ;;  %31641 = vmatpush3.msra.mxu0 %v35230_v33 }
0x3fd1   : > { %31642 = vmatprep.mubr.msk.f32.mxu0 %vm32161_vm1, %v32160_v10  ;;  %31690 = vmatpush3.msra.mxu1 %v35175_v14 }
0x3fd2   : > { %31643 = vmatmul.mubr.f32.vlgmr.msra.gmra.mxu0 %v27558_v23  ;;  %31664 = vmatprep.subr.mxu0 %v32160_v10 }
0x3fd3   : > { %31691 = vmatprep.subr.mxu1 %v32160_v10  ;;  %31665 = vmatpush3.msra.mxu0 %v27586_v36 }
0x3fd4   : > { %31692 = vmatpush3.msra.mxu1 %v35187_v59  ;;  %31666 = vmatprep.subr.mxu0 %v32160_v10 }
0x3fd5   : > { %31693 = vmatprep.subr.mxu1 %v32160_v10  ;;  %31667 = vmatpush3.msra.mxu0 %v27593_v62 }
0x3fd6   : > { %31694 = vmatpush3.msra.mxu1 %v35194_v28  ;;  %31668 = vmatprep.subr.mxu0 %v32160_v10 }
0x3fd7   : > { %31695 = vmatprep.subr.mxu1 %v32160_v10  ;;  %31669 = vmatpush3.msra.mxu0 %v27600_v20 }
0x3fd8   : > { %31696 = vmatpush3.msra.mxu1 %v35207_v41  ;;  %31670 = vmatprep.subr.mxu0 %v32160_v10 }
0x3fd9   : > { %31697 = vmatprep.subr.mxu1 %v32160_v10  ;;  %31671 = vmatpush3.msra.mxu0 %v27607_v22 }
0x3fda   : > { %31698 = vmatpush3.msra.mxu1 %v35217_v17  ;;  %31699 = vmatprep.mubr.msk.f32.mxu1 %vm32161_vm1, %v32160_v10 }
0x3fdb   : > { %31672 = vmatprep.subr.mxu0 %v32160_v10  ;;  %31700 = vmatmul.mubr.f32.vlgmr.msra.gmra.mxu1 %v35248_v16 }
0x3fdc   : > { %31673 = vmatpush3.msra.mxu0 %v27614_v46  ;;  %31680 = vmatprep.mubr.msk.f32.mxu0 %vm32161_vm1, %v32160_v10 }
0x3fdd   : > { %31674 = vmatprep.subr.mxu0 %v32160_v10 }
0x3fde   : > { %31675 = vmatpush3.msra.mxu0 %v27621_v34 }
0x3fdf   : > { %31676 = vmatprep.subr.mxu0 %v32160_v10 }
0x3fe0   : > { %31677 = vmatpush3.msra.mxu0 %v27628_v24 }
0x3fe1   : > { %31678 = vmatprep.subr.mxu0 %v32160_v10 }
0x3fe2   : > { %31679 = vmatpush3.msra.mxu0 %v27635_v45  ;;  %v28275_v45 = vld [vmem:[#allocation11 + $0x1c] ss:$0 sm:$0xff] }
0x3fe3   : > { %31681 = vmatmul.mubr.f32.vlgmr.msra.gmra.mxu0 %v35248_v16 }
0x4079   : > { %v27674_v13 = vpop.f32.mrf.mxu1 }
0x407b   : > { %v31625_v53 = vpop.f32.mrf.mxu1 }
0x4081   : > { %v27563_v57 = vpop.f32.mrf.mxu0 }
0x4082   : > { %v27675_v20 = vadd.f32 %v27674_v13, %v27563_v57 }
0x4083   : > { %v31606_v36 = vpop.f32.mrf.mxu0 }
0x4089   : > { %v27843_v35 = vpop.f32.mrf.mxu1 }
0x408b   : > { %v31663_v6 = vpop.f32.mrf.mxu1 }
0x4092   : > { %v27762_v62 = vpop.f32.mrf.mxu0 }
0x4093   : > { %v27763_v59 = vadd.f32 %v27762_v62, %v27675_v20 }
0x4094   : > { %v31644_v2 = vpop.f32.mrf.mxu0 }
0x4095   : > { %v27844_v22 = vadd.f32 %v27843_v35, %v27763_v59 }
0x409b   : > { %v28017_v14 = vpop.f32.mrf.mxu1 }
0x409d   : > { %v31701_v21 = vpop.f32.mrf.mxu1 }
0x40a3   : > { %v27938_v28 = vpop.f32.mrf.mxu0 }
0x40a4   : > { %v27939_v10 = vadd.f32 %v27938_v28, %v27844_v22 }
0x40a5   : > { %v31682_v30 = vpop.f32.mrf.mxu0 }
0x40a6   : > { %v28018_v37 = vadd.f32 %v28017_v14, %v27939_v10 }
0x40a8   : > { %v28021_v31 = vadd.f32 %v28018_v37, %v35048_v63 }
0x40aa   : > { %v28026_v41 = vadd.f32 %v28274_v42, %v28021_v31 }
0x40ac   : > { %v28029_v46 = vsel %vm448_vm0, %v28026_v41, 0.0 }
0x40ad   : > { %28030 = vadd.xlane.f32.xlu0 %v28029_v46 }
0x4136   : > { %v28031_v58 = vpop.xlane.xlu0 %28030 }
0x4137   : > { %v28032_v47 = vmul.f32 0.03125, %v28031_v58 }
0x4139   : > { %v28033_v34 = vsub.f32 %v28026_v41, %v28032_v47 }
0x413b   : > { %v28034_v48 = vmul.f32 %v28033_v34, %v28033_v34  ;;  %v28052_v3 = vmul.f32 %v28275_v45, %v28033_v34 }
0x413d   : > { %v28035_v17 = vsel %vm448_vm0, %v28034_v48, 0.0 }
0x413e   : > { %28036 = vadd.xlane.f32.xlu0 %v28035_v17 }
0x41c7   : > { %v28037_v19 = vpop.xlane.xlu0 %28036 }
0x41c8   : > { %v28038_v44 = vmul.f32 0.032258064, %v28037_v19 }
0x41ca   : > { %31887 = vrsqrt.f32 %v28038_v44  ;;  %vm28041_vm1 = vcmp.eq.f32.partialorder %v28038_v44, inf  ;;  %v28044_v63 = vand.u32 2147483648, %v28038_v44  ;;  %vm28043_vm3 = vcmp.eq.f32.partialorder %v28038_v44, 0.0 }
0x41d7   : > { %v31888_v24 = vpop.eup %31887 }
0x41d8   : > { %v28040_v33 = vmul.f32 %v31888_v24, %v28038_v44 }
0x41da   : > { %v28042_v25 = vsel %vm28041_vm1, %v28038_v44, %v28040_v33 }
0x41db   : > { %v28045_v12 = vsel %vm28043_vm3, %v28044_v63, %v28042_v25 }
0x41dc   : > { %v28046_v29 = vadd.f32 1e-06, %v28045_v12 }
0x41de   : > { %31889 = vrcp.f32 %v28046_v29 }
0x41eb   : > { %v31890_v8 = vpop.eup %31889 }
0x41ec   : > { %v28053_v60 = vmul.f32 %v31890_v8, %v28052_v3 }
0x41ee   : > { %v28058_v61 = vadd.f32 %v28276_v11, %v28053_v60 }
0x41f0   : > { %28059 = vst.msk [vmem:[%s406_s11] sm:$0xff] %vm448_vm0, %v28058_v61 }
0x41f1   : > { %32083 = shalt.err (!%p32080_p2)
}
0x41f2   : > { %s32084_s0 = scalar_lea.hbm %s28072_s29, 128  ;;  %s32088_s26 = scalar_lea.hbm %s35378_s6, 256 }
0x41f3   : > { %p32085_p0 = scmp.ne.s32.totalorder %s28072_s29, %s32084_s0  ;;  %p32089_p7 = scmp.lt.s32.totalorder %s28072_s29, %s35378_s6 }
0x41f4   : > { %p32090_p3 = scmp.lt.s32.totalorder %s32088_s26, %s32084_s0 }
0x41f5   : > { %p32086_p11 = pnand %p32085_p0, %p35421_p10 }
0x41f6   : > { %p32091_p8 = por %p32090_p3, %p32089_p7 }
0x41f7   : > { %p32087_p4 = pneg %p32086_p11 }
0x41f9   : > { %p32092_p9 = pnand %p32091_p8, %p32087_p4 }
0x41fb   : > { %32095 = shalt.err (!%p32092_p9)
}
0x41fc   : > { %31718 = dma.vmem_to_hbm [thread:$0]  (%p35421_p10), %s28075_s28, 128, %s28072_s29, %s28061_s15  }
0x41fd PF: > { %s28086_s17 = sand.u32 1, %s32138_s21   ;;  %p35422_p1 = scmp.ne.s32.totalorder %s35400_s10, 0 }
0x41fe   : > { %p35423_p5 = scmp.ge.s32.totalorder %s32150_s24, 2  ;;  %s28087_s7 = scalar_lea.sflag [#allocation4], %s28086_s17 }
0x4200   : > { %p31741_p12 = pnand %p35423_p5, %p35422_p1 }
0x4202   : > { %p31742_p6 = pneg %p31741_p12 }
0x4204   : > { %32133 = dma.done.wait (%p31742_p6), %s28087_s7, 128  }
0x4205   : > { %32135 = vsyncadd (%p31742_p6), %s28087_s7, 4294967168  ;;  %s35424_s30 = sld [smem:[#allocation20_spill]]  ;;  %p26_p13 = scmp.ge.s32.totalorder %s32234_s27, 4  }
0x4206   : > { %s35425_s23 = sld [smem:[#allocation21_spill]]  ;;  %s35426_s21 = smov %s32142_s22 }
0x4207   : > { %s35428_s24 = smov %s32234_s27  ;;  %28 = sbr.rel (!%p26_p13) target bundleno = 15 (0xf), region = 136 }
0x420b   : > { %s35427_s22 = smov %s35424_s30 }
0x420c   :  { %28092 = vsyncpa [#allocation3], 1 }
0x420d   :  { %28094 = vsyncpa [#allocation3 + $0x1], 1 }
0x420e   :  { %28095 = vsyncpa [#allocation6], 1 }
0x420f   :  { %28097 = vsyncpa [#allocation6 + $0x1], 1 }
0x4210   :  { %28098 = vsyncpa [#allocation9], 1 }
0x4211   :  { %28100 = vsyncpa [#allocation9 + $0x1], 1 }
0x4212   :  { %28101 = vsyncpa [#allocation12], 1 }
0x4213   :  { %28102 = vsyncpa [#allocation4], 1 }
0x4214   :  { %28104 = vsyncpa [#allocation4 + $0x1], 1 }

</bundles_post_ra>
